<compile_context>
chip_gen: v6e
topology: v6e:2x2x1
jax: 0.10.0
libtpu: 0.0.40
codegen_flags: <defaults>
</compile_context>

<pallas_src>
import functools

import jax
import jax.numpy as jnp
from jax import lax
from jax.experimental import pallas as pl
from jax.experimental.pallas import tpu as pltpu

NUM_CLASS = 15
SEQ_LEN = 39            # implied by fc1 = Linear(39 * 16, 30)
FC1_OUT = 30
BATCH_TILE = 128        # samples per grid step (one full lane tile of batch)


def _shifted_taps(h, bt):
    """h: (C, L*bt) with lane index = l*bt + b.  Returns (value at l-1, value
    at l+1), zero at the sample edges.  With the L-major/batch-minor layout a
    +-1 tap is a whole +-bt-lane shift, i.e. a lane-tile-aligned slice+concat
    (cheap vreg selection; no unaligned lane shifts, no mask pass needed)."""
    c, n = h.shape
    zeros = jnp.zeros((c, bt), h.dtype)
    prev = jnp.concatenate([zeros, h[:, : n - bt]], axis=1)   # value at l-1
    nxt = jnp.concatenate([h[:, bt:], zeros], axis=1)         # value at l+1
    return prev, nxt


def _conv_mxu(h, w_ref, b_ref, bt):
    """Conv1d(k=3, pad=1) + ReLU as three per-tap MXU matmuls.
    h: (Cin, L*bt) in the matmul dtype; w_ref: (3, Cout, Cin); b_ref: (Cout,1) f32."""
    hm1, hp1 = _shifted_taps(h, bt)
    y = (jnp.dot(w_ref[0], hm1, preferred_element_type=jnp.float32)
         + jnp.dot(w_ref[1], h, preferred_element_type=jnp.float32)
         + jnp.dot(w_ref[2], hp1, preferred_element_type=jnp.float32)
         + b_ref[...])
    return jnp.maximum(y, 0.0)


def cnn_kernel(x_ref, w1_ref, b1_ref, w2_ref, b2_ref, w3_ref, b3_ref,
               wfc1_ref, bfc1_ref, wout_ref, bout_ref, out_ref):
    bt = out_ref.shape[-1]                       # batch tile (lane width)
    n = x_ref.shape[-1]                          # L * bt
    L = n // bt
    cdtype = w2_ref.dtype                        # matmul operand dtype (bf16/f32)

    # conv1 (Cin=1): VPU broadcast outer product, f32 (keeps the MXU free).
    x = x_ref[0]                                 # (1, L*bt) f32
    xm1, xp1 = _shifted_taps(x, bt)
    h = w1_ref[0] * xm1 + w1_ref[1] * x + w1_ref[2] * xp1 + b1_ref[...]
    h = jnp.maximum(h, 0.0).astype(cdtype)       # (64, L*bt)

    # conv2 / conv3 on the MXU; batch rides the lane/N dimension.
    h = _conv_mxu(h, w2_ref, b2_ref, bt).astype(cdtype)   # (32, L*bt)
    h = _conv_mxu(h, w3_ref, b3_ref, bt).astype(cdtype)   # (16, L*bt)
    # F.max_pool1d(kernel_size=1) is the identity -> nothing to do.

    # fc1: stack the L lane tiles along sublanes -> (L*16, bt) slab; the
    # channel-major flatten of the PyTorch .view() is absorbed into the
    # host-side re-ordering of the fc1 weight columns.  Single MXU matmul.
    flat = jnp.concatenate([h[:, l * bt:(l + 1) * bt] for l in range(L)], axis=0)
    z = (jnp.dot(wfc1_ref[...], flat, preferred_element_type=jnp.float32)
         + bfc1_ref[...])                        # (30, bt)
    z = jnp.maximum(z, 0.0).astype(cdtype)

    logits = (jnp.dot(wout_ref[...], z, preferred_element_type=jnp.float32)
              + bout_ref[...])                   # (15, bt), lane-dense in batch
    m = jnp.max(logits, axis=0, keepdims=True)
    lse = m + jnp.log(jnp.sum(jnp.exp(logits - m), axis=0, keepdims=True))
    out_ref[0] = logits - lse                    # log_softmax over classes


@functools.partial(jax.jit, static_argnames=("compute_dtype",))
def cnn_forward(x, params, *, compute_dtype=jnp.bfloat16):
    """x: (B, 1, L) float32 in NCL layout like the PyTorch module. Returns (B, 15)."""
    (w1, b1, w2, b2, w3, b3, wfc1, bfc1, wout, bout) = params
    B, _, L = x.shape
    bt = BATCH_TILE
    T = -(-B // bt)                              # number of batch tiles
    Bp = T * bt

    # ---- host-side layout glue (outside the kernel) ----
    # x -> (T, 1, L*bt) with lane index l*bt + b (L-major, batch-minor).
    x2 = jnp.pad(x[:, 0, :].astype(jnp.float32), ((0, Bp - B), (0, 0)))
    x_tiles = x2.reshape(T, bt, L).transpose(0, 2, 1).reshape(T, 1, L * bt)

    w1s = jnp.transpose(w1, (2, 0, 1))                            # (3, 64, 1) f32
    b1c = b1[:, None]                                             # (64, 1) f32
    w2s = jnp.transpose(w2, (2, 0, 1)).astype(compute_dtype)      # (3, 32, 64)
    b2c = b2[:, None]
    w3s = jnp.transpose(w3, (2, 0, 1)).astype(compute_dtype)      # (3, 16, 32)
    b3c = b3[:, None]
    # fc1 weight columns re-ordered from torch's c*L+l flatten to the kernel's
    # l*16+c sublane-slab ordering.
    wfc1_re = (wfc1.reshape(FC1_OUT, 16, L).transpose(0, 2, 1)
               .reshape(FC1_OUT, 16 * L).astype(compute_dtype))   # (30, 624)
    bfc1_c = bfc1[:, None]
    wout_c = wout.astype(compute_dtype)                           # (15, 30)
    bout_c = bout[:, None]

    def full(a):
        nd = a.ndim
        return pl.BlockSpec(a.shape, lambda *args, _nd=nd: (0,) * _nd)

    grid_spec = pltpu.PrefetchScalarGridSpec(
        num_scalar_prefetch=0,
        grid=(T,),
        in_specs=[
            pl.BlockSpec((1, 1, L * bt), lambda t: (t, 0, 0)),    # one batch tile
            full(w1s), full(b1c),
            full(w2s), full(b2c),
            full(w3s), full(b3c),
            full(wfc1_re), full(bfc1_c),
            full(wout_c), full(bout_c),
        ],
        out_specs=pl.BlockSpec((1, NUM_CLASS, bt), lambda t: (t, 0, 0)),
    )

    out = pl.pallas_call(
        cnn_kernel,
        out_shape=jax.ShapeDtypeStruct((T, NUM_CLASS, bt), jnp.float32),
        grid_spec=grid_spec,
        compiler_params=pltpu.CompilerParams(
            dimension_semantics=("parallel",),       # batch tiles are independent
            vmem_limit_bytes=32 * 1024 * 1024),
    )(x_tiles, w1s, b1c, w2s, b2c, w3s, b3c, wfc1_re, bfc1_c, wout_c, bout_c)

    # (T, NUM_CLASS, bt) -> (B, NUM_CLASS)
    return out.transpose(0, 2, 1).reshape(Bp, NUM_CLASS)[:B]


def cnn_reference(x, params):
    """Pure-JAX reference matching the PyTorch forward exactly."""
    (w1, b1, w2, b2, w3, b3, wfc1, bfc1, wout, bout) = params
    dn = ("NCH", "OIH", "NCH")

    def conv(h, w, b):
        y = lax.conv_general_dilated(h, w, window_strides=(1,),
                                     padding=[(1, 1)], dimension_numbers=dn)
        return jax.nn.relu(y + b[None, :, None])

    h = conv(x, w1, b1)
    h = conv(h, w2, b2)
    h = conv(h, w3, b3)
    flat = h.reshape(h.shape[0], -1)
    z = jax.nn.relu(flat @ wfc1.T + bfc1)
    logits = z @ wout.T + bout
    return jax.nn.log_softmax(logits, axis=1)


if __name__ == "__main__":
    key = jax.random.PRNGKey(0)
    keys = jax.random.split(key, 11)

    def u(k, shape, fan_in):
        bound = 1.0 / float(fan_in) ** 0.5
        return jax.random.uniform(k, shape, jnp.float32, -bound, bound)

    # Deterministic PyTorch-default-style init (U(-1/sqrt(fan_in), +...)).
    w1 = u(keys[0], (64, 1, 3), 1 * 3);      b1 = u(keys[1], (64,), 1 * 3)
    w2 = u(keys[2], (32, 64, 3), 64 * 3);    b2 = u(keys[3], (32,), 64 * 3)
    w3 = u(keys[4], (16, 32, 3), 32 * 3);    b3 = u(keys[5], (16,), 32 * 3)
    wfc1 = u(keys[6], (FC1_OUT, 16 * SEQ_LEN), 16 * SEQ_LEN)
    bfc1 = u(keys[7], (FC1_OUT,), 16 * SEQ_LEN)
    wout = u(keys[8], (NUM_CLASS, FC1_OUT), FC1_OUT)
    bout = u(keys[9], (NUM_CLASS,), FC1_OUT)
    params = (w1, b1, w2, b2, w3, b3, wfc1, bfc1, wout, bout)

    x = jax.random.normal(keys[10], (2, 1, SEQ_LEN), jnp.float32)
    ref = cnn_reference(x, params)

    # Default path: bf16 matmul operands (f32 accumulation).
    out_bf16 = jax.block_until_ready(cnn_forward(x, params))
    assert out_bf16.shape == (2, NUM_CLASS), out_bf16.shape
    assert jnp.allclose(out_bf16, ref, atol=2.5e-2, rtol=2.5e-2), (out_bf16, ref)

    # f32 path for a tighter numerical check.
    out_f32 = jax.block_until_ready(cnn_forward(x, params, compute_dtype=jnp.float32))
    assert jnp.allclose(out_f32, ref, atol=5e-3, rtol=5e-3), (out_f32, ref)

    print("KERNEL_OK")
</pallas_src>

<mosaic_0001>
module attributes {stable_mosaic.version = 11 : i64} {
  func.func @cnn_kernel(%arg0: i32, %arg1: memref<1x1x4992xf32, #tpu.memory_space<vmem>>, %arg2: memref<3x64x1xf32, #tpu.memory_space<vmem>>, %arg3: memref<64x1xf32, #tpu.memory_space<vmem>>, %arg4: memref<3x32x64xbf16, #tpu.memory_space<vmem>>, %arg5: memref<32x1xf32, #tpu.memory_space<vmem>>, %arg6: memref<3x16x32xbf16, #tpu.memory_space<vmem>>, %arg7: memref<16x1xf32, #tpu.memory_space<vmem>>, %arg8: memref<30x624xbf16, #tpu.memory_space<vmem>>, %arg9: memref<30x1xf32, #tpu.memory_space<vmem>>, %arg10: memref<15x30xbf16, #tpu.memory_space<vmem>>, %arg11: memref<15x1xf32, #tpu.memory_space<vmem>>, %arg12: memref<1x15x128xf32, #tpu.memory_space<vmem>>) attributes {dimension_semantics = [#tpu.dimension_semantics<parallel>], iteration_bounds = array<i64: 1>, scalar_prefetch = 0 : i64, scratch_operands = 0 : i64, tpu.core_type = #tpu.core_type<tc>, window_params = [{transform_indices = @transform_0, window_bounds = array<i64: 1, 1, 4992>}, {pipeline_mode = #tpu.pipeline_mode<synchronous>, transform_indices = @transform_1, window_bounds = array<i64: 3, 64, 1>}, {pipeline_mode = #tpu.pipeline_mode<synchronous>, transform_indices = @transform_2, window_bounds = array<i64: 64, 1>}, {pipeline_mode = #tpu.pipeline_mode<synchronous>, transform_indices = @transform_3, window_bounds = array<i64: 3, 32, 64>}, {pipeline_mode = #tpu.pipeline_mode<synchronous>, transform_indices = @transform_4, window_bounds = array<i64: 32, 1>}, {pipeline_mode = #tpu.pipeline_mode<synchronous>, transform_indices = @transform_5, window_bounds = array<i64: 3, 16, 32>}, {pipeline_mode = #tpu.pipeline_mode<synchronous>, transform_indices = @transform_6, window_bounds = array<i64: 16, 1>}, {pipeline_mode = #tpu.pipeline_mode<synchronous>, transform_indices = @transform_7, window_bounds = array<i64: 30, 624>}, {pipeline_mode = #tpu.pipeline_mode<synchronous>, transform_indices = @transform_8, window_bounds = array<i64: 30, 1>}, {pipeline_mode = #tpu.pipeline_mode<synchronous>, transform_indices = @transform_9, window_bounds = array<i64: 15, 30>}, {pipeline_mode = #tpu.pipeline_mode<synchronous>, transform_indices = @transform_10, window_bounds = array<i64: 15, 1>}, {transform_indices = @transform_11, window_bounds = array<i64: 1, 15, 128>}]} {
    %c0 = arith.constant 0 : index
    %c0_0 = arith.constant 0 : index
    %c0_1 = arith.constant 0 : index
    %0 = vector.load %arg1[%c0, %c0_0, %c0_1] : memref<1x1x4992xf32, #tpu.memory_space<vmem>>, vector<1x1x4992xf32>
    %1 = vector.shape_cast %0 : vector<1x1x4992xf32> to vector<1x4992xf32>
    %cst = arith.constant 0.000000e+00 : f32
    %2 = vector.broadcast %cst : f32 to vector<1x128xf32>
    %3 = vector.extract_strided_slice %1 {offsets = [0, 0], sizes = [1, 4864], strides = [1, 1]} : vector<1x4992xf32> to vector<1x4864xf32>
    %4 = tpu.concatenate %2, %3 in 1 : vector<1x128xf32>, vector<1x4864xf32> -> vector<1x4992xf32>
    %5 = vector.extract_strided_slice %1 {offsets = [0, 128], sizes = [1, 4864], strides = [1, 1]} : vector<1x4992xf32> to vector<1x4864xf32>
    %6 = tpu.concatenate %5, %2 in 1 : vector<1x4864xf32>, vector<1x128xf32> -> vector<1x4992xf32>
    %c0_2 = arith.constant 0 : index
    %c0_3 = arith.constant 0 : index
    %c0_4 = arith.constant 0 : index
    %7 = vector.load %arg2[%c0_2, %c0_3, %c0_4] : memref<3x64x1xf32, #tpu.memory_space<vmem>>, vector<1x64x1xf32>
    %8 = vector.shape_cast %7 : vector<1x64x1xf32> to vector<64x1xf32>
    %9 = vector.broadcast %8 : vector<64x1xf32> to vector<64x4992xf32>
    %10 = vector.broadcast %4 : vector<1x4992xf32> to vector<64x4992xf32>
    %11 = arith.mulf %9, %10 : vector<64x4992xf32>
    %c1 = arith.constant 1 : index
    %c0_5 = arith.constant 0 : index
    %c0_6 = arith.constant 0 : index
    %12 = vector.load %arg2[%c1, %c0_5, %c0_6] : memref<3x64x1xf32, #tpu.memory_space<vmem>>, vector<1x64x1xf32>
    %13 = vector.shape_cast %12 : vector<1x64x1xf32> to vector<64x1xf32>
    %14 = vector.broadcast %13 : vector<64x1xf32> to vector<64x4992xf32>
    %15 = vector.broadcast %1 : vector<1x4992xf32> to vector<64x4992xf32>
    %16 = arith.mulf %14, %15 : vector<64x4992xf32>
    %17 = arith.addf %11, %16 : vector<64x4992xf32>
    %c2 = arith.constant 2 : index
    %c0_7 = arith.constant 0 : index
    %c0_8 = arith.constant 0 : index
    %18 = vector.load %arg2[%c2, %c0_7, %c0_8] : memref<3x64x1xf32, #tpu.memory_space<vmem>>, vector<1x64x1xf32>
    %19 = vector.shape_cast %18 : vector<1x64x1xf32> to vector<64x1xf32>
    %20 = vector.broadcast %19 : vector<64x1xf32> to vector<64x4992xf32>
    %21 = vector.broadcast %6 : vector<1x4992xf32> to vector<64x4992xf32>
    %22 = arith.mulf %20, %21 : vector<64x4992xf32>
    %23 = arith.addf %17, %22 : vector<64x4992xf32>
    %c0_9 = arith.constant 0 : index
    %c0_10 = arith.constant 0 : index
    %24 = vector.load %arg3[%c0_9, %c0_10] : memref<64x1xf32, #tpu.memory_space<vmem>>, vector<64x1xf32>
    %25 = vector.broadcast %24 : vector<64x1xf32> to vector<64x4992xf32>
    %26 = arith.addf %23, %25 : vector<64x4992xf32>
    %cst_11 = arith.constant 0.000000e+00 : f32
    %27 = vector.broadcast %cst_11 : f32 to vector<64x4992xf32>
    %28 = arith.maximumf %26, %27 : vector<64x4992xf32>
    %29 = arith.truncf %28 : vector<64x4992xf32> to vector<64x4992xbf16>
    %cst_12 = arith.constant 0.000000e+00 : bf16
    %30 = vector.broadcast %cst_12 : bf16 to vector<64x128xbf16>
    %31 = vector.extract_strided_slice %29 {offsets = [0, 0], sizes = [64, 4864], strides = [1, 1]} : vector<64x4992xbf16> to vector<64x4864xbf16>
    %32 = tpu.concatenate %30, %31 in 1 : vector<64x128xbf16>, vector<64x4864xbf16> -> vector<64x4992xbf16>
    %33 = vector.extract_strided_slice %29 {offsets = [0, 128], sizes = [64, 4864], strides = [1, 1]} : vector<64x4992xbf16> to vector<64x4864xbf16>
    %34 = tpu.concatenate %33, %30 in 1 : vector<64x4864xbf16>, vector<64x128xbf16> -> vector<64x4992xbf16>
    %c0_13 = arith.constant 0 : index
    %c0_14 = arith.constant 0 : index
    %c0_15 = arith.constant 0 : index
    %35 = vector.load %arg4[%c0_13, %c0_14, %c0_15] : memref<3x32x64xbf16, #tpu.memory_space<vmem>>, vector<1x32x64xbf16>
    %36 = vector.shape_cast %35 : vector<1x32x64xbf16> to vector<32x64xbf16>
    %cst_16 = arith.constant dense<0.000000e+00> : vector<32x4992xf32>
    %37 = tpu.matmul %36, %32, %cst_16 {dimension_numbers = #tpu.dot_dimension_numbers<[1], [0], [0], [1], [0, 0, 1, 1], [], []>} : vector<32x64xbf16>, vector<64x4992xbf16>, vector<32x4992xf32> -> vector<32x4992xf32>
    %c1_17 = arith.constant 1 : index
    %c0_18 = arith.constant 0 : index
    %c0_19 = arith.constant 0 : index
    %38 = vector.load %arg4[%c1_17, %c0_18, %c0_19] : memref<3x32x64xbf16, #tpu.memory_space<vmem>>, vector<1x32x64xbf16>
    %39 = vector.shape_cast %38 : vector<1x32x64xbf16> to vector<32x64xbf16>
    %cst_20 = arith.constant dense<0.000000e+00> : vector<32x4992xf32>
    %40 = tpu.matmul %39, %29, %cst_20 {dimension_numbers = #tpu.dot_dimension_numbers<[1], [0], [0], [1], [0, 0, 1, 1], [], []>} : vector<32x64xbf16>, vector<64x4992xbf16>, vector<32x4992xf32> -> vector<32x4992xf32>
    %41 = arith.addf %37, %40 : vector<32x4992xf32>
    %c2_21 = arith.constant 2 : index
    %c0_22 = arith.constant 0 : index
    %c0_23 = arith.constant 0 : index
    %42 = vector.load %arg4[%c2_21, %c0_22, %c0_23] : memref<3x32x64xbf16, #tpu.memory_space<vmem>>, vector<1x32x64xbf16>
    %43 = vector.shape_cast %42 : vector<1x32x64xbf16> to vector<32x64xbf16>
    %cst_24 = arith.constant dense<0.000000e+00> : vector<32x4992xf32>
    %44 = tpu.matmul %43, %34, %cst_24 {dimension_numbers = #tpu.dot_dimension_numbers<[1], [0], [0], [1], [0, 0, 1, 1], [], []>} : vector<32x64xbf16>, vector<64x4992xbf16>, vector<32x4992xf32> -> vector<32x4992xf32>
    %45 = arith.addf %41, %44 : vector<32x4992xf32>
    %c0_25 = arith.constant 0 : index
    %c0_26 = arith.constant 0 : index
    %46 = vector.load %arg5[%c0_25, %c0_26] : memref<32x1xf32, #tpu.memory_space<vmem>>, vector<32x1xf32>
    %47 = vector.broadcast %46 : vector<32x1xf32> to vector<32x4992xf32>
    %48 = arith.addf %45, %47 : vector<32x4992xf32>
    %cst_27 = arith.constant 0.000000e+00 : f32
    %49 = vector.broadcast %cst_27 : f32 to vector<32x4992xf32>
    %50 = arith.maximumf %48, %49 : vector<32x4992xf32>
    %51 = arith.truncf %50 : vector<32x4992xf32> to vector<32x4992xbf16>
    %cst_28 = arith.constant 0.000000e+00 : bf16
    %52 = vector.broadcast %cst_28 : bf16 to vector<32x128xbf16>
    %53 = vector.extract_strided_slice %51 {offsets = [0, 0], sizes = [32, 4864], strides = [1, 1]} : vector<32x4992xbf16> to vector<32x4864xbf16>
    %54 = tpu.concatenate %52, %53 in 1 : vector<32x128xbf16>, vector<32x4864xbf16> -> vector<32x4992xbf16>
    %55 = vector.extract_strided_slice %51 {offsets = [0, 128], sizes = [32, 4864], strides = [1, 1]} : vector<32x4992xbf16> to vector<32x4864xbf16>
    %56 = tpu.concatenate %55, %52 in 1 : vector<32x4864xbf16>, vector<32x128xbf16> -> vector<32x4992xbf16>
    %c0_29 = arith.constant 0 : index
    %c0_30 = arith.constant 0 : index
    %c0_31 = arith.constant 0 : index
    %57 = vector.load %arg6[%c0_29, %c0_30, %c0_31] : memref<3x16x32xbf16, #tpu.memory_space<vmem>>, vector<1x16x32xbf16>
    %58 = vector.shape_cast %57 : vector<1x16x32xbf16> to vector<16x32xbf16>
    %cst_32 = arith.constant dense<0.000000e+00> : vector<16x4992xf32>
    %59 = tpu.matmul %58, %54, %cst_32 {dimension_numbers = #tpu.dot_dimension_numbers<[1], [0], [0], [1], [0, 0, 1, 1], [], []>} : vector<16x32xbf16>, vector<32x4992xbf16>, vector<16x4992xf32> -> vector<16x4992xf32>
    %c1_33 = arith.constant 1 : index
    %c0_34 = arith.constant 0 : index
    %c0_35 = arith.constant 0 : index
    %60 = vector.load %arg6[%c1_33, %c0_34, %c0_35] : memref<3x16x32xbf16, #tpu.memory_space<vmem>>, vector<1x16x32xbf16>
    %61 = vector.shape_cast %60 : vector<1x16x32xbf16> to vector<16x32xbf16>
    %cst_36 = arith.constant dense<0.000000e+00> : vector<16x4992xf32>
    %62 = tpu.matmul %61, %51, %cst_36 {dimension_numbers = #tpu.dot_dimension_numbers<[1], [0], [0], [1], [0, 0, 1, 1], [], []>} : vector<16x32xbf16>, vector<32x4992xbf16>, vector<16x4992xf32> -> vector<16x4992xf32>
    %63 = arith.addf %59, %62 : vector<16x4992xf32>
    %c2_37 = arith.constant 2 : index
    %c0_38 = arith.constant 0 : index
    %c0_39 = arith.constant 0 : index
    %64 = vector.load %arg6[%c2_37, %c0_38, %c0_39] : memref<3x16x32xbf16, #tpu.memory_space<vmem>>, vector<1x16x32xbf16>
    %65 = vector.shape_cast %64 : vector<1x16x32xbf16> to vector<16x32xbf16>
    %cst_40 = arith.constant dense<0.000000e+00> : vector<16x4992xf32>
    %66 = tpu.matmul %65, %56, %cst_40 {dimension_numbers = #tpu.dot_dimension_numbers<[1], [0], [0], [1], [0, 0, 1, 1], [], []>} : vector<16x32xbf16>, vector<32x4992xbf16>, vector<16x4992xf32> -> vector<16x4992xf32>
    %67 = arith.addf %63, %66 : vector<16x4992xf32>
    %c0_41 = arith.constant 0 : index
    %c0_42 = arith.constant 0 : index
    %68 = vector.load %arg7[%c0_41, %c0_42] : memref<16x1xf32, #tpu.memory_space<vmem>>, vector<16x1xf32>
    %69 = vector.broadcast %68 : vector<16x1xf32> to vector<16x4992xf32>
    %70 = arith.addf %67, %69 : vector<16x4992xf32>
    %cst_43 = arith.constant 0.000000e+00 : f32
    %71 = vector.broadcast %cst_43 : f32 to vector<16x4992xf32>
    %72 = arith.maximumf %70, %71 : vector<16x4992xf32>
    %73 = arith.truncf %72 : vector<16x4992xf32> to vector<16x4992xbf16>
    %74 = vector.extract_strided_slice %73 {offsets = [0, 0], sizes = [16, 128], strides = [1, 1]} : vector<16x4992xbf16> to vector<16x128xbf16>
    %75 = vector.extract_strided_slice %73 {offsets = [0, 128], sizes = [16, 128], strides = [1, 1]} : vector<16x4992xbf16> to vector<16x128xbf16>
    %76 = vector.extract_strided_slice %73 {offsets = [0, 256], sizes = [16, 128], strides = [1, 1]} : vector<16x4992xbf16> to vector<16x128xbf16>
    %77 = vector.extract_strided_slice %73 {offsets = [0, 384], sizes = [16, 128], strides = [1, 1]} : vector<16x4992xbf16> to vector<16x128xbf16>
    %78 = vector.extract_strided_slice %73 {offsets = [0, 512], sizes = [16, 128], strides = [1, 1]} : vector<16x4992xbf16> to vector<16x128xbf16>
    %79 = vector.extract_strided_slice %73 {offsets = [0, 640], sizes = [16, 128], strides = [1, 1]} : vector<16x4992xbf16> to vector<16x128xbf16>
    %80 = vector.extract_strided_slice %73 {offsets = [0, 768], sizes = [16, 128], strides = [1, 1]} : vector<16x4992xbf16> to vector<16x128xbf16>
    %81 = vector.extract_strided_slice %73 {offsets = [0, 896], sizes = [16, 128], strides = [1, 1]} : vector<16x4992xbf16> to vector<16x128xbf16>
    %82 = vector.extract_strided_slice %73 {offsets = [0, 1024], sizes = [16, 128], strides = [1, 1]} : vector<16x4992xbf16> to vector<16x128xbf16>
    %83 = vector.extract_strided_slice %73 {offsets = [0, 1152], sizes = [16, 128], strides = [1, 1]} : vector<16x4992xbf16> to vector<16x128xbf16>
    %84 = vector.extract_strided_slice %73 {offsets = [0, 1280], sizes = [16, 128], strides = [1, 1]} : vector<16x4992xbf16> to vector<16x128xbf16>
    %85 = vector.extract_strided_slice %73 {offsets = [0, 1408], sizes = [16, 128], strides = [1, 1]} : vector<16x4992xbf16> to vector<16x128xbf16>
    %86 = vector.extract_strided_slice %73 {offsets = [0, 1536], sizes = [16, 128], strides = [1, 1]} : vector<16x4992xbf16> to vector<16x128xbf16>
    %87 = vector.extract_strided_slice %73 {offsets = [0, 1664], sizes = [16, 128], strides = [1, 1]} : vector<16x4992xbf16> to vector<16x128xbf16>
    %88 = vector.extract_strided_slice %73 {offsets = [0, 1792], sizes = [16, 128], strides = [1, 1]} : vector<16x4992xbf16> to vector<16x128xbf16>
    %89 = vector.extract_strided_slice %73 {offsets = [0, 1920], sizes = [16, 128], strides = [1, 1]} : vector<16x4992xbf16> to vector<16x128xbf16>
    %90 = vector.extract_strided_slice %73 {offsets = [0, 2048], sizes = [16, 128], strides = [1, 1]} : vector<16x4992xbf16> to vector<16x128xbf16>
    %91 = vector.extract_strided_slice %73 {offsets = [0, 2176], sizes = [16, 128], strides = [1, 1]} : vector<16x4992xbf16> to vector<16x128xbf16>
    %92 = vector.extract_strided_slice %73 {offsets = [0, 2304], sizes = [16, 128], strides = [1, 1]} : vector<16x4992xbf16> to vector<16x128xbf16>
    %93 = vector.extract_strided_slice %73 {offsets = [0, 2432], sizes = [16, 128], strides = [1, 1]} : vector<16x4992xbf16> to vector<16x128xbf16>
    %94 = vector.extract_strided_slice %73 {offsets = [0, 2560], sizes = [16, 128], strides = [1, 1]} : vector<16x4992xbf16> to vector<16x128xbf16>
    %95 = vector.extract_strided_slice %73 {offsets = [0, 2688], sizes = [16, 128], strides = [1, 1]} : vector<16x4992xbf16> to vector<16x128xbf16>
    %96 = vector.extract_strided_slice %73 {offsets = [0, 2816], sizes = [16, 128], strides = [1, 1]} : vector<16x4992xbf16> to vector<16x128xbf16>
    %97 = vector.extract_strided_slice %73 {offsets = [0, 2944], sizes = [16, 128], strides = [1, 1]} : vector<16x4992xbf16> to vector<16x128xbf16>
    %98 = vector.extract_strided_slice %73 {offsets = [0, 3072], sizes = [16, 128], strides = [1, 1]} : vector<16x4992xbf16> to vector<16x128xbf16>
    %99 = vector.extract_strided_slice %73 {offsets = [0, 3200], sizes = [16, 128], strides = [1, 1]} : vector<16x4992xbf16> to vector<16x128xbf16>
    %100 = vector.extract_strided_slice %73 {offsets = [0, 3328], sizes = [16, 128], strides = [1, 1]} : vector<16x4992xbf16> to vector<16x128xbf16>
    %101 = vector.extract_strided_slice %73 {offsets = [0, 3456], sizes = [16, 128], strides = [1, 1]} : vector<16x4992xbf16> to vector<16x128xbf16>
    %102 = vector.extract_strided_slice %73 {offsets = [0, 3584], sizes = [16, 128], strides = [1, 1]} : vector<16x4992xbf16> to vector<16x128xbf16>
    %103 = vector.extract_strided_slice %73 {offsets = [0, 3712], sizes = [16, 128], strides = [1, 1]} : vector<16x4992xbf16> to vector<16x128xbf16>
    %104 = vector.extract_strided_slice %73 {offsets = [0, 3840], sizes = [16, 128], strides = [1, 1]} : vector<16x4992xbf16> to vector<16x128xbf16>
    %105 = vector.extract_strided_slice %73 {offsets = [0, 3968], sizes = [16, 128], strides = [1, 1]} : vector<16x4992xbf16> to vector<16x128xbf16>
    %106 = vector.extract_strided_slice %73 {offsets = [0, 4096], sizes = [16, 128], strides = [1, 1]} : vector<16x4992xbf16> to vector<16x128xbf16>
    %107 = vector.extract_strided_slice %73 {offsets = [0, 4224], sizes = [16, 128], strides = [1, 1]} : vector<16x4992xbf16> to vector<16x128xbf16>
    %108 = vector.extract_strided_slice %73 {offsets = [0, 4352], sizes = [16, 128], strides = [1, 1]} : vector<16x4992xbf16> to vector<16x128xbf16>
    %109 = vector.extract_strided_slice %73 {offsets = [0, 4480], sizes = [16, 128], strides = [1, 1]} : vector<16x4992xbf16> to vector<16x128xbf16>
    %110 = vector.extract_strided_slice %73 {offsets = [0, 4608], sizes = [16, 128], strides = [1, 1]} : vector<16x4992xbf16> to vector<16x128xbf16>
    %111 = vector.extract_strided_slice %73 {offsets = [0, 4736], sizes = [16, 128], strides = [1, 1]} : vector<16x4992xbf16> to vector<16x128xbf16>
    %112 = vector.extract_strided_slice %73 {offsets = [0, 4864], sizes = [16, 128], strides = [1, 1]} : vector<16x4992xbf16> to vector<16x128xbf16>
    %113 = tpu.concatenate %74, %75, %76, %77, %78, %79, %80, %81, %82, %83, %84, %85, %86, %87, %88, %89 in 0 : vector<16x128xbf16>, vector<16x128xbf16>, vector<16x128xbf16>, vector<16x128xbf16>, vector<16x128xbf16>, vector<16x128xbf16>, vector<16x128xbf16>, vector<16x128xbf16>, vector<16x128xbf16>, vector<16x128xbf16>, vector<16x128xbf16>, vector<16x128xbf16>, vector<16x128xbf16>, vector<16x128xbf16>, vector<16x128xbf16>, vector<16x128xbf16> -> vector<256x128xbf16>
    %114 = tpu.concatenate %90, %91, %92, %93, %94, %95, %96, %97, %98, %99, %100, %101, %102, %103, %104, %105 in 0 : vector<16x128xbf16>, vector<16x128xbf16>, vector<16x128xbf16>, vector<16x128xbf16>, vector<16x128xbf16>, vector<16x128xbf16>, vector<16x128xbf16>, vector<16x128xbf16>, vector<16x128xbf16>, vector<16x128xbf16>, vector<16x128xbf16>, vector<16x128xbf16>, vector<16x128xbf16>, vector<16x128xbf16>, vector<16x128xbf16>, vector<16x128xbf16> -> vector<256x128xbf16>
    %115 = tpu.concatenate %106, %107, %108, %109, %110, %111, %112 in 0 : vector<16x128xbf16>, vector<16x128xbf16>, vector<16x128xbf16>, vector<16x128xbf16>, vector<16x128xbf16>, vector<16x128xbf16>, vector<16x128xbf16> -> vector<112x128xbf16>
    %116 = tpu.concatenate %113, %114, %115 in 0 : vector<256x128xbf16>, vector<256x128xbf16>, vector<112x128xbf16> -> vector<624x128xbf16>
    %c0_44 = arith.constant 0 : index
    %c0_45 = arith.constant 0 : index
    %117 = vector.load %arg8[%c0_44, %c0_45] : memref<30x624xbf16, #tpu.memory_space<vmem>>, vector<30x624xbf16>
    %cst_46 = arith.constant dense<0.000000e+00> : vector<30x128xf32>
    %118 = tpu.matmul %117, %116, %cst_46 {dimension_numbers = #tpu.dot_dimension_numbers<[1], [0], [0], [1], [0, 0, 1, 1], [], []>} : vector<30x624xbf16>, vector<624x128xbf16>, vector<30x128xf32> -> vector<30x128xf32>
    %c0_47 = arith.constant 0 : index
    %c0_48 = arith.constant 0 : index
    %119 = vector.load %arg9[%c0_47, %c0_48] : memref<30x1xf32, #tpu.memory_space<vmem>>, vector<30x1xf32>
    %120 = vector.broadcast %119 : vector<30x1xf32> to vector<30x128xf32>
    %121 = arith.addf %118, %120 : vector<30x128xf32>
    %cst_49 = arith.constant 0.000000e+00 : f32
    %122 = vector.broadcast %cst_49 : f32 to vector<30x128xf32>
    %123 = arith.maximumf %121, %122 : vector<30x128xf32>
    %124 = arith.truncf %123 : vector<30x128xf32> to vector<30x128xbf16>
    %c0_50 = arith.constant 0 : index
    %c0_51 = arith.constant 0 : index
    %125 = vector.load %arg10[%c0_50, %c0_51] : memref<15x30xbf16, #tpu.memory_space<vmem>>, vector<15x30xbf16>
    %cst_52 = arith.constant dense<0.000000e+00> : vector<15x128xf32>
    %126 = tpu.matmul %125, %124, %cst_52 {dimension_numbers = #tpu.dot_dimension_numbers<[1], [0], [0], [1], [0, 0, 1, 1], [], []>} : vector<15x30xbf16>, vector<30x128xbf16>, vector<15x128xf32> -> vector<15x128xf32>
    %c0_53 = arith.constant 0 : index
    %c0_54 = arith.constant 0 : index
    %127 = vector.load %arg11[%c0_53, %c0_54] : memref<15x1xf32, #tpu.memory_space<vmem>>, vector<15x1xf32>
    %128 = vector.broadcast %127 : vector<15x1xf32> to vector<15x128xf32>
    %129 = arith.addf %126, %128 : vector<15x128xf32>
    %cst_55 = arith.constant dense<0xFF800000> : vector<128xf32>
    %130 = vector.multi_reduction <maximumf>, %129, %cst_55 [0] : vector<15x128xf32> to vector<128xf32>
    %131 = vector.shape_cast %130 : vector<128xf32> to vector<1x128xf32>
    %132 = vector.broadcast %131 : vector<1x128xf32> to vector<15x128xf32>
    %133 = arith.subf %129, %132 : vector<15x128xf32>
    %134 = math.exp %133 : vector<15x128xf32>
    %cst_56 = arith.constant dense<0.000000e+00> : vector<128xf32>
    %135 = vector.multi_reduction <add>, %134, %cst_56 [0] : vector<15x128xf32> to vector<128xf32>
    %136 = vector.shape_cast %135 : vector<128xf32> to vector<1x128xf32>
    %137 = math.log %136 : vector<1x128xf32>
    %138 = arith.addf %131, %137 : vector<1x128xf32>
    %139 = vector.broadcast %138 : vector<1x128xf32> to vector<15x128xf32>
    %140 = arith.subf %129, %139 : vector<15x128xf32>
    %c0_57 = arith.constant 0 : index
    %c0_58 = arith.constant 0 : index
    %c0_59 = arith.constant 0 : index
    %141 = vector.load %arg12[%c0_57, %c0_58, %c0_59] : memref<1x15x128xf32, #tpu.memory_space<vmem>>, vector<1x15x128xf32>
    %142 = vector.shape_cast %141 : vector<1x15x128xf32> to vector<15x128xf32>
    %143 = vector.shape_cast %140 : vector<15x128xf32> to vector<1x15x128xf32>
    tpu.vector_store %arg12[%c0_57, %c0_58, %c0_59], %143 {strides = array<i32>} : memref<1x15x128xf32, #tpu.memory_space<vmem>>, vector<1x15x128xf32>,
    return
  }
  func.func @transform_0(%arg0: i32) -> (i32, i32, i32) {
    %c0_i32 = arith.constant 0 : i32
    %c0_i32_0 = arith.constant 0 : i32
    %c0_i32_1 = arith.constant 0 : i32
    return %arg0, %c0_i32, %c0_i32_0 : i32, i32, i32
  }
  func.func @transform_1(%arg0: i32) -> (i32, i32, i32) {
    %c0_i32 = arith.constant 0 : i32
    %c0_i32_0 = arith.constant 0 : i32
    %c0_i32_1 = arith.constant 0 : i32
    %c0_i32_2 = arith.constant 0 : i32
    return %c0_i32, %c0_i32_0, %c0_i32_1 : i32, i32, i32
  }
  func.func @transform_2(%arg0: i32) -> (i32, i32) {
    %c0_i32 = arith.constant 0 : i32
    %c0_i32_0 = arith.constant 0 : i32
    %c0_i32_1 = arith.constant 0 : i32
    return %c0_i32, %c0_i32_0 : i32, i32
  }
  func.func @transform_3(%arg0: i32) -> (i32, i32, i32) {
    %c0_i32 = arith.constant 0 : i32
    %c0_i32_0 = arith.constant 0 : i32
    %c0_i32_1 = arith.constant 0 : i32
    %c0_i32_2 = arith.constant 0 : i32
    return %c0_i32, %c0_i32_0, %c0_i32_1 : i32, i32, i32
  }
  func.func @transform_4(%arg0: i32) -> (i32, i32) {
    %c0_i32 = arith.constant 0 : i32
    %c0_i32_0 = arith.constant 0 : i32
    %c0_i32_1 = arith.constant 0 : i32
    return %c0_i32, %c0_i32_0 : i32, i32
  }
  func.func @transform_5(%arg0: i32) -> (i32, i32, i32) {
    %c0_i32 = arith.constant 0 : i32
    %c0_i32_0 = arith.constant 0 : i32
    %c0_i32_1 = arith.constant 0 : i32
    %c0_i32_2 = arith.constant 0 : i32
    return %c0_i32, %c0_i32_0, %c0_i32_1 : i32, i32, i32
  }
  func.func @transform_6(%arg0: i32) -> (i32, i32) {
    %c0_i32 = arith.constant 0 : i32
    %c0_i32_0 = arith.constant 0 : i32
    %c0_i32_1 = arith.constant 0 : i32
    return %c0_i32, %c0_i32_0 : i32, i32
  }
  func.func @transform_7(%arg0: i32) -> (i32, i32) {
    %c0_i32 = arith.constant 0 : i32
    %c0_i32_0 = arith.constant 0 : i32
    %c0_i32_1 = arith.constant 0 : i32
    return %c0_i32, %c0_i32_0 : i32, i32
  }
  func.func @transform_8(%arg0: i32) -> (i32, i32) {
    %c0_i32 = arith.constant 0 : i32
    %c0_i32_0 = arith.constant 0 : i32
    %c0_i32_1 = arith.constant 0 : i32
    return %c0_i32, %c0_i32_0 : i32, i32
  }
  func.func @transform_9(%arg0: i32) -> (i32, i32) {
    %c0_i32 = arith.constant 0 : i32
    %c0_i32_0 = arith.constant 0 : i32
    %c0_i32_1 = arith.constant 0 : i32
    return %c0_i32, %c0_i32_0 : i32, i32
  }
  func.func @transform_10(%arg0: i32) -> (i32, i32) {
    %c0_i32 = arith.constant 0 : i32
    %c0_i32_0 = arith.constant 0 : i32
    %c0_i32_1 = arith.constant 0 : i32
    return %c0_i32, %c0_i32_0 : i32, i32
  }
  func.func @transform_11(%arg0: i32) -> (i32, i32, i32) {
    %c0_i32 = arith.constant 0 : i32
    %c0_i32_0 = arith.constant 0 : i32
    %c0_i32_1 = arith.constant 0 : i32
    return %arg0, %c0_i32, %c0_i32_0 : i32, i32, i32
  }
}

</mosaic_0001>

<bundles_post_ra>
// kernel: cnn_forward.1
= control target key start
LH: loop header
LB: loop body
LE: loop exit
PB: predicated region body
PF: predicated region fallthrough
CT: control target
= control target key end

     0   :  { %v17470_v0 = vmov 0   ;;  %v49_v45 = vlaneseq  ;;  %vm2956_vm0 = vcmask 523264   ;;  %vm6748_vm1 = vcmask 261120   ;;  %s17458_s1 = inlined_call_operand.vmem [shape: f32[3,64,1], index: 1, kind: input, shape index: {}]   ;;  %s17459_s2 = inlined_call_operand.vmem [shape: f32[64,1], index: 2, kind: input, shape index: {}]   ;;  %s17460_s4 = inlined_call_operand.vmem [shape: f32[32,1], index: 4, kind: input, shape index: {}]   ;;  %s17461_s6 = inlined_call_operand.vmem [shape: f32[16,1], index: 6, kind: input, shape index: {}]   ;;  %s17462_s8 = inlined_call_operand.vmem [shape: f32[30,1], index: 8, kind: input, shape index: {}]   ;;  %s17463_s3 = inlined_call_operand.vmem [shape: bf16[3,32,64], index: 3, kind: input, shape index: {}]   ;;  %s17464_s10 = inlined_call_operand.vmem [shape: f32[15,1], index: 10, kind: input, shape index: {}]   ;;  %s17465_s0 = inlined_call_operand.vmem [shape: f32[1,1,4992], index: 0, kind: input, shape index: {}]   ;;  %s17466_s5 = inlined_call_operand.vmem [shape: bf16[3,16,32], index: 5, kind: input, shape index: {}]   ;;  %s17467_s7 = inlined_call_operand.vmem [shape: bf16[30,624], index: 7, kind: input, shape index: {}]   ;;  %s17468_s9 = inlined_call_operand.vmem [shape: bf16[15,30], index: 9, kind: input, shape index: {}]   ;;  %s17469_s11 = inlined_call_operand.vmem [shape: f32[1,15,128], index: 11, kind: output, shape index: {}]  }
   0x1   :  { %10381 = vset.pattern.permute.xlu1 %v17470_v0  ;;  %10380 = vset.pattern.permute.xlu0 %v17470_v0  ;;  %v9983_v1 = vld [vmem:[%s17458_s1 + $0x70] sm:$0xff]  ;;  %v9984_v3 = vld [vmem:[%s17458_s1 + $0x78] sm:$0xff]  ;;  %v249_v7 = vld [vmem:[%s17458_s1 + $0x28] sm:$0xff]  ;;  %vm10427_vm2 = vmmov 0   ;;  %vm9716_vm3 = vcmask 916480   ;;  %vm9899_vm4 = vcmask 1046528  }
   0x2   :  { %v250_v2 = vld [vmem:[%s17458_s1 + $0x30] sm:$0xff]  ;;  %800 = vperm.xlu1 %10381, %v9983_v1   ;;  %v251_v4 = vld [vmem:[%s17458_s1 + $0x38] sm:$0xff]  ;;  %2995 = vmatprep.mubr.bf16.mxu0 %v17470_v0  ;;  %v248_v8 = vld [vmem:[%s17458_s1 + $0x20] sm:$0xff]  ;;  %v50_v46 = vshrl.u32 %v49_v45, 7  ;;  %vm9895_vm5 = vcmask 244736  }
   0x3   :  { %284 = vperm.xlu0 %10380, %v250_v2   ;;  %3048 = vmatprep.mubr.bf16.mxu1 %v17470_v0  ;;  %v9992_v5 = vld [vmem:[%s17458_s1 + $0xb8] sm:$0xff]  ;;  %v9991_v6 = vld [vmem:[%s17458_s1 + $0xb0] sm:$0xff]  ;;  %v9982_v9 = vld [vmem:[%s17458_s1 + $0x68] sm:$0xff] }
   0x4   :  { %v9981_v10 = vld [vmem:[%s17458_s1 + $0x60] sm:$0xff]  ;;  %v9990_v11 = vld [vmem:[%s17458_s1 + $0xa8] sm:$0xff]  ;;  %v2116_v13 = vld [vmem:[%s17459_s2 + $0x38] sm:$0xff]  ;;  %v10624_v47 = vsub.s32 0, %v50_v46  ;;  %v10629_v49 = vsub.s32 1, %v50_v46  ;;  %v59_v50 = vsub.s32 2, %v50_v46 }
   0x5   :  { %v9989_v12 = vld [vmem:[%s17458_s1 + $0xa0] sm:$0xff]  ;;  %v2115_v14 = vld [vmem:[%s17459_s2 + $0x30] sm:$0xff]  ;;  %v247_v15 = vld [vmem:[%s17458_s1 + $0x18] sm:$0xff]  ;;  %v67_v51 = vsub.s32 4, %v50_v46  ;;  %v10631_v52 = vsub.s32 6, %v50_v46  ;;  %v10642_v56 = vsub.s32 3, %v50_v46 }
   0x6   :  { %805 = vperm.xlu1 %10381, %v9984_v3   ;;  %v246_v16 = vld [vmem:[%s17458_s1 + $0x10] sm:$0xff]  ;;  %v9980_v17 = vld [vmem:[%s17458_s1 + $0x58] sm:$0xff]  ;;  %v2114_v21 = vld [vmem:[%s17459_s2 + $0x28] sm:$0xff]  ;;  %17990 = vst [vmem:[#allocation2_spill] sm:$0xff] %v10624_v47  ;;  %v10644_v57 = vsub.s32 5, %v50_v46 }
   0x7   :  { %289 = vperm.xlu0 %10380, %v251_v4   ;;  %v9979_v18 = vld [vmem:[%s17458_s1 + $0x50] sm:$0xff]  ;;  %v9988_v19 = vld [vmem:[%s17458_s1 + $0x98] sm:$0xff]  ;;  %v2113_v22 = vld [vmem:[%s17459_s2 + $0x20] sm:$0xff]  ;;  %17991 = vst [vmem:[#allocation3_spill] sm:$0xff] %v10629_v49 }
   0x8   :  { %v9987_v20 = vld [vmem:[%s17458_s1 + $0x90] sm:$0xff]  ;;  %v245_v23 = vld [vmem:[%s17458_s1 + $0x8] sm:$0xff]  ;;  %v244_v24 = vld [vmem:[%s17458_s1] sm:$0xff]  ;;  %17992 = vst [vmem:[#allocation4_spill] sm:$0xff] %v10631_v52 }
   0x9   :  { %v9978_v25 = vld [vmem:[%s17458_s1 + $0x48] sm:$0xff]  ;;  %v9977_v26 = vld [vmem:[%s17458_s1 + $0x40] sm:$0xff]  ;;  %v2112_v29 = vld [vmem:[%s17459_s2 + $0x18] sm:$0xff]  ;;  %17993 = vst [vmem:[#allocation5_spill] sm:$0xff] %v10642_v56 }
   0xa   :  { %1478 = vperm.xlu1 %10381, %v9992_v5   ;;  %v9986_v27 = vld [vmem:[%s17458_s1 + $0x88] sm:$0xff]  ;;  %v9985_v28 = vld [vmem:[%s17458_s1 + $0x80] sm:$0xff]  ;;  %v2111_v30 = vld [vmem:[%s17459_s2 + $0x10] sm:$0xff]  ;;  %17994 = vst [vmem:[#allocation6_spill] sm:$0xff] %v10644_v57 }
   0xb   :  { %1473 = vperm.xlu0 %10380, %v9991_v6   ;;  %v2110_v31 = vld [vmem:[%s17459_s2 + $0x8] sm:$0xff]  ;;  %v2109_v32 = vld [vmem:[%s17459_s2] sm:$0xff]  ;;  %v6327_v33 = vld [vmem:[%s17460_s4 + $0x18] sm:$0xff] }
   0xc   :  { %v6326_v34 = vld [vmem:[%s17460_s4 + $0x10] sm:$0xff]  ;;  %v6325_v35 = vld [vmem:[%s17460_s4 + $0x8] sm:$0xff]  ;;  %v6324_v36 = vld [vmem:[%s17460_s4] sm:$0xff] }
   0xd   :  { %v9424_v37 = vld [vmem:[%s17461_s6 + $0x8] sm:$0xff]  ;;  %v9423_v38 = vld [vmem:[%s17461_s6] sm:$0xff]  ;;  %v9645_v39 = vld [vmem:[%s17462_s8 + $0x18] sm:$0x3f] }
   0xe   :  { %279 = vperm.xlu1 %10381, %v249_v7   ;;  %v9644_v40 = vld [vmem:[%s17462_s8 + $0x10] sm:$0xff]  ;;  %v9643_v41 = vld [vmem:[%s17462_s8 + $0x8] sm:$0xff]  ;;  %v9642_v42 = vld [vmem:[%s17462_s8] sm:$0xff] }
   0xf   :  { %274 = vperm.xlu0 %10380, %v248_v8   ;;  %v9878_v43 = vld [vmem:[%s17464_s10] sm:$0xff]  ;;  %v9879_v44 = vld [vmem:[%s17464_s10 + $0x8] sm:$0x7f]  ;;  %v41_v54 = vld [vmem:[%s17465_s0 + $0x10] sm:$0xff] }
  0x10   :  { %v39_v48 = vld [vmem:[%s17465_s0] sm:$0xff]  ;;  %v40_v53 = vld [vmem:[%s17465_s0 + $0x8] sm:$0xff]  ;;  %v42_v58 = vld [vmem:[%s17465_s0 + $0x18] sm:$0xff]  ;;  %v10673_v5 = vrot.slane %v41_v54, %v10624_v47  ;;  %v10675_v6 = vrot.slane %v41_v54, %v59_v50  ;;  %v10677_v7 = vrot.slane %v41_v54, %v67_v51  ;;  %v10680_v8 = vrot.slane %v41_v54, %v10631_v52 }
  0x11   :  { %v10640_v55 = vrot.slane %v39_v48, %v10624_v47  ;;  %v10650_v59 = vrot.slane %v39_v48, %v10629_v49  ;;  %v10652_v60 = vrot.slane %v39_v48, %v59_v50  ;;  %v10654_v61 = vrot.slane %v39_v48, %v67_v51  ;;  %v43_v63 = vld [vmem:[%s17465_s0 + $0x20] sm:$0xff] }
  0x12   :  { %795 = vperm.xlu1 %10381, %v9982_v9   ;;  %v10657_v62 = vrot.slane %v39_v48, %v10631_v52  ;;  %v10663_v1 = vrot.slane %v40_v53, %v10624_v47  ;;  %v10665_v2 = vrot.slane %v40_v53, %v59_v50  ;;  %v10667_v3 = vrot.slane %v40_v53, %v67_v51 }
  0x13   :  { %790 = vperm.xlu0 %10380, %v9981_v10   ;;  %v10670_v4 = vrot.slane %v40_v53, %v10631_v52  ;;  %17999 = vst [vmem:[#allocation11_spill] sm:$0xff] %v10673_v5  ;;  %18000 = vst [vmem:[#allocation12_spill] sm:$0xff] %v10675_v6  ;;  %v10683_v9 = vrot.slane %v42_v58, %v10624_v47  ;;  %v10685_v10 = vrot.slane %v42_v58, %v59_v50 }
  0x14   :  { %17995 = vst [vmem:[#allocation7_spill] sm:$0xff] %v10663_v1  ;;  %17996 = vst [vmem:[#allocation8_spill] sm:$0xff] %v10665_v2 }
  0x15   :  { %17997 = vst [vmem:[#allocation9_spill] sm:$0xff] %v10667_v3  ;;  %17998 = vst [vmem:[#allocation10_spill] sm:$0xff] %v10670_v4 }
  0x16   :  { %1468 = vperm.xlu1 %10381, %v9990_v11   ;;  %18001 = vst [vmem:[#allocation13_spill] sm:$0xff] %v10677_v7  ;;  %18002 = vst [vmem:[#allocation14_spill] sm:$0xff] %v10680_v8  ;;  %v10687_v11 = vrot.slane %v42_v58, %v67_v51 }
  0x17   :  { %1463 = vperm.xlu0 %10380, %v9989_v12   ;;  %18003 = vst [vmem:[#allocation15_spill] sm:$0xff] %v10683_v9  ;;  %18004 = vst [vmem:[#allocation16_spill] sm:$0xff] %v10685_v10  ;;  %v10689_v12 = vsub.s32 7, %v50_v46 }
  0x18   :  { %18005 = vst [vmem:[#allocation17_spill] sm:$0xff] %v10687_v11 }
  0x19   :  { %18006 = vst [vmem:[#allocation18_spill] sm:$0xff] %v10689_v12 }
  0x1a   :  { %2154 = vperm.xlu1 %10381, %v2116_v13   ;;  %v10692_v13 = vrot.slane %v42_v58, %v10631_v52 }
  0x1b   :  { %2149 = vperm.xlu0 %10380, %v2115_v14   ;;  %v10695_v14 = vrot.slane %v43_v63, %v10624_v47 }
  0x1c   :  { %18007 = vst [vmem:[#allocation19_spill] sm:$0xff] %v10692_v13 }
  0x1d   :  { %18008 = vst [vmem:[#allocation20_spill] sm:$0xff] %v10695_v14 }
  0x1e   :  { %269 = vperm.xlu1 %10381, %v247_v15   ;;  %v10697_v15 = vrot.slane %v43_v63, %v59_v50 }
  0x1f   :  { %264 = vperm.xlu0 %10380, %v246_v16   ;;  %v10699_v16 = vrot.slane %v43_v63, %v67_v51 }
  0x20   :  { %18009 = vst [vmem:[#allocation21_spill] sm:$0xff] %v10697_v15 }
  0x21   :  { %18010 = vst [vmem:[#allocation22_spill] sm:$0xff] %v10699_v16 }
  0x22   :  { %785 = vperm.xlu1 %10381, %v9980_v17   ;;  %v10703_v17 = vrot.slane %v10640_v55, %v10624_v47 }
  0x23   :  { %780 = vperm.xlu0 %10380, %v9979_v18   ;;  %v10707_v18 = vrot.slane %v10650_v59, %v10624_v47 }
  0x26   :  { %1458 = vperm.xlu1 %10381, %v9988_v19   ;;  %v10711_v19 = vrot.slane %v10652_v60, %v10624_v47 }
  0x27   :  { %1453 = vperm.xlu0 %10380, %v9987_v20   ;;  %v10715_v20 = vrot.slane %v10654_v61, %v10624_v47 }
  0x2a   :  { %2144 = vperm.xlu1 %10381, %v2114_v21   ;;  %v10719_v21 = vrot.slane %v10657_v62, %v10624_v47 }
  0x2b   :  { %2139 = vperm.xlu0 %10380, %v2113_v22   ;;  %v10723_v22 = vrot.slane %v10663_v1, %v10624_v47 }
  0x2c   :  { %18011 = vst [vmem:[#allocation23_spill] sm:$0xff] %v10719_v21 }
  0x2d   :  { %18012 = vst [vmem:[#allocation24_spill] sm:$0xff] %v10723_v22 }
  0x2e   :  { %259 = vperm.xlu1 %10381, %v245_v23   ;;  %v10727_v23 = vrot.slane %v10665_v2, %v10624_v47 }
  0x2f   :  { %254 = vperm.xlu0 %10380, %v244_v24   ;;  %v10731_v24 = vrot.slane %v10667_v3, %v10624_v47 }
  0x30   :  { %18013 = vst [vmem:[#allocation25_spill] sm:$0xff] %v10727_v23 }
  0x31   :  { %18014 = vst [vmem:[#allocation26_spill] sm:$0xff] %v10731_v24 }
  0x32   :  { %775 = vperm.xlu1 %10381, %v9978_v25   ;;  %v10735_v25 = vrot.slane %v10670_v4, %v10624_v47 }
  0x33   :  { %770 = vperm.xlu0 %10380, %v9977_v26   ;;  %v10738_v26 = vrot.slane %v39_v48, %v10642_v56 }
  0x34   :  { %18015 = vst [vmem:[#allocation27_spill] sm:$0xff] %v10735_v25 }
  0x36   :  { %1448 = vperm.xlu1 %10381, %v9986_v27   ;;  %v10741_v27 = vrot.slane %v39_v48, %v10644_v57 }
  0x37   :  { %1443 = vperm.xlu0 %10380, %v9985_v28   ;;  %v10744_v28 = vrot.slane %v39_v48, %v10689_v12 }
  0x38   :  { %18016 = vst [vmem:[#allocation28_spill] sm:$0xff] %v10741_v27  ;;  %v10806_v45 = vrot.slane %v10741_v27, %v10624_v47 }
  0x39   :  { %18017 = vst [vmem:[#allocation29_spill] sm:$0xff] %v10744_v28  ;;  %v10810_v46 = vrot.slane %v10744_v28, %v10624_v47 }
  0x3a   :  { %2134 = vperm.xlu1 %10381, %v2112_v29   ;;  %v10748_v29 = vrot.slane %v10673_v5, %v10624_v47 }
  0x3b   :  { %2129 = vperm.xlu0 %10380, %v2111_v30   ;;  %v10752_v30 = vrot.slane %v10675_v6, %v10624_v47  ;;  %18031 = vst [vmem:[#allocation43_spill] sm:$0xff] %v10810_v46 }
  0x3c   :  { %18018 = vst [vmem:[#allocation30_spill] sm:$0xff] %v10748_v29 }
  0x3d   :  { %18019 = vst [vmem:[#allocation31_spill] sm:$0xff] %v10752_v30 }
  0x3e   :  { %2124 = vperm.xlu1 %10381, %v2110_v31   ;;  %v10756_v31 = vrot.slane %v10677_v7, %v10624_v47 }
  0x3f   :  { %2119 = vperm.xlu0 %10380, %v2109_v32   ;;  %v10760_v32 = vrot.slane %v10680_v8, %v10624_v47 }
  0x40   :  { %18020 = vst [vmem:[#allocation32_spill] sm:$0xff] %v10756_v31 }
  0x41   :  { %18021 = vst [vmem:[#allocation33_spill] sm:$0xff] %v10760_v32 }
  0x42   :  { %6345 = vperm.xlu1 %10381, %v6327_v33   ;;  %v10764_v33 = vrot.slane %v10683_v9, %v10624_v47 }
  0x43   :  { %6340 = vperm.xlu0 %10380, %v6326_v34   ;;  %v10768_v34 = vrot.slane %v10685_v10, %v10624_v47 }
  0x44   :  { %18022 = vst [vmem:[#allocation34_spill] sm:$0xff] %v10764_v33 }
  0x45   :  { %18023 = vst [vmem:[#allocation35_spill] sm:$0xff] %v10768_v34 }
  0x46   :  { %6335 = vperm.xlu1 %10381, %v6325_v35   ;;  %v10772_v35 = vrot.slane %v10687_v11, %v10624_v47 }
  0x47   :  { %6330 = vperm.xlu0 %10380, %v6324_v36   ;;  %v10776_v36 = vrot.slane %v10692_v13, %v10624_v47 }
  0x48   :  { %18024 = vst [vmem:[#allocation36_spill] sm:$0xff] %v10772_v35 }
  0x49   :  { %18025 = vst [vmem:[#allocation37_spill] sm:$0xff] %v10776_v36 }
  0x4a   :  { %9432 = vperm.xlu1 %10381, %v9424_v37   ;;  %v10780_v37 = vrot.slane %v10695_v14, %v10624_v47 }
  0x4b   :  { %9427 = vperm.xlu0 %10380, %v9423_v38   ;;  %v10784_v38 = vrot.slane %v10697_v15, %v10624_v47 }
  0x4c   :  { %18026 = vst [vmem:[#allocation38_spill] sm:$0xff] %v10780_v37 }
  0x4d   :  { %18027 = vst [vmem:[#allocation39_spill] sm:$0xff] %v10784_v38 }
  0x4e   :  { %9663 = vperm.xlu1 %10381, %v9645_v39   ;;  %v10787_v39 = vrot.slane %v40_v53, %v10629_v49 }
  0x4f   :  { %9658 = vperm.xlu0 %10380, %v9644_v40   ;;  %v10790_v40 = vrot.slane %v40_v53, %v10642_v56 }
  0x50   :  { %18028 = vst [vmem:[#allocation40_spill] sm:$0xff] %v10787_v39  ;;  %v10829_v15 = vrot.slane %v10787_v39, %v10624_v47 }
  0x51   :  { %18029 = vst [vmem:[#allocation41_spill] sm:$0xff] %v10790_v40  ;;  %v10833_v14 = vrot.slane %v10790_v40, %v10624_v47 }
  0x52   :  { %9653 = vperm.xlu1 %10381, %v9643_v41   ;;  %18032 = vst [vmem:[#allocation44_spill] sm:$0xff] %v10829_v15 }
  0x53   :  { %9648 = vperm.xlu0 %10380, %v9642_v42   ;;  %18033 = vst [vmem:[#allocation45_spill] sm:$0xff] %v10833_v14 }
  0x56   :  { %9882 = vperm.xlu1 %10381, %v9878_v43   ;;  %v10798_v43 = vrot.slane %v10699_v16, %v10624_v47 }
  0x57   :  { %9887 = vperm.xlu0 %10380, %v9879_v44   ;;  %v10802_v44 = vrot.slane %v10738_v26, %v10624_v47 }
  0x58   :  { %18030 = vst [vmem:[#allocation42_spill] sm:$0xff] %v10798_v43 }
  0x7d   :  { %v10792_v41 = vpop.permute.xlu1 %800 }
  0x7e   :  { %v10794_v42 = vpop.permute.xlu0 %284  ;;  %v1043_v50 = vmul.f32 %v10792_v41, %v10650_v59  ;;  %v1045_v53 = vmul.f32 %v10792_v41, %v10738_v26  ;;  %v1042_v58 = vmul.f32 %v10792_v41, %v10640_v55  ;;  %v1044_v0 = vmul.f32 %v10792_v41, %v10652_v60 }
  0x7f   :  { %v682_v48 = vmul.f32 %v10703_v17, %v10794_v42  ;;  %v684_v51 = vmul.f32 %v10711_v19, %v10794_v42  ;;  %v681_v54 = vmul.f32 0.0, %v10794_v42  ;;  %v683_v63 = vmul.f32 %v10707_v18, %v10794_v42 }
  0x80   :  { %v686_v37 = vmul.f32 %v10715_v20, %v10794_v42  ;;  %v688_v35 = vmul.f32 %v10719_v21, %v10794_v42  ;;  %v1049_v34 = vmul.f32 %v10792_v41, %v10744_v28  ;;  %v10960_v23 = vmul.f32 %v10802_v44, %v10794_v42 }
  0x81   :  { %v1355_v16 = vadd.f32 %v1043_v50, %v682_v48  ;;  %v1357_v52 = vadd.f32 %v1045_v53, %v684_v51  ;;  %v10835_v43 = vpop.permute.xlu1 %805  ;;  %v1354_v13 = vadd.f32 %v1042_v58, %v681_v54  ;;  %v1356_v11 = vadd.f32 %v1044_v0, %v683_v63 }
  0x82   :  { %v10837_v38 = vpop.permute.xlu0 %289  ;;  %v1047_v48 = vmul.f32 %v10792_v41, %v10741_v27  ;;  %v1082_v51 = vmul.f32 %v10835_v43, %v10650_v59  ;;  %v1084_v36 = vmul.f32 %v10835_v43, %v10738_v26  ;;  %v1081_v54 = vmul.f32 %v10835_v43, %v10640_v55 }
  0x83   :  { %v721_v50 = vmul.f32 %v10703_v17, %v10837_v38  ;;  %v723_v53 = vmul.f32 %v10711_v19, %v10837_v38  ;;  %v720_v0 = vmul.f32 0.0, %v10837_v38  ;;  %v722_v58 = vmul.f32 %v10707_v18, %v10837_v38 }
  0x84   :  { %v1083_v63 = vmul.f32 %v10835_v43, %v10652_v60  ;;  %v725_v6 = vmul.f32 %v10715_v20, %v10837_v38  ;;  %v1086_v5 = vmul.f32 %v10835_v43, %v10741_v27  ;;  %v10890_v30 = vadd.f32 %v1047_v48, %v686_v37 }
  0x85   :  { %v1394_v10 = vadd.f32 %v1082_v51, %v721_v50  ;;  %v1396_v9 = vadd.f32 %v1084_v36, %v723_v53  ;;  %v10862_v8 = vpop.permute.xlu1 %1478  ;;  %v1393_v33 = vadd.f32 %v1081_v54, %v720_v0  ;;  %v10894_v49 = vmul.f32 %v10719_v21, %v10837_v38 }
  0x86   :  { %18034 = vst [vmem:[#allocation46_spill] sm:$0xff] %v10862_v8  ;;  %v10864_v7 = vpop.permute.xlu0 %1473  ;;  %v1395_v32 = vadd.f32 %v1083_v63, %v722_v58  ;;  %v1759_v50 = vmul.f32 %v10862_v8, %v10711_v19  ;;  %v1761_v53 = vmul.f32 %v10862_v8, %v10715_v20  ;;  %v1758_v54 = vmul.f32 %v10862_v8, %v10707_v18 }
  0x87   :  { %v1720_v36 = vmul.f32 %v10864_v7, %v10711_v19  ;;  %v1722_v51 = vmul.f32 %v10864_v7, %v10715_v20  ;;  %v1719_v0 = vmul.f32 %v10864_v7, %v10707_v18  ;;  %v1721_v58 = vmul.f32 %v10864_v7, %v10802_v44 }
  0x88   :  { %v1760_v63 = vmul.f32 %v10862_v8, %v10802_v44  ;;  %v10888_v56 = vadd.f32 %v1759_v50, %v1394_v10  ;;  %v2073_v12 = vadd.f32 %v1761_v53, %v1396_v9  ;;  %v2070_v47 = vadd.f32 %v1758_v54, %v1393_v33 }
  0x89   :  { %v10886_v31 = vadd.f32 %v1720_v36, %v1355_v16  ;;  %v10896_v4 = vpop.permute.xlu1 %279  ;;  %v2034_v29 = vadd.f32 %v1722_v51, %v1357_v52  ;;  %v2031_v25 = vadd.f32 %v1719_v0, %v1354_v13  ;;  %v2033_v57 = vadd.f32 %v1721_v58, %v1356_v11 }
  0x8a   :  { %18035 = vst [vmem:[#allocation47_spill] sm:$0xff] %v10896_v4  ;;  %v10898_v3 = vpop.permute.xlu0 %274  ;;  %v2072_v14 = vadd.f32 %v1760_v63, %v1395_v32  ;;  %v643_v16 = vmul.f32 %v10703_v17, %v10896_v4  ;;  %v645_v48 = vmul.f32 %v10711_v19, %v10896_v4  ;;  %v642_v52 = vmul.f32 0.0, %v10896_v4 }
  0x8b   :  { %18036 = vst [vmem:[#allocation48_spill] sm:$0xff] %v10898_v3  ;;  %v604_v10 = vmul.f32 %v10703_v17, %v10898_v3  ;;  %v606_v37 = vmul.f32 %v10711_v19, %v10898_v3  ;;  %v603_v36 = vmul.f32 0.0, %v10898_v3  ;;  %v605_v9 = vmul.f32 %v10707_v18, %v10898_v3 }
  0x8c   :  { %v644_v11 = vmul.f32 %v10707_v18, %v10896_v4  ;;  %v10914_v13 = vadd.f32 %v1086_v5, %v725_v6  ;;  %v10918_v32 = vmul.f32 %v10864_v7, %v10719_v21  ;;  %v10926_v51 = vmul.f32 %v10862_v8, %v10719_v21 }
  0x8d   :  { %v10920_v33 = vpop.permute.xlu1 %795  ;;  %v10930_v53 = vmul.f32 %v10835_v43, %v10744_v28  ;;  %v10932_v0 = vadd.f32 %v1049_v34, %v688_v35  ;;  %v10936_v5 = vmul.f32 %v10864_v7, %v10723_v22  ;;  %v10956_v40 = vmul.f32 %v10862_v8, %v10723_v22 }
  0x8e   :  { %18037 = vst [vmem:[#allocation49_spill] sm:$0xff] %v10920_v33  ;;  %v10922_v50 = vpop.permute.xlu0 %790  ;;  %v1004_v54 = vmul.f32 %v10920_v33, %v10650_v59  ;;  %v1006_v63 = vmul.f32 %v10920_v33, %v10738_v26  ;;  %v1003_v35 = vmul.f32 %v10920_v33, %v10640_v55  ;;  %v1005_v15 = vmul.f32 %v10920_v33, %v10652_v60 }
  0x8f   :  { %18038 = vst [vmem:[#allocation50_spill] sm:$0xff] %v10922_v50  ;;  %v965_v6 = vmul.f32 %v10922_v50, %v10650_v59  ;;  %v967_v58 = vmul.f32 %v10922_v50, %v10738_v26  ;;  %v964_v34 = vmul.f32 %v10922_v50, %v10640_v55  ;;  %v966_v2 = vmul.f32 %v10922_v50, %v10652_v60 }
  0x90   :  { %v1316_v24 = vadd.f32 %v1004_v54, %v643_v16  ;;  %v1318_v27 = vadd.f32 %v1006_v63, %v645_v48  ;;  %v1315_v4 = vadd.f32 %v1003_v35, %v642_v52 }
  0x91   :  { %v1277_v1 = vadd.f32 %v965_v6, %v604_v10  ;;  %v10962_v39 = vpop.permute.xlu1 %1468  ;;  %v1279_v21 = vadd.f32 %v967_v58, %v606_v37  ;;  %v1276_v50 = vadd.f32 %v964_v34, %v603_v36  ;;  %v1278_v48 = vadd.f32 %v966_v2, %v605_v9 }
  0x92   :  { %18039 = vst [vmem:[#allocation51_spill] sm:$0xff] %v10962_v39  ;;  %v10964_v28 = vpop.permute.xlu0 %1463  ;;  %v1681_v16 = vmul.f32 %v10962_v39, %v10711_v19  ;;  %v1683_v54 = vmul.f32 %v10962_v39, %v10715_v20  ;;  %v1680_v37 = vmul.f32 %v10962_v39, %v10707_v18  ;;  %v1317_v36 = vadd.f32 %v1005_v15, %v644_v11 }
  0x93   :  { %18040 = vst [vmem:[#allocation52_spill] sm:$0xff] %v10964_v28  ;;  %v1642_v10 = vmul.f32 %v10964_v28, %v10711_v19  ;;  %v1644_v6 = vmul.f32 %v10964_v28, %v10715_v20  ;;  %v1641_v22 = vmul.f32 %v10964_v28, %v10707_v18  ;;  %v1643_v63 = vmul.f32 %v10964_v28, %v10802_v44 }
  0x94   :  { %v10980_v58 = vadd.f32 %v1681_v16, %v1316_v24  ;;  %v1682_v34 = vmul.f32 %v10962_v39, %v10802_v44  ;;  %v10992_v46 = vadd.f32 %v1683_v54, %v1318_v27 }
  0x95   :  { %v10978_v52 = vadd.f32 %v1642_v10, %v1277_v1  ;;  %v10986_v35 = vpop.permute.xlu1 %2154  ;;  %v10990_v3 = vadd.f32 %v1644_v6, %v1279_v21  ;;  %v10994_v2 = vadd.f32 %v1641_v22, %v1276_v50  ;;  %v10996_v1 = vadd.f32 %v1680_v37, %v1315_v4 }
  0x96   :  { %v10988_v33 = vpop.permute.xlu0 %2149  ;;  %v2431_v24 = vadd.f32 %v10986_v35, %v10888_v56  ;;  %v2433_v11 = vadd.f32 %v10986_v35, %v2073_v12  ;;  %v2430_v21 = vadd.f32 %v10986_v35, %v2070_v47  ;;  %v2432_v22 = vadd.f32 %v10986_v35, %v2072_v14 }
  0x97   :  { %v2392_v15 = vadd.f32 %v10988_v33, %v10886_v31  ;;  %v2394_v9 = vadd.f32 %v10988_v33, %v2034_v29  ;;  %v2391_v10 = vadd.f32 %v10988_v33, %v2031_v25  ;;  %v2393_v27 = vadd.f32 %v10988_v33, %v2033_v57 }
  0x98   :  { %v2743_v50 = vmax.f32 %v2431_v24, 0.0  ;;  %v2745_v6 = vmax.f32 %v2433_v11, 0.0  ;;  %v2742_v29 = vmax.f32 %v2430_v21, 0.0  ;;  %v2744_v12 = vmax.f32 %v2432_v22, 0.0 }
  0x99   :  { %v2704_v4 = vmax.f32 %v2392_v15, 0.0  ;;  %v2706_v16 = vmax.f32 %v2394_v9, 0.0  ;;  %v11008_v31 = vpop.permute.xlu1 %269  ;;  %v2703_v56 = vmax.f32 %v2391_v10, 0.0  ;;  %v2705_v37 = vmax.f32 %v2393_v27, 0.0 }
  0x9a   :  { %18041 = vst [vmem:[#allocation53_spill] sm:$0xff] %v11008_v31  ;;  %v11010_v54 = vpop.permute.xlu0 %264  ;;  %v1955_v47 = vadd.f32 %v1643_v63, %v1278_v48  ;;  %v1994_v57 = vadd.f32 %v1682_v34, %v1317_v36  ;;  %v565_v24 = vmul.f32 %v10703_v17, %v11008_v31  ;;  %v567_v48 = vmul.f32 %v10711_v19, %v11008_v31 }
  0x9b   :  { %18042 = vst [vmem:[#allocation54_spill] sm:$0xff] %v11010_v54  ;;  %v11012_v39 = vpack.c.bf16 %v2743_v50, %v2704_v4  ;;  %v11014_v25 = vpack.c.bf16 %v2745_v6, %v2706_v16  ;;  %v11016_v28 = vpack.c.bf16 %v2742_v29, %v2703_v56  ;;  %v11018_v14 = vpack.c.bf16 %v2744_v12, %v2705_v37 }
  0x9c   :  { %v526_v15 = vmul.f32 %v10703_v17, %v11010_v54  ;;  %v528_v9 = vmul.f32 %v10711_v19, %v11010_v54  ;;  %v525_v36 = vmul.f32 0.0, %v11010_v54  ;;  %v527_v63 = vmul.f32 %v10707_v18, %v11010_v54 }
  0x9d   :  { %18043 = vst [vmem:[#allocation55_spill] sm:$0xff] %v11012_v39  ;;  %18044 = vst [vmem:[#allocation56_spill] sm:$0xff] %v11014_v25  ;;  %2971 = vmatprep.subr.bf16.mxu0 %v11012_v39  ;;  %3024 = vmatprep.subr.bf16.mxu1 %v11014_v25  ;;  %v11033_v34 = vpop.permute.xlu1 %785  ;;  %v564_v10 = vmul.f32 0.0, %v11008_v31  ;;  %v566_v21 = vmul.f32 %v10707_v18, %v11008_v31  ;;  %v11044_v27 = vadd.f32 %v10918_v32, %v10890_v30 }
  0x9e   :  { %18045 = vst [vmem:[#allocation57_spill] sm:$0xff] %v11016_v28  ;;  %18046 = vst [vmem:[#allocation58_spill] sm:$0xff] %v11018_v14  ;;  %v11035_v11 = vpop.permute.xlu0 %780  ;;  %2972 = vmatpush1.bf16.msra.mxu0 %v11016_v28  ;;  %3025 = vmatpush1.bf16.msra.mxu1 %v11018_v14  ;;  %v11048_v22 = vadd.f32 %v10926_v51, %v10914_v13  ;;  %v926_v50 = vmul.f32 %v11033_v34, %v10650_v59 }
  0x9f   :  { %18047 = vst [vmem:[#allocation59_spill] sm:$0xff] %v11035_v11  ;;  %v887_v4 = vmul.f32 %v11035_v11, %v10650_v59  ;;  %v889_v16 = vmul.f32 %v11035_v11, %v10738_v26  ;;  %v928_v6 = vmul.f32 %v11033_v34, %v10738_v26  ;;  %v886_v30 = vmul.f32 %v11035_v11, %v10640_v55 }
  0xa0   :  { %v925_v32 = vmul.f32 %v11033_v34, %v10640_v55  ;;  %v888_v13 = vmul.f32 %v11035_v11, %v10652_v60  ;;  %v927_v51 = vmul.f32 %v11033_v34, %v10652_v60  ;;  %v1238_v29 = vadd.f32 %v926_v50, %v565_v24 }
  0xa1   :  { %v1199_v56 = vadd.f32 %v887_v4, %v526_v15  ;;  %v1201_v37 = vadd.f32 %v889_v16, %v528_v9  ;;  %v11068_v12 = vadd.f32 %v10930_v53, %v10894_v49  ;;  %v11070_v25 = vpop.permute.xlu1 %1458  ;;  %v1240_v28 = vadd.f32 %v928_v6, %v567_v48 }
  0xa2   :  { %18048 = vst [vmem:[#allocation60_spill] sm:$0xff] %v11070_v25  ;;  %v11072_v39 = vpop.permute.xlu0 %1453  ;;  %v1198_v14 = vadd.f32 %v886_v30, %v525_v36  ;;  %v1237_v31 = vadd.f32 %v925_v32, %v564_v10  ;;  %v1200_v54 = vadd.f32 %v888_v13, %v527_v63  ;;  %v1603_v15 = vmul.f32 %v11070_v25, %v10711_v19 }
  0xa3   :  { %18049 = vst [vmem:[#allocation61_spill] sm:$0xff] %v11072_v39  ;;  %v1564_v11 = vmul.f32 %v11072_v39, %v10711_v19  ;;  %v1566_v24 = vmul.f32 %v11072_v39, %v10715_v20  ;;  %v1605_v49 = vmul.f32 %v11070_v25, %v10715_v20  ;;  %v1563_v53 = vmul.f32 %v11072_v39, %v10707_v18 }
  0xa4   :  { %v1602_v9 = vmul.f32 %v11070_v25, %v10707_v18  ;;  %v1239_v48 = vadd.f32 %v927_v51, %v566_v21  ;;  %v1565_v36 = vmul.f32 %v11072_v39, %v10802_v44  ;;  %v11090_v10 = vadd.f32 %v1603_v15, %v1238_v29 }
  0xa5   :  { %v11088_v63 = vadd.f32 %v1564_v11, %v1199_v56  ;;  %v11092_v4 = vadd.f32 %v1566_v24, %v1201_v37  ;;  %v1604_v50 = vmul.f32 %v11070_v25, %v10802_v44  ;;  %v11096_v16 = vpop.permute.xlu1 %2144  ;;  %v11100_v30 = vadd.f32 %v1605_v49, %v1240_v28 }
  0xa6   :  { %v11098_v6 = vpop.permute.xlu0 %2139  ;;  %v11102_v32 = vadd.f32 %v1563_v53, %v1198_v14  ;;  %v11104_v21 = vadd.f32 %v1602_v9, %v1237_v31  ;;  %v11106_v13 = vadd.f32 %v1565_v36, %v1200_v54  ;;  %v2353_v51 = vadd.f32 %v11096_v16, %v10980_v58 }
  0xa7   :  { %v2314_v11 = vadd.f32 %v11098_v6, %v10978_v52  ;;  %v2316_v56 = vadd.f32 %v11098_v6, %v10990_v3  ;;  %v2355_v29 = vadd.f32 %v11096_v16, %v10992_v46  ;;  %v2313_v28 = vadd.f32 %v11098_v6, %v10994_v2 }
  0xa8   :  { %v2352_v31 = vadd.f32 %v11096_v16, %v10996_v1  ;;  %v2315_v54 = vadd.f32 %v11098_v6, %v1955_v47  ;;  %v2354_v14 = vadd.f32 %v11096_v16, %v1994_v57  ;;  %v2665_v37 = vmax.f32 %v2353_v51, 0.0 }
  0xa9   :  { %v2626_v52 = vmax.f32 %v2314_v11, 0.0  ;;  %v2628_v15 = vmax.f32 %v2316_v56, 0.0  ;;  %v2667_v58 = vmax.f32 %v2355_v29, 0.0  ;;  %v11122_v24 = vpop.permute.xlu1 %259  ;;  %v2625_v49 = vmax.f32 %v2313_v28, 0.0 }
  0xaa   :  { %18050 = vst [vmem:[#allocation62_spill] sm:$0xff] %v11122_v24  ;;  %v11124_v3 = vpop.permute.xlu0 %254  ;;  %v2664_v46 = vmax.f32 %v2352_v31, 0.0  ;;  %v2627_v53 = vmax.f32 %v2315_v54, 0.0  ;;  %v2666_v9 = vmax.f32 %v2354_v14, 0.0  ;;  %v11130_v1 = vadd.f32 %v1604_v50, %v1239_v48 }
  0xab   :  { %18051 = vst [vmem:[#allocation63_spill] sm:$0xff] %v11124_v3  ;;  %v11126_v2 = vpack.c.bf16 %v2665_v37, %v2626_v52  ;;  %v11128_v36 = vpack.c.bf16 %v2667_v58, %v2628_v15  ;;  %v448_v47 = vmul.f32 %v10703_v17, %v11124_v3  ;;  %v487_v51 = vmul.f32 %v10703_v17, %v11122_v24 }
  0xac   :  { %v11134_v57 = vpack.c.bf16 %v2664_v46, %v2625_v49  ;;  %v11136_v11 = vpack.c.bf16 %v2666_v9, %v2627_v53  ;;  %v450_v56 = vmul.f32 %v10711_v19, %v11124_v3  ;;  %v489_v48 = vmul.f32 %v10711_v19, %v11122_v24 }
  0xad   :  { %18052 = vst [vmem:[#allocation64_spill] sm:$0xff] %v11126_v2  ;;  %18053 = vst [vmem:[#allocation65_spill] sm:$0xff] %v11128_v36  ;;  %2973 = vmatprep.subr.bf16.mxu0 %v11126_v2  ;;  %3026 = vmatprep.subr.bf16.mxu1 %v11128_v36  ;;  %v447_v50 = vmul.f32 0.0, %v11124_v3  ;;  %v449_v29 = vmul.f32 %v10707_v18, %v11124_v3  ;;  %v488_v28 = vmul.f32 %v10707_v18, %v11122_v24  ;;  %v11151_v31 = vpop.permute.xlu1 %775 }
  0xae   :  { %18054 = vst [vmem:[#allocation66_spill] sm:$0xff] %v11134_v57  ;;  %18055 = vst [vmem:[#allocation67_spill] sm:$0xff] %v11136_v11  ;;  %v11153_v17 = vpop.permute.xlu0 %770  ;;  %2974 = vmatpush1.bf16.msra.mxu0 %v11134_v57  ;;  %3027 = vmatpush1.bf16.msra.mxu1 %v11136_v11  ;;  %v486_v54 = vmul.f32 0.0, %v11122_v24  ;;  %v11160_v14 = vadd.f32 %v10988_v33, %v11044_v27  ;;  %v11164_v52 = vadd.f32 %v10986_v35, %v11048_v22 }
  0xaf   :  { %18056 = vst [vmem:[#allocation68_spill] sm:$0xff] %v11153_v17  ;;  %v11168_v37 = vadd.f32 %v10936_v5, %v10932_v0  ;;  %v809_v15 = vmul.f32 %v11153_v17, %v10650_v59  ;;  %v848_v58 = vmul.f32 %v11151_v31, %v10650_v59  ;;  %v811_v49 = vmul.f32 %v11153_v17, %v10738_v26 }
  0xb0   :  { %v850_v27 = vmul.f32 %v11151_v31, %v10738_v26  ;;  %v808_v22 = vmul.f32 %v11153_v17, %v10640_v55  ;;  %v847_v46 = vmul.f32 %v11151_v31, %v10640_v55  ;;  %v810_v0 = vmul.f32 %v11153_v17, %v10652_v60 }
  0xb1   :  { %v849_v5 = vmul.f32 %v11151_v31, %v10652_v60  ;;  %v1121_v53 = vadd.f32 %v809_v15, %v448_v47  ;;  %v1160_v59 = vadd.f32 %v848_v58, %v487_v51  ;;  %v1123_v9 = vadd.f32 %v811_v49, %v450_v56  ;;  %v11186_v2 = vpop.permute.xlu1 %1448 }
  0xb2   :  { %v1162_v36 = vadd.f32 %v850_v27, %v489_v48  ;;  %v11188_v57 = vpop.permute.xlu0 %1443  ;;  %v1120_v26 = vadd.f32 %v808_v22, %v447_v50  ;;  %v1159_v11 = vadd.f32 %v847_v46, %v486_v54  ;;  %v1122_v24 = vadd.f32 %v810_v0, %v449_v29 }
  0xb3   :  { %v1161_v3 = vadd.f32 %v849_v5, %v488_v28  ;;  %v1486_v55 = vmul.f32 %v11188_v57, %v10711_v19  ;;  %v1525_v17 = vmul.f32 %v11186_v2, %v10711_v19  ;;  %v1488_v60 = vmul.f32 %v11188_v57, %v10715_v20 }
  0xb4   :  { %v1527_v47 = vmul.f32 %v11186_v2, %v10715_v20  ;;  %v1485_v51 = vmul.f32 %v11188_v57, %v10707_v18  ;;  %v1524_v56 = vmul.f32 %v11186_v2, %v10707_v18  ;;  %v1487_v48 = vmul.f32 %v11188_v57, %v10802_v44 }
  0xb5   :  { %v1526_v50 = vmul.f32 %v11186_v2, %v10802_v44  ;;  %v1798_v29 = vadd.f32 %v1486_v55, %v1121_v53  ;;  %v1837_v19 = vadd.f32 %v1525_v17, %v1160_v59  ;;  %v1800_v28 = vadd.f32 %v1488_v60, %v1123_v9  ;;  %v11206_v15 = vpop.permute.xlu1 %2134 }
  0xb6   :  { %v1839_v54 = vadd.f32 %v1527_v47, %v1162_v36  ;;  %v11208_v58 = vpop.permute.xlu0 %2129  ;;  %v1797_v49 = vadd.f32 %v1485_v51, %v1120_v26  ;;  %v1836_v27 = vadd.f32 %v1524_v56, %v1159_v11  ;;  %v1799_v22 = vadd.f32 %v1487_v48, %v1122_v24 }
  0xb7   :  { %v1838_v46 = vadd.f32 %v1526_v50, %v1161_v3  ;;  %v2236_v18 = vadd.f32 %v11208_v58, %v11088_v63  ;;  %v2275_v0 = vadd.f32 %v11206_v15, %v11090_v10  ;;  %v2238_v5 = vadd.f32 %v11208_v58, %v11092_v4 }
  0xb8   :  { %v2277_v36 = vadd.f32 %v11206_v15, %v11100_v30  ;;  %v2235_v17 = vadd.f32 %v11208_v58, %v11102_v32  ;;  %v2274_v11 = vadd.f32 %v11206_v15, %v11104_v21  ;;  %v2237_v24 = vadd.f32 %v11208_v58, %v11106_v13 }
  0xb9   :  { %v2276_v63 = vadd.f32 %v11206_v15, %v11130_v1  ;;  %v2548_v3 = vmax.f32 %v2236_v18, 0.0  ;;  %v2587_v10 = vmax.f32 %v2275_v0, 0.0  ;;  %v2550_v53 = vmax.f32 %v2238_v5, 0.0  ;;  %v11226_v4 = vpop.permute.xlu1 %2124 }
  0xba   :  { %v2589_v59 = vmax.f32 %v2277_v36, 0.0  ;;  %v11228_v9 = vpop.permute.xlu0 %2119  ;;  %v2547_v30 = vmax.f32 %v2235_v17, 0.0  ;;  %v2586_v26 = vmax.f32 %v2274_v11, 0.0  ;;  %v2549_v32 = vmax.f32 %v2237_v24, 0.0 }
  0xbb   :  { %v2588_v55 = vmax.f32 %v2276_v63, 0.0  ;;  %v11230_v60 = vpack.c.bf16 %v2587_v10, %v2548_v3  ;;  %v2158_v13 = vadd.f32 %v11228_v9, %v1798_v29  ;;  %v2197_v1 = vadd.f32 %v11226_v4, %v1837_v19 }
  0xbc   :  { %v11232_v21 = vpack.c.bf16 %v2589_v59, %v2550_v53  ;;  %v11236_v47 = vpack.c.bf16 %v2586_v26, %v2547_v30  ;;  %v2160_v56 = vadd.f32 %v11228_v9, %v1800_v28  ;;  %v2199_v48 = vadd.f32 %v11226_v4, %v1839_v54 }
  0xbd   :  { %18057 = vst [vmem:[#allocation69_spill] sm:$0xff] %v11230_v60  ;;  %v11238_v51 = vpack.c.bf16 %v2588_v55, %v2549_v32  ;;  %2975 = vmatprep.subr.bf16.mxu0 %v11230_v60  ;;  %v2470_v50 = vmax.f32 %v2158_v13, 0.0  ;;  %v2509_v18 = vmax.f32 %v2197_v1, 0.0  ;;  %v2157_v0 = vadd.f32 %v11228_v9, %v1797_v49 }
  0xbe   :  { %18058 = vst [vmem:[#allocation70_spill] sm:$0xff] %v11232_v21  ;;  %18059 = vst [vmem:[#allocation71_spill] sm:$0xff] %v11236_v47  ;;  %3028 = vmatprep.subr.bf16.mxu1 %v11232_v21  ;;  %v2196_v29 = vadd.f32 %v11226_v4, %v1836_v27  ;;  %2976 = vmatpush1.bf16.msra.mxu0 %v11236_v47  ;;  %v2472_v19 = vmax.f32 %v2160_v56, 0.0  ;;  %v2511_v5 = vmax.f32 %v2199_v48, 0.0  ;;  %v2708_v24 = vmax.f32 %v11160_v14, 0.0 }
  0xbf   :  { %18060 = vst [vmem:[#allocation72_spill] sm:$0xff] %v11238_v51  ;;  %3029 = vmatpush1.bf16.msra.mxu1 %v11238_v51  ;;  %v2159_v28 = vadd.f32 %v11228_v9, %v1799_v22  ;;  %v2198_v54 = vadd.f32 %v11226_v4, %v1838_v46  ;;  %v11250_v36 = vpack.c.bf16 %v2509_v18, %v2470_v50  ;;  %v2469_v17 = vmax.f32 %v2157_v0, 0.0 }
  0xc0   :  { %v2508_v11 = vmax.f32 %v2196_v29, 0.0  ;;  %v11253_v63 = vpack.c.bf16 %v2511_v5, %v2472_v19  ;;  %v2747_v3 = vmax.f32 %v11164_v52, 0.0  ;;  %v2077_v22 = vadd.f32 %v10956_v40, %v11068_v12  ;;  %v11273_v52 = vld [vmem:[%s17463_s3 + $0x10] sm:$0xff]  }
  0xc1   :  { %18061 = vst [vmem:[#allocation73_spill] sm:$0xff] %v11250_v36  ;;  %v2471_v49 = vmax.f32 %v2159_v28, 0.0  ;;  %v2510_v27 = vmax.f32 %v2198_v54, 0.0  ;;  %2977 = vmatprep.subr.bf16.mxu0 %v11250_v36  ;;  %v2398_v46 = vadd.f32 %v10988_v33, %v11168_v37  ;;  %v724_v53 = vmul.f32 %v10802_v44, %v10837_v38 }
  0xc2   :  { %18062 = vst [vmem:[#allocation74_spill] sm:$0xff] %v11253_v63  ;;  %v11257_v10 = vpack.c.bf16 %v2508_v11, %v2469_v17  ;;  %3030 = vmatprep.subr.bf16.mxu1 %v11253_v63  ;;  %v11268_v59 = vpack.c.bf16 %v2747_v3, %v2708_v24  ;;  %v1046_v40 = vmul.f32 %v10792_v41, %v10654_v61  ;;  %v18068_v11 = vld [vmem:[#allocation48_spill] sm:$0xff]  ;;  %v18069_v3 = vld [vmem:[#allocation47_spill] sm:$0xff] }
  0xc3   :  { %v11266_v14 = vpack.c.bf16 %v2510_v27, %v2471_v49  ;;  %v1085_v12 = vmul.f32 %v10835_v43, %v10654_v61  ;;  %v2437_v37 = vadd.f32 %v10986_v35, %v2077_v22  ;;  %v2710_v30 = vmax.f32 %v2398_v46, 0.0  ;;  %v18070_v46 = vld [vmem:[#allocation28_spill] sm:$0xff] }
  0xc4   :  { %18063 = vst [vmem:[#allocation75_spill] sm:$0xff] %v11257_v10  ;;  %18065 = vst [vmem:[#allocation77_spill] sm:$0xff] %v11268_v59  ;;  %2978 = vmatpush1.bf16.msra.mxu0 %v11257_v10  ;;  %v1723_v26 = vmul.f32 %v10864_v7, %v10806_v45  ;;  %v1762_v32 = vmul.f32 %v10862_v8, %v10806_v45  ;;  %v1358_v55 = vadd.f32 %v1046_v40, %v10960_v23  ;;  %v18066_v23 = vld [vmem:[#allocation43_spill] sm:$0xff] }
  0xc5   :  { %18064 = vst [vmem:[#allocation76_spill] sm:$0xff] %v11266_v14  ;;  %3031 = vmatpush1.bf16.msra.mxu1 %v11266_v14  ;;  %3077 = vmatprep.subr.bf16.mxu0 %v11268_v59  ;;  %v1397_v13 = vadd.f32 %v1085_v12, %v724_v53  ;;  %v687_v1 = vmul.f32 %v10806_v45, %v10794_v42  ;;  %v2749_v56 = vmax.f32 %v2437_v37, 0.0  ;;  %v18071_v53 = vld [vmem:[#allocation50_spill] sm:$0xff]  ;;  %v18072_v12 = vmov 0  }
  0xc6   :  { %v726_v48 = vmul.f32 %v10806_v45, %v10837_v38  ;;  %v1048_v50 = vmul.f32 %v10792_v41, %v10657_v62  ;;  %v1087_v18 = vmul.f32 %v10835_v43, %v10657_v62  ;;  %v2035_v0 = vadd.f32 %v1723_v26, %v1358_v55  ;;  %v18073_v26 = vld [vmem:[#allocation49_spill] sm:$0xff]  ;;  %v18074_v55 = vld [vmem:[#allocation23_spill] sm:$0xff] }
  0xc7   :  { %9999 = vmatmul.mubr.msk.bf16.vlgmr.msra.gmra.mxu0 %vm2956_vm0, %v11273_v52  ;;  %v2074_v29 = vadd.f32 %v1762_v32, %v1397_v13  ;;  %v1725_v19 = vmul.f32 %v10864_v7, %v18066_v23  ;;  %v1764_v5 = vmul.f32 %v10862_v8, %v18066_v23  ;;  %v11302_v28 = vpack.c.bf16 %v2749_v56, %v2710_v30  ;;  %v18075_v13 = vld [vmem:[#allocation52_spill] sm:$0xff] }
  0xc8   :  { %10001 = vmatmul.mubr.msk.bf16.vlgmr.msra.gmra.mxu1 %vm2956_vm0, %v11273_v52  ;;  %v1360_v54 = vadd.f32 %v1048_v50, %v687_v1  ;;  %v1399_v17 = vadd.f32 %v1087_v18, %v726_v48  ;;  %v608_v24 = vmul.f32 %v10715_v20, %v18068_v11  ;;  %v2395_v49 = vadd.f32 %v10988_v33, %v2035_v0  ;;  %v18076_v18 = vld [vmem:[#allocation51_spill] sm:$0xff] }
  0xc9   :  { %18067 = vst [vmem:[#allocation43_spill] sm:$0xff] %v11302_v28  ;;  %v2434_v27 = vadd.f32 %v10986_v35, %v2074_v29  ;;  %v647_v22 = vmul.f32 %v10715_v20, %v18069_v3  ;;  %v969_v40 = vmul.f32 %v18071_v53, %v18070_v46  ;;  %3005 = vmatprep.mubr.bf16.mxu0 %v18072_v12 }
  0xca   :  { %3130 = vmatprep.subr.bf16.mxu1 %v11302_v28  ;;  %v2037_v37 = vadd.f32 %v1725_v19, %v1360_v54  ;;  %v2076_v30 = vadd.f32 %v1764_v5, %v1399_v17  ;;  %v1008_v32 = vmul.f32 %v18073_v26, %v18070_v46  ;;  %v1646_v1 = vmul.f32 %v18075_v13, %v18074_v55  ;;  %v11330_v54 = vld [vmem:[%s17463_s3 + $0x18] sm:$0xff]  }
  0xcb   :  { %v2707_v56 = vmax.f32 %v2395_v49, 0.0  ;;  %v2746_v48 = vmax.f32 %v2434_v27, 0.0  ;;  %v1281_v50 = vadd.f32 %v969_v40, %v608_v24  ;;  %v1685_v0 = vmul.f32 %v18076_v18, %v18074_v55  ;;  %3058 = vmatprep.mubr.bf16.mxu1 %v18072_v12  ;;  %v18078_v27 = vld [vmem:[#allocation29_spill] sm:$0xff] }
  0xcc   :  { %v2397_v29 = vadd.f32 %v10988_v33, %v2037_v37  ;;  %v2436_v28 = vadd.f32 %v10986_v35, %v2076_v30  ;;  %v1320_v19 = vadd.f32 %v1008_v32, %v647_v22  ;;  %v610_v5 = vmul.f32 %v18074_v55, %v18068_v11 }
  0xcd   :  { %v11332_v17 = vpack.c.bf16 %v2746_v48, %v2707_v56  ;;  %v1958_v24 = vadd.f32 %v1646_v1, %v1281_v50  ;;  %v649_v49 = vmul.f32 %v18074_v55, %v18069_v3  ;;  %v971_v40 = vmul.f32 %v18071_v53, %v18078_v27  ;;  %v18079_v56 = vld [vmem:[#allocation24_spill] sm:$0xff] }
  0xce   :  { %v2709_v37 = vmax.f32 %v2397_v29, 0.0  ;;  %v2748_v30 = vmax.f32 %v2436_v28, 0.0  ;;  %v1997_v22 = vadd.f32 %v1685_v0, %v1320_v19  ;;  %v1010_v32 = vmul.f32 %v18073_v26, %v18078_v27 }
  0xcf   :  { %18077 = vst [vmem:[#allocation48_spill] sm:$0xff] %v11332_v17  ;;  %3078 = vmatpush1.bf16.msra.mxu0 %v11332_v17  ;;  %v2318_v63 = vadd.f32 %v11098_v6, %v1958_v24  ;;  %v1283_v21 = vadd.f32 %v971_v40, %v610_v5  ;;  %v1648_v1 = vmul.f32 %v18075_v13, %v18079_v56 }
  0xd0   :  { %v1687_v48 = vmul.f32 %v18076_v18, %v18079_v56  ;;  %v11346_v50 = vpack.c.bf16 %v2748_v30, %v2709_v37  ;;  %v2357_v29 = vadd.f32 %v11096_v16, %v1997_v22  ;;  %v1322_v28 = vadd.f32 %v1010_v32, %v649_v49  ;;  %10000 = vmatmul.mubr.msk.bf16.gmra.mxu0 %vm2956_vm0, %v11330_v54 }
  0xd1   :  { %v607_v0 = vmul.f32 %v10802_v44, %v18068_v11  ;;  %v2630_v19 = vmax.f32 %v2318_v63, 0.0  ;;  %v1960_v24 = vadd.f32 %v1648_v1, %v1283_v21  ;;  %v646_v5 = vmul.f32 %v10802_v44, %v18069_v3  ;;  %10002 = vmatmul.mubr.msk.bf16.gmra.mxu1 %vm2956_vm0, %v11330_v54  ;;  %3101 = vmatprep.mubr.bf16.mxu0 %v18072_v12 }
  0xd2   :  { %18080 = vst [vmem:[#allocation47_spill] sm:$0xff] %v11346_v50  ;;  %v968_v40 = vmul.f32 %v18071_v53, %v10654_v61  ;;  %3131 = vmatpush1.bf16.msra.mxu1 %v11346_v50  ;;  %v2669_v49 = vmax.f32 %v2357_v29, 0.0  ;;  %v1999_v37 = vadd.f32 %v1687_v48, %v1322_v28  ;;  %v1007_v30 = vmul.f32 %v18073_v26, %v10654_v61 }
  0xd3   :  { %v1645_v21 = vmul.f32 %v18075_v13, %v10806_v45  ;;  %3154 = vmatprep.mubr.bf16.mxu1 %v18072_v12  ;;  %v2320_v63 = vadd.f32 %v11098_v6, %v1960_v24  ;;  %v1684_v32 = vmul.f32 %v18076_v18, %v10806_v45  ;;  %v609_v1 = vmul.f32 %v10806_v45, %v18068_v11 }
  0xd4   :  { %v1280_v22 = vadd.f32 %v968_v40, %v607_v0  ;;  %v11371_v59 = vpack.c.bf16 %v2669_v49, %v2630_v19  ;;  %v2359_v48 = vadd.f32 %v11096_v16, %v1999_v37  ;;  %v1319_v29 = vadd.f32 %v1007_v30, %v646_v5 }
  0xd5   :  { %v648_v28 = vmul.f32 %v10806_v45, %v18069_v3  ;;  %v2632_v17 = vmax.f32 %v2320_v63, 0.0  ;;  %v970_v24 = vmul.f32 %v18071_v53, %v10657_v62  ;;  %v1009_v0 = vmul.f32 %v18073_v26, %v10657_v62 }
  0xd6   :  { %18081 = vst [vmem:[#allocation28_spill] sm:$0xff] %v11371_v59  ;;  %v1957_v50 = vadd.f32 %v1645_v21, %v1280_v22  ;;  %3079 = vmatprep.subr.bf16.mxu0 %v11371_v59  ;;  %v2671_v40 = vmax.f32 %v2359_v48, 0.0  ;;  %v1996_v36 = vadd.f32 %v1684_v32, %v1319_v29  ;;  %v1647_v19 = vmul.f32 %v18075_v13, %v18066_v23  ;;  %v18082_v21 = vld [vmem:[#allocation54_spill] sm:$0xff]  ;;  %v18084_v59 = vld [vmem:[#allocation53_spill] sm:$0xff]  ;;  %v18085_v48 = vld [vmem:[#allocation59_spill] sm:$0xff] }
  0xd7   :  { %v1686_v5 = vmul.f32 %v18076_v18, %v18066_v23  ;;  %v1282_v37 = vadd.f32 %v970_v24, %v609_v1  ;;  %v1321_v30 = vadd.f32 %v1009_v0, %v648_v28  ;;  %v530_v63 = vmul.f32 %v10715_v20, %v18082_v21 }
  0xd8   :  { %v2317_v49 = vadd.f32 %v11098_v6, %v1957_v50  ;;  %v11388_v22 = vpack.c.bf16 %v2671_v40, %v2632_v17  ;;  %v2356_v10 = vadd.f32 %v11096_v16, %v1996_v36  ;;  %v569_v32 = vmul.f32 %v10715_v20, %v18084_v59 }
  0xd9   :  { %v891_v29 = vmul.f32 %v18085_v48, %v18070_v46  ;;  %v1959_v60 = vadd.f32 %v1647_v19, %v1282_v37  ;;  %v1998_v47 = vadd.f32 %v1686_v5, %v1321_v30  ;;  %v930_v50 = vmul.f32 %v11033_v34, %v18070_v46 }
  0xda   :  { %18083 = vst [vmem:[#allocation50_spill] sm:$0xff] %v11388_v22  ;;  %v2629_v14 = vmax.f32 %v2317_v49, 0.0  ;;  %3132 = vmatprep.subr.bf16.mxu1 %v11388_v22  ;;  %v2668_v1 = vmax.f32 %v2356_v10, 0.0  ;;  %v1568_v17 = vmul.f32 %v11072_v39, %v18074_v55  ;;  %v1607_v36 = vmul.f32 %v11070_v25, %v18074_v55 }
  0xdb   :  { %v1203_v28 = vadd.f32 %v891_v29, %v530_v63  ;;  %v2319_v24 = vadd.f32 %v11098_v6, %v1959_v60  ;;  %v2358_v0 = vadd.f32 %v11096_v16, %v1998_v47  ;;  %v1242_v40 = vadd.f32 %v930_v50, %v569_v32 }
  0xdc   :  { %v532_v19 = vmul.f32 %v18074_v55, %v18082_v21  ;;  %v11406_v5 = vpack.c.bf16 %v2668_v1, %v2629_v14  ;;  %v571_v10 = vmul.f32 %v18074_v55, %v18084_v59  ;;  %v893_v37 = vmul.f32 %v18085_v48, %v18078_v27 }
  0xdd   :  { %v1880_v49 = vadd.f32 %v1568_v17, %v1203_v28  ;;  %v2631_v30 = vmax.f32 %v2319_v24, 0.0  ;;  %v2670_v63 = vmax.f32 %v2358_v0, 0.0  ;;  %v1919_v29 = vadd.f32 %v1607_v36, %v1242_v40 }
  0xde   :  { %18086 = vst [vmem:[#allocation49_spill] sm:$0xff] %v11406_v5  ;;  %v932_v60 = vmul.f32 %v11033_v34, %v18078_v27  ;;  %3080 = vmatpush1.bf16.msra.mxu0 %v11406_v5  ;;  %v1205_v32 = vadd.f32 %v893_v37, %v532_v19  ;;  %v1570_v14 = vmul.f32 %v11072_v39, %v18079_v56 }
  0xdf   :  { %v2240_v47 = vadd.f32 %v11208_v58, %v1880_v49  ;;  %v1609_v50 = vmul.f32 %v11070_v25, %v18079_v56  ;;  %v11420_v1 = vpack.c.bf16 %v2670_v63, %v2631_v30  ;;  %v2279_v28 = vadd.f32 %v11206_v15, %v1919_v29 }
  0xe0   :  { %v1244_v17 = vadd.f32 %v932_v60, %v571_v10  ;;  %v529_v36 = vmul.f32 %v10802_v44, %v18082_v21  ;;  %v1882_v0 = vadd.f32 %v1570_v14, %v1205_v32  ;;  %v568_v40 = vmul.f32 %v10802_v44, %v18084_v59 }
  0xe1   :  { %18087 = vst [vmem:[#allocation23_spill] sm:$0xff] %v11420_v1  ;;  %v2552_v24 = vmax.f32 %v2240_v47, 0.0  ;;  %v890_v19 = vmul.f32 %v18085_v48, %v10654_v61  ;;  %3133 = vmatpush1.bf16.msra.mxu1 %v11420_v1  ;;  %v2591_v49 = vmax.f32 %v2279_v28, 0.0  ;;  %v929_v30 = vmul.f32 %v11033_v34, %v10654_v61 }
  0xe2   :  { %v1921_v37 = vadd.f32 %v1609_v50, %v1244_v17  ;;  %v1567_v10 = vmul.f32 %v11072_v39, %v10806_v45  ;;  %v2242_v63 = vadd.f32 %v11208_v58, %v1882_v0  ;;  %v1606_v60 = vmul.f32 %v11070_v25, %v10806_v45 }
  0xe3   :  { %v1202_v29 = vadd.f32 %v890_v19, %v529_v36  ;;  %v531_v47 = vmul.f32 %v10806_v45, %v18082_v21  ;;  %v11439_v32 = vpack.c.bf16 %v2591_v49, %v2552_v24  ;;  %v1241_v50 = vadd.f32 %v929_v30, %v568_v40 }
  0xe4   :  { %v2281_v14 = vadd.f32 %v11206_v15, %v1921_v37  ;;  %v570_v28 = vmul.f32 %v10806_v45, %v18084_v59  ;;  %v2554_v17 = vmax.f32 %v2242_v63, 0.0  ;;  %v892_v0 = vmul.f32 %v18085_v48, %v10657_v62 }
  0xe5   :  { %18088 = vst [vmem:[#allocation52_spill] sm:$0xff] %v11439_v32  ;;  %v1879_v22 = vadd.f32 %v1567_v10, %v1202_v29  ;;  %v931_v36 = vmul.f32 %v11033_v34, %v10657_v62  ;;  %3081 = vmatprep.subr.bf16.mxu0 %v11439_v32  ;;  %v1918_v5 = vadd.f32 %v1606_v60, %v1241_v50  ;;  %v18089_v10 = vld [vmem:[#allocation63_spill] sm:$0xff]  ;;  %v18091_v32 = vld [vmem:[#allocation62_spill] sm:$0xff] }
  0xe6   :  { %v2593_v19 = vmax.f32 %v2281_v14, 0.0  ;;  %v1569_v24 = vmul.f32 %v11072_v39, %v18066_v23  ;;  %v1608_v40 = vmul.f32 %v11070_v25, %v18066_v23  ;;  %v1204_v37 = vadd.f32 %v892_v0, %v531_v47  ;;  %v18092_v14 = vld [vmem:[#allocation68_spill] sm:$0xff] }
  0xe7   :  { %v2239_v49 = vadd.f32 %v11208_v58, %v1879_v22  ;;  %v1243_v30 = vadd.f32 %v931_v36, %v570_v28  ;;  %v452_v63 = vmul.f32 %v10715_v20, %v18089_v10  ;;  %v2278_v1 = vadd.f32 %v11206_v15, %v1918_v5 }
  0xe8   :  { %v11456_v29 = vpack.c.bf16 %v2593_v19, %v2554_v17  ;;  %v491_v60 = vmul.f32 %v10715_v20, %v18091_v32  ;;  %v813_v50 = vmul.f32 %v18092_v14, %v18070_v46  ;;  %v1881_v39 = vadd.f32 %v1569_v24, %v1204_v37 }
  0xe9   :  { %v2551_v51 = vmax.f32 %v2239_v49, 0.0  ;;  %v1920_v25 = vadd.f32 %v1608_v40, %v1243_v30  ;;  %v852_v22 = vmul.f32 %v11151_v31, %v18070_v46  ;;  %v2590_v47 = vmax.f32 %v2278_v1, 0.0 }
  0xea   :  { %18090 = vst [vmem:[#allocation51_spill] sm:$0xff] %v11456_v29  ;;  %3134 = vmatprep.subr.bf16.mxu1 %v11456_v29  ;;  %v1125_v28 = vadd.f32 %v813_v50, %v452_v63  ;;  %v1490_v17 = vmul.f32 %v11188_v57, %v18074_v55  ;;  %v1529_v5 = vmul.f32 %v11186_v2, %v18074_v55 }
  0xeb   :  { %v2241_v20 = vadd.f32 %v11208_v58, %v1881_v39  ;;  %v2280_v0 = vadd.f32 %v11206_v15, %v1920_v25  ;;  %v1164_v36 = vadd.f32 %v852_v22, %v491_v60  ;;  %v454_v19 = vmul.f32 %v18074_v55, %v18089_v10 }
  0xec   :  { %v11474_v24 = vpack.c.bf16 %v2590_v47, %v2551_v51  ;;  %v1802_v46 = vadd.f32 %v1490_v17, %v1125_v28  ;;  %v493_v1 = vmul.f32 %v18074_v55, %v18091_v32  ;;  %v815_v40 = vmul.f32 %v18092_v14, %v18078_v27 }
  0xed   :  { %v2553_v49 = vmax.f32 %v2241_v20, 0.0  ;;  %v2592_v37 = vmax.f32 %v2280_v0, 0.0  ;;  %v1841_v30 = vadd.f32 %v1529_v5, %v1164_v36  ;;  %v854_v39 = vmul.f32 %v11151_v31, %v18078_v27 }
  0xee   :  { %18093 = vst [vmem:[#allocation29_spill] sm:$0xff] %v11474_v24  ;;  %3082 = vmatpush1.bf16.msra.mxu0 %v11474_v24  ;;  %v2162_v25 = vadd.f32 %v11228_v9, %v1802_v46  ;;  %v1127_v63 = vadd.f32 %v815_v40, %v454_v19  ;;  %v1492_v51 = vmul.f32 %v11188_v57, %v18079_v56 }
  0xef   :  { %v1531_v55 = vmul.f32 %v11186_v2, %v18079_v56  ;;  %v11488_v60 = vpack.c.bf16 %v2592_v37, %v2553_v49  ;;  %v2201_v50 = vadd.f32 %v11226_v4, %v1841_v30  ;;  %v1166_v22 = vadd.f32 %v854_v39, %v493_v1 }
  0xf0   :  { %v451_v47 = vmul.f32 %v10802_v44, %v18089_v10  ;;  %v2474_v27 = vmax.f32 %v2162_v25, 0.0  ;;  %v1804_v28 = vadd.f32 %v1492_v51, %v1127_v63  ;;  %v490_v17 = vmul.f32 %v10802_v44, %v18091_v32 }
  0xf1   :  { %18094 = vst [vmem:[#allocation24_spill] sm:$0xff] %v11488_v60  ;;  %v812_v5 = vmul.f32 %v18092_v14, %v10654_v61  ;;  %3135 = vmatpush1.bf16.msra.mxu1 %v11488_v60  ;;  %v2513_v20 = vmax.f32 %v2201_v50, 0.0  ;;  %v1843_v0 = vadd.f32 %v1531_v55, %v1166_v22  ;;  %v851_v36 = vmul.f32 %v11151_v31, %v10654_v61 }
  0xf2   :  { %v1489_v19 = vmul.f32 %v11188_v57, %v10806_v45  ;;  %v2164_v46 = vadd.f32 %v11228_v9, %v1804_v28  ;;  %v1528_v40 = vmul.f32 %v11186_v2, %v10806_v45  ;;  %v453_v44 = vmul.f32 %v10806_v45, %v18089_v10 }
  0xf3   :  { %v1124_v1 = vadd.f32 %v812_v5, %v451_v47  ;;  %v11507_v49 = vpack.c.bf16 %v2513_v20, %v2474_v27  ;;  %v2203_v37 = vadd.f32 %v11226_v4, %v1843_v0  ;;  %v1163_v30 = vadd.f32 %v851_v36, %v490_v17  ;;  %v18097_v0 = vld [vmem:[#allocation40_spill] sm:$0xff] }
  0xf4   :  { %v492_v61 = vmul.f32 %v10806_v45, %v18091_v32  ;;  %v2476_v39 = vmax.f32 %v2164_v46, 0.0  ;;  %v814_v63 = vmul.f32 %v18092_v14, %v10657_v62  ;;  %v853_v51 = vmul.f32 %v11151_v31, %v10657_v62 }
  0xf5   :  { %18095 = vst [vmem:[#allocation54_spill] sm:$0xff] %v11507_v49  ;;  %v1801_v25 = vadd.f32 %v1489_v19, %v1124_v1  ;;  %3083 = vmatprep.subr.bf16.mxu0 %v11507_v49  ;;  %v2515_v55 = vmax.f32 %v2203_v37, 0.0  ;;  %v1840_v50 = vadd.f32 %v1528_v40, %v1163_v30  ;;  %v1491_v22 = vmul.f32 %v11188_v57, %v18066_v23  ;;  %v18098_v30 = vld [vmem:[#allocation25_spill] sm:$0xff] }
  0xf6   :  { %v1530_v47 = vmul.f32 %v11186_v2, %v18066_v23  ;;  %v1126_v27 = vadd.f32 %v814_v63, %v453_v44  ;;  %v1165_v28 = vadd.f32 %v853_v51, %v492_v61  ;;  %v690_v17 = vmul.f32 %v18079_v56, %v10794_v42 }
  0xf7   :  { %v2161_v45 = vadd.f32 %v11228_v9, %v1801_v25  ;;  %v11524_v5 = vpack.c.bf16 %v2515_v55, %v2476_v39  ;;  %v2200_v62 = vadd.f32 %v11226_v4, %v1840_v50  ;;  %v729_v20 = vmul.f32 %v18079_v56, %v10837_v38 }
  0xf8   :  { %v1051_v36 = vmul.f32 %v10792_v41, %v18097_v0  ;;  %v1803_v46 = vadd.f32 %v1491_v22, %v1126_v27  ;;  %v1842_v1 = vadd.f32 %v1530_v47, %v1165_v28  ;;  %v1090_v40 = vmul.f32 %v10835_v43, %v18097_v0 }
  0xf9   :  { %18096 = vst [vmem:[#allocation53_spill] sm:$0xff] %v11524_v5  ;;  %v2473_v19 = vmax.f32 %v2161_v45, 0.0  ;;  %3136 = vmatprep.subr.bf16.mxu1 %v11524_v5  ;;  %v2512_v44 = vmax.f32 %v2200_v62, 0.0  ;;  %v1728_v61 = vmul.f32 %v10864_v7, %v18098_v30  ;;  %v1767_v39 = vmul.f32 %v10862_v8, %v18098_v30  ;;  %v18100_v45 = vld [vmem:[#allocation41_spill] sm:$0xff] }
  0xfa   :  { %v1363_v37 = vadd.f32 %v1051_v36, %v690_v17  ;;  %v2163_v25 = vadd.f32 %v11228_v9, %v1803_v46  ;;  %v2202_v63 = vadd.f32 %v11226_v4, %v1842_v1  ;;  %v1402_v51 = vadd.f32 %v1090_v40, %v729_v20 }
  0xfb   :  { %v692_v55 = vmul.f32 %v18098_v30, %v10794_v42  ;;  %v11542_v50 = vpack.c.bf16 %v2512_v44, %v2473_v19  ;;  %v731_v47 = vmul.f32 %v18098_v30, %v10837_v38  ;;  %v1053_v27 = vmul.f32 %v10792_v41, %v18100_v45  ;;  %v18101_v19 = vld [vmem:[#allocation26_spill] sm:$0xff] }
  0xfc   :  { %v2040_v22 = vadd.f32 %v1728_v61, %v1363_v37  ;;  %v2475_v28 = vmax.f32 %v2163_v25, 0.0  ;;  %v2514_v17 = vmax.f32 %v2202_v63, 0.0  ;;  %v2079_v62 = vadd.f32 %v1767_v39, %v1402_v51 }
  0xfd   :  { %18099 = vst [vmem:[#allocation59_spill] sm:$0xff] %v11542_v50  ;;  %v1092_v36 = vmul.f32 %v10835_v43, %v18100_v45  ;;  %3084 = vmatpush1.bf16.msra.mxu0 %v11542_v50  ;;  %v1365_v46 = vadd.f32 %v1053_v27, %v692_v55  ;;  %v1730_v1 = vmul.f32 %v10864_v7, %v18101_v19  ;;  %v18103_v55 = vld [vmem:[#allocation7_spill] sm:$0xff] }
  0xfe   :  { %v2400_v20 = vadd.f32 %v10988_v33, %v2040_v22  ;;  %v1769_v40 = vmul.f32 %v10862_v8, %v18101_v19  ;;  %v11556_v44 = vpack.c.bf16 %v2514_v17, %v2475_v28  ;;  %v2439_v37 = vadd.f32 %v10986_v35, %v2079_v62  ;;  %v18104_v28 = vld [vmem:[#allocation44_spill] sm:$0xff] }
  0xff   :  { %v1404_v61 = vadd.f32 %v1092_v36, %v731_v47  ;;  %v689_v39 = vmul.f32 %v18066_v23, %v10794_v42  ;;  %v2042_v63 = vadd.f32 %v1730_v1, %v1365_v46  ;;  %v728_v51 = vmul.f32 %v18066_v23, %v10837_v38 }
 0x100   :  { %18102 = vst [vmem:[#allocation63_spill] sm:$0xff] %v11556_v44  ;;  %v2712_v25 = vmax.f32 %v2400_v20, 0.0  ;;  %v1050_v22 = vmul.f32 %v10792_v41, %v18103_v55  ;;  %3137 = vmatpush1.bf16.msra.mxu1 %v11556_v44  ;;  %v2751_v27 = vmax.f32 %v2439_v37, 0.0  ;;  %10003 = vmatmul.mubr.msk.bf16.vlgmr.msra.gmra.mxu0 %vm2956_vm0, %v11273_v52  ;;  %v1089_v47 = vmul.f32 %v10835_v43, %v18103_v55 }
 0x101   :  { %v2081_v5 = vadd.f32 %v1769_v40, %v1404_v61  ;;  %v1727_v17 = vmul.f32 %v10864_v7, %v18104_v28  ;;  %v2402_v62 = vadd.f32 %v10988_v33, %v2042_v63  ;;  %v1766_v20 = vmul.f32 %v10862_v8, %v18104_v28  ;;  %3111 = vmatprep.mubr.bf16.mxu0 %v18072_v12  ;;  %v18106_v63 = vld [vmem:[#allocation8_spill] sm:$0xff] }
 0x102   :  { %v1362_v36 = vadd.f32 %v1050_v22, %v689_v39  ;;  %v691_v46 = vmul.f32 %v18104_v28, %v10794_v42  ;;  %v11578_v1 = vpack.c.bf16 %v2751_v27, %v2712_v25  ;;  %v1401_v37 = vadd.f32 %v1089_v47, %v728_v51 }
 0x103   :  { %v2441_v40 = vadd.f32 %v10986_v35, %v2081_v5  ;;  %v730_v61 = vmul.f32 %v18104_v28, %v10837_v38  ;;  %v2714_v29 = vmax.f32 %v2402_v62, 0.0  ;;  %10005 = vmatmul.mubr.msk.bf16.vlgmr.msra.gmra.mxu1 %vm2956_vm0, %v11273_v52  ;;  %v1052_v22 = vmul.f32 %v10792_v41, %v18106_v63  ;;  %v18107_v5 = vld [vmem:[#allocation45_spill] sm:$0xff] }
 0x104   :  { %18105 = vst [vmem:[#allocation62_spill] sm:$0xff] %v11578_v1  ;;  %v2039_v39 = vadd.f32 %v1727_v17, %v1362_v36  ;;  %v1091_v49 = vmul.f32 %v10835_v43, %v18106_v63  ;;  %3183 = vmatprep.subr.bf16.mxu0 %v11578_v1  ;;  %v2078_v27 = vadd.f32 %v1766_v20, %v1401_v37 }
 0x105   :  { %v2753_v25 = vmax.f32 %v2441_v40, 0.0  ;;  %v1729_v51 = vmul.f32 %v10864_v7, %v18107_v5  ;;  %v1768_v47 = vmul.f32 %v10862_v8, %v18107_v5  ;;  %3164 = vmatprep.mubr.bf16.mxu1 %v18072_v12  ;;  %v1364_v17 = vadd.f32 %v1052_v22, %v691_v46 }
 0x106   :  { %v2399_v52 = vadd.f32 %v10988_v33, %v2039_v39  ;;  %v1403_v62 = vadd.f32 %v1091_v49, %v730_v61  ;;  %v612_v36 = vmul.f32 %v18079_v56, %v18068_v11  ;;  %v2438_v40 = vadd.f32 %v10986_v35, %v2078_v27 }
 0x107   :  { %v11598_v50 = vpack.c.bf16 %v2753_v25, %v2714_v29  ;;  %v651_v20 = vmul.f32 %v18079_v56, %v18069_v3  ;;  %v973_v37 = vmul.f32 %v18071_v53, %v18097_v0  ;;  %v2041_v44 = vadd.f32 %v1729_v51, %v1364_v17 }
 0x108   :  { %v2711_v1 = vmax.f32 %v2399_v52, 0.0  ;;  %v2080_v24 = vadd.f32 %v1768_v47, %v1403_v62  ;;  %v1012_v46 = vmul.f32 %v18073_v26, %v18097_v0  ;;  %v2750_v49 = vmax.f32 %v2438_v40, 0.0  ;;  %10004 = vmatmul.mubr.msk.bf16.gmra.mxu0 %vm2956_vm0, %v11330_v54 }
 0x109   :  { %18108 = vst [vmem:[#allocation68_spill] sm:$0xff] %v11598_v50  ;;  %3236 = vmatprep.subr.bf16.mxu1 %v11598_v50  ;;  %v1285_v61 = vadd.f32 %v973_v37, %v612_v36  ;;  %v1650_v29 = vmul.f32 %v18075_v13, %v18098_v30  ;;  %v1689_v39 = vmul.f32 %v18076_v18, %v18098_v30 }
 0x10a   :  { %v2401_v22 = vadd.f32 %v10988_v33, %v2041_v44  ;;  %v2440_v25 = vadd.f32 %v10986_v35, %v2080_v24  ;;  %v1324_v27 = vadd.f32 %v1012_v46, %v651_v20  ;;  %v614_v51 = vmul.f32 %v18098_v30, %v18068_v11  ;;  %3207 = vmatprep.mubr.bf16.mxu0 %v18072_v12 }
 0x10b   :  { %v11619_v47 = vpack.c.bf16 %v2750_v49, %v2711_v1  ;;  %v1962_v52 = vadd.f32 %v1650_v29, %v1285_v61  ;;  %v653_v17 = vmul.f32 %v18098_v30, %v18069_v3  ;;  %v975_v62 = vmul.f32 %v18071_v53, %v18100_v45  ;;  %10006 = vmatmul.mubr.msk.bf16.gmra.mxu1 %vm2956_vm0, %v11330_v54 }
 0x10c   :  { %v2713_v36 = vmax.f32 %v2401_v22, 0.0  ;;  %v2752_v40 = vmax.f32 %v2440_v25, 0.0  ;;  %v2001_v44 = vadd.f32 %v1689_v39, %v1324_v27  ;;  %v1014_v24 = vmul.f32 %v18073_v26, %v18100_v45  ;;  %3260 = vmatprep.mubr.bf16.mxu1 %v18072_v12 }
 0x10d   :  { %18109 = vst [vmem:[#allocation40_spill] sm:$0xff] %v11619_v47  ;;  %3184 = vmatpush1.bf16.msra.mxu0 %v11619_v47  ;;  %v2322_v1 = vadd.f32 %v11098_v6, %v1962_v52  ;;  %v1287_v20 = vadd.f32 %v975_v62, %v614_v51  ;;  %v1652_v37 = vmul.f32 %v18075_v13, %v18101_v19 }
 0x10e   :  { %v1691_v46 = vmul.f32 %v18076_v18, %v18101_v19  ;;  %v11635_v49 = vpack.c.bf16 %v2752_v40, %v2713_v36  ;;  %v2361_v61 = vadd.f32 %v11096_v16, %v2001_v44  ;;  %v1326_v29 = vadd.f32 %v1014_v24, %v653_v17 }
 0x10f   :  { %v611_v39 = vmul.f32 %v18066_v23, %v18068_v11  ;;  %v2634_v54 = vmax.f32 %v2322_v1, 0.0  ;;  %v1964_v22 = vadd.f32 %v1652_v37, %v1287_v20  ;;  %v650_v25 = vmul.f32 %v18066_v23, %v18069_v3 }
 0x110   :  { %18110 = vst [vmem:[#allocation25_spill] sm:$0xff] %v11635_v49  ;;  %v972_v27 = vmul.f32 %v18071_v53, %v18103_v55  ;;  %3237 = vmatpush1.bf16.msra.mxu1 %v11635_v49  ;;  %v2673_v51 = vmax.f32 %v2361_v61, 0.0  ;;  %v2003_v52 = vadd.f32 %v1691_v46, %v1326_v29  ;;  %v1011_v17 = vmul.f32 %v18073_v26, %v18103_v55 }
 0x111   :  { %v1649_v62 = vmul.f32 %v18075_v13, %v18104_v28  ;;  %v2324_v36 = vadd.f32 %v11098_v6, %v1964_v22  ;;  %v1688_v44 = vmul.f32 %v18076_v18, %v18104_v28  ;;  %v613_v24 = vmul.f32 %v18104_v28, %v18068_v11 }
 0x112   :  { %v1284_v40 = vadd.f32 %v972_v27, %v611_v39  ;;  %v11655_v1 = vpack.c.bf16 %v2673_v51, %v2634_v54  ;;  %v2363_v20 = vadd.f32 %v11096_v16, %v2003_v52  ;;  %v1323_v37 = vadd.f32 %v1011_v17, %v650_v25 }
 0x113   :  { %v652_v46 = vmul.f32 %v18104_v28, %v18069_v3  ;;  %v2636_v61 = vmax.f32 %v2324_v36, 0.0  ;;  %v974_v22 = vmul.f32 %v18071_v53, %v18106_v63  ;;  %v1013_v39 = vmul.f32 %v18073_v26, %v18106_v63 }
 0x114   :  { %18111 = vst [vmem:[#allocation41_spill] sm:$0xff] %v11655_v1  ;;  %v1961_v29 = vadd.f32 %v1649_v62, %v1284_v40  ;;  %3185 = vmatprep.subr.bf16.mxu0 %v11655_v1  ;;  %v2675_v27 = vmax.f32 %v2363_v20, 0.0  ;;  %v2000_v50 = vadd.f32 %v1688_v44, %v1323_v37  ;;  %v1651_v54 = vmul.f32 %v18075_v13, %v18107_v5 }
 0x115   :  { %v1690_v25 = vmul.f32 %v18076_v18, %v18107_v5  ;;  %v1286_v52 = vadd.f32 %v974_v22, %v613_v24  ;;  %v1325_v17 = vadd.f32 %v1013_v39, %v652_v46  ;;  %v534_v62 = vmul.f32 %v18079_v56, %v18082_v21 }
 0x116   :  { %v2321_v51 = vadd.f32 %v11098_v6, %v1961_v29  ;;  %v11672_v36 = vpack.c.bf16 %v2675_v27, %v2636_v61  ;;  %v2360_v40 = vadd.f32 %v11096_v16, %v2000_v50  ;;  %v573_v44 = vmul.f32 %v18079_v56, %v18084_v59  ;;  %v18113_v61 = vld [vmem:[#allocation61_spill] sm:$0xff]  ;;  %v18114_v50 = vld [vmem:[#allocation60_spill] sm:$0xff] }
 0x117   :  { %v895_v20 = vmul.f32 %v18085_v48, %v18097_v0  ;;  %v1963_v1 = vadd.f32 %v1651_v54, %v1286_v52  ;;  %v2002_v47 = vadd.f32 %v1690_v25, %v1325_v17  ;;  %v934_v24 = vmul.f32 %v11033_v34, %v18097_v0 }
 0x118   :  { %18112 = vst [vmem:[#allocation26_spill] sm:$0xff] %v11672_v36  ;;  %v2633_v37 = vmax.f32 %v2321_v51, 0.0  ;;  %3238 = vmatprep.subr.bf16.mxu1 %v11672_v36  ;;  %v2672_v46 = vmax.f32 %v2360_v40, 0.0  ;;  %v1572_v22 = vmul.f32 %v18113_v61, %v18098_v30  ;;  %v1611_v39 = vmul.f32 %v18114_v50, %v18098_v30 }
 0x119   :  { %v1207_v29 = vadd.f32 %v895_v20, %v534_v62  ;;  %v2323_v27 = vadd.f32 %v11098_v6, %v1963_v1  ;;  %v2362_v49 = vadd.f32 %v11096_v16, %v2002_v47  ;;  %v1246_v51 = vadd.f32 %v934_v24, %v573_v44 }
 0x11a   :  { %v536_v54 = vmul.f32 %v18098_v30, %v18082_v21  ;;  %v11690_v25 = vpack.c.bf16 %v2672_v46, %v2633_v37  ;;  %v575_v17 = vmul.f32 %v18098_v30, %v18084_v59  ;;  %v897_v62 = vmul.f32 %v18085_v48, %v18100_v45 }
 0x11b   :  { %v1884_v52 = vadd.f32 %v1572_v22, %v1207_v29  ;;  %v2635_v40 = vmax.f32 %v2323_v27, 0.0  ;;  %v2674_v20 = vmax.f32 %v2362_v49, 0.0  ;;  %v1923_v36 = vadd.f32 %v1611_v39, %v1246_v51 }
 0x11c   :  { %18115 = vst [vmem:[#allocation7_spill] sm:$0xff] %v11690_v25  ;;  %v936_v1 = vmul.f32 %v11033_v34, %v18100_v45  ;;  %3186 = vmatpush1.bf16.msra.mxu0 %v11690_v25  ;;  %v1209_v44 = vadd.f32 %v897_v62, %v536_v54  ;;  %v1574_v37 = vmul.f32 %v18113_v61, %v18101_v19 }
 0x11d   :  { %v2244_v47 = vadd.f32 %v11208_v58, %v1884_v52  ;;  %v1613_v24 = vmul.f32 %v18114_v50, %v18101_v19  ;;  %v11704_v46 = vpack.c.bf16 %v2674_v20, %v2635_v40  ;;  %v2283_v29 = vadd.f32 %v11206_v15, %v1923_v36 }
 0x11e   :  { %v1248_v49 = vadd.f32 %v936_v1, %v575_v17  ;;  %v533_v22 = vmul.f32 %v18066_v23, %v18082_v21  ;;  %v1886_v27 = vadd.f32 %v1574_v37, %v1209_v44  ;;  %v572_v51 = vmul.f32 %v18066_v23, %v18084_v59 }
 0x11f   :  { %18116 = vst [vmem:[#allocation44_spill] sm:$0xff] %v11704_v46  ;;  %v2556_v39 = vmax.f32 %v2244_v47, 0.0  ;;  %v894_v54 = vmul.f32 %v18085_v48, %v18103_v55  ;;  %3239 = vmatpush1.bf16.msra.mxu1 %v11704_v46  ;;  %v2595_v52 = vmax.f32 %v2283_v29, 0.0  ;;  %v933_v40 = vmul.f32 %v11033_v34, %v18103_v55 }
 0x120   :  { %v1925_v62 = vadd.f32 %v1613_v24, %v1248_v49  ;;  %v1571_v36 = vmul.f32 %v18113_v61, %v18104_v28  ;;  %v2246_v17 = vadd.f32 %v11208_v58, %v1886_v27  ;;  %v1610_v1 = vmul.f32 %v18114_v50, %v18104_v28 }
 0x121   :  { %v1206_v20 = vadd.f32 %v894_v54, %v533_v22  ;;  %v535_v47 = vmul.f32 %v18104_v28, %v18082_v21  ;;  %v11723_v44 = vpack.c.bf16 %v2595_v52, %v2556_v39  ;;  %v1245_v24 = vadd.f32 %v933_v40, %v572_v51 }
 0x122   :  { %v2285_v37 = vadd.f32 %v11206_v15, %v1925_v62  ;;  %v574_v29 = vmul.f32 %v18104_v28, %v18084_v59  ;;  %v2558_v49 = vmax.f32 %v2246_v17, 0.0  ;;  %v896_v27 = vmul.f32 %v18085_v48, %v18106_v63 }
 0x123   :  { %18117 = vst [vmem:[#allocation8_spill] sm:$0xff] %v11723_v44  ;;  %v1883_v25 = vadd.f32 %v1571_v36, %v1206_v20  ;;  %v935_v22 = vmul.f32 %v11033_v34, %v18106_v63  ;;  %3187 = vmatprep.subr.bf16.mxu0 %v11723_v44  ;;  %v1922_v46 = vadd.f32 %v1610_v1, %v1245_v24 }
 0x124   :  { %v2597_v54 = vmax.f32 %v2285_v37, 0.0  ;;  %v1573_v39 = vmul.f32 %v18113_v61, %v18107_v5  ;;  %v1612_v51 = vmul.f32 %v18114_v50, %v18107_v5  ;;  %v1208_v62 = vadd.f32 %v896_v27, %v535_v47 }
 0x125   :  { %v2243_v52 = vadd.f32 %v11208_v58, %v1883_v25  ;;  %v1247_v40 = vadd.f32 %v935_v22, %v574_v29  ;;  %v456_v36 = vmul.f32 %v18079_v56, %v18089_v10  ;;  %v2282_v20 = vadd.f32 %v11206_v15, %v1922_v46 }
 0x126   :  { %v11740_v17 = vpack.c.bf16 %v2597_v54, %v2558_v49  ;;  %v495_v1 = vmul.f32 %v18079_v56, %v18091_v32  ;;  %v817_v37 = vmul.f32 %v18092_v14, %v18097_v0  ;;  %v1885_v44 = vadd.f32 %v1573_v39, %v1208_v62 }
 0x127   :  { %v2555_v24 = vmax.f32 %v2243_v52, 0.0  ;;  %v1924_v60 = vadd.f32 %v1612_v51, %v1247_v40  ;;  %v856_v25 = vmul.f32 %v11151_v31, %v18097_v0  ;;  %v2594_v47 = vmax.f32 %v2282_v20, 0.0 }
 0x128   :  { %18118 = vst [vmem:[#allocation45_spill] sm:$0xff] %v11740_v17  ;;  %3240 = vmatprep.subr.bf16.mxu1 %v11740_v17  ;;  %v1129_v29 = vadd.f32 %v817_v37, %v456_v36  ;;  %v1494_v49 = vmul.f32 %v11188_v57, %v18098_v30  ;;  %v1533_v46 = vmul.f32 %v11186_v2, %v18098_v30 }
 0x129   :  { %v2245_v56 = vadd.f32 %v11208_v58, %v1885_v44  ;;  %v2284_v27 = vadd.f32 %v11206_v15, %v1924_v60  ;;  %v1168_v22 = vadd.f32 %v856_v25, %v495_v1  ;;  %v458_v54 = vmul.f32 %v18098_v30, %v18089_v10 }
 0x12a   :  { %v11758_v39 = vpack.c.bf16 %v2594_v47, %v2555_v24  ;;  %v1806_v0 = vadd.f32 %v1494_v49, %v1129_v29  ;;  %v497_v51 = vmul.f32 %v18098_v30, %v18091_v32  ;;  %v819_v52 = vmul.f32 %v18092_v14, %v18100_v45 }
 0x12b   :  { %v2557_v62 = vmax.f32 %v2245_v56, 0.0  ;;  %v2596_v40 = vmax.f32 %v2284_v27, 0.0  ;;  %v1845_v36 = vadd.f32 %v1533_v46, %v1168_v22  ;;  %v858_v44 = vmul.f32 %v11151_v31, %v18100_v45 }
 0x12c   :  { %18119 = vst [vmem:[#allocation61_spill] sm:$0xff] %v11758_v39  ;;  %3188 = vmatpush1.bf16.msra.mxu0 %v11758_v39  ;;  %v2166_v60 = vadd.f32 %v11228_v9, %v1806_v0  ;;  %v1131_v20 = vadd.f32 %v819_v52, %v458_v54  ;;  %v1496_v1 = vmul.f32 %v11188_v57, %v18101_v19 }
 0x12d   :  { %v1535_v30 = vmul.f32 %v11186_v2, %v18101_v19  ;;  %v11772_v37 = vpack.c.bf16 %v2596_v40, %v2557_v62  ;;  %v2205_v24 = vadd.f32 %v11226_v4, %v1845_v36  ;;  %v1170_v25 = vadd.f32 %v858_v44, %v497_v51 }
 0x12e   :  { %v455_v47 = vmul.f32 %v18066_v23, %v18089_v10  ;;  %v2478_v45 = vmax.f32 %v2166_v60, 0.0  ;;  %v1808_v29 = vadd.f32 %v1496_v1, %v1131_v20  ;;  %v494_v49 = vmul.f32 %v18066_v23, %v18091_v32 }
 0x12f   :  { %18120 = vst [vmem:[#allocation60_spill] sm:$0xff] %v11772_v37  ;;  %v816_v46 = vmul.f32 %v18092_v14, %v18103_v55  ;;  %3241 = vmatpush1.bf16.msra.mxu1 %v11772_v37  ;;  %v2517_v56 = vmax.f32 %v2205_v24, 0.0  ;;  %v1847_v27 = vadd.f32 %v1535_v30, %v1170_v25  ;;  %v855_v22 = vmul.f32 %v11151_v31, %v18103_v55 }
 0x130   :  { %v1493_v54 = vmul.f32 %v11188_v57, %v18104_v28  ;;  %v2168_v0 = vadd.f32 %v11228_v9, %v1808_v29  ;;  %v1532_v52 = vmul.f32 %v11186_v2, %v18104_v28  ;;  %v457_v23 = vmul.f32 %v18104_v28, %v18089_v10 }
 0x131   :  { %v1128_v51 = vadd.f32 %v816_v46, %v455_v47  ;;  %v11791_v62 = vpack.c.bf16 %v2517_v56, %v2478_v45  ;;  %v2207_v40 = vadd.f32 %v11226_v4, %v1847_v27  ;;  %v1167_v36 = vadd.f32 %v855_v22, %v494_v49  ;;  %v10412_v49 = vld [vmem:[%s17465_s0 + $0x8] sm:$0xff]  ;;  %v18122_v46 = vld [vmem:[#allocation6_spill] sm:$0xff] }
 0x132   :  { %v496_v55 = vmul.f32 %v18104_v28, %v18091_v32  ;;  %v2480_v44 = vmax.f32 %v2168_v0, 0.0  ;;  %v818_v20 = vmul.f32 %v18092_v14, %v18106_v63  ;;  %v857_v1 = vmul.f32 %v11151_v31, %v18106_v63 }
 0x133   :  { %18121 = vst [vmem:[#allocation78_spill] sm:$0xff] %v11791_v62  ;;  %v1805_v60 = vadd.f32 %v1493_v54, %v1128_v51  ;;  %3189 = vmatprep.subr.bf16.mxu0 %v11791_v62  ;;  %v2519_v30 = vmax.f32 %v2207_v40, 0.0  ;;  %v1844_v24 = vadd.f32 %v1532_v52, %v1167_v36  ;;  %v1495_v25 = vmul.f32 %v11188_v57, %v18107_v5 }
 0x134   :  { %v1534_v47 = vmul.f32 %v11186_v2, %v18107_v5  ;;  %v1130_v45 = vadd.f32 %v818_v20, %v457_v23  ;;  %v1169_v29 = vadd.f32 %v857_v1, %v496_v55  ;;  %v11810_v63 = vrot.slane %v10412_v49, %v18122_v46  ;;  %v18124_v23 = vld [vmem:[#allocation2_spill] sm:$0xff] }
 0x135   :  { %v2165_v28 = vadd.f32 %v11228_v9, %v1805_v60  ;;  %v11812_v56 = vpack.c.bf16 %v2519_v30, %v2480_v44  ;;  %v2204_v27 = vadd.f32 %v11226_v4, %v1844_v24  ;;  %v694_v22 = vmul.f32 %v18101_v19, %v10794_v42  ;;  %v18125_v60 = vld [vmem:[#allocation27_spill] sm:$0xff] }
 0x136   :  { %v733_v54 = vmul.f32 %v18101_v19, %v10837_v38  ;;  %v1807_v51 = vadd.f32 %v1495_v25, %v1130_v45  ;;  %v1846_v52 = vadd.f32 %v1534_v47, %v1169_v29  ;;  %v11821_v40 = vrot.slane %v11810_v63, %v18124_v23  ;;  %v18126_v25 = vld [vmem:[#allocation18_spill] sm:$0xff] }
 0x137   :  { %18123 = vst [vmem:[#allocation79_spill] sm:$0xff] %v11812_v56  ;;  %v2477_v0 = vmax.f32 %v2165_v28, 0.0  ;;  %3242 = vmatprep.subr.bf16.mxu1 %v11812_v56  ;;  %v2516_v36 = vmax.f32 %v2204_v27, 0.0  ;;  %v1055_v55 = vmul.f32 %v10792_v41, %v11810_v63  ;;  %v1094_v44 = vmul.f32 %v10835_v43, %v11810_v63 }
 0x138   :  { %v1732_v20 = vmul.f32 %v10864_v7, %v18125_v60  ;;  %v2167_v1 = vadd.f32 %v11228_v9, %v1807_v51  ;;  %v2206_v30 = vadd.f32 %v11226_v4, %v1846_v52  ;;  %v1771_v24 = vmul.f32 %v10862_v8, %v18125_v60 }
 0x139   :  { %v11835_v47 = vrot.slane %v10412_v49, %v18126_v25  ;;  %v11837_v28 = vpack.c.bf16 %v2516_v36, %v2477_v0  ;;  %v1367_v45 = vadd.f32 %v1055_v55, %v694_v22  ;;  %v1406_v29 = vadd.f32 %v1094_v44, %v733_v54  ;;  %v18129_v36 = vld [vmem:[#allocation30_spill] sm:$0xff] }
 0x13a   :  { %v696_v27 = vmul.f32 %v18125_v60, %v10794_v42  ;;  %v2479_v56 = vmax.f32 %v2167_v1, 0.0  ;;  %v2518_v17 = vmax.f32 %v2206_v30, 0.0  ;;  %v735_v52 = vmul.f32 %v18125_v60, %v10837_v38 }
 0x13b   :  { %18127 = vst [vmem:[#allocation27_spill] sm:$0xff] %v11837_v28  ;;  %v11843_v51 = vrot.slane %v11835_v47, %v18124_v23  ;;  %3190 = vmatpush1.bf16.msra.mxu0 %v11837_v28  ;;  %v2044_v49 = vadd.f32 %v1732_v20, %v1367_v45  ;;  %v2083_v62 = vadd.f32 %v1771_v24, %v1406_v29  ;;  %v18130_v29 = vld [vmem:[#allocation9_spill] sm:$0xff] }
 0x13c   :  { %v1057_v22 = vmul.f32 %v10792_v41, %v11835_v47  ;;  %v1096_v54 = vmul.f32 %v10835_v43, %v11835_v47  ;;  %v11852_v0 = vpack.c.bf16 %v2518_v17, %v2479_v56  ;;  %v1734_v55 = vmul.f32 %v10864_v7, %v18129_v36  ;;  %v11866_v17 = vld [vmem:[%s17463_s3 + $0x10] sm:$0xff]  }
 0x13d   :  { %v1773_v44 = vmul.f32 %v10862_v8, %v18129_v36  ;;  %v693_v1 = vmul.f32 %v18107_v5, %v10794_v42  ;;  %v2404_v20 = vadd.f32 %v10988_v33, %v2044_v49  ;;  %v2443_v30 = vadd.f32 %v10986_v35, %v2083_v62 }
 0x13e   :  { %18128 = vst [vmem:[#allocation80_spill] sm:$0xff] %v11852_v0  ;;  %v1369_v24 = vadd.f32 %v1057_v22, %v696_v27  ;;  %v1408_v45 = vadd.f32 %v1096_v54, %v735_v52  ;;  %3243 = vmatpush1.bf16.msra.mxu1 %v11852_v0  ;;  %10007 = vmatmul.mubr.msk.bf16.vlgmr.msra.gmra.mxu0 %vm2956_vm0, %v11866_v17 }
 0x13f   :  { %v732_v56 = vmul.f32 %v18107_v5, %v10837_v38  ;;  %v1054_v49 = vmul.f32 %v10792_v41, %v18130_v29  ;;  %v1093_v62 = vmul.f32 %v10835_v43, %v18130_v29  ;;  %v2716_v27 = vmax.f32 %v2404_v20, 0.0  ;;  %3217 = vmatprep.mubr.bf16.mxu0 %v18072_v12 }
 0x140   :  { %v2755_v52 = vmax.f32 %v2443_v30, 0.0  ;;  %v2046_v22 = vadd.f32 %v1734_v55, %v1369_v24  ;;  %v2085_v54 = vadd.f32 %v1773_v44, %v1408_v45  ;;  %v1731_v39 = vmul.f32 %v10864_v7, %v11821_v40  ;;  %v18132_v30 = vld [vmem:[#allocation10_spill] sm:$0xff] }
 0x141   :  { %v1366_v28 = vadd.f32 %v1054_v49, %v693_v1  ;;  %v1405_v0 = vadd.f32 %v1093_v62, %v732_v56  ;;  %v1770_v37 = vmul.f32 %v10862_v8, %v11821_v40  ;;  %10009 = vmatmul.mubr.msk.bf16.vlgmr.msra.gmra.mxu1 %vm2956_vm0, %v11866_v17  ;;  %v695_v55 = vmul.f32 %v11821_v40, %v10794_v42 }
 0x142   :  { %v11881_v25 = vpack.c.bf16 %v2755_v52, %v2716_v27  ;;  %v2406_v46 = vadd.f32 %v10988_v33, %v2046_v22  ;;  %v2445_v23 = vadd.f32 %v10986_v35, %v2085_v54  ;;  %v734_v20 = vmul.f32 %v11821_v40, %v10837_v38  ;;  %3270 = vmatprep.mubr.bf16.mxu1 %v18072_v12 }
 0x143   :  { %v2043_v44 = vadd.f32 %v1731_v39, %v1366_v28  ;;  %v2082_v1 = vadd.f32 %v1770_v37, %v1405_v0  ;;  %v1056_v24 = vmul.f32 %v10792_v41, %v18132_v30  ;;  %v1095_v49 = vmul.f32 %v10835_v43, %v18132_v30 }
 0x144   :  { %18131 = vst [vmem:[#allocation30_spill] sm:$0xff] %v11881_v25  ;;  %3289 = vmatprep.subr.bf16.mxu0 %v11881_v25  ;;  %v2718_v45 = vmax.f32 %v2406_v46, 0.0  ;;  %v2757_v56 = vmax.f32 %v2445_v23, 0.0  ;;  %v1733_v62 = vmul.f32 %v10864_v7, %v11843_v51  ;;  %v1772_v0 = vmul.f32 %v10862_v8, %v11843_v51 }
 0x145   :  { %v2403_v39 = vadd.f32 %v10988_v33, %v2043_v44  ;;  %v2442_v37 = vadd.f32 %v10986_v35, %v2082_v1  ;;  %v1368_v28 = vadd.f32 %v1056_v24, %v695_v55  ;;  %v1407_v52 = vadd.f32 %v1095_v49, %v734_v20  ;;  %v11914_v55 = vld [vmem:[%s17463_s3 + $0x18] sm:$0xff]  }
 0x146   :  { %v11903_v27 = vpack.c.bf16 %v2757_v56, %v2718_v45  ;;  %v616_v46 = vmul.f32 %v18101_v19, %v18068_v11  ;;  %v655_v23 = vmul.f32 %v18101_v19, %v18069_v3  ;;  %v977_v44 = vmul.f32 %v18071_v53, %v11810_v63  ;;  %18134 = vst [vmem:[#allocation10_spill] sm:$0xff] %v11914_v55 }
 0x147   :  { %v2715_v22 = vmax.f32 %v2403_v39, 0.0  ;;  %v2754_v54 = vmax.f32 %v2442_v37, 0.0  ;;  %v2045_v25 = vadd.f32 %v1733_v62, %v1368_v28  ;;  %10008 = vmatmul.mubr.msk.bf16.gmra.mxu0 %vm2956_vm0, %v11914_v55  ;;  %v2084_v1 = vadd.f32 %v1772_v0, %v1407_v52 }
 0x148   :  { %18133 = vst [vmem:[#allocation9_spill] sm:$0xff] %v11903_v27  ;;  %3342 = vmatprep.subr.bf16.mxu1 %v11903_v27  ;;  %v1016_v20 = vmul.f32 %v18073_v26, %v11810_v63  ;;  %v1654_v24 = vmul.f32 %v18075_v13, %v18125_v60  ;;  %v1693_v45 = vmul.f32 %v18076_v18, %v18125_v60 }
 0x149   :  { %v11925_v56 = vpack.c.bf16 %v2754_v54, %v2715_v22  ;;  %v2405_v49 = vadd.f32 %v10988_v33, %v2045_v25  ;;  %v1289_v62 = vadd.f32 %v977_v44, %v616_v46  ;;  %v618_v39 = vmul.f32 %v18125_v60, %v18068_v11  ;;  %3313 = vmatprep.mubr.bf16.mxu0 %v18072_v12 }
 0x14a   :  { %v2444_v37 = vadd.f32 %v10986_v35, %v2084_v1  ;;  %v1328_v28 = vadd.f32 %v1016_v20, %v655_v23  ;;  %v657_v0 = vmul.f32 %v18125_v60, %v18069_v3  ;;  %v979_v52 = vmul.f32 %v18071_v53, %v11835_v47  ;;  %10010 = vmatmul.mubr.msk.bf16.gmra.mxu1 %vm2956_vm0, %v11914_v55 }
 0x14b   :  { %18135 = vst [vmem:[#allocation81_spill] sm:$0xff] %v11925_v56  ;;  %3290 = vmatpush1.bf16.msra.mxu0 %v11925_v56  ;;  %v2717_v25 = vmax.f32 %v2405_v49, 0.0  ;;  %v1966_v46 = vadd.f32 %v1654_v24, %v1289_v62  ;;  %v1018_v22 = vmul.f32 %v18073_v26, %v11835_v47  ;;  %v1656_v54 = vmul.f32 %v18075_v13, %v18129_v36 }
 0x14c   :  { %3366 = vmatprep.mubr.bf16.mxu1 %v18072_v12  ;;  %v2756_v23 = vmax.f32 %v2444_v37, 0.0  ;;  %v2005_v44 = vadd.f32 %v1693_v45, %v1328_v28  ;;  %v1291_v1 = vadd.f32 %v979_v52, %v618_v39  ;;  %v1695_v20 = vmul.f32 %v18076_v18, %v18129_v36 }
 0x14d   :  { %v2326_v27 = vadd.f32 %v11098_v6, %v1966_v46  ;;  %v1330_v55 = vadd.f32 %v1018_v22, %v657_v0  ;;  %v615_v24 = vmul.f32 %v18107_v5, %v18068_v11  ;;  %v654_v49 = vmul.f32 %v18107_v5, %v18069_v3 }
 0x14e   :  { %v11951_v62 = vpack.c.bf16 %v2756_v23, %v2717_v25  ;;  %v2365_v56 = vadd.f32 %v11096_v16, %v2005_v44  ;;  %v1968_v12 = vadd.f32 %v1656_v54, %v1291_v1  ;;  %v976_v45 = vmul.f32 %v18071_v53, %v18130_v29 }
 0x14f   :  { %v2638_v39 = vmax.f32 %v2326_v27, 0.0  ;;  %v2007_v37 = vadd.f32 %v1695_v20, %v1330_v55  ;;  %v1015_v28 = vmul.f32 %v18073_v26, %v18130_v29  ;;  %v1653_v0 = vmul.f32 %v18075_v13, %v11821_v40 }
 0x150   :  { %18136 = vst [vmem:[#allocation82_spill] sm:$0xff] %v11951_v62  ;;  %3343 = vmatpush1.bf16.msra.mxu1 %v11951_v62  ;;  %v2677_v52 = vmax.f32 %v2365_v56, 0.0  ;;  %v2328_v25 = vadd.f32 %v11098_v6, %v1968_v12  ;;  %v1288_v46 = vadd.f32 %v976_v45, %v615_v24  ;;  %v1692_v22 = vmul.f32 %v18076_v18, %v11821_v40 }
 0x151   :  { %v2367_v54 = vadd.f32 %v11096_v16, %v2007_v37  ;;  %v1327_v23 = vadd.f32 %v1015_v28, %v654_v49  ;;  %v617_v27 = vmul.f32 %v11821_v40, %v18068_v11  ;;  %v656_v55 = vmul.f32 %v11821_v40, %v18069_v3 }
 0x152   :  { %v11969_v44 = vpack.c.bf16 %v2677_v52, %v2638_v39  ;;  %v2640_v1 = vmax.f32 %v2328_v25, 0.0  ;;  %v1965_v20 = vadd.f32 %v1653_v0, %v1288_v46  ;;  %v978_v12 = vmul.f32 %v18071_v53, %v18132_v30 }
 0x153   :  { %v2679_v56 = vmax.f32 %v2367_v54, 0.0  ;;  %v2004_v24 = vadd.f32 %v1692_v22, %v1327_v23  ;;  %v1017_v45 = vmul.f32 %v18073_v26, %v18132_v30  ;;  %v1655_v49 = vmul.f32 %v18075_v13, %v11843_v51 }
 0x154   :  { %18137 = vst [vmem:[#allocation83_spill] sm:$0xff] %v11969_v44  ;;  %3291 = vmatprep.subr.bf16.mxu0 %v11969_v44  ;;  %v2325_v37 = vadd.f32 %v11098_v6, %v1965_v20  ;;  %v1290_v28 = vadd.f32 %v978_v12, %v617_v27  ;;  %v1694_v39 = vmul.f32 %v18076_v18, %v11843_v51 }
 0x155   :  { %v538_v0 = vmul.f32 %v18101_v19, %v18082_v21  ;;  %v11983_v52 = vpack.c.bf16 %v2679_v56, %v2640_v1  ;;  %v2364_v25 = vadd.f32 %v11096_v16, %v2004_v24  ;;  %v1329_v46 = vadd.f32 %v1017_v45, %v656_v55 }
 0x156   :  { %v577_v22 = vmul.f32 %v18101_v19, %v18084_v59  ;;  %v2637_v54 = vmax.f32 %v2325_v37, 0.0  ;;  %v1967_v23 = vadd.f32 %v1655_v49, %v1290_v28  ;;  %v899_v20 = vmul.f32 %v18085_v48, %v11810_v63 }
 0x157   :  { %18138 = vst [vmem:[#allocation84_spill] sm:$0xff] %v11983_v52  ;;  %v938_v27 = vmul.f32 %v11033_v34, %v11810_v63  ;;  %3344 = vmatprep.subr.bf16.mxu1 %v11983_v52  ;;  %v2676_v12 = vmax.f32 %v2364_v25, 0.0  ;;  %v2006_v44 = vadd.f32 %v1694_v39, %v1329_v46  ;;  %v1576_v1 = vmul.f32 %v18113_v61, %v18125_v60 }
 0x158   :  { %v1615_v55 = vmul.f32 %v18114_v50, %v18125_v60  ;;  %v2327_v56 = vadd.f32 %v11098_v6, %v1967_v23  ;;  %v1211_v24 = vadd.f32 %v899_v20, %v538_v0  ;;  %v540_v49 = vmul.f32 %v18125_v60, %v18082_v21 }
 0x159   :  { %v1250_v45 = vadd.f32 %v938_v27, %v577_v22  ;;  %v12000_v37 = vpack.c.bf16 %v2676_v12, %v2637_v54  ;;  %v2366_v28 = vadd.f32 %v11096_v16, %v2006_v44  ;;  %v579_v39 = vmul.f32 %v18125_v60, %v18084_v59 }
 0x15a   :  { %v901_v25 = vmul.f32 %v18085_v48, %v11835_v47  ;;  %v2639_v46 = vmax.f32 %v2327_v56, 0.0  ;;  %v1888_v52 = vadd.f32 %v1576_v1, %v1211_v24  ;;  %v940_v0 = vmul.f32 %v11033_v34, %v11835_v47 }
 0x15b   :  { %18139 = vst [vmem:[#allocation85_spill] sm:$0xff] %v12000_v37  ;;  %v1927_v62 = vadd.f32 %v1615_v55, %v1250_v45  ;;  %3292 = vmatpush1.bf16.msra.mxu0 %v12000_v37  ;;  %v2678_v22 = vmax.f32 %v2366_v28, 0.0  ;;  %v1578_v54 = vmul.f32 %v18113_v61, %v18129_v36  ;;  %v1617_v44 = vmul.f32 %v18114_v50, %v18129_v36 }
 0x15c   :  { %v1213_v23 = vadd.f32 %v901_v25, %v540_v49  ;;  %v2248_v20 = vadd.f32 %v11208_v58, %v1888_v52  ;;  %v1252_v12 = vadd.f32 %v940_v0, %v579_v39  ;;  %v537_v1 = vmul.f32 %v18107_v5, %v18082_v21 }
 0x15d   :  { %v2287_v27 = vadd.f32 %v11206_v15, %v1927_v62  ;;  %v12018_v55 = vpack.c.bf16 %v2678_v22, %v2639_v46  ;;  %v576_v24 = vmul.f32 %v18107_v5, %v18084_v59  ;;  %v898_v45 = vmul.f32 %v18085_v48, %v18130_v29 }
 0x15e   :  { %v1890_v56 = vadd.f32 %v1578_v54, %v1213_v23  ;;  %v2560_v49 = vmax.f32 %v2248_v20, 0.0  ;;  %v1929_v25 = vadd.f32 %v1617_v44, %v1252_v12  ;;  %v937_v52 = vmul.f32 %v11033_v34, %v18130_v29 }
 0x15f   :  { %18140 = vst [vmem:[#allocation86_spill] sm:$0xff] %v12018_v55  ;;  %v2599_v28 = vmax.f32 %v2287_v27, 0.0  ;;  %3345 = vmatpush1.bf16.msra.mxu1 %v12018_v55  ;;  %v1210_v39 = vadd.f32 %v898_v45, %v537_v1  ;;  %v1575_v46 = vmul.f32 %v18113_v61, %v11821_v40  ;;  %v1614_v0 = vmul.f32 %v18114_v50, %v11821_v40 }
 0x160   :  { %v2250_v62 = vadd.f32 %v11208_v58, %v1890_v56  ;;  %v2289_v23 = vadd.f32 %v11206_v15, %v1929_v25  ;;  %v1249_v54 = vadd.f32 %v937_v52, %v576_v24  ;;  %v539_v44 = vmul.f32 %v11821_v40, %v18082_v21 }
 0x161   :  { %v12032_v22 = vpack.c.bf16 %v2599_v28, %v2560_v49  ;;  %v1887_v27 = vadd.f32 %v1575_v46, %v1210_v39  ;;  %v578_v12 = vmul.f32 %v11821_v40, %v18084_v59  ;;  %v900_v1 = vmul.f32 %v18085_v48, %v18132_v30 }
 0x162   :  { %v2562_v20 = vmax.f32 %v2250_v62, 0.0  ;;  %v2601_v56 = vmax.f32 %v2289_v23, 0.0  ;;  %v1926_v45 = vadd.f32 %v1614_v0, %v1249_v54  ;;  %v939_v49 = vmul.f32 %v11033_v34, %v18132_v30 }
 0x163   :  { %18141 = vst [vmem:[#allocation87_spill] sm:$0xff] %v12032_v22  ;;  %3293 = vmatprep.subr.bf16.mxu0 %v12032_v22  ;;  %v1577_v24 = vmul.f32 %v18113_v61, %v11843_v51  ;;  %v2247_v28 = vadd.f32 %v11208_v58, %v1887_v27  ;;  %v1212_v25 = vadd.f32 %v900_v1, %v539_v44 }
 0x164   :  { %v1616_v52 = vmul.f32 %v18114_v50, %v11843_v51  ;;  %v460_v62 = vmul.f32 %v18101_v19, %v18089_v10  ;;  %v12051_v39 = vpack.c.bf16 %v2601_v56, %v2562_v20  ;;  %v2286_v46 = vadd.f32 %v11206_v15, %v1926_v45 }
 0x165   :  { %v1251_v0 = vadd.f32 %v939_v49, %v578_v12  ;;  %v499_v23 = vmul.f32 %v18101_v19, %v18091_v32  ;;  %v2559_v54 = vmax.f32 %v2247_v28, 0.0  ;;  %v1889_v22 = vadd.f32 %v1577_v24, %v1212_v25 }
 0x166   :  { %18142 = vst [vmem:[#allocation88_spill] sm:$0xff] %v12051_v39  ;;  %v821_v27 = vmul.f32 %v18092_v14, %v11810_v63  ;;  %v860_v44 = vmul.f32 %v11151_v31, %v11810_v63  ;;  %3346 = vmatprep.subr.bf16.mxu1 %v12051_v39  ;;  %v2598_v1 = vmax.f32 %v2286_v46, 0.0  ;;  %v1498_v20 = vmul.f32 %v11188_v57, %v18125_v60 }
 0x167   :  { %v1928_v37 = vadd.f32 %v1616_v52, %v1251_v0  ;;  %v1537_v12 = vmul.f32 %v11186_v2, %v18125_v60  ;;  %v2249_v19 = vadd.f32 %v11208_v58, %v1889_v22  ;;  %v462_v49 = vmul.f32 %v18125_v60, %v18089_v10 }
 0x168   :  { %v1133_v56 = vadd.f32 %v821_v27, %v460_v62  ;;  %v1172_v45 = vadd.f32 %v860_v44, %v499_v23  ;;  %v12068_v24 = vpack.c.bf16 %v2598_v1, %v2559_v54  ;;  %v501_v28 = vmul.f32 %v18125_v60, %v18091_v32 }
 0x169   :  { %v2288_v63 = vadd.f32 %v11206_v15, %v1928_v37  ;;  %v823_v25 = vmul.f32 %v18092_v14, %v11835_v47  ;;  %v2561_v52 = vmax.f32 %v2249_v19, 0.0  ;;  %v862_v22 = vmul.f32 %v11151_v31, %v11835_v47 }
 0x16a   :  { %18143 = vst [vmem:[#allocation89_spill] sm:$0xff] %v12068_v24  ;;  %v1810_v46 = vadd.f32 %v1498_v20, %v1133_v56  ;;  %v1849_v0 = vadd.f32 %v1537_v12, %v1172_v45  ;;  %3294 = vmatpush1.bf16.msra.mxu0 %v12068_v24  ;;  %v1500_v54 = vmul.f32 %v11188_v57, %v18129_v36 }
 0x16b   :  { %v2600_v62 = vmax.f32 %v2288_v63, 0.0  ;;  %v1135_v23 = vadd.f32 %v823_v25, %v462_v49  ;;  %v1539_v37 = vmul.f32 %v11186_v2, %v18129_v36  ;;  %v1174_v44 = vadd.f32 %v862_v22, %v501_v28 }
 0x16c   :  { %v2170_v60 = vadd.f32 %v11228_v9, %v1810_v46  ;;  %v2209_v27 = vadd.f32 %v11226_v4, %v1849_v0  ;;  %v459_v1 = vmul.f32 %v18107_v5, %v18089_v10  ;;  %v498_v12 = vmul.f32 %v18107_v5, %v18091_v32 }
 0x16d   :  { %v12086_v20 = vpack.c.bf16 %v2600_v62, %v2561_v52  ;;  %v1812_v47 = vadd.f32 %v1500_v54, %v1135_v23  ;;  %v820_v19 = vmul.f32 %v18092_v14, %v18130_v29  ;;  %v1851_v49 = vadd.f32 %v1539_v37, %v1174_v44 }
 0x16e   :  { %v2482_v56 = vmax.f32 %v2170_v60, 0.0  ;;  %v2521_v45 = vmax.f32 %v2209_v27, 0.0  ;;  %v859_v63 = vmul.f32 %v11151_v31, %v18130_v29  ;;  %v1497_v52 = vmul.f32 %v11188_v57, %v11821_v40 }
 0x16f   :  { %18144 = vst [vmem:[#allocation90_spill] sm:$0xff] %v12086_v20  ;;  %3347 = vmatpush1.bf16.msra.mxu1 %v12086_v20  ;;  %v2172_v28 = vadd.f32 %v11228_v9, %v1812_v47  ;;  %v1132_v25 = vadd.f32 %v820_v19, %v459_v1  ;;  %v1536_v5 = vmul.f32 %v11186_v2, %v11821_v40 }
 0x170   :  { %v12100_v46 = vpack.c.bf16 %v2521_v45, %v2482_v56  ;;  %v2211_v0 = vadd.f32 %v11226_v4, %v1851_v49  ;;  %v1171_v22 = vadd.f32 %v859_v63, %v498_v12  ;;  %v461_v62 = vmul.f32 %v11821_v40, %v18089_v10  ;;  %v18147_v56 = vld [vmem:[#allocation3_spill] sm:$0xff] }
 0x171   :  { %v2484_v29 = vmax.f32 %v2172_v28, 0.0  ;;  %v1809_v23 = vadd.f32 %v1497_v52, %v1132_v25  ;;  %v500_v54 = vmul.f32 %v11821_v40, %v18091_v32  ;;  %v822_v37 = vmul.f32 %v18092_v14, %v18132_v30  ;;  %v12120_v40 = vld [vmem:[%s17465_s0 + $0x10] sm:$0xff] }
 0x172   :  { %18145 = vst [vmem:[#allocation91_spill] sm:$0xff] %v12100_v46  ;;  %3295 = vmatprep.subr.bf16.mxu0 %v12100_v46  ;;  %v2523_v60 = vmax.f32 %v2211_v0, 0.0  ;;  %v1848_v27 = vadd.f32 %v1536_v5, %v1171_v22  ;;  %v861_v44 = vmul.f32 %v11151_v31, %v18132_v30  ;;  %v1499_v1 = vmul.f32 %v11188_v57, %v11843_v51  ;;  %v18149_v5 = vld [vmem:[#allocation2_spill] sm:$0xff] }
 0x173   :  { %v2169_v47 = vadd.f32 %v11228_v9, %v1809_v23  ;;  %v1134_v12 = vadd.f32 %v822_v37, %v461_v62  ;;  %v1538_v19 = vmul.f32 %v11186_v2, %v11843_v51  ;;  %18146 = vst [vmem:[#allocation92_spill] sm:$0xff] %v12120_v40  ;;  %v12124_v45 = vrot.slane %v12120_v40, %v18147_v56 }
 0x174   :  { %v12126_v49 = vpack.c.bf16 %v2523_v60, %v2484_v29  ;;  %v2208_v30 = vadd.f32 %v11226_v4, %v1848_v27  ;;  %v1173_v63 = vadd.f32 %v861_v44, %v500_v54  ;;  %v698_v28 = vmul.f32 %v18129_v36, %v10794_v42  ;;  %v18150_v60 = vld [vmem:[#allocation31_spill] sm:$0xff] }
 0x175   :  { %v2481_v25 = vmax.f32 %v2169_v47, 0.0  ;;  %v1811_v52 = vadd.f32 %v1499_v1, %v1134_v12  ;;  %v12133_v0 = vrot.slane %v12124_v45, %v18149_v5  ;;  %v737_v22 = vmul.f32 %v18129_v36, %v10837_v38  ;;  %v18151_v1 = vld [vmem:[#allocation5_spill] sm:$0xff] }
 0x176   :  { %18148 = vst [vmem:[#allocation93_spill] sm:$0xff] %v12126_v49  ;;  %3348 = vmatprep.subr.bf16.mxu1 %v12126_v49  ;;  %v2520_v62 = vmax.f32 %v2208_v30, 0.0  ;;  %v1850_v29 = vadd.f32 %v1538_v19, %v1173_v63  ;;  %v1059_v23 = vmul.f32 %v10792_v41, %v12124_v45  ;;  %v1098_v54 = vmul.f32 %v10835_v43, %v12124_v45 }
 0x177   :  { %v2171_v37 = vadd.f32 %v11228_v9, %v1811_v52  ;;  %v1736_v27 = vmul.f32 %v10864_v7, %v18150_v60  ;;  %v1775_v44 = vmul.f32 %v10862_v8, %v18150_v60  ;;  %v12149_v47 = vrot.slane %v12120_v40, %v18151_v1 }
 0x178   :  { %v12151_v12 = vpack.c.bf16 %v2520_v62, %v2481_v25  ;;  %v2210_v19 = vadd.f32 %v11226_v4, %v1850_v29  ;;  %v1371_v30 = vadd.f32 %v1059_v23, %v698_v28  ;;  %v1410_v63 = vadd.f32 %v1098_v54, %v737_v22  ;;  %v18153_v29 = vld [vmem:[#allocation32_spill] sm:$0xff] }
 0x179   :  { %v2483_v49 = vmax.f32 %v2171_v37, 0.0  ;;  %v12156_v52 = vrot.slane %v12149_v47, %v18149_v5  ;;  %v700_v39 = vmul.f32 %v18150_v60, %v10794_v42  ;;  %v739_v46 = vmul.f32 %v18150_v60, %v10837_v38 }
 0x17a   :  { %18152 = vst [vmem:[#allocation31_spill] sm:$0xff] %v12151_v12  ;;  %3296 = vmatpush1.bf16.msra.mxu0 %v12151_v12  ;;  %v2522_v24 = vmax.f32 %v2210_v19, 0.0  ;;  %v2048_v25 = vadd.f32 %v1736_v27, %v1371_v30  ;;  %v2087_v62 = vadd.f32 %v1775_v44, %v1410_v63  ;;  %v1061_v28 = vmul.f32 %v10792_v41, %v12149_v47  ;;  %v18155_v12 = vld [vmem:[#allocation11_spill] sm:$0xff] }
 0x17b   :  { %v1100_v22 = vmul.f32 %v10835_v43, %v12149_v47  ;;  %v1738_v23 = vmul.f32 %v10864_v7, %v18153_v29  ;;  %v1777_v54 = vmul.f32 %v10862_v8, %v18153_v29  ;;  %v697_v37 = vmul.f32 %v11843_v51, %v10794_v42 }
 0x17c   :  { %v12173_v20 = vpack.c.bf16 %v2522_v24, %v2483_v49  ;;  %v2408_v27 = vadd.f32 %v10988_v33, %v2048_v25  ;;  %v2447_v44 = vadd.f32 %v10986_v35, %v2087_v62  ;;  %v1373_v19 = vadd.f32 %v1061_v28, %v700_v39 }
 0x17d   :  { %v1412_v30 = vadd.f32 %v1100_v22, %v739_v46  ;;  %10011 = vmatmul.mubr.msk.bf16.vlgmr.msra.gmra.mxu0 %vm2956_vm0, %v11866_v17  ;;  %v736_v63 = vmul.f32 %v11843_v51, %v10837_v38  ;;  %v1058_v55 = vmul.f32 %v10792_v41, %v18155_v12  ;;  %v1097_v1 = vmul.f32 %v10835_v43, %v18155_v12 }
 0x17e   :  { %18154 = vst [vmem:[#allocation32_spill] sm:$0xff] %v12173_v20  ;;  %3349 = vmatpush1.bf16.msra.mxu1 %v12173_v20  ;;  %v2720_v24 = vmax.f32 %v2408_v27, 0.0  ;;  %v2759_v49 = vmax.f32 %v2447_v44, 0.0  ;;  %v2050_v25 = vadd.f32 %v1738_v23, %v1373_v19  ;;  %v1735_v39 = vmul.f32 %v10864_v7, %v12133_v0 }
 0x17f   :  { %v18156_v46 = vmov 0   ;;  %v2089_v62 = vadd.f32 %v1777_v54, %v1412_v30  ;;  %v1370_v28 = vadd.f32 %v1058_v55, %v697_v37  ;;  %v1409_v22 = vadd.f32 %v1097_v1, %v736_v63  ;;  %v18158_v54 = vld [vmem:[#allocation12_spill] sm:$0xff] }
 0x180   :  { %3323 = vmatprep.mubr.bf16.mxu0 %v18156_v46  ;;  %v1774_v56 = vmul.f32 %v10862_v8, %v12133_v0  ;;  %v12191_v5 = vpack.c.bf16 %v2759_v49, %v2720_v24  ;;  %v2410_v40 = vadd.f32 %v10988_v33, %v2050_v25  ;;  %v699_v27 = vmul.f32 %v12133_v0, %v10794_v42 }
 0x181   :  { %v738_v23 = vmul.f32 %v12133_v0, %v10837_v38  ;;  %v2449_v44 = vadd.f32 %v10986_v35, %v2089_v62  ;;  %10013 = vmatmul.mubr.msk.bf16.vlgmr.msra.gmra.mxu1 %vm2956_vm0, %v11866_v17  ;;  %v2047_v55 = vadd.f32 %v1735_v39, %v1370_v28  ;;  %v1060_v37 = vmul.f32 %v10792_v41, %v18158_v54 }
 0x182   :  { %18157 = vst [vmem:[#allocation11_spill] sm:$0xff] %v12191_v5  ;;  %v2086_v1 = vadd.f32 %v1774_v56, %v1409_v22  ;;  %3395 = vmatprep.subr.bf16.mxu0 %v12191_v5  ;;  %v2722_v19 = vmax.f32 %v2410_v40, 0.0  ;;  %v1099_v30 = vmul.f32 %v10835_v43, %v18158_v54  ;;  %v1737_v63 = vmul.f32 %v10864_v7, %v12156_v52 }
 0x183   :  { %v1776_v24 = vmul.f32 %v10862_v8, %v12156_v52  ;;  %3376 = vmatprep.mubr.bf16.mxu1 %v18156_v46  ;;  %v2761_v17 = vmax.f32 %v2449_v44, 0.0  ;;  %v2407_v56 = vadd.f32 %v10988_v33, %v2047_v55  ;;  %v1372_v25 = vadd.f32 %v1060_v37, %v699_v27  ;;  %v18160_v8 = vld [vmem:[#allocation10_spill] sm:$0xff] }
 0x184   :  { %v2446_v49 = vadd.f32 %v10986_v35, %v2086_v1  ;;  %v1411_v39 = vadd.f32 %v1099_v30, %v738_v23  ;;  %v620_v40 = vmul.f32 %v18129_v36, %v18068_v11  ;;  %v659_v62 = vmul.f32 %v18129_v36, %v18069_v3 }
 0x185   :  { %v981_v28 = vmul.f32 %v18071_v53, %v12124_v45  ;;  %v12219_v22 = vpack.c.bf16 %v2761_v17, %v2722_v19  ;;  %v2719_v5 = vmax.f32 %v2407_v56, 0.0  ;;  %v2049_v44 = vadd.f32 %v1737_v63, %v1372_v25  ;;  %10012 = vmatmul.mubr.msk.bf16.gmra.mxu0 %vm2956_vm0, %v18160_v8 }
 0x186   :  { %v2758_v20 = vmax.f32 %v2446_v49, 0.0  ;;  %v2088_v55 = vadd.f32 %v1776_v24, %v1411_v39  ;;  %v1020_v27 = vmul.f32 %v18073_v26, %v12124_v45  ;;  %v1658_v1 = vmul.f32 %v18075_v13, %v18150_v60  ;;  %3419 = vmatprep.mubr.bf16.mxu0 %v18156_v46 }
 0x187   :  { %18159 = vst [vmem:[#allocation12_spill] sm:$0xff] %v12219_v22  ;;  %v1293_v23 = vadd.f32 %v981_v28, %v620_v40  ;;  %3448 = vmatprep.subr.bf16.mxu1 %v12219_v22  ;;  %v2409_v19 = vadd.f32 %v10988_v33, %v2049_v44  ;;  %v1697_v30 = vmul.f32 %v18076_v18, %v18150_v60 }
 0x188   :  { %v12229_v37 = vpack.c.bf16 %v2758_v20, %v2719_v5  ;;  %v622_v63 = vmul.f32 %v18150_v60, %v18068_v11  ;;  %v2448_v24 = vadd.f32 %v10986_v35, %v2088_v55  ;;  %v1332_v17 = vadd.f32 %v1020_v27, %v659_v62 }
 0x189   :  { %v1970_v56 = vadd.f32 %v1658_v1, %v1293_v23  ;;  %v661_v49 = vmul.f32 %v18150_v60, %v18069_v3  ;;  %v2721_v25 = vmax.f32 %v2409_v19, 0.0  ;;  %v983_v20 = vmul.f32 %v18071_v53, %v12149_v47  ;;  %10014 = vmatmul.mubr.msk.bf16.gmra.mxu1 %vm2956_vm0, %v18160_v8 }
 0x18a   :  { %18161 = vst [vmem:[#allocation10_spill] sm:$0xff] %v12229_v37  ;;  %3396 = vmatpush1.bf16.msra.mxu0 %v12229_v37  ;;  %v1022_v5 = vmul.f32 %v18073_v26, %v12149_v47  ;;  %v1660_v39 = vmul.f32 %v18075_v13, %v18153_v29  ;;  %v2760_v40 = vmax.f32 %v2448_v24, 0.0  ;;  %v2009_v62 = vadd.f32 %v1697_v30, %v1332_v17 }
 0x18b   :  { %v2330_v28 = vadd.f32 %v11098_v6, %v1970_v56  ;;  %v1699_v44 = vmul.f32 %v18076_v18, %v18153_v29  ;;  %3472 = vmatprep.mubr.bf16.mxu1 %v18156_v46  ;;  %v1295_v55 = vadd.f32 %v983_v20, %v622_v63  ;;  %v619_v23 = vmul.f32 %v11843_v51, %v18068_v11 }
 0x18c   :  { %v1334_v27 = vadd.f32 %v1022_v5, %v661_v49  ;;  %v658_v1 = vmul.f32 %v11843_v51, %v18069_v3  ;;  %v12256_v19 = vpack.c.bf16 %v2760_v40, %v2721_v25  ;;  %v2369_v8 = vadd.f32 %v11096_v16, %v2009_v62 }
 0x18d   :  { %v2642_v30 = vmax.f32 %v2330_v28, 0.0  ;;  %v980_v24 = vmul.f32 %v18071_v53, %v18155_v12  ;;  %v1972_v17 = vadd.f32 %v1660_v39, %v1295_v55  ;;  %v1019_v63 = vmul.f32 %v18073_v26, %v18155_v12 }
 0x18e   :  { %18162 = vst [vmem:[#allocation94_spill] sm:$0xff] %v12256_v19  ;;  %v2011_v56 = vadd.f32 %v1699_v44, %v1334_v27  ;;  %v1657_v49 = vmul.f32 %v18075_v13, %v12133_v0  ;;  %3449 = vmatpush1.bf16.msra.mxu1 %v12256_v19  ;;  %v2681_v20 = vmax.f32 %v2369_v8, 0.0  ;;  %v1696_v25 = vmul.f32 %v18076_v18, %v12133_v0 }
 0x18f   :  { %v1292_v5 = vadd.f32 %v980_v24, %v619_v23  ;;  %v621_v40 = vmul.f32 %v12133_v0, %v18068_v11  ;;  %v2332_v62 = vadd.f32 %v11098_v6, %v1972_v17  ;;  %v1331_v28 = vadd.f32 %v1019_v63, %v658_v1 }
 0x190   :  { %v2371_v39 = vadd.f32 %v11096_v16, %v2011_v56  ;;  %v660_v44 = vmul.f32 %v12133_v0, %v18069_v3  ;;  %v12274_v55 = vpack.c.bf16 %v2681_v20, %v2642_v30  ;;  %v982_v23 = vmul.f32 %v18071_v53, %v18158_v54 }
 0x191   :  { %v1969_v27 = vadd.f32 %v1657_v49, %v1292_v5  ;;  %v1021_v8 = vmul.f32 %v18073_v26, %v18158_v54  ;;  %v2644_v24 = vmax.f32 %v2332_v62, 0.0  ;;  %v2008_v37 = vadd.f32 %v1696_v25, %v1331_v28 }
 0x192   :  { %18163 = vst [vmem:[#allocation95_spill] sm:$0xff] %v12274_v55  ;;  %v2683_v22 = vmax.f32 %v2371_v39, 0.0  ;;  %v1659_v17 = vmul.f32 %v18075_v13, %v12156_v52  ;;  %3397 = vmatprep.subr.bf16.mxu0 %v12274_v55  ;;  %v1294_v56 = vadd.f32 %v982_v23, %v621_v40  ;;  %v1698_v63 = vmul.f32 %v18076_v18, %v12156_v52 }
 0x193   :  { %v2329_v1 = vadd.f32 %v11098_v6, %v1969_v27  ;;  %v1333_v30 = vadd.f32 %v1021_v8, %v660_v44  ;;  %v2368_v20 = vadd.f32 %v11096_v16, %v2008_v37  ;;  %v542_v5 = vmul.f32 %v18129_v36, %v18082_v21 }
 0x194   :  { %v12286_v49 = vpack.c.bf16 %v2683_v22, %v2644_v24  ;;  %v581_v25 = vmul.f32 %v18129_v36, %v18084_v59  ;;  %v1971_v39 = vadd.f32 %v1659_v17, %v1294_v56  ;;  %v903_v40 = vmul.f32 %v18085_v48, %v12124_v45 }
 0x195   :  { %v2641_v62 = vmax.f32 %v2329_v1, 0.0  ;;  %v2010_v28 = vadd.f32 %v1698_v63, %v1333_v30  ;;  %v2680_v44 = vmax.f32 %v2368_v20, 0.0  ;;  %v942_v22 = vmul.f32 %v11033_v34, %v12124_v45 }
 0x196   :  { %18164 = vst [vmem:[#allocation96_spill] sm:$0xff] %v12286_v49  ;;  %3450 = vmatprep.subr.bf16.mxu1 %v12286_v49  ;;  %v1580_v37 = vmul.f32 %v18113_v61, %v18150_v60  ;;  %v1619_v27 = vmul.f32 %v18114_v50, %v18150_v60  ;;  %v2331_v23 = vadd.f32 %v11098_v6, %v1971_v39 }
 0x197   :  { %v2370_v8 = vadd.f32 %v11096_v16, %v2010_v28  ;;  %v1215_v24 = vadd.f32 %v903_v40, %v542_v5  ;;  %v544_v17 = vmul.f32 %v18150_v60, %v18082_v21  ;;  %v12306_v1 = vpack.c.bf16 %v2680_v44, %v2641_v62 }
 0x198   :  { %v1254_v56 = vadd.f32 %v942_v22, %v581_v25  ;;  %v583_v30 = vmul.f32 %v18150_v60, %v18084_v59  ;;  %v905_v63 = vmul.f32 %v18085_v48, %v12149_v47  ;;  %v2643_v20 = vmax.f32 %v2331_v23, 0.0 }
 0x199   :  { %18165 = vst [vmem:[#allocation97_spill] sm:$0xff] %v12306_v1  ;;  %v2682_v49 = vmax.f32 %v2370_v8, 0.0  ;;  %v1892_v55 = vadd.f32 %v1580_v37, %v1215_v24  ;;  %v944_v39 = vmul.f32 %v11033_v34, %v12149_v47  ;;  %3398 = vmatpush1.bf16.msra.mxu0 %v12306_v1  ;;  %v1582_v62 = vmul.f32 %v18113_v61, %v18153_v29 }
 0x19a   :  { %v1931_v5 = vadd.f32 %v1619_v27, %v1254_v56  ;;  %v1217_v28 = vadd.f32 %v905_v63, %v544_v17  ;;  %v1621_v25 = vmul.f32 %v18114_v50, %v18153_v29  ;;  %v541_v37 = vmul.f32 %v11843_v51, %v18082_v21 }
 0x19b   :  { %v12319_v40 = vpack.c.bf16 %v2682_v49, %v2643_v20  ;;  %v2252_v44 = vadd.f32 %v11208_v58, %v1892_v55  ;;  %v1256_v22 = vadd.f32 %v944_v39, %v583_v30  ;;  %v580_v27 = vmul.f32 %v11843_v51, %v18084_v59 }
 0x19c   :  { %v2291_v23 = vadd.f32 %v11206_v15, %v1931_v5  ;;  %v1894_v8 = vadd.f32 %v1582_v62, %v1217_v28  ;;  %v902_v24 = vmul.f32 %v18085_v48, %v18155_v12  ;;  %v941_v55 = vmul.f32 %v11033_v34, %v18155_v12 }
 0x19d   :  { %18166 = vst [vmem:[#allocation98_spill] sm:$0xff] %v12319_v40  ;;  %3451 = vmatpush1.bf16.msra.mxu1 %v12319_v40  ;;  %v2564_v17 = vmax.f32 %v2252_v44, 0.0  ;;  %v1933_v49 = vadd.f32 %v1621_v25, %v1256_v22  ;;  %v1579_v56 = vmul.f32 %v18113_v61, %v12133_v0  ;;  %v1618_v39 = vmul.f32 %v18114_v50, %v12133_v0  ;;  %v18183_v40 = vld [vmem:[#allocation13_spill] sm:$0xff] }
 0x19e   :  { %v2603_v30 = vmax.f32 %v2291_v23, 0.0  ;;  %v2254_v63 = vadd.f32 %v11208_v58, %v1894_v8  ;;  %v1214_v20 = vadd.f32 %v902_v24, %v541_v37  ;;  %v1253_v28 = vadd.f32 %v941_v55, %v580_v27 }
 0x19f   :  { %v2293_v5 = vadd.f32 %v11206_v15, %v1933_v49  ;;  %v543_v62 = vmul.f32 %v12133_v0, %v18082_v21  ;;  %v582_v25 = vmul.f32 %v12133_v0, %v18084_v59  ;;  %v904_v23 = vmul.f32 %v18085_v48, %v18158_v54 }
 0x1a0   :  { %v12342_v44 = vpack.c.bf16 %v2603_v30, %v2564_v17  ;;  %v2566_v22 = vmax.f32 %v2254_v63, 0.0  ;;  %v1891_v1 = vadd.f32 %v1579_v56, %v1214_v20  ;;  %v1930_v8 = vadd.f32 %v1618_v39, %v1253_v28 }
 0x1a1   :  { %v2605_v37 = vmax.f32 %v2293_v5, 0.0  ;;  %v943_v24 = vmul.f32 %v11033_v34, %v18158_v54  ;;  %v1581_v27 = vmul.f32 %v18113_v61, %v12156_v52  ;;  %v1216_v55 = vadd.f32 %v904_v23, %v543_v62 }
 0x1a2   :  { %18167 = vst [vmem:[#allocation99_spill] sm:$0xff] %v12342_v44  ;;  %3399 = vmatprep.subr.bf16.mxu0 %v12342_v44  ;;  %v2251_v49 = vadd.f32 %v11208_v58, %v1891_v1  ;;  %v1620_v17 = vmul.f32 %v18114_v50, %v12156_v52  ;;  %v464_v56 = vmul.f32 %v18129_v36, %v18089_v10 }
 0x1a3   :  { %v12356_v30 = vpack.c.bf16 %v2605_v37, %v2566_v22  ;;  %v2290_v63 = vadd.f32 %v11206_v15, %v1930_v8  ;;  %v1255_v20 = vadd.f32 %v943_v24, %v582_v25  ;;  %v503_v39 = vmul.f32 %v18129_v36, %v18091_v32 }
 0x1a4   :  { %v2563_v5 = vmax.f32 %v2251_v49, 0.0  ;;  %v1893_v28 = vadd.f32 %v1581_v27, %v1216_v55  ;;  %v825_v1 = vmul.f32 %v18092_v14, %v12124_v45  ;;  %v864_v62 = vmul.f32 %v11151_v31, %v12124_v45 }
 0x1a5   :  { %18168 = vst [vmem:[#allocation100_spill] sm:$0xff] %v12356_v30  ;;  %3452 = vmatprep.subr.bf16.mxu1 %v12356_v30  ;;  %v2602_v23 = vmax.f32 %v2290_v63, 0.0  ;;  %v1932_v44 = vadd.f32 %v1620_v17, %v1255_v20  ;;  %v1502_v22 = vmul.f32 %v11188_v57, %v18150_v60  ;;  %v1541_v25 = vmul.f32 %v11186_v2, %v18150_v60 }
 0x1a6   :  { %v2253_v36 = vadd.f32 %v11208_v58, %v1893_v28  ;;  %v1137_v37 = vadd.f32 %v825_v1, %v464_v56  ;;  %v1176_v8 = vadd.f32 %v864_v62, %v503_v39  ;;  %v466_v24 = vmul.f32 %v18150_v60, %v18089_v10 }
 0x1a7   :  { %v12373_v27 = vpack.c.bf16 %v2602_v23, %v2563_v5  ;;  %v2292_v45 = vadd.f32 %v11206_v15, %v1932_v44  ;;  %v505_v49 = vmul.f32 %v18150_v60, %v18091_v32  ;;  %v827_v55 = vmul.f32 %v18092_v14, %v12149_v47 }
 0x1a8   :  { %v2565_v17 = vmax.f32 %v2253_v36, 0.0  ;;  %v1814_v63 = vadd.f32 %v1502_v22, %v1137_v37  ;;  %v1853_v20 = vadd.f32 %v1541_v25, %v1176_v8  ;;  %v866_v56 = vmul.f32 %v11151_v31, %v12149_v47 }
 0x1a9   :  { %18169 = vst [vmem:[#allocation101_spill] sm:$0xff] %v12373_v27  ;;  %3400 = vmatpush1.bf16.msra.mxu0 %v12373_v27  ;;  %v2604_v39 = vmax.f32 %v2292_v45, 0.0  ;;  %v1139_v28 = vadd.f32 %v827_v55, %v466_v24  ;;  %v1504_v5 = vmul.f32 %v11188_v57, %v18153_v29  ;;  %v1543_v44 = vmul.f32 %v11186_v2, %v18153_v29 }
 0x1aa   :  { %v2174_v60 = vadd.f32 %v11228_v9, %v1814_v63  ;;  %v2213_v1 = vadd.f32 %v11226_v4, %v1853_v20  ;;  %v1178_v62 = vadd.f32 %v866_v56, %v505_v49  ;;  %v463_v23 = vmul.f32 %v11843_v51, %v18089_v10 }
 0x1ab   :  { %v12391_v22 = vpack.c.bf16 %v2604_v39, %v2565_v17  ;;  %v1816_v47 = vadd.f32 %v1504_v5, %v1139_v28  ;;  %v502_v25 = vmul.f32 %v11843_v51, %v18091_v32  ;;  %v824_v36 = vmul.f32 %v18092_v14, %v18155_v12 }
 0x1ac   :  { %v2486_v37 = vmax.f32 %v2174_v60, 0.0  ;;  %v2525_v8 = vmax.f32 %v2213_v1, 0.0  ;;  %v1855_v24 = vadd.f32 %v1543_v44, %v1178_v62  ;;  %v863_v45 = vmul.f32 %v11151_v31, %v18155_v12 }
 0x1ad   :  { %18170 = vst [vmem:[#allocation102_spill] sm:$0xff] %v12391_v22  ;;  %3453 = vmatpush1.bf16.msra.mxu1 %v12391_v22  ;;  %v2176_v49 = vadd.f32 %v11228_v9, %v1816_v47  ;;  %v1136_v55 = vadd.f32 %v824_v36, %v463_v23  ;;  %v1501_v17 = vmul.f32 %v11188_v57, %v12133_v0 }
 0x1ae   :  { %v1540_v51 = vmul.f32 %v11186_v2, %v12133_v0  ;;  %v12405_v63 = vpack.c.bf16 %v2525_v8, %v2486_v37  ;;  %v2215_v20 = vadd.f32 %v11226_v4, %v1855_v24  ;;  %v1175_v56 = vadd.f32 %v863_v45, %v502_v25  ;;  %v18173_v37 = vld [vmem:[#allocation92_spill] sm:$0xff] }
 0x1af   :  { %v465_v39 = vmul.f32 %v12133_v0, %v18089_v10  ;;  %v2488_v12 = vmax.f32 %v2176_v49, 0.0  ;;  %v1813_v28 = vadd.f32 %v1501_v17, %v1136_v55  ;;  %v504_v5 = vmul.f32 %v12133_v0, %v18091_v32  ;;  %v18172_v0 = vld [vmem:[#allocation6_spill] sm:$0xff] }
 0x1b0   :  { %18171 = vst [vmem:[#allocation103_spill] sm:$0xff] %v12405_v63  ;;  %v826_v44 = vmul.f32 %v18092_v14, %v18158_v54  ;;  %3401 = vmatprep.subr.bf16.mxu0 %v12405_v63  ;;  %v2527_v60 = vmax.f32 %v2215_v20, 0.0  ;;  %v1852_v1 = vadd.f32 %v1540_v51, %v1175_v56  ;;  %v865_v62 = vmul.f32 %v11151_v31, %v18158_v54  ;;  %v18175_v51 = vld [vmem:[#allocation2_spill] sm:$0xff] }
 0x1b1   :  { %v1503_v23 = vmul.f32 %v11188_v57, %v12156_v52  ;;  %v2173_v47 = vadd.f32 %v11228_v9, %v1813_v28  ;;  %v1542_v36 = vmul.f32 %v11186_v2, %v12156_v52  ;;  %v12424_v8 = vrot.slane %v18173_v37, %v18172_v0 }
 0x1b2   :  { %v1138_v25 = vadd.f32 %v826_v44, %v465_v39  ;;  %v12426_v24 = vpack.c.bf16 %v2527_v60, %v2488_v12  ;;  %v2212_v45 = vadd.f32 %v11226_v4, %v1852_v1  ;;  %v1177_v49 = vadd.f32 %v865_v62, %v504_v5  ;;  %v18176_v60 = vld [vmem:[#allocation33_spill] sm:$0xff]  ;;  %v18177_v62 = vld [vmem:[#allocation46_spill] sm:$0xff] }
 0x1b3   :  { %v702_v54 = vmul.f32 %v18153_v29, %v10794_v42  ;;  %v2485_v55 = vmax.f32 %v2173_v47, 0.0  ;;  %v12433_v20 = vrot.slane %v12424_v8, %v18175_v51  ;;  %v741_v56 = vmul.f32 %v18153_v29, %v10837_v38  ;;  %v18178_v47 = vld [vmem:[#allocation18_spill] sm:$0xff] }
 0x1b4   :  { %18174 = vst [vmem:[#allocation92_spill] sm:$0xff] %v12426_v24  ;;  %v1815_v17 = vadd.f32 %v1503_v23, %v1138_v25  ;;  %3454 = vmatprep.subr.bf16.mxu1 %v12426_v24  ;;  %v2524_v39 = vmax.f32 %v2212_v45, 0.0  ;;  %v1854_v12 = vadd.f32 %v1542_v36, %v1177_v49  ;;  %v1063_v28 = vmul.f32 %v10792_v41, %v12424_v8 }
 0x1b5   :  { %v1102_v5 = vmul.f32 %v10835_v43, %v12424_v8  ;;  %v1740_v1 = vmul.f32 %v10864_v7, %v18176_v60  ;;  %v1779_v23 = vmul.f32 %v18177_v62, %v18176_v60  ;;  %v12449_v25 = vrot.slane %v18173_v37, %v18178_v47 }
 0x1b6   :  { %v2175_v44 = vadd.f32 %v11228_v9, %v1815_v17  ;;  %v12451_v45 = vpack.c.bf16 %v2524_v39, %v2485_v55  ;;  %v2214_v36 = vadd.f32 %v11226_v4, %v1854_v12  ;;  %v1375_v49 = vadd.f32 %v1063_v28, %v702_v54  ;;  %v18180_v12 = vld [vmem:[#allocation34_spill] sm:$0xff] }
 0x1b7   :  { %v1414_v24 = vadd.f32 %v1102_v5, %v741_v56  ;;  %v12456_v17 = vrot.slane %v12449_v25, %v18175_v51  ;;  %v704_v63 = vmul.f32 %v18176_v60, %v10794_v42  ;;  %v743_v27 = vmul.f32 %v18176_v60, %v10837_v38 }
 0x1b8   :  { %18179 = vst [vmem:[#allocation33_spill] sm:$0xff] %v12451_v45  ;;  %v2487_v30 = vmax.f32 %v2175_v44, 0.0  ;;  %3402 = vmatpush1.bf16.msra.mxu0 %v12451_v45  ;;  %v2526_v37 = vmax.f32 %v2214_v36, 0.0  ;;  %v2052_v55 = vadd.f32 %v1740_v1, %v1375_v49  ;;  %v1065_v54 = vmul.f32 %v10792_v41, %v12449_v25  ;;  %v12480_v49 = vld [vmem:[%s17463_s3 + $0x10] sm:$0xff]  }
 0x1b9   :  { %v2091_v39 = vadd.f32 %v1779_v23, %v1414_v24  ;;  %v1104_v56 = vmul.f32 %v10835_v43, %v12449_v25  ;;  %v1742_v28 = vmul.f32 %v10864_v7, %v18180_v12  ;;  %v1781_v5 = vmul.f32 %v18177_v62, %v18180_v12  ;;  %18182 = vst [vmem:[#allocation104_spill] sm:$0xff] %v12480_v49 }
 0x1ba   :  { %v701_v44 = vmul.f32 %v12156_v52, %v10794_v42  ;;  %v12473_v22 = vpack.c.bf16 %v2526_v37, %v2487_v30  ;;  %v2412_v1 = vadd.f32 %v10988_v33, %v2052_v55  ;;  %v1377_v23 = vadd.f32 %v1065_v54, %v704_v63 }
 0x1bb   :  { %v2451_v24 = vadd.f32 %v10986_v35, %v2091_v39  ;;  %v1416_v36 = vadd.f32 %v1104_v56, %v743_v27  ;;  %10015 = vmatmul.mubr.msk.bf16.vlgmr.msra.gmra.mxu0 %vm2956_vm0, %v12480_v49  ;;  %v740_v45 = vmul.f32 %v12156_v52, %v10837_v38  ;;  %v1062_v30 = vmul.f32 %v10792_v41, %v18183_v40 }
 0x1bc   :  { %18181 = vst [vmem:[#allocation34_spill] sm:$0xff] %v12473_v22  ;;  %v1101_v37 = vmul.f32 %v10835_v43, %v18183_v40  ;;  %3455 = vmatpush1.bf16.msra.mxu1 %v12473_v22  ;;  %v2724_v27 = vmax.f32 %v2412_v1, 0.0  ;;  %v2054_v55 = vadd.f32 %v1742_v28, %v1377_v23  ;;  %v1739_v39 = vmul.f32 %v10864_v7, %v12433_v20 }
 0x1bd   :  { %v2763_v63 = vmax.f32 %v2451_v24, 0.0  ;;  %3429 = vmatprep.mubr.bf16.mxu0 %v18156_v46  ;;  %v2093_v54 = vadd.f32 %v1781_v5, %v1416_v36  ;;  %v1374_v56 = vadd.f32 %v1062_v30, %v701_v44  ;;  %v1778_v47 = vmul.f32 %v18177_v62, %v12433_v20  ;;  %v18185_v44 = vld [vmem:[#allocation14_spill] sm:$0xff] }
 0x1be   :  { %v1413_v19 = vadd.f32 %v1101_v37, %v740_v45  ;;  %v2414_v51 = vadd.f32 %v10988_v33, %v2054_v55  ;;  %v703_v1 = vmul.f32 %v12433_v20, %v10794_v42  ;;  %v742_v28 = vmul.f32 %v12433_v20, %v10837_v38 }
 0x1bf   :  { %v12496_v0 = vpack.c.bf16 %v2763_v63, %v2724_v27  ;;  %v2453_v24 = vadd.f32 %v10986_v35, %v2093_v54  ;;  %10017 = vmatmul.mubr.msk.bf16.vlgmr.msra.gmra.mxu1 %vm2956_vm0, %v12480_v49  ;;  %v2051_v5 = vadd.f32 %v1739_v39, %v1374_v56  ;;  %v1064_v23 = vmul.f32 %v10792_v41, %v18185_v44 }
 0x1c0   :  { %v2090_v45 = vadd.f32 %v1778_v47, %v1413_v19  ;;  %v2726_v36 = vmax.f32 %v2414_v51, 0.0  ;;  %v1103_v30 = vmul.f32 %v10835_v43, %v18185_v44  ;;  %v1741_v37 = vmul.f32 %v10864_v7, %v12456_v17  ;;  %3482 = vmatprep.mubr.bf16.mxu1 %v18156_v46 }
 0x1c1   :  { %18184 = vst [vmem:[#allocation13_spill] sm:$0xff] %v12496_v0  ;;  %3501 = vmatprep.subr.bf16.mxu0 %v12496_v0  ;;  %v1780_v27 = vmul.f32 %v18177_v62, %v12456_v17  ;;  %v2765_v63 = vmax.f32 %v2453_v24, 0.0  ;;  %v2411_v19 = vadd.f32 %v10988_v33, %v2051_v5  ;;  %v1376_v55 = vadd.f32 %v1064_v23, %v703_v1  ;;  %v12529_v5 = vld [vmem:[%s17463_s3 + $0x18] sm:$0xff]  }
 0x1c2   :  { %v2450_v47 = vadd.f32 %v10986_v35, %v2090_v45  ;;  %v1415_v39 = vadd.f32 %v1103_v30, %v742_v28  ;;  %v624_v51 = vmul.f32 %v18153_v29, %v18068_v11  ;;  %v663_v54 = vmul.f32 %v18153_v29, %v18069_v3  ;;  %18187 = vst [vmem:[#allocation105_spill] sm:$0xff] %v12529_v5 }
 0x1c3   :  { %v985_v56 = vmul.f32 %v18071_v53, %v12424_v8  ;;  %v12524_v0 = vpack.c.bf16 %v2765_v63, %v2726_v36  ;;  %v2723_v22 = vmax.f32 %v2411_v19, 0.0  ;;  %v2053_v24 = vadd.f32 %v1741_v37, %v1376_v55  ;;  %10016 = vmatmul.mubr.msk.bf16.gmra.mxu0 %vm2956_vm0, %v12529_v5 }
 0x1c4   :  { %v2762_v49 = vmax.f32 %v2450_v47, 0.0  ;;  %v2092_v1 = vadd.f32 %v1780_v27, %v1415_v39  ;;  %v1024_v28 = vmul.f32 %v18073_v26, %v12424_v8  ;;  %v1662_v23 = vmul.f32 %v18075_v13, %v18176_v60  ;;  %3525 = vmatprep.mubr.bf16.mxu0 %v18156_v46 }
 0x1c5   :  { %18186 = vst [vmem:[#allocation14_spill] sm:$0xff] %v12524_v0  ;;  %v1297_v45 = vadd.f32 %v985_v56, %v624_v51  ;;  %3554 = vmatprep.subr.bf16.mxu1 %v12524_v0  ;;  %v2413_v30 = vadd.f32 %v10988_v33, %v2053_v24  ;;  %v1701_v37 = vmul.f32 %v18076_v18, %v18176_v60 }
 0x1c6   :  { %v12539_v36 = vpack.c.bf16 %v2762_v49, %v2723_v22  ;;  %v626_v27 = vmul.f32 %v18176_v60, %v18068_v11  ;;  %v2452_v63 = vadd.f32 %v10986_v35, %v2092_v1  ;;  %v1336_v19 = vadd.f32 %v1024_v28, %v663_v54 }
 0x1c7   :  { %v1974_v47 = vadd.f32 %v1662_v23, %v1297_v45  ;;  %v665_v55 = vmul.f32 %v18176_v60, %v18069_v3  ;;  %v2725_v39 = vmax.f32 %v2413_v30, 0.0  ;;  %v987_v22 = vmul.f32 %v18071_v53, %v12449_v25  ;;  %10018 = vmatmul.mubr.msk.bf16.gmra.mxu1 %vm2956_vm0, %v12529_v5 }
 0x1c8   :  { %18188 = vst [vmem:[#allocation106_spill] sm:$0xff] %v12539_v36  ;;  %3502 = vmatpush1.bf16.msra.mxu0 %v12539_v36  ;;  %v1026_v49 = vmul.f32 %v18073_v26, %v12449_v25  ;;  %v1664_v51 = vmul.f32 %v18075_v13, %v18180_v12  ;;  %v2764_v54 = vmax.f32 %v2452_v63, 0.0  ;;  %v2013_v56 = vadd.f32 %v1701_v37, %v1336_v19 }
 0x1c9   :  { %v2334_v24 = vadd.f32 %v11098_v6, %v1974_v47  ;;  %v1703_v1 = vmul.f32 %v18076_v18, %v18180_v12  ;;  %3578 = vmatprep.mubr.bf16.mxu1 %v18156_v46  ;;  %v1299_v28 = vadd.f32 %v987_v22, %v626_v27  ;;  %v623_v23 = vmul.f32 %v12156_v52, %v18068_v11 }
 0x1ca   :  { %v1338_v45 = vadd.f32 %v1026_v49, %v665_v55  ;;  %v662_v30 = vmul.f32 %v12156_v52, %v18069_v3  ;;  %v12566_v0 = vpack.c.bf16 %v2764_v54, %v2725_v39  ;;  %v2373_v63 = vadd.f32 %v11096_v16, %v2013_v56 }
 0x1cb   :  { %v2646_v37 = vmax.f32 %v2334_v24, 0.0  ;;  %v984_v19 = vmul.f32 %v18071_v53, %v18183_v40  ;;  %v1976_v47 = vadd.f32 %v1664_v51, %v1299_v28  ;;  %v1023_v27 = vmul.f32 %v18073_v26, %v18183_v40 }
 0x1cc   :  { %18189 = vst [vmem:[#allocation107_spill] sm:$0xff] %v12566_v0  ;;  %v2015_v36 = vadd.f32 %v1703_v1, %v1338_v45  ;;  %v1661_v55 = vmul.f32 %v18075_v13, %v12433_v20  ;;  %3555 = vmatpush1.bf16.msra.mxu1 %v12566_v0  ;;  %v2685_v22 = vmax.f32 %v2373_v63, 0.0  ;;  %v1700_v39 = vmul.f32 %v18076_v18, %v12433_v20 }
 0x1cd   :  { %v1296_v49 = vadd.f32 %v984_v19, %v623_v23  ;;  %v625_v54 = vmul.f32 %v12433_v20, %v18068_v11  ;;  %v2336_v56 = vadd.f32 %v11098_v6, %v1976_v47  ;;  %v1335_v24 = vadd.f32 %v1023_v27, %v662_v30 }
 0x1ce   :  { %v2375_v51 = vadd.f32 %v11096_v16, %v2015_v36  ;;  %v664_v1 = vmul.f32 %v12433_v20, %v18069_v3  ;;  %v12584_v28 = vpack.c.bf16 %v2685_v22, %v2646_v37  ;;  %v986_v23 = vmul.f32 %v18071_v53, %v18185_v44 }
 0x1cf   :  { %v1973_v45 = vadd.f32 %v1661_v55, %v1296_v49  ;;  %v1025_v63 = vmul.f32 %v18073_v26, %v18185_v44  ;;  %v2648_v19 = vmax.f32 %v2336_v56, 0.0  ;;  %v2012_v5 = vadd.f32 %v1700_v39, %v1335_v24 }
 0x1d0   :  { %18190 = vst [vmem:[#allocation108_spill] sm:$0xff] %v12584_v28  ;;  %v2687_v0 = vmax.f32 %v2375_v51, 0.0  ;;  %v1663_v47 = vmul.f32 %v18075_v13, %v12456_v17  ;;  %3503 = vmatprep.subr.bf16.mxu0 %v12584_v28  ;;  %v1298_v30 = vadd.f32 %v986_v23, %v625_v54  ;;  %v1702_v27 = vmul.f32 %v18076_v18, %v12456_v17 }
 0x1d1   :  { %v2333_v36 = vadd.f32 %v11098_v6, %v1973_v45  ;;  %v1337_v37 = vadd.f32 %v1025_v63, %v664_v1  ;;  %v2372_v22 = vadd.f32 %v11096_v16, %v2012_v5  ;;  %v546_v49 = vmul.f32 %v18153_v29, %v18082_v21 }
 0x1d2   :  { %v12596_v55 = vpack.c.bf16 %v2687_v0, %v2648_v19  ;;  %v585_v39 = vmul.f32 %v18153_v29, %v18084_v59  ;;  %v1975_v51 = vadd.f32 %v1663_v47, %v1298_v30  ;;  %v907_v54 = vmul.f32 %v18085_v48, %v12424_v8 }
 0x1d3   :  { %v2645_v56 = vmax.f32 %v2333_v36, 0.0  ;;  %v2014_v24 = vadd.f32 %v1702_v27, %v1337_v37  ;;  %v2684_v1 = vmax.f32 %v2372_v22, 0.0  ;;  %v946_v0 = vmul.f32 %v11033_v34, %v12424_v8 }
 0x1d4   :  { %18191 = vst [vmem:[#allocation109_spill] sm:$0xff] %v12596_v55  ;;  %3556 = vmatprep.subr.bf16.mxu1 %v12596_v55  ;;  %v1584_v5 = vmul.f32 %v18113_v61, %v18176_v60  ;;  %v1623_v45 = vmul.f32 %v18114_v50, %v18176_v60  ;;  %v2335_v23 = vadd.f32 %v11098_v6, %v1975_v51 }
 0x1d5   :  { %v2374_v63 = vadd.f32 %v11096_v16, %v2014_v24  ;;  %v1219_v19 = vadd.f32 %v907_v54, %v546_v49  ;;  %v548_v47 = vmul.f32 %v18176_v60, %v18082_v21  ;;  %v12616_v36 = vpack.c.bf16 %v2684_v1, %v2645_v56 }
 0x1d6   :  { %v1258_v30 = vadd.f32 %v946_v0, %v585_v39  ;;  %v587_v37 = vmul.f32 %v18176_v60, %v18084_v59  ;;  %v909_v27 = vmul.f32 %v18085_v48, %v12449_v25  ;;  %v2647_v22 = vmax.f32 %v2335_v23, 0.0 }
 0x1d7   :  { %18192 = vst [vmem:[#allocation110_spill] sm:$0xff] %v12616_v36  ;;  %v2686_v55 = vmax.f32 %v2374_v63, 0.0  ;;  %v1896_v28 = vadd.f32 %v1584_v5, %v1219_v19  ;;  %v948_v51 = vmul.f32 %v11033_v34, %v12449_v25  ;;  %3504 = vmatpush1.bf16.msra.mxu0 %v12616_v36  ;;  %v1586_v56 = vmul.f32 %v18113_v61, %v18180_v12 }
 0x1d8   :  { %v1935_v49 = vadd.f32 %v1623_v45, %v1258_v30  ;;  %v1221_v24 = vadd.f32 %v909_v27, %v548_v47  ;;  %v1625_v39 = vmul.f32 %v18114_v50, %v18180_v12  ;;  %v545_v5 = vmul.f32 %v12156_v52, %v18082_v21 }
 0x1d9   :  { %v12629_v54 = vpack.c.bf16 %v2686_v55, %v2647_v22  ;;  %v2256_v1 = vadd.f32 %v11208_v58, %v1896_v28  ;;  %v1260_v0 = vadd.f32 %v948_v51, %v587_v37  ;;  %v584_v45 = vmul.f32 %v12156_v52, %v18084_v59 }
 0x1da   :  { %v2295_v23 = vadd.f32 %v11206_v15, %v1935_v49  ;;  %v1898_v63 = vadd.f32 %v1586_v56, %v1221_v24  ;;  %v906_v19 = vmul.f32 %v18085_v48, %v18183_v40  ;;  %v945_v28 = vmul.f32 %v11033_v34, %v18183_v40 }
 0x1db   :  { %18193 = vst [vmem:[#allocation111_spill] sm:$0xff] %v12629_v54  ;;  %3557 = vmatpush1.bf16.msra.mxu1 %v12629_v54  ;;  %v2568_v47 = vmax.f32 %v2256_v1, 0.0  ;;  %v1937_v55 = vadd.f32 %v1625_v39, %v1260_v0  ;;  %v1583_v30 = vmul.f32 %v18113_v61, %v12433_v20  ;;  %v1622_v51 = vmul.f32 %v18114_v50, %v12433_v20  ;;  %v18209_v54 = vld [vmem:[#allocation15_spill] sm:$0xff] }
 0x1dc   :  { %v2607_v37 = vmax.f32 %v2295_v23, 0.0  ;;  %v2258_v27 = vadd.f32 %v11208_v58, %v1898_v63  ;;  %v1218_v22 = vadd.f32 %v906_v19, %v545_v5  ;;  %v1257_v24 = vadd.f32 %v945_v28, %v584_v45 }
 0x1dd   :  { %v2297_v49 = vadd.f32 %v11206_v15, %v1937_v55  ;;  %v547_v56 = vmul.f32 %v12433_v20, %v18082_v21  ;;  %v586_v39 = vmul.f32 %v12433_v20, %v18084_v59  ;;  %v908_v23 = vmul.f32 %v18085_v48, %v18185_v44 }
 0x1de   :  { %v12652_v1 = vpack.c.bf16 %v2607_v37, %v2568_v47  ;;  %v2570_v0 = vmax.f32 %v2258_v27, 0.0  ;;  %v1895_v36 = vadd.f32 %v1583_v30, %v1218_v22  ;;  %v1934_v63 = vadd.f32 %v1622_v51, %v1257_v24 }
 0x1df   :  { %v2609_v5 = vmax.f32 %v2297_v49, 0.0  ;;  %v947_v19 = vmul.f32 %v11033_v34, %v18185_v44  ;;  %v1585_v45 = vmul.f32 %v18113_v61, %v12456_v17  ;;  %v1220_v28 = vadd.f32 %v908_v23, %v547_v56 }
 0x1e0   :  { %18194 = vst [vmem:[#allocation112_spill] sm:$0xff] %v12652_v1  ;;  %3505 = vmatprep.subr.bf16.mxu0 %v12652_v1  ;;  %v2255_v55 = vadd.f32 %v11208_v58, %v1895_v36  ;;  %v1624_v47 = vmul.f32 %v18114_v50, %v12456_v17  ;;  %v468_v30 = vmul.f32 %v18153_v29, %v18089_v10 }
 0x1e1   :  { %v12666_v37 = vpack.c.bf16 %v2609_v5, %v2570_v0  ;;  %v2294_v27 = vadd.f32 %v11206_v15, %v1934_v63  ;;  %v1259_v22 = vadd.f32 %v947_v19, %v586_v39  ;;  %v507_v51 = vmul.f32 %v18153_v29, %v18091_v32 }
 0x1e2   :  { %v2567_v49 = vmax.f32 %v2255_v55, 0.0  ;;  %v1897_v24 = vadd.f32 %v1585_v45, %v1220_v28  ;;  %v829_v36 = vmul.f32 %v18092_v14, %v12424_v8  ;;  %v868_v56 = vmul.f32 %v11151_v31, %v12424_v8 }
 0x1e3   :  { %18195 = vst [vmem:[#allocation113_spill] sm:$0xff] %v12666_v37  ;;  %3558 = vmatprep.subr.bf16.mxu1 %v12666_v37  ;;  %v2606_v23 = vmax.f32 %v2294_v27, 0.0  ;;  %v1936_v1 = vadd.f32 %v1624_v47, %v1259_v22  ;;  %v1506_v0 = vmul.f32 %v11188_v57, %v18176_v60  ;;  %v1545_v39 = vmul.f32 %v11186_v2, %v18176_v60 }
 0x1e4   :  { %v2257_v29 = vadd.f32 %v11208_v58, %v1897_v24  ;;  %v1141_v5 = vadd.f32 %v829_v36, %v468_v30  ;;  %v1180_v63 = vadd.f32 %v868_v56, %v507_v51  ;;  %v470_v19 = vmul.f32 %v18176_v60, %v18089_v10 }
 0x1e5   :  { %v12683_v45 = vpack.c.bf16 %v2606_v23, %v2567_v49  ;;  %v2296_v8 = vadd.f32 %v11206_v15, %v1936_v1  ;;  %v509_v55 = vmul.f32 %v18176_v60, %v18091_v32  ;;  %v831_v28 = vmul.f32 %v18092_v14, %v12449_v25 }
 0x1e6   :  { %v2569_v47 = vmax.f32 %v2257_v29, 0.0  ;;  %v1818_v27 = vadd.f32 %v1506_v0, %v1141_v5  ;;  %v1857_v22 = vadd.f32 %v1545_v39, %v1180_v63  ;;  %v870_v30 = vmul.f32 %v11151_v31, %v12449_v25 }
 0x1e7   :  { %18196 = vst [vmem:[#allocation114_spill] sm:$0xff] %v12683_v45  ;;  %3506 = vmatpush1.bf16.msra.mxu0 %v12683_v45  ;;  %v2608_v51 = vmax.f32 %v2296_v8, 0.0  ;;  %v1143_v24 = vadd.f32 %v831_v28, %v470_v19  ;;  %v1508_v49 = vmul.f32 %v11188_v57, %v18180_v12  ;;  %v1547_v1 = vmul.f32 %v11186_v2, %v18180_v12 }
 0x1e8   :  { %v2178_v60 = vadd.f32 %v11228_v9, %v1818_v27  ;;  %v2217_v36 = vadd.f32 %v11226_v4, %v1857_v22  ;;  %v1182_v56 = vadd.f32 %v870_v30, %v509_v55  ;;  %v467_v23 = vmul.f32 %v12156_v52, %v18089_v10 }
 0x1e9   :  { %v12701_v0 = vpack.c.bf16 %v2608_v51, %v2569_v47  ;;  %v1820_v25 = vadd.f32 %v1508_v49, %v1143_v24  ;;  %v506_v39 = vmul.f32 %v12156_v52, %v18091_v32  ;;  %v828_v29 = vmul.f32 %v18092_v14, %v18183_v40 }
 0x1ea   :  { %v2490_v5 = vmax.f32 %v2178_v60, 0.0  ;;  %v2529_v63 = vmax.f32 %v2217_v36, 0.0  ;;  %v1859_v19 = vadd.f32 %v1547_v1, %v1182_v56  ;;  %v867_v8 = vmul.f32 %v11151_v31, %v18183_v40 }
 0x1eb   :  { %18197 = vst [vmem:[#allocation115_spill] sm:$0xff] %v12701_v0  ;;  %3559 = vmatpush1.bf16.msra.mxu1 %v12701_v0  ;;  %v2180_v55 = vadd.f32 %v11228_v9, %v1820_v25  ;;  %v1140_v28 = vadd.f32 %v828_v29, %v467_v23  ;;  %v1505_v47 = vmul.f32 %v11188_v57, %v12433_v20 }
 0x1ec   :  { %v1544_v52 = vmul.f32 %v11186_v2, %v12433_v20  ;;  %v12715_v27 = vpack.c.bf16 %v2529_v63, %v2490_v5  ;;  %v2219_v22 = vadd.f32 %v11226_v4, %v1859_v19  ;;  %v1179_v30 = vadd.f32 %v867_v8, %v506_v39  ;;  %v18200_v5 = vld [vmem:[#allocation3_spill] sm:$0xff] }
 0x1ed   :  { %v469_v51 = vmul.f32 %v12433_v20, %v18089_v10  ;;  %v2492_v40 = vmax.f32 %v2180_v55, 0.0  ;;  %v1817_v24 = vadd.f32 %v1505_v47, %v1140_v28  ;;  %v508_v49 = vmul.f32 %v12433_v20, %v18091_v32  ;;  %v12735_v20 = vld [vmem:[%s17465_s0 + $0x18] sm:$0xff] }
 0x1ee   :  { %18198 = vst [vmem:[#allocation116_spill] sm:$0xff] %v12715_v27  ;;  %v830_v1 = vmul.f32 %v18092_v14, %v18185_v44  ;;  %3507 = vmatprep.subr.bf16.mxu0 %v12715_v27  ;;  %v2531_v60 = vmax.f32 %v2219_v22, 0.0  ;;  %v1856_v36 = vadd.f32 %v1544_v52, %v1179_v30  ;;  %v869_v56 = vmul.f32 %v11151_v31, %v18185_v44  ;;  %v18202_v52 = vld [vmem:[#allocation2_spill] sm:$0xff] }
 0x1ef   :  { %v1507_v23 = vmul.f32 %v11188_v57, %v12456_v17  ;;  %v2177_v25 = vadd.f32 %v11228_v9, %v1817_v24  ;;  %v1546_v29 = vmul.f32 %v11186_v2, %v12456_v17  ;;  %18199 = vst [vmem:[#allocation117_spill] sm:$0xff] %v12735_v20  ;;  %v12739_v63 = vrot.slane %v12735_v20, %v18200_v5 }
 0x1f0   :  { %v1142_v39 = vadd.f32 %v830_v1, %v469_v51  ;;  %v12741_v19 = vpack.c.bf16 %v2531_v60, %v2492_v40  ;;  %v2216_v44 = vadd.f32 %v11226_v4, %v1856_v36  ;;  %v1181_v8 = vadd.f32 %v869_v56, %v508_v49  ;;  %v18203_v60 = vld [vmem:[#allocation35_spill] sm:$0xff] }
 0x1f1   :  { %v706_v55 = vmul.f32 %v18180_v12, %v10794_v42  ;;  %v2489_v28 = vmax.f32 %v2177_v25, 0.0  ;;  %v12748_v22 = vrot.slane %v12739_v63, %v18202_v52  ;;  %v745_v30 = vmul.f32 %v18180_v12, %v10837_v38 }
 0x1f2   :  { %18201 = vst [vmem:[#allocation118_spill] sm:$0xff] %v12741_v19  ;;  %v1819_v47 = vadd.f32 %v1507_v23, %v1142_v39  ;;  %3560 = vmatprep.subr.bf16.mxu1 %v12741_v19  ;;  %v2528_v51 = vmax.f32 %v2216_v44, 0.0  ;;  %v1858_v40 = vadd.f32 %v1546_v29, %v1181_v8  ;;  %v1067_v24 = vmul.f32 %v10792_v41, %v12739_v63  ;;  %v18204_v23 = vld [vmem:[#allocation5_spill] sm:$0xff] }
 0x1f3   :  { %v1106_v49 = vmul.f32 %v10835_v43, %v12739_v63  ;;  %v1744_v36 = vmul.f32 %v10864_v7, %v18203_v60  ;;  %v1783_v56 = vmul.f32 %v18177_v62, %v18203_v60  ;;  %v12764_v25 = vrot.slane %v12735_v20, %v18204_v23 }
 0x1f4   :  { %v2179_v1 = vadd.f32 %v11228_v9, %v1819_v47  ;;  %v12766_v39 = vpack.c.bf16 %v2528_v51, %v2489_v28  ;;  %v2218_v29 = vadd.f32 %v11226_v4, %v1858_v40  ;;  %v1379_v44 = vadd.f32 %v1067_v24, %v706_v55  ;;  %v18206_v40 = vld [vmem:[#allocation36_spill] sm:$0xff] }
 0x1f5   :  { %v1418_v8 = vadd.f32 %v1106_v49, %v745_v30  ;;  %v12771_v47 = vrot.slane %v12764_v25, %v18202_v52  ;;  %v708_v37 = vmul.f32 %v18203_v60, %v10794_v42  ;;  %v747_v27 = vmul.f32 %v18203_v60, %v10837_v38 }
 0x1f6   :  { %18205 = vst [vmem:[#allocation35_spill] sm:$0xff] %v12766_v39  ;;  %v2491_v19 = vmax.f32 %v2179_v1, 0.0  ;;  %3508 = vmatpush1.bf16.msra.mxu0 %v12766_v39  ;;  %v2530_v45 = vmax.f32 %v2218_v29, 0.0  ;;  %v2056_v28 = vadd.f32 %v1744_v36, %v1379_v44  ;;  %v1069_v55 = vmul.f32 %v10792_v41, %v12764_v25 }
 0x1f7   :  { %v2095_v51 = vadd.f32 %v1783_v56, %v1418_v8  ;;  %v1108_v30 = vmul.f32 %v10835_v43, %v12764_v25  ;;  %v1746_v24 = vmul.f32 %v10864_v7, %v18206_v40  ;;  %v1785_v49 = vmul.f32 %v18177_v62, %v18206_v40  ;;  %v18208_v8 = vld [vmem:[#allocation104_spill] sm:$0xff] }
 0x1f8   :  { %v705_v1 = vmul.f32 %v12456_v17, %v10794_v42  ;;  %v12788_v0 = vpack.c.bf16 %v2530_v45, %v2491_v19  ;;  %v2416_v36 = vadd.f32 %v10988_v33, %v2056_v28  ;;  %v1381_v29 = vadd.f32 %v1069_v55, %v708_v37 }
 0x1f9   :  { %v2455_v56 = vadd.f32 %v10986_v35, %v2095_v51  ;;  %v1420_v44 = vadd.f32 %v1108_v30, %v747_v27  ;;  %10019 = vmatmul.mubr.msk.bf16.vlgmr.msra.gmra.mxu0 %vm2956_vm0, %v18208_v8  ;;  %v744_v39 = vmul.f32 %v12456_v17, %v10837_v38  ;;  %v1066_v23 = vmul.f32 %v10792_v41, %v18209_v54 }
 0x1fa   :  { %18207 = vst [vmem:[#allocation36_spill] sm:$0xff] %v12788_v0  ;;  %v1105_v5 = vmul.f32 %v10835_v43, %v18209_v54  ;;  %3561 = vmatpush1.bf16.msra.mxu1 %v12788_v0  ;;  %v2728_v45 = vmax.f32 %v2416_v36, 0.0  ;;  %v2058_v28 = vadd.f32 %v1746_v24, %v1381_v29  ;;  %v1743_v37 = vmul.f32 %v10864_v7, %v12748_v22 }
 0x1fb   :  { %v2767_v19 = vmax.f32 %v2455_v56, 0.0  ;;  %3535 = vmatprep.mubr.bf16.mxu0 %v18156_v46  ;;  %v2097_v27 = vadd.f32 %v1785_v49, %v1420_v44  ;;  %v1378_v51 = vadd.f32 %v1066_v23, %v705_v1  ;;  %v1782_v30 = vmul.f32 %v18177_v62, %v12748_v22 }
 0x1fc   :  { %v1417_v55 = vadd.f32 %v1105_v5, %v744_v39  ;;  %v2418_v20 = vadd.f32 %v10988_v33, %v2058_v28  ;;  %v707_v36 = vmul.f32 %v12748_v22, %v10794_v42  ;;  %v746_v24 = vmul.f32 %v12748_v22, %v10837_v38  ;;  %v18211_v39 = vld [vmem:[#allocation16_spill] sm:$0xff] }
 0x1fd   :  { %v12806_v52 = vpack.c.bf16 %v2767_v19, %v2728_v45  ;;  %v2457_v56 = vadd.f32 %v10986_v35, %v2097_v27  ;;  %10021 = vmatmul.mubr.msk.bf16.vlgmr.msra.gmra.mxu1 %vm2956_vm0, %v18208_v8  ;;  %v2055_v23 = vadd.f32 %v1743_v37, %v1378_v51  ;;  %v1068_v49 = vmul.f32 %v10792_v41, %v18211_v39 }
 0x1fe   :  { %v2094_v5 = vadd.f32 %v1782_v30, %v1417_v55  ;;  %v2730_v1 = vmax.f32 %v2418_v20, 0.0  ;;  %v1107_v29 = vmul.f32 %v10835_v43, %v18211_v39  ;;  %v1745_v44 = vmul.f32 %v10864_v7, %v12771_v47  ;;  %3588 = vmatprep.mubr.bf16.mxu1 %v18156_v46 }
 0x1ff   :  { %18210 = vst [vmem:[#allocation104_spill] sm:$0xff] %v12806_v52  ;;  %3607 = vmatprep.subr.bf16.mxu0 %v12806_v52  ;;  %v1784_v45 = vmul.f32 %v18177_v62, %v12771_v47  ;;  %v2769_v8 = vmax.f32 %v2457_v56, 0.0  ;;  %v2415_v19 = vadd.f32 %v10988_v33, %v2055_v23  ;;  %v1380_v37 = vadd.f32 %v1068_v49, %v707_v36  ;;  %v18213_v62 = vld [vmem:[#allocation105_spill] sm:$0xff] }
 0x200   :  { %v2454_v28 = vadd.f32 %v10986_v35, %v2094_v5  ;;  %v1419_v27 = vadd.f32 %v1107_v29, %v746_v24  ;;  %v628_v20 = vmul.f32 %v18180_v12, %v18068_v11  ;;  %v667_v51 = vmul.f32 %v18180_v12, %v18069_v3 }
 0x201   :  { %v989_v55 = vmul.f32 %v18071_v53, %v12739_v63  ;;  %v12834_v30 = vpack.c.bf16 %v2769_v8, %v2730_v1  ;;  %v2727_v52 = vmax.f32 %v2415_v19, 0.0  ;;  %v2057_v56 = vadd.f32 %v1745_v44, %v1380_v37  ;;  %10020 = vmatmul.mubr.msk.bf16.gmra.mxu0 %vm2956_vm0, %v18213_v62 }
 0x202   :  { %v2766_v0 = vmax.f32 %v2454_v28, 0.0  ;;  %v2096_v23 = vadd.f32 %v1784_v45, %v1419_v27  ;;  %v1028_v36 = vmul.f32 %v18073_v26, %v12739_v63  ;;  %v1666_v5 = vmul.f32 %v18075_v13, %v18203_v60  ;;  %3631 = vmatprep.mubr.bf16.mxu0 %v18156_v46 }
 0x203   :  { %18212 = vst [vmem:[#allocation15_spill] sm:$0xff] %v12834_v30  ;;  %v1301_v24 = vadd.f32 %v989_v55, %v628_v20  ;;  %3660 = vmatprep.subr.bf16.mxu1 %v12834_v30  ;;  %v2417_v1 = vadd.f32 %v10988_v33, %v2057_v56  ;;  %v1705_v29 = vmul.f32 %v18076_v18, %v18203_v60 }
 0x204   :  { %v12844_v49 = vpack.c.bf16 %v2766_v0, %v2727_v52  ;;  %v630_v44 = vmul.f32 %v18203_v60, %v18068_v11  ;;  %v2456_v45 = vadd.f32 %v10986_v35, %v2096_v23  ;;  %v1340_v8 = vadd.f32 %v1028_v36, %v667_v51 }
 0x205   :  { %v1978_v19 = vadd.f32 %v1666_v5, %v1301_v24  ;;  %v669_v28 = vmul.f32 %v18203_v60, %v18069_v3  ;;  %v2729_v37 = vmax.f32 %v2417_v1, 0.0  ;;  %v991_v0 = vmul.f32 %v18071_v53, %v12764_v25  ;;  %10022 = vmatmul.mubr.msk.bf16.gmra.mxu1 %vm2956_vm0, %v18213_v62 }
 0x206   :  { %18214 = vst [vmem:[#allocation16_spill] sm:$0xff] %v12844_v49  ;;  %3608 = vmatpush1.bf16.msra.mxu0 %v12844_v49  ;;  %v1030_v52 = vmul.f32 %v18073_v26, %v12764_v25  ;;  %v1668_v27 = vmul.f32 %v18075_v13, %v18206_v40  ;;  %v2768_v20 = vmax.f32 %v2456_v45, 0.0  ;;  %v2017_v51 = vadd.f32 %v1705_v29, %v1340_v8 }
 0x207   :  { %v2338_v55 = vadd.f32 %v11098_v6, %v1978_v19  ;;  %v1707_v56 = vmul.f32 %v18076_v18, %v18206_v40  ;;  %3684 = vmatprep.mubr.bf16.mxu1 %v18156_v46  ;;  %v1303_v23 = vadd.f32 %v991_v0, %v630_v44  ;;  %v627_v24 = vmul.f32 %v12456_v17, %v18068_v11 }
 0x208   :  { %v1342_v36 = vadd.f32 %v1030_v52, %v669_v28  ;;  %v666_v5 = vmul.f32 %v12456_v17, %v18069_v3  ;;  %v12871_v1 = vpack.c.bf16 %v2768_v20, %v2729_v37  ;;  %v2377_v62 = vadd.f32 %v11096_v16, %v2017_v51 }
 0x209   :  { %v2650_v29 = vmax.f32 %v2338_v55, 0.0  ;;  %v988_v45 = vmul.f32 %v18071_v53, %v18209_v54  ;;  %v1980_v8 = vadd.f32 %v1668_v27, %v1303_v23  ;;  %v1027_v44 = vmul.f32 %v18073_v26, %v18209_v54 }
 0x20a   :  { %18215 = vst [vmem:[#allocation105_spill] sm:$0xff] %v12871_v1  ;;  %v2019_v19 = vadd.f32 %v1707_v56, %v1342_v36  ;;  %v1665_v28 = vmul.f32 %v18075_v13, %v12748_v22  ;;  %3661 = vmatpush1.bf16.msra.mxu1 %v12871_v1  ;;  %v2689_v0 = vmax.f32 %v2377_v62, 0.0  ;;  %v1704_v37 = vmul.f32 %v18076_v18, %v12748_v22 }
 0x20b   :  { %v1300_v52 = vadd.f32 %v988_v45, %v627_v24  ;;  %v629_v20 = vmul.f32 %v12748_v22, %v18068_v11  ;;  %v2340_v51 = vadd.f32 %v11098_v6, %v1980_v8  ;;  %v1339_v55 = vadd.f32 %v1027_v44, %v666_v5 }
 0x20c   :  { %v2379_v27 = vadd.f32 %v11096_v16, %v2019_v19  ;;  %v668_v56 = vmul.f32 %v12748_v22, %v18069_v3  ;;  %v12889_v23 = vpack.c.bf16 %v2689_v0, %v2650_v29  ;;  %v990_v24 = vmul.f32 %v18071_v53, %v18211_v39 }
 0x20d   :  { %v1977_v36 = vadd.f32 %v1665_v28, %v1300_v52  ;;  %v1029_v62 = vmul.f32 %v18073_v26, %v18211_v39  ;;  %v2652_v45 = vmax.f32 %v2340_v51, 0.0  ;;  %v2016_v49 = vadd.f32 %v1704_v37, %v1339_v55 }
 0x20e   :  { %18216 = vst [vmem:[#allocation119_spill] sm:$0xff] %v12889_v23  ;;  %v2691_v30 = vmax.f32 %v2379_v27, 0.0  ;;  %v1667_v8 = vmul.f32 %v18075_v13, %v12771_v47  ;;  %3609 = vmatprep.subr.bf16.mxu0 %v12889_v23  ;;  %v1302_v19 = vadd.f32 %v990_v24, %v629_v20  ;;  %v1706_v44 = vmul.f32 %v18076_v18, %v12771_v47 }
 0x20f   :  { %v2337_v5 = vadd.f32 %v11098_v6, %v1977_v36  ;;  %v1341_v29 = vadd.f32 %v1029_v62, %v668_v56  ;;  %v2376_v0 = vadd.f32 %v11096_v16, %v2016_v49  ;;  %v550_v52 = vmul.f32 %v18180_v12, %v18082_v21 }
 0x210   :  { %v12901_v28 = vpack.c.bf16 %v2691_v30, %v2652_v45  ;;  %v589_v37 = vmul.f32 %v18180_v12, %v18084_v59  ;;  %v1979_v27 = vadd.f32 %v1667_v8, %v1302_v19  ;;  %v911_v20 = vmul.f32 %v18085_v48, %v12739_v63 }
 0x211   :  { %v2649_v51 = vmax.f32 %v2337_v5, 0.0  ;;  %v2018_v55 = vadd.f32 %v1706_v44, %v1341_v29  ;;  %v2688_v56 = vmax.f32 %v2376_v0, 0.0  ;;  %v950_v30 = vmul.f32 %v11033_v34, %v12739_v63 }
 0x212   :  { %18217 = vst [vmem:[#allocation120_spill] sm:$0xff] %v12901_v28  ;;  %3662 = vmatprep.subr.bf16.mxu1 %v12901_v28  ;;  %v1588_v49 = vmul.f32 %v18113_v61, %v18203_v60  ;;  %v1627_v36 = vmul.f32 %v18114_v50, %v18203_v60  ;;  %v2339_v24 = vadd.f32 %v11098_v6, %v1979_v27 }
 0x213   :  { %v2378_v62 = vadd.f32 %v11096_v16, %v2018_v55  ;;  %v1223_v45 = vadd.f32 %v911_v20, %v550_v52  ;;  %v552_v8 = vmul.f32 %v18203_v60, %v18082_v21  ;;  %v12921_v5 = vpack.c.bf16 %v2688_v56, %v2649_v51 }
 0x214   :  { %v1262_v19 = vadd.f32 %v950_v30, %v589_v37  ;;  %v591_v29 = vmul.f32 %v18203_v60, %v18084_v59  ;;  %v913_v44 = vmul.f32 %v18085_v48, %v12764_v25  ;;  %v2651_v0 = vmax.f32 %v2339_v24, 0.0 }
 0x215   :  { %18218 = vst [vmem:[#allocation121_spill] sm:$0xff] %v12921_v5  ;;  %v2690_v28 = vmax.f32 %v2378_v62, 0.0  ;;  %v1900_v23 = vadd.f32 %v1588_v49, %v1223_v45  ;;  %v952_v27 = vmul.f32 %v11033_v34, %v12764_v25  ;;  %3610 = vmatpush1.bf16.msra.mxu0 %v12921_v5  ;;  %v1590_v51 = vmul.f32 %v18113_v61, %v18206_v40 }
 0x216   :  { %v1939_v52 = vadd.f32 %v1627_v36, %v1262_v19  ;;  %v1225_v55 = vadd.f32 %v913_v44, %v552_v8  ;;  %v1629_v37 = vmul.f32 %v18114_v50, %v18206_v40  ;;  %v549_v49 = vmul.f32 %v12456_v17, %v18082_v21 }
 0x217   :  { %v12934_v20 = vpack.c.bf16 %v2690_v28, %v2651_v0  ;;  %v2260_v56 = vadd.f32 %v11208_v58, %v1900_v23  ;;  %v1264_v30 = vadd.f32 %v952_v27, %v591_v29  ;;  %v588_v36 = vmul.f32 %v12456_v17, %v18084_v59 }
 0x218   :  { %v2299_v24 = vadd.f32 %v11206_v15, %v1939_v52  ;;  %v1902_v62 = vadd.f32 %v1590_v51, %v1225_v55  ;;  %v910_v45 = vmul.f32 %v18085_v48, %v18209_v54  ;;  %v949_v23 = vmul.f32 %v11033_v34, %v18209_v54 }
 0x219   :  { %18219 = vst [vmem:[#allocation122_spill] sm:$0xff] %v12934_v20  ;;  %3663 = vmatpush1.bf16.msra.mxu1 %v12934_v20  ;;  %v2572_v8 = vmax.f32 %v2260_v56, 0.0  ;;  %v1941_v28 = vadd.f32 %v1629_v37, %v1264_v30  ;;  %v1587_v19 = vmul.f32 %v18113_v61, %v12748_v22  ;;  %v1626_v27 = vmul.f32 %v18114_v50, %v12748_v22 }
 0x21a   :  { %v2611_v29 = vmax.f32 %v2299_v24, 0.0  ;;  %v2262_v44 = vadd.f32 %v11208_v58, %v1902_v62  ;;  %v1222_v0 = vadd.f32 %v910_v45, %v549_v49  ;;  %v1261_v55 = vadd.f32 %v949_v23, %v588_v36 }
 0x21b   :  { %v2301_v52 = vadd.f32 %v11206_v15, %v1941_v28  ;;  %v551_v51 = vmul.f32 %v12748_v22, %v18082_v21  ;;  %v590_v37 = vmul.f32 %v12748_v22, %v18084_v59  ;;  %v912_v24 = vmul.f32 %v18085_v48, %v18211_v39 }
 0x21c   :  { %v12957_v56 = vpack.c.bf16 %v2611_v29, %v2572_v8  ;;  %v2574_v30 = vmax.f32 %v2262_v44, 0.0  ;;  %v1899_v5 = vadd.f32 %v1587_v19, %v1222_v0  ;;  %v1938_v62 = vadd.f32 %v1626_v27, %v1261_v55 }
 0x21d   :  { %v2613_v49 = vmax.f32 %v2301_v52, 0.0  ;;  %v951_v45 = vmul.f32 %v11033_v34, %v18211_v39  ;;  %v1589_v36 = vmul.f32 %v18113_v61, %v12771_v47  ;;  %v1224_v23 = vadd.f32 %v912_v24, %v551_v51 }
 0x21e   :  { %18220 = vst [vmem:[#allocation123_spill] sm:$0xff] %v12957_v56  ;;  %3611 = vmatprep.subr.bf16.mxu0 %v12957_v56  ;;  %v2259_v28 = vadd.f32 %v11208_v58, %v1899_v5  ;;  %v1628_v8 = vmul.f32 %v18114_v50, %v12771_v47  ;;  %v472_v19 = vmul.f32 %v18180_v12, %v18089_v10 }
 0x21f   :  { %v12971_v29 = vpack.c.bf16 %v2613_v49, %v2574_v30  ;;  %v2298_v44 = vadd.f32 %v11206_v15, %v1938_v62  ;;  %v1263_v0 = vadd.f32 %v951_v45, %v590_v37  ;;  %v511_v27 = vmul.f32 %v18180_v12, %v18091_v32 }
 0x220   :  { %v2571_v52 = vmax.f32 %v2259_v28, 0.0  ;;  %v1901_v55 = vadd.f32 %v1589_v36, %v1224_v23  ;;  %v833_v5 = vmul.f32 %v18092_v14, %v12739_v63  ;;  %v872_v51 = vmul.f32 %v11151_v31, %v12739_v63 }
 0x221   :  { %18221 = vst [vmem:[#allocation124_spill] sm:$0xff] %v12971_v29  ;;  %3664 = vmatprep.subr.bf16.mxu1 %v12971_v29  ;;  %v2610_v24 = vmax.f32 %v2298_v44, 0.0  ;;  %v1940_v56 = vadd.f32 %v1628_v8, %v1263_v0  ;;  %v1510_v30 = vmul.f32 %v11188_v57, %v18203_v60  ;;  %v1549_v37 = vmul.f32 %v11186_v2, %v18203_v60 }
 0x222   :  { %v2261_v12 = vadd.f32 %v11208_v58, %v1901_v55  ;;  %v1145_v49 = vadd.f32 %v833_v5, %v472_v19  ;;  %v1184_v62 = vadd.f32 %v872_v51, %v511_v27  ;;  %v474_v45 = vmul.f32 %v18203_v60, %v18089_v10 }
 0x223   :  { %v12988_v36 = vpack.c.bf16 %v2610_v24, %v2571_v52  ;;  %v2300_v63 = vadd.f32 %v11206_v15, %v1940_v56  ;;  %v513_v28 = vmul.f32 %v18203_v60, %v18091_v32  ;;  %v835_v23 = vmul.f32 %v18092_v14, %v12764_v25 }
 0x224   :  { %v2573_v8 = vmax.f32 %v2261_v12, 0.0  ;;  %v1822_v44 = vadd.f32 %v1510_v30, %v1145_v49  ;;  %v1861_v0 = vadd.f32 %v1549_v37, %v1184_v62  ;;  %v874_v19 = vmul.f32 %v11151_v31, %v12764_v25 }
 0x225   :  { %18222 = vst [vmem:[#allocation125_spill] sm:$0xff] %v12988_v36  ;;  %3612 = vmatpush1.bf16.msra.mxu0 %v12988_v36  ;;  %v2612_v27 = vmax.f32 %v2300_v63, 0.0  ;;  %v1147_v55 = vadd.f32 %v835_v23, %v474_v45  ;;  %v1512_v52 = vmul.f32 %v11188_v57, %v18206_v40  ;;  %v1551_v56 = vmul.f32 %v11186_v2, %v18206_v40 }
 0x226   :  { %v2182_v60 = vadd.f32 %v11228_v9, %v1822_v44  ;;  %v2221_v5 = vadd.f32 %v11226_v4, %v1861_v0  ;;  %v1186_v51 = vadd.f32 %v874_v19, %v513_v28  ;;  %v471_v24 = vmul.f32 %v12456_v17, %v18089_v10 }
 0x227   :  { %v13006_v30 = vpack.c.bf16 %v2612_v27, %v2573_v8  ;;  %v1824_v25 = vadd.f32 %v1512_v52, %v1147_v55  ;;  %v510_v37 = vmul.f32 %v12456_v17, %v18091_v32  ;;  %v832_v12 = vmul.f32 %v18092_v14, %v18209_v54 }
 0x228   :  { %v2494_v49 = vmax.f32 %v2182_v60, 0.0  ;;  %v2533_v62 = vmax.f32 %v2221_v5, 0.0  ;;  %v1863_v45 = vadd.f32 %v1551_v56, %v1186_v51  ;;  %v871_v63 = vmul.f32 %v11151_v31, %v18209_v54 }
 0x229   :  { %18223 = vst [vmem:[#allocation126_spill] sm:$0xff] %v13006_v30  ;;  %3665 = vmatpush1.bf16.msra.mxu1 %v13006_v30  ;;  %v2184_v28 = vadd.f32 %v11228_v9, %v1824_v25  ;;  %v1144_v23 = vadd.f32 %v832_v12, %v471_v24  ;;  %v1509_v8 = vmul.f32 %v11188_v57, %v12748_v22  ;;  %v18236_v30 = vld [vmem:[#allocation17_spill] sm:$0xff] }
 0x22a   :  { %v1548_v17 = vmul.f32 %v11186_v2, %v12748_v22  ;;  %v13020_v44 = vpack.c.bf16 %v2533_v62, %v2494_v49  ;;  %v2223_v0 = vadd.f32 %v11226_v4, %v1863_v45  ;;  %v1183_v19 = vadd.f32 %v871_v63, %v510_v37  ;;  %v18226_v49 = vld [vmem:[#allocation117_spill] sm:$0xff] }
 0x22b   :  { %v473_v27 = vmul.f32 %v12748_v22, %v18089_v10  ;;  %v2496_v54 = vmax.f32 %v2184_v28, 0.0  ;;  %v1821_v55 = vadd.f32 %v1509_v8, %v1144_v23  ;;  %v512_v52 = vmul.f32 %v12748_v22, %v18091_v32  ;;  %v18225_v22 = vld [vmem:[#allocation6_spill] sm:$0xff] }
 0x22c   :  { %18224 = vst [vmem:[#allocation127_spill] sm:$0xff] %v13020_v44  ;;  %v834_v56 = vmul.f32 %v18092_v14, %v18211_v39  ;;  %3613 = vmatprep.subr.bf16.mxu0 %v13020_v44  ;;  %v2535_v60 = vmax.f32 %v2223_v0, 0.0  ;;  %v1860_v5 = vadd.f32 %v1548_v17, %v1183_v19  ;;  %v873_v51 = vmul.f32 %v11151_v31, %v18211_v39  ;;  %v18228_v17 = vld [vmem:[#allocation2_spill] sm:$0xff] }
 0x22d   :  { %v1511_v24 = vmul.f32 %v11188_v57, %v12771_v47  ;;  %v2181_v25 = vadd.f32 %v11228_v9, %v1821_v55  ;;  %v1550_v12 = vmul.f32 %v11186_v2, %v12771_v47  ;;  %v13039_v62 = vrot.slane %v18226_v49, %v18225_v22 }
 0x22e   :  { %v1146_v37 = vadd.f32 %v834_v56, %v473_v27  ;;  %v13041_v45 = vpack.c.bf16 %v2535_v60, %v2496_v54  ;;  %v2220_v63 = vadd.f32 %v11226_v4, %v1860_v5  ;;  %v1185_v28 = vadd.f32 %v873_v51, %v512_v52  ;;  %v18229_v60 = vld [vmem:[#allocation37_spill] sm:$0xff]  ;;  %v18230_v51 = vld [vmem:[#allocation46_spill] sm:$0xff] }
 0x22f   :  { %v710_v39 = vmul.f32 %v18206_v40, %v10794_v42  ;;  %v2493_v23 = vmax.f32 %v2181_v25, 0.0  ;;  %v13048_v0 = vrot.slane %v13039_v62, %v18228_v17  ;;  %v749_v19 = vmul.f32 %v18206_v40, %v10837_v38  ;;  %v18231_v25 = vld [vmem:[#allocation18_spill] sm:$0xff] }
 0x230   :  { %18227 = vst [vmem:[#allocation117_spill] sm:$0xff] %v13041_v45  ;;  %v1823_v8 = vadd.f32 %v1511_v24, %v1146_v37  ;;  %3666 = vmatprep.subr.bf16.mxu1 %v13041_v45  ;;  %v2532_v27 = vmax.f32 %v2220_v63, 0.0  ;;  %v1862_v54 = vadd.f32 %v1550_v12, %v1185_v28  ;;  %v1071_v55 = vmul.f32 %v10792_v41, %v13039_v62 }
 0x231   :  { %v1110_v52 = vmul.f32 %v10835_v43, %v13039_v62  ;;  %v1748_v5 = vmul.f32 %v10864_v7, %v18229_v60  ;;  %v1787_v24 = vmul.f32 %v18230_v51, %v18229_v60  ;;  %v13064_v37 = vrot.slane %v18226_v49, %v18231_v25 }
 0x232   :  { %v2183_v56 = vadd.f32 %v11228_v9, %v1823_v8  ;;  %v13066_v63 = vpack.c.bf16 %v2532_v27, %v2493_v23  ;;  %v2222_v12 = vadd.f32 %v11226_v4, %v1862_v54  ;;  %v1383_v28 = vadd.f32 %v1071_v55, %v710_v39  ;;  %v18233_v54 = vld [vmem:[#allocation38_spill] sm:$0xff] }
 0x233   :  { %v1422_v45 = vadd.f32 %v1110_v52, %v749_v19  ;;  %v13071_v8 = vrot.slane %v13064_v37, %v18228_v17  ;;  %v712_v44 = vmul.f32 %v18229_v60, %v10794_v42  ;;  %v751_v36 = vmul.f32 %v18229_v60, %v10837_v38 }
 0x234   :  { %18232 = vst [vmem:[#allocation37_spill] sm:$0xff] %v13066_v63  ;;  %v2495_v29 = vmax.f32 %v2183_v56, 0.0  ;;  %3614 = vmatpush1.bf16.msra.mxu0 %v13066_v63  ;;  %v2534_v49 = vmax.f32 %v2222_v12, 0.0  ;;  %v2060_v23 = vadd.f32 %v1748_v5, %v1383_v28  ;;  %v1073_v39 = vmul.f32 %v10792_v41, %v13064_v37  ;;  %v13095_v28 = vld [vmem:[%s17463_s3 + $0x10] sm:$0xff]  }
 0x235   :  { %v2099_v27 = vadd.f32 %v1787_v24, %v1422_v45  ;;  %v1112_v19 = vmul.f32 %v10835_v43, %v13064_v37  ;;  %v1750_v55 = vmul.f32 %v10864_v7, %v18233_v54  ;;  %v1789_v52 = vmul.f32 %v18230_v51, %v18233_v54  ;;  %18235 = vst [vmem:[#allocation38_spill] sm:$0xff] %v13095_v28 }
 0x236   :  { %v709_v56 = vmul.f32 %v12771_v47, %v10794_v42  ;;  %v13088_v25 = vpack.c.bf16 %v2534_v49, %v2495_v29  ;;  %v2420_v5 = vadd.f32 %v10988_v33, %v2060_v23  ;;  %v1385_v24 = vadd.f32 %v1073_v39, %v712_v44 }
 0x237   :  { %v2459_v45 = vadd.f32 %v10986_v35, %v2099_v27  ;;  %v1424_v12 = vadd.f32 %v1112_v19, %v751_v36  ;;  %10023 = vmatmul.mubr.msk.bf16.vlgmr.msra.gmra.mxu0 %vm2956_vm0, %v13095_v28  ;;  %v748_v63 = vmul.f32 %v12771_v47, %v10837_v38  ;;  %v1070_v29 = vmul.f32 %v10792_v41, %v18236_v30 }
 0x238   :  { %18234 = vst [vmem:[#allocation18_spill] sm:$0xff] %v13088_v25  ;;  %v1109_v49 = vmul.f32 %v10835_v43, %v18236_v30  ;;  %3667 = vmatpush1.bf16.msra.mxu1 %v13088_v25  ;;  %v2732_v36 = vmax.f32 %v2420_v5, 0.0  ;;  %v2062_v23 = vadd.f32 %v1750_v55, %v1385_v24  ;;  %v1747_v27 = vmul.f32 %v10864_v7, %v13048_v0 }
 0x239   :  { %v2771_v44 = vmax.f32 %v2459_v45, 0.0  ;;  %3641 = vmatprep.mubr.bf16.mxu0 %v18156_v46  ;;  %v2101_v39 = vadd.f32 %v1789_v52, %v1424_v12  ;;  %v1382_v19 = vadd.f32 %v1070_v29, %v709_v56  ;;  %v1786_v1 = vmul.f32 %v18230_v51, %v13048_v0  ;;  %v18238_v56 = vld [vmem:[#allocation19_spill] sm:$0xff] }
 0x23a   :  { %v1421_v20 = vadd.f32 %v1109_v49, %v748_v63  ;;  %v2422_v17 = vadd.f32 %v10988_v33, %v2062_v23  ;;  %v711_v5 = vmul.f32 %v13048_v0, %v10794_v42  ;;  %v750_v55 = vmul.f32 %v13048_v0, %v10837_v38 }
 0x23b   :  { %v13111_v22 = vpack.c.bf16 %v2771_v44, %v2732_v36  ;;  %v2461_v45 = vadd.f32 %v10986_v35, %v2101_v39  ;;  %10025 = vmatmul.mubr.msk.bf16.vlgmr.msra.gmra.mxu1 %vm2956_vm0, %v13095_v28  ;;  %v2059_v52 = vadd.f32 %v1747_v27, %v1382_v19  ;;  %v1072_v24 = vmul.f32 %v10792_v41, %v18238_v56 }
 0x23c   :  { %v2098_v63 = vadd.f32 %v1786_v1, %v1421_v20  ;;  %v2734_v12 = vmax.f32 %v2422_v17, 0.0  ;;  %v1111_v29 = vmul.f32 %v10835_v43, %v18238_v56  ;;  %v1749_v49 = vmul.f32 %v10864_v7, %v13071_v8  ;;  %3694 = vmatprep.mubr.bf16.mxu1 %v18156_v46 }
 0x23d   :  { %18237 = vst [vmem:[#allocation17_spill] sm:$0xff] %v13111_v22  ;;  %3713 = vmatprep.subr.bf16.mxu0 %v13111_v22  ;;  %v1788_v36 = vmul.f32 %v18230_v51, %v13071_v8  ;;  %v2773_v44 = vmax.f32 %v2461_v45, 0.0  ;;  %v2419_v1 = vadd.f32 %v10988_v33, %v2059_v52  ;;  %v1384_v23 = vadd.f32 %v1072_v24, %v711_v5  ;;  %v13144_v52 = vld [vmem:[%s17463_s3 + $0x18] sm:$0xff]  }
 0x23e   :  { %v2458_v20 = vadd.f32 %v10986_v35, %v2098_v63  ;;  %v1423_v27 = vadd.f32 %v1111_v29, %v750_v55  ;;  %v632_v17 = vmul.f32 %v18206_v40, %v18068_v11  ;;  %v671_v39 = vmul.f32 %v18206_v40, %v18069_v3  ;;  %18240 = vst [vmem:[#allocation128_spill] sm:$0xff] %v13144_v52 }
 0x23f   :  { %v993_v19 = vmul.f32 %v18071_v53, %v13039_v62  ;;  %v13139_v22 = vpack.c.bf16 %v2773_v44, %v2734_v12  ;;  %v2731_v25 = vmax.f32 %v2419_v1, 0.0  ;;  %v2061_v45 = vadd.f32 %v1749_v49, %v1384_v23  ;;  %10024 = vmatmul.mubr.msk.bf16.gmra.mxu0 %vm2956_vm0, %v13144_v52 }
 0x240   :  { %v2770_v28 = vmax.f32 %v2458_v20, 0.0  ;;  %v2100_v5 = vadd.f32 %v1788_v36, %v1423_v27  ;;  %v1032_v55 = vmul.f32 %v18073_v26, %v13039_v62  ;;  %v1670_v24 = vmul.f32 %v18075_v13, %v18229_v60  ;;  %3737 = vmatprep.mubr.bf16.mxu0 %v18156_v46 }
 0x241   :  { %18239 = vst [vmem:[#allocation19_spill] sm:$0xff] %v13139_v22  ;;  %v1305_v63 = vadd.f32 %v993_v19, %v632_v17  ;;  %3766 = vmatprep.subr.bf16.mxu1 %v13139_v22  ;;  %v2421_v29 = vadd.f32 %v10988_v33, %v2061_v45  ;;  %v1709_v49 = vmul.f32 %v18076_v18, %v18229_v60 }
 0x242   :  { %v13154_v12 = vpack.c.bf16 %v2770_v28, %v2731_v25  ;;  %v634_v36 = vmul.f32 %v18229_v60, %v18068_v11  ;;  %v2460_v44 = vadd.f32 %v10986_v35, %v2100_v5  ;;  %v1344_v1 = vadd.f32 %v1032_v55, %v671_v39 }
 0x243   :  { %v1982_v20 = vadd.f32 %v1670_v24, %v1305_v63  ;;  %v673_v23 = vmul.f32 %v18229_v60, %v18069_v3  ;;  %v2733_v27 = vmax.f32 %v2421_v29, 0.0  ;;  %v995_v25 = vmul.f32 %v18071_v53, %v13064_v37  ;;  %10026 = vmatmul.mubr.msk.bf16.gmra.mxu1 %vm2956_vm0, %v13144_v52 }
 0x244   :  { %18241 = vst [vmem:[#allocation129_spill] sm:$0xff] %v13154_v12  ;;  %3714 = vmatpush1.bf16.msra.mxu0 %v13154_v12  ;;  %v1034_v28 = vmul.f32 %v18073_v26, %v13064_v37  ;;  %v1672_v17 = vmul.f32 %v18075_v13, %v18233_v54  ;;  %v2772_v39 = vmax.f32 %v2460_v44, 0.0  ;;  %v2021_v19 = vadd.f32 %v1709_v49, %v1344_v1 }
 0x245   :  { %v2342_v45 = vadd.f32 %v11098_v6, %v1982_v20  ;;  %v1711_v5 = vmul.f32 %v18076_v18, %v18233_v54  ;;  %3790 = vmatprep.mubr.bf16.mxu1 %v18156_v46  ;;  %v1307_v55 = vadd.f32 %v995_v25, %v634_v36  ;;  %v631_v24 = vmul.f32 %v12771_v47, %v18068_v11 }
 0x246   :  { %v1346_v63 = vadd.f32 %v1034_v28, %v673_v23  ;;  %v670_v29 = vmul.f32 %v12771_v47, %v18069_v3  ;;  %v13181_v22 = vpack.c.bf16 %v2772_v39, %v2733_v27  ;;  %v2381_v44 = vadd.f32 %v11096_v16, %v2021_v19 }
 0x247   :  { %v2654_v49 = vmax.f32 %v2342_v45, 0.0  ;;  %v992_v1 = vmul.f32 %v18071_v53, %v18236_v30  ;;  %v1984_v20 = vadd.f32 %v1672_v17, %v1307_v55  ;;  %v1031_v36 = vmul.f32 %v18073_v26, %v18236_v30 }
 0x248   :  { %18242 = vst [vmem:[#allocation130_spill] sm:$0xff] %v13181_v22  ;;  %v2023_v12 = vadd.f32 %v1711_v5, %v1346_v63  ;;  %v1669_v23 = vmul.f32 %v18075_v13, %v13048_v0  ;;  %3767 = vmatpush1.bf16.msra.mxu1 %v13181_v22  ;;  %v2693_v25 = vmax.f32 %v2381_v44, 0.0  ;;  %v1708_v27 = vmul.f32 %v18076_v18, %v13048_v0 }
 0x249   :  { %v1304_v28 = vadd.f32 %v992_v1, %v631_v24  ;;  %v633_v39 = vmul.f32 %v13048_v0, %v18068_v11  ;;  %v2344_v19 = vadd.f32 %v11098_v6, %v1984_v20  ;;  %v1343_v45 = vadd.f32 %v1031_v36, %v670_v29 }
 0x24a   :  { %v2383_v17 = vadd.f32 %v11096_v16, %v2023_v12  ;;  %v672_v5 = vmul.f32 %v13048_v0, %v18069_v3  ;;  %v13199_v55 = vpack.c.bf16 %v2693_v25, %v2654_v49  ;;  %v994_v24 = vmul.f32 %v18071_v53, %v18238_v56 }
 0x24b   :  { %v1981_v63 = vadd.f32 %v1669_v23, %v1304_v28  ;;  %v1033_v44 = vmul.f32 %v18073_v26, %v18238_v56  ;;  %v2656_v1 = vmax.f32 %v2344_v19, 0.0  ;;  %v2020_v52 = vadd.f32 %v1708_v27, %v1343_v45 }
 0x24c   :  { %18243 = vst [vmem:[#allocation131_spill] sm:$0xff] %v13199_v55  ;;  %v2695_v22 = vmax.f32 %v2383_v17, 0.0  ;;  %v1671_v20 = vmul.f32 %v18075_v13, %v13071_v8  ;;  %3715 = vmatprep.subr.bf16.mxu0 %v13199_v55  ;;  %v1306_v29 = vadd.f32 %v994_v24, %v633_v39  ;;  %v1710_v36 = vmul.f32 %v18076_v18, %v13071_v8 }
 0x24d   :  { %v2341_v12 = vadd.f32 %v11098_v6, %v1981_v63  ;;  %v1345_v49 = vadd.f32 %v1033_v44, %v672_v5  ;;  %v2380_v25 = vadd.f32 %v11096_v16, %v2020_v52  ;;  %v554_v28 = vmul.f32 %v18206_v40, %v18082_v21 }
 0x24e   :  { %v13211_v23 = vpack.c.bf16 %v2695_v22, %v2656_v1  ;;  %v593_v27 = vmul.f32 %v18206_v40, %v18084_v59  ;;  %v1983_v17 = vadd.f32 %v1671_v20, %v1306_v29  ;;  %v915_v39 = vmul.f32 %v18085_v48, %v13039_v62 }
 0x24f   :  { %v2653_v19 = vmax.f32 %v2341_v12, 0.0  ;;  %v2022_v45 = vadd.f32 %v1710_v36, %v1345_v49  ;;  %v2692_v5 = vmax.f32 %v2380_v25, 0.0  ;;  %v954_v22 = vmul.f32 %v11033_v34, %v13039_v62 }
 0x250   :  { %18244 = vst [vmem:[#allocation132_spill] sm:$0xff] %v13211_v23  ;;  %3768 = vmatprep.subr.bf16.mxu1 %v13211_v23  ;;  %v1592_v52 = vmul.f32 %v18113_v61, %v18229_v60  ;;  %v1631_v63 = vmul.f32 %v18114_v50, %v18229_v60  ;;  %v2343_v24 = vadd.f32 %v11098_v6, %v1983_v17 }
 0x251   :  { %v2382_v44 = vadd.f32 %v11096_v16, %v2022_v45  ;;  %v1227_v1 = vadd.f32 %v915_v39, %v554_v28  ;;  %v556_v20 = vmul.f32 %v18229_v60, %v18082_v21  ;;  %v13231_v12 = vpack.c.bf16 %v2692_v5, %v2653_v19 }
 0x252   :  { %v1266_v29 = vadd.f32 %v954_v22, %v593_v27  ;;  %v595_v49 = vmul.f32 %v18229_v60, %v18084_v59  ;;  %v917_v36 = vmul.f32 %v18085_v48, %v13064_v37  ;;  %v2655_v25 = vmax.f32 %v2343_v24, 0.0 }
 0x253   :  { %18245 = vst [vmem:[#allocation133_spill] sm:$0xff] %v13231_v12  ;;  %v2694_v23 = vmax.f32 %v2382_v44, 0.0  ;;  %v1904_v55 = vadd.f32 %v1592_v52, %v1227_v1  ;;  %v956_v17 = vmul.f32 %v11033_v34, %v13064_v37  ;;  %3716 = vmatpush1.bf16.msra.mxu0 %v13231_v12  ;;  %v1594_v19 = vmul.f32 %v18113_v61, %v18233_v54 }
 0x254   :  { %v1943_v28 = vadd.f32 %v1631_v63, %v1266_v29  ;;  %v1229_v45 = vadd.f32 %v917_v36, %v556_v20  ;;  %v1633_v27 = vmul.f32 %v18114_v50, %v18233_v54  ;;  %v553_v52 = vmul.f32 %v12771_v47, %v18082_v21 }
 0x255   :  { %v13244_v39 = vpack.c.bf16 %v2694_v23, %v2655_v25  ;;  %v2264_v5 = vadd.f32 %v11208_v58, %v1904_v55  ;;  %v1268_v22 = vadd.f32 %v956_v17, %v595_v49  ;;  %v592_v63 = vmul.f32 %v12771_v47, %v18084_v59 }
 0x256   :  { %v2303_v24 = vadd.f32 %v11206_v15, %v1943_v28  ;;  %v1906_v44 = vadd.f32 %v1594_v19, %v1229_v45  ;;  %v914_v1 = vmul.f32 %v18085_v48, %v18236_v30  ;;  %v953_v55 = vmul.f32 %v11033_v34, %v18236_v30 }
 0x257   :  { %18246 = vst [vmem:[#allocation134_spill] sm:$0xff] %v13244_v39  ;;  %3769 = vmatpush1.bf16.msra.mxu1 %v13244_v39  ;;  %v2576_v20 = vmax.f32 %v2264_v5, 0.0  ;;  %v1945_v23 = vadd.f32 %v1633_v27, %v1268_v22  ;;  %v1591_v29 = vmul.f32 %v18113_v61, %v13048_v0  ;;  %v1630_v17 = vmul.f32 %v18114_v50, %v13048_v0 }
 0x258   :  { %v2615_v49 = vmax.f32 %v2303_v24, 0.0  ;;  %v2266_v36 = vadd.f32 %v11208_v58, %v1906_v44  ;;  %v1226_v25 = vadd.f32 %v914_v1, %v553_v52  ;;  %v1265_v45 = vadd.f32 %v953_v55, %v592_v63 }
 0x259   :  { %v2305_v28 = vadd.f32 %v11206_v15, %v1945_v23  ;;  %v555_v19 = vmul.f32 %v13048_v0, %v18082_v21  ;;  %v594_v27 = vmul.f32 %v13048_v0, %v18084_v59  ;;  %v916_v24 = vmul.f32 %v18085_v48, %v18238_v56 }
 0x25a   :  { %v13267_v5 = vpack.c.bf16 %v2615_v49, %v2576_v20  ;;  %v2578_v22 = vmax.f32 %v2266_v36, 0.0  ;;  %v1903_v12 = vadd.f32 %v1591_v29, %v1226_v25  ;;  %v1942_v44 = vadd.f32 %v1630_v17, %v1265_v45 }
 0x25b   :  { %v2617_v52 = vmax.f32 %v2305_v28, 0.0  ;;  %v955_v1 = vmul.f32 %v11033_v34, %v18238_v56  ;;  %v1593_v63 = vmul.f32 %v18113_v61, %v13071_v8  ;;  %v1228_v55 = vadd.f32 %v916_v24, %v555_v19 }
 0x25c   :  { %18247 = vst [vmem:[#allocation135_spill] sm:$0xff] %v13267_v5  ;;  %3717 = vmatprep.subr.bf16.mxu0 %v13267_v5  ;;  %v2263_v23 = vadd.f32 %v11208_v58, %v1903_v12  ;;  %v1632_v20 = vmul.f32 %v18114_v50, %v13071_v8  ;;  %v476_v29 = vmul.f32 %v18206_v40, %v18089_v10 }
 0x25d   :  { %v13281_v49 = vpack.c.bf16 %v2617_v52, %v2578_v22  ;;  %v2302_v36 = vadd.f32 %v11206_v15, %v1942_v44  ;;  %v1267_v25 = vadd.f32 %v955_v1, %v594_v27  ;;  %v515_v17 = vmul.f32 %v18206_v40, %v18091_v32 }
 0x25e   :  { %v2575_v28 = vmax.f32 %v2263_v23, 0.0  ;;  %v1905_v45 = vadd.f32 %v1593_v63, %v1228_v55  ;;  %v837_v12 = vmul.f32 %v18092_v14, %v13039_v62  ;;  %v876_v19 = vmul.f32 %v11151_v31, %v13039_v62 }
 0x25f   :  { %18248 = vst [vmem:[#allocation136_spill] sm:$0xff] %v13281_v49  ;;  %3770 = vmatprep.subr.bf16.mxu1 %v13281_v49  ;;  %v2614_v24 = vmax.f32 %v2302_v36, 0.0  ;;  %v1944_v5 = vadd.f32 %v1632_v20, %v1267_v25  ;;  %v1514_v22 = vmul.f32 %v11188_v57, %v18229_v60  ;;  %v1553_v27 = vmul.f32 %v11186_v2, %v18229_v60 }
 0x260   :  { %v2265_v40 = vadd.f32 %v11208_v58, %v1905_v45  ;;  %v1149_v52 = vadd.f32 %v837_v12, %v476_v29  ;;  %v1188_v44 = vadd.f32 %v876_v19, %v515_v17  ;;  %v478_v1 = vmul.f32 %v18229_v60, %v18089_v10 }
 0x261   :  { %v13298_v63 = vpack.c.bf16 %v2614_v24, %v2575_v28  ;;  %v2304_v62 = vadd.f32 %v11206_v15, %v1944_v5  ;;  %v517_v23 = vmul.f32 %v18229_v60, %v18091_v32  ;;  %v839_v55 = vmul.f32 %v18092_v14, %v13064_v37 }
 0x262   :  { %v2577_v20 = vmax.f32 %v2265_v40, 0.0  ;;  %v1826_v36 = vadd.f32 %v1514_v22, %v1149_v52  ;;  %v1865_v25 = vadd.f32 %v1553_v27, %v1188_v44  ;;  %v878_v29 = vmul.f32 %v11151_v31, %v13064_v37 }
 0x263   :  { %18249 = vst [vmem:[#allocation137_spill] sm:$0xff] %v13298_v63  ;;  %3718 = vmatpush1.bf16.msra.mxu0 %v13298_v63  ;;  %v2616_v17 = vmax.f32 %v2304_v62, 0.0  ;;  %v1151_v45 = vadd.f32 %v839_v55, %v478_v1  ;;  %v1516_v28 = vmul.f32 %v11188_v57, %v18233_v54  ;;  %v1555_v5 = vmul.f32 %v11186_v2, %v18233_v54  ;;  %v18262_v63 = vld [vmem:[#allocation20_spill] sm:$0xff] }
 0x264   :  { %v2186_v60 = vadd.f32 %v11228_v9, %v1826_v36  ;;  %v2225_v12 = vadd.f32 %v11226_v4, %v1865_v25  ;;  %v1190_v19 = vadd.f32 %v878_v29, %v517_v23  ;;  %v475_v24 = vmul.f32 %v12771_v47, %v18089_v10 }
 0x265   :  { %v13316_v22 = vpack.c.bf16 %v2616_v17, %v2577_v20  ;;  %v1828_v37 = vadd.f32 %v1516_v28, %v1151_v45  ;;  %v514_v27 = vmul.f32 %v12771_v47, %v18091_v32  ;;  %v836_v40 = vmul.f32 %v18092_v14, %v18236_v30 }
 0x266   :  { %v2498_v52 = vmax.f32 %v2186_v60, 0.0  ;;  %v2537_v44 = vmax.f32 %v2225_v12, 0.0  ;;  %v1867_v1 = vadd.f32 %v1555_v5, %v1190_v19  ;;  %v875_v62 = vmul.f32 %v11151_v31, %v18236_v30 }
 0x267   :  { %18250 = vst [vmem:[#allocation138_spill] sm:$0xff] %v13316_v22  ;;  %3771 = vmatpush1.bf16.msra.mxu1 %v13316_v22  ;;  %v2188_v23 = vadd.f32 %v11228_v9, %v1828_v37  ;;  %v1148_v55 = vadd.f32 %v836_v40, %v475_v24  ;;  %v1513_v20 = vmul.f32 %v11188_v57, %v13048_v0 }
 0x268   :  { %v1552_v47 = vmul.f32 %v11186_v2, %v13048_v0  ;;  %v13330_v36 = vpack.c.bf16 %v2537_v44, %v2498_v52  ;;  %v2227_v25 = vadd.f32 %v11226_v4, %v1867_v1  ;;  %v1187_v29 = vadd.f32 %v875_v62, %v514_v27  ;;  %v18253_v52 = vld [vmem:[#allocation3_spill] sm:$0xff] }
 0x269   :  { %v477_v17 = vmul.f32 %v13048_v0, %v18089_v10  ;;  %v2500_v30 = vmax.f32 %v2188_v23, 0.0  ;;  %v1825_v45 = vadd.f32 %v1513_v20, %v1148_v55  ;;  %v516_v28 = vmul.f32 %v13048_v0, %v18091_v32  ;;  %v13350_v0 = vld [vmem:[%s17465_s0 + $0x20] sm:$0xff] }
 0x26a   :  { %18251 = vst [vmem:[#allocation139_spill] sm:$0xff] %v13330_v36  ;;  %v838_v5 = vmul.f32 %v18092_v14, %v18238_v56  ;;  %3719 = vmatprep.subr.bf16.mxu0 %v13330_v36  ;;  %v2539_v60 = vmax.f32 %v2227_v25, 0.0  ;;  %v1864_v12 = vadd.f32 %v1552_v47, %v1187_v29  ;;  %v877_v19 = vmul.f32 %v11151_v31, %v18238_v56  ;;  %v18255_v47 = vld [vmem:[#allocation2_spill] sm:$0xff] }
 0x26b   :  { %v1515_v24 = vmul.f32 %v11188_v57, %v13071_v8  ;;  %v2185_v37 = vadd.f32 %v11228_v9, %v1825_v45  ;;  %v1554_v40 = vmul.f32 %v11186_v2, %v13071_v8  ;;  %18252 = vst [vmem:[#allocation140_spill] sm:$0xff] %v13350_v0  ;;  %v13354_v44 = vrot.slane %v13350_v0, %v18253_v52 }
 0x26c   :  { %v1150_v27 = vadd.f32 %v838_v5, %v477_v17  ;;  %v13356_v1 = vpack.c.bf16 %v2539_v60, %v2500_v30  ;;  %v2224_v56 = vadd.f32 %v11226_v4, %v1864_v12  ;;  %v1189_v62 = vadd.f32 %v877_v19, %v516_v28  ;;  %v18256_v60 = vld [vmem:[#allocation39_spill] sm:$0xff] }
 0x26d   :  { %v714_v23 = vmul.f32 %v18233_v54, %v10794_v42  ;;  %v2497_v55 = vmax.f32 %v2185_v37, 0.0  ;;  %v13363_v25 = vrot.slane %v13354_v44, %v18255_v47  ;;  %v753_v29 = vmul.f32 %v18233_v54, %v10837_v38 }
 0x26e   :  { %18254 = vst [vmem:[#allocation3_spill] sm:$0xff] %v13356_v1  ;;  %v1827_v20 = vadd.f32 %v1515_v24, %v1150_v27  ;;  %3772 = vmatprep.subr.bf16.mxu1 %v13356_v1  ;;  %v2536_v17 = vmax.f32 %v2224_v56, 0.0  ;;  %v1866_v30 = vadd.f32 %v1554_v40, %v1189_v62  ;;  %v1075_v45 = vmul.f32 %v10792_v41, %v13354_v44  ;;  %v18257_v24 = vld [vmem:[#allocation5_spill] sm:$0xff] }
 0x26f   :  { %v1114_v28 = vmul.f32 %v10835_v43, %v13354_v44  ;;  %v1752_v12 = vmul.f32 %v10864_v7, %v18256_v60  ;;  %v1791_v19 = vmul.f32 %v18230_v51, %v18256_v60  ;;  %v13379_v37 = vrot.slane %v13350_v0, %v18257_v24 }
 0x270   :  { %v2187_v5 = vadd.f32 %v11228_v9, %v1827_v20  ;;  %v13381_v27 = vpack.c.bf16 %v2536_v17, %v2497_v55  ;;  %v2226_v40 = vadd.f32 %v11226_v4, %v1866_v30  ;;  %v1387_v52 = vadd.f32 %v1075_v45, %v714_v23  ;;  %v18259_v30 = vld [vmem:[#allocation42_spill] sm:$0xff] }
 0x271   :  { %v1426_v56 = vadd.f32 %v1114_v28, %v753_v29  ;;  %v13386_v20 = vrot.slane %v13379_v37, %v18255_v47  ;;  %v716_v1 = vmul.f32 %v18256_v60, %v10794_v42  ;;  %v755_v49 = vmul.f32 %v18256_v60, %v10837_v38 }
 0x272   :  { %18258 = vst [vmem:[#allocation39_spill] sm:$0xff] %v13381_v27  ;;  %v2499_v62 = vmax.f32 %v2187_v5, 0.0  ;;  %3720 = vmatpush1.bf16.msra.mxu0 %v13381_v27  ;;  %v2538_v24 = vmax.f32 %v2226_v40, 0.0  ;;  %v2064_v55 = vadd.f32 %v1752_v12, %v1387_v52  ;;  %v1077_v23 = vmul.f32 %v10792_v41, %v13379_v37 }
 0x273   :  { %v2103_v17 = vadd.f32 %v1791_v19, %v1426_v56  ;;  %v1116_v29 = vmul.f32 %v10835_v43, %v13379_v37  ;;  %v1754_v45 = vmul.f32 %v10864_v7, %v18259_v30  ;;  %v1793_v28 = vmul.f32 %v18230_v51, %v18259_v30  ;;  %v18261_v56 = vld [vmem:[#allocation38_spill] sm:$0xff] }
 0x274   :  { %v713_v5 = vmul.f32 %v13071_v8, %v10794_v42  ;;  %v13403_v36 = vpack.c.bf16 %v2538_v24, %v2499_v62  ;;  %v2424_v12 = vadd.f32 %v10988_v33, %v2064_v55  ;;  %v1389_v40 = vadd.f32 %v1077_v23, %v716_v1 }
 0x275   :  { %v2463_v19 = vadd.f32 %v10986_v35, %v2103_v17  ;;  %v1428_v52 = vadd.f32 %v1116_v29, %v755_v49  ;;  %10027 = vmatmul.mubr.msk.bf16.vlgmr.msra.gmra.mxu0 %vm2956_vm0, %v18261_v56  ;;  %v752_v27 = vmul.f32 %v13071_v8, %v10837_v38  ;;  %v1074_v22 = vmul.f32 %v10792_v41, %v18262_v63 }
 0x276   :  { %18260 = vst [vmem:[#allocation5_spill] sm:$0xff] %v13403_v36  ;;  %v1113_v39 = vmul.f32 %v10835_v43, %v18262_v63  ;;  %3773 = vmatpush1.bf16.msra.mxu1 %v13403_v36  ;;  %v2736_v62 = vmax.f32 %v2424_v12, 0.0  ;;  %v2066_v55 = vadd.f32 %v1754_v45, %v1389_v40  ;;  %v1751_v49 = vmul.f32 %v10864_v7, %v13363_v25 }
 0x277   :  { %v2775_v24 = vmax.f32 %v2463_v19, 0.0  ;;  %3747 = vmatprep.mubr.bf16.mxu0 %v18156_v46  ;;  %v2105_v1 = vadd.f32 %v1793_v28, %v1428_v52  ;;  %v1386_v17 = vadd.f32 %v1074_v22, %v713_v5  ;;  %v1790_v29 = vmul.f32 %v18230_v51, %v13363_v25 }
 0x278   :  { %v1425_v23 = vadd.f32 %v1113_v39, %v752_v27  ;;  %v2426_v0 = vadd.f32 %v10988_v33, %v2066_v55  ;;  %v715_v12 = vmul.f32 %v13363_v25, %v10794_v42  ;;  %v754_v45 = vmul.f32 %v13363_v25, %v10837_v38  ;;  %v18264_v27 = vld [vmem:[#allocation21_spill] sm:$0xff] }
 0x279   :  { %v13421_v47 = vpack.c.bf16 %v2775_v24, %v2736_v62  ;;  %v2465_v19 = vadd.f32 %v10986_v35, %v2105_v1  ;;  %10029 = vmatmul.mubr.msk.bf16.vlgmr.msra.gmra.mxu1 %vm2956_vm0, %v18261_v56  ;;  %v2063_v22 = vadd.f32 %v1751_v49, %v1386_v17  ;;  %v1076_v28 = vmul.f32 %v10792_v41, %v18264_v27 }
 0x27a   :  { %v2102_v39 = vadd.f32 %v1790_v29, %v1425_v23  ;;  %v2738_v5 = vmax.f32 %v2426_v0, 0.0  ;;  %v1115_v40 = vmul.f32 %v10835_v43, %v18264_v27  ;;  %v1753_v52 = vmul.f32 %v10864_v7, %v13386_v20  ;;  %3800 = vmatprep.mubr.bf16.mxu1 %v18156_v46 }
 0x27b   :  { %18263 = vst [vmem:[#allocation42_spill] sm:$0xff] %v13421_v47  ;;  %3819 = vmatprep.subr.bf16.mxu0 %v13421_v47  ;;  %v1792_v62 = vmul.f32 %v18230_v51, %v13386_v20  ;;  %v2777_v56 = vmax.f32 %v2465_v19, 0.0  ;;  %v2423_v24 = vadd.f32 %v10988_v33, %v2063_v22  ;;  %v1388_v49 = vadd.f32 %v1076_v28, %v715_v12  ;;  %v18266_v51 = vld [vmem:[#allocation128_spill] sm:$0xff] }
 0x27c   :  { %v2462_v55 = vadd.f32 %v10986_v35, %v2102_v39  ;;  %v1427_v1 = vadd.f32 %v1115_v40, %v754_v45  ;;  %v636_v0 = vmul.f32 %v18233_v54, %v18068_v11  ;;  %v675_v17 = vmul.f32 %v18233_v54, %v18069_v3 }
 0x27d   :  { %v997_v23 = vmul.f32 %v18071_v53, %v13354_v44  ;;  %v13449_v29 = vpack.c.bf16 %v2777_v56, %v2738_v5  ;;  %v2735_v47 = vmax.f32 %v2423_v24, 0.0  ;;  %v2065_v19 = vadd.f32 %v1753_v52, %v1388_v49  ;;  %10028 = vmatmul.mubr.msk.bf16.gmra.mxu0 %vm2956_vm0, %v18266_v51 }
 0x27e   :  { %v2774_v36 = vmax.f32 %v2462_v55, 0.0  ;;  %v2104_v22 = vadd.f32 %v1792_v62, %v1427_v1  ;;  %v1036_v12 = vmul.f32 %v18073_v26, %v13354_v44  ;;  %v1674_v39 = vmul.f32 %v18075_v13, %v18256_v60  ;;  %3843 = vmatprep.mubr.bf16.mxu0 %v18156_v46 }
 0x27f   :  { %18265 = vst [vmem:[#allocation38_spill] sm:$0xff] %v13449_v29  ;;  %v1309_v45 = vadd.f32 %v997_v23, %v636_v0  ;;  %3872 = vmatprep.subr.bf16.mxu1 %v13449_v29  ;;  %v2425_v5 = vadd.f32 %v10988_v33, %v2065_v19  ;;  %v1713_v40 = vmul.f32 %v18076_v18, %v18256_v60 }
 0x280   :  { %v13459_v28 = vpack.c.bf16 %v2774_v36, %v2735_v47  ;;  %v638_v52 = vmul.f32 %v18256_v60, %v18068_v11  ;;  %v2464_v62 = vadd.f32 %v10986_v35, %v2104_v22  ;;  %v1348_v56 = vadd.f32 %v1036_v12, %v675_v17 }
 0x281   :  { %v1986_v24 = vadd.f32 %v1674_v39, %v1309_v45  ;;  %v677_v55 = vmul.f32 %v18256_v60, %v18069_v3  ;;  %v2737_v49 = vmax.f32 %v2425_v5, 0.0  ;;  %v999_v36 = vmul.f32 %v18071_v53, %v13379_v37  ;;  %10030 = vmatmul.mubr.msk.bf16.gmra.mxu1 %vm2956_vm0, %v18266_v51 }
 0x282   :  { %18267 = vst [vmem:[#allocation20_spill] sm:$0xff] %v13459_v28  ;;  %3820 = vmatpush1.bf16.msra.mxu0 %v13459_v28  ;;  %v1038_v47 = vmul.f32 %v18073_v26, %v13379_v37  ;;  %v1676_v1 = vmul.f32 %v18075_v13, %v18259_v30  ;;  %v2776_v0 = vmax.f32 %v2464_v62, 0.0  ;;  %v2025_v17 = vadd.f32 %v1713_v40, %v1348_v56 }
 0x283   :  { %v2346_v23 = vadd.f32 %v11098_v6, %v1986_v24  ;;  %v1715_v19 = vmul.f32 %v18076_v18, %v18259_v30  ;;  %3896 = vmatprep.mubr.bf16.mxu1 %v18156_v46  ;;  %v1311_v22 = vadd.f32 %v999_v36, %v638_v52  ;;  %v635_v45 = vmul.f32 %v13071_v8, %v18068_v11 }
 0x284   :  { %v1350_v12 = vadd.f32 %v1038_v47, %v677_v55  ;;  %v674_v39 = vmul.f32 %v13071_v8, %v18069_v3  ;;  %v13486_v5 = vpack.c.bf16 %v2776_v0, %v2737_v49  ;;  %v2385_v51 = vadd.f32 %v11096_v16, %v2025_v17 }
 0x285   :  { %v2658_v40 = vmax.f32 %v2346_v23, 0.0  ;;  %v996_v62 = vmul.f32 %v18071_v53, %v18262_v63  ;;  %v1988_v56 = vadd.f32 %v1676_v1, %v1311_v22  ;;  %v1035_v52 = vmul.f32 %v18073_v26, %v18262_v63 }
 0x286   :  { %18268 = vst [vmem:[#allocation21_spill] sm:$0xff] %v13486_v5  ;;  %v2027_v24 = vadd.f32 %v1715_v19, %v1350_v12  ;;  %v1673_v55 = vmul.f32 %v18075_v13, %v13363_v25  ;;  %3873 = vmatpush1.bf16.msra.mxu1 %v13486_v5  ;;  %v2697_v36 = vmax.f32 %v2385_v51, 0.0  ;;  %v1712_v49 = vmul.f32 %v18076_v18, %v13363_v25 }
 0x287   :  { %v1308_v47 = vadd.f32 %v996_v62, %v635_v45  ;;  %v637_v0 = vmul.f32 %v13363_v25, %v18068_v11  ;;  %v2348_v17 = vadd.f32 %v11098_v6, %v1988_v56  ;;  %v1347_v23 = vadd.f32 %v1035_v52, %v674_v39 }
 0x288   :  { %v2387_v1 = vadd.f32 %v11096_v16, %v2027_v24  ;;  %v676_v19 = vmul.f32 %v13363_v25, %v18069_v3  ;;  %v13504_v22 = vpack.c.bf16 %v2697_v36, %v2658_v40  ;;  %v998_v45 = vmul.f32 %v18071_v53, %v18264_v27 }
 0x289   :  { %v1985_v12 = vadd.f32 %v1673_v55, %v1308_v47  ;;  %v1037_v51 = vmul.f32 %v18073_v26, %v18264_v27  ;;  %v2660_v62 = vmax.f32 %v2348_v17, 0.0  ;;  %v2024_v28 = vadd.f32 %v1712_v49, %v1347_v23 }
 0x28a   :  { %18269 = vst [vmem:[#allocation128_spill] sm:$0xff] %v13504_v22  ;;  %v2699_v29 = vmax.f32 %v2387_v1, 0.0  ;;  %v1675_v56 = vmul.f32 %v18075_v13, %v13386_v20  ;;  %3821 = vmatprep.subr.bf16.mxu0 %v13504_v22  ;;  %v1310_v24 = vadd.f32 %v998_v45, %v637_v0  ;;  %v1714_v52 = vmul.f32 %v18076_v18, %v13386_v20 }
 0x28b   :  { %v2345_v39 = vadd.f32 %v11098_v6, %v1985_v12  ;;  %v1349_v40 = vadd.f32 %v1037_v51, %v676_v19  ;;  %v2384_v36 = vadd.f32 %v11096_v16, %v2024_v28  ;;  %v558_v47 = vmul.f32 %v18233_v54, %v18082_v21 }
 0x28c   :  { %v13516_v55 = vpack.c.bf16 %v2699_v29, %v2660_v62  ;;  %v597_v49 = vmul.f32 %v18233_v54, %v18084_v59  ;;  %v1987_v1 = vadd.f32 %v1675_v56, %v1310_v24  ;;  %v919_v0 = vmul.f32 %v18085_v48, %v13354_v44 }
 0x28d   :  { %v2657_v17 = vmax.f32 %v2345_v39, 0.0  ;;  %v2026_v23 = vadd.f32 %v1714_v52, %v1349_v40  ;;  %v2696_v19 = vmax.f32 %v2384_v36, 0.0  ;;  %v958_v29 = vmul.f32 %v11033_v34, %v13354_v44 }
 0x28e   :  { %18270 = vst [vmem:[#allocation141_spill] sm:$0xff] %v13516_v55  ;;  %3874 = vmatprep.subr.bf16.mxu1 %v13516_v55  ;;  %v1596_v28 = vmul.f32 %v18113_v61, %v18256_v60  ;;  %v1635_v12 = vmul.f32 %v18114_v50, %v18256_v60  ;;  %v2347_v45 = vadd.f32 %v11098_v6, %v1987_v1 }
 0x28f   :  { %v2386_v51 = vadd.f32 %v11096_v16, %v2026_v23  ;;  %v1231_v62 = vadd.f32 %v919_v0, %v558_v47  ;;  %v560_v56 = vmul.f32 %v18256_v60, %v18082_v21  ;;  %v13536_v39 = vpack.c.bf16 %v2696_v19, %v2657_v17 }
 0x290   :  { %v1270_v24 = vadd.f32 %v958_v29, %v597_v49  ;;  %v599_v40 = vmul.f32 %v18256_v60, %v18084_v59  ;;  %v921_v52 = vmul.f32 %v18085_v48, %v13379_v37  ;;  %v2659_v36 = vmax.f32 %v2347_v45, 0.0  ;;  %v13554_v45 = vpop.f32.mrf.mxu0 }
 0x291   :  { %18271 = vst [vmem:[#allocation142_spill] sm:$0xff] %v13536_v39  ;;  %v2698_v55 = vmax.f32 %v2386_v51, 0.0  ;;  %v1908_v22 = vadd.f32 %v1596_v28, %v1231_v62  ;;  %v960_v1 = vmul.f32 %v11033_v34, %v13379_v37  ;;  %3822 = vmatpush1.bf16.msra.mxu0 %v13536_v39  ;;  %v1598_v17 = vmul.f32 %v18113_v61, %v18259_v30  ;;  %v13556_v51 = vpop.f32.mrf.mxu1 }
 0x292   :  { %v1947_v47 = vadd.f32 %v1635_v12, %v1270_v24  ;;  %v1233_v23 = vadd.f32 %v921_v52, %v560_v56  ;;  %v1637_v49 = vmul.f32 %v18114_v50, %v18259_v30  ;;  %v557_v28 = vmul.f32 %v13071_v8, %v18082_v21  ;;  %18273 = vst [vmem:[#allocation144_spill] sm:$0xff] %v13554_v45 }
 0x293   :  { %v13549_v0 = vpack.c.bf16 %v2698_v55, %v2659_v36  ;;  %v2268_v19 = vadd.f32 %v11208_v58, %v1908_v22  ;;  %v1272_v29 = vadd.f32 %v960_v1, %v599_v40  ;;  %18274 = vst [vmem:[#allocation145_spill] sm:$0xff] %v13556_v51  ;;  %v596_v56 = vmul.f32 %v13071_v8, %v18084_v59  ;;  %v13573_v45 = vpop.f32.mrf.mxu1 }
 0x294   :  { %v2307_v12 = vadd.f32 %v11206_v15, %v1947_v47  ;;  %v1910_v62 = vadd.f32 %v1598_v17, %v1233_v23  ;;  %v918_v55 = vmul.f32 %v18085_v48, %v18262_v63  ;;  %v957_v40 = vmul.f32 %v11033_v34, %v18262_v63  ;;  %v13571_v17 = vpop.f32.mrf.mxu0  ;;  %18276 = vst [vmem:[#allocation147_spill] sm:$0xff] %v13573_v45 }
 0x295   :  { %18272 = vst [vmem:[#allocation143_spill] sm:$0xff] %v13549_v0  ;;  %3875 = vmatpush1.bf16.msra.mxu1 %v13549_v0  ;;  %v2580_v22 = vmax.f32 %v2268_v19, 0.0  ;;  %v1949_v24 = vadd.f32 %v1637_v49, %v1272_v29  ;;  %v1595_v52 = vmul.f32 %v18113_v61, %v13363_v25  ;;  %v1634_v23 = vmul.f32 %v18114_v50, %v13363_v25 }
 0x296   :  { %v2619_v36 = vmax.f32 %v2307_v12, 0.0  ;;  %v2270_v1 = vadd.f32 %v11208_v58, %v1910_v62  ;;  %v1230_v47 = vadd.f32 %v918_v55, %v557_v28  ;;  %18275 = vst [vmem:[#allocation146_spill] sm:$0xff] %v13571_v17  ;;  %v1269_v49 = vadd.f32 %v957_v40, %v596_v56  ;;  %v13584_v39 = vpop.f32.mrf.mxu0  ;;  %v13586_v17 = vpop.f32.mrf.mxu1 }
 0x297   :  { %v2309_v19 = vadd.f32 %v11206_v15, %v1949_v24  ;;  %v559_v29 = vmul.f32 %v13363_v25, %v18082_v21  ;;  %v598_v51 = vmul.f32 %v13363_v25, %v18084_v59  ;;  %v920_v55 = vmul.f32 %v18085_v48, %v18264_v27  ;;  %18278 = vst [vmem:[#allocation149_spill] sm:$0xff] %v13584_v39 }
 0x298   :  { %v13580_v12 = vpack.c.bf16 %v2619_v36, %v2580_v22  ;;  %v2582_v62 = vmax.f32 %v2270_v1, 0.0  ;;  %v1907_v28 = vadd.f32 %v1595_v52, %v1230_v47  ;;  %18279 = vst [vmem:[#allocation150_spill] sm:$0xff] %v13586_v17  ;;  %v1946_v24 = vadd.f32 %v1634_v23, %v1269_v49  ;;  %v13598_v47 = vpop.f32.mrf.mxu0  ;;  %v13600_v23 = vpop.f32.mrf.mxu1 }
 0x299   :  { %v2621_v45 = vmax.f32 %v2309_v19, 0.0  ;;  %v959_v56 = vmul.f32 %v11033_v34, %v18264_v27  ;;  %v1597_v40 = vmul.f32 %v18113_v61, %v13386_v20  ;;  %v1232_v52 = vadd.f32 %v920_v55, %v559_v29  ;;  %18280 = vst [vmem:[#allocation151_spill] sm:$0xff] %v13598_v47  ;;  %18281 = vst [vmem:[#allocation152_spill] sm:$0xff] %v13600_v23 }
 0x29a   :  { %18277 = vst [vmem:[#allocation148_spill] sm:$0xff] %v13580_v12  ;;  %3823 = vmatprep.subr.bf16.mxu0 %v13580_v12  ;;  %v2267_v22 = vadd.f32 %v11208_v58, %v1907_v28  ;;  %v1636_v36 = vmul.f32 %v18114_v50, %v13386_v20  ;;  %v480_v1 = vmul.f32 %v18233_v54, %v18089_v10  ;;  %v13611_v0 = vpop.f32.mrf.mxu0  ;;  %v13613_v47 = vpop.f32.mrf.mxu1 }
 0x29b   :  { %v13602_v19 = vpack.c.bf16 %v2621_v45, %v2582_v62  ;;  %v2306_v49 = vadd.f32 %v11206_v15, %v1946_v24  ;;  %v1271_v39 = vadd.f32 %v959_v56, %v598_v51  ;;  %v519_v17 = vmul.f32 %v18233_v54, %v18091_v32  ;;  %18283 = vst [vmem:[#allocation154_spill] sm:$0xff] %v13611_v0 }
 0x29c   :  { %v2579_v28 = vmax.f32 %v2267_v22, 0.0  ;;  %v1909_v29 = vadd.f32 %v1597_v40, %v1232_v52  ;;  %v841_v55 = vmul.f32 %v18092_v14, %v13354_v44  ;;  %v880_v12 = vmul.f32 %v11151_v31, %v13354_v44  ;;  %18284 = vst [vmem:[#allocation155_spill] sm:$0xff] %v13613_v47  ;;  %v13623_v22 = vpop.f32.mrf.mxu0  ;;  %v13625_v52 = vpop.f32.mrf.mxu1 }
 0x29d   :  { %18282 = vst [vmem:[#allocation153_spill] sm:$0xff] %v13602_v19  ;;  %3876 = vmatprep.subr.bf16.mxu1 %v13602_v19  ;;  %v2618_v45 = vmax.f32 %v2306_v49, 0.0  ;;  %v1948_v62 = vadd.f32 %v1636_v36, %v1271_v39  ;;  %v1518_v51 = vmul.f32 %v11188_v57, %v18256_v60  ;;  %v1557_v54 = vmul.f32 %v11186_v2, %v18256_v60 }
 0x29e   :  { %v2269_v24 = vadd.f32 %v11208_v58, %v1909_v29  ;;  %v1153_v56 = vadd.f32 %v841_v55, %v480_v1  ;;  %v1192_v40 = vadd.f32 %v880_v12, %v519_v17  ;;  %v482_v44 = vmul.f32 %v18256_v60, %v18089_v10  ;;  %18285 = vst [vmem:[#allocation156_spill] sm:$0xff] %v13623_v22  ;;  %v13636_v55 = vpop.f32.mrf.mxu0  ;;  %v13638_v22 = vpop.f32.mrf.mxu1 }
 0x29f   :  { %18286 = vst [vmem:[#allocation157_spill] sm:$0xff] %v13625_v52  ;;  %v13627_v0 = vpack.c.bf16 %v2618_v45, %v2579_v28  ;;  %v2308_v39 = vadd.f32 %v11206_v15, %v1948_v62  ;;  %v521_v36 = vmul.f32 %v18256_v60, %v18091_v32  ;;  %v843_v49 = vmul.f32 %v18092_v14, %v13379_v37 }
 0x2a0   :  { %v2581_v29 = vmax.f32 %v2269_v24, 0.0  ;;  %v1830_v1 = vadd.f32 %v1518_v51, %v1153_v56  ;;  %v1869_v17 = vadd.f32 %v1557_v54, %v1192_v40  ;;  %v882_v12 = vmul.f32 %v11151_v31, %v13379_v37  ;;  %18288 = vst [vmem:[#allocation159_spill] sm:$0xff] %v13636_v55  ;;  %18289 = vst [vmem:[#allocation160_spill] sm:$0xff] %v13638_v22  ;;  %v13649_v56 = vpop.f32.mrf.mxu0  ;;  %v13651_v40 = vpop.f32.mrf.mxu1 }
 0x2a1   :  { %18287 = vst [vmem:[#allocation158_spill] sm:$0xff] %v13627_v0  ;;  %3824 = vmatpush1.bf16.msra.mxu0 %v13627_v0  ;;  %v2620_v28 = vmax.f32 %v2308_v39, 0.0  ;;  %v1155_v45 = vadd.f32 %v843_v49, %v482_v44  ;;  %v1520_v60 = vmul.f32 %v11188_v57, %v18259_v30  ;;  %v1559_v62 = vmul.f32 %v11186_v2, %v18259_v30 }
 0x2a2   :  { %v2190_v51 = vadd.f32 %v11228_v9, %v1830_v1  ;;  %v2229_v54 = vadd.f32 %v11226_v4, %v1869_v17  ;;  %v1194_v24 = vadd.f32 %v882_v12, %v521_v36  ;;  %v479_v37 = vmul.f32 %v13071_v8, %v18089_v10  ;;  %18290 = vst [vmem:[#allocation161_spill] sm:$0xff] %v13649_v56  ;;  %v13661_v12 = vpop.f32.mrf.mxu1  ;;  %v18301_v56 = vld [vmem:[#allocation4_spill] sm:$0xff] }
 0x2a3   :  { %18291 = vst [vmem:[#allocation162_spill] sm:$0xff] %v13651_v40  ;;  %v13653_v39 = vpack.c.bf16 %v2620_v28, %v2581_v29  ;;  %v1832_v44 = vadd.f32 %v1520_v60, %v1155_v45  ;;  %v518_v49 = vmul.f32 %v13071_v8, %v18091_v32  ;;  %v840_v55 = vmul.f32 %v18092_v14, %v18262_v63  ;;  %v13669_v60 = vpop.f32.mrf.mxu0 }
 0x2a4   :  { %v2502_v1 = vmax.f32 %v2190_v51, 0.0  ;;  %v2541_v22 = vmax.f32 %v2229_v54, 0.0  ;;  %v1871_v17 = vadd.f32 %v1559_v62, %v1194_v24  ;;  %v879_v36 = vmul.f32 %v11151_v31, %v18262_v63  ;;  %18293 = vst [vmem:[#allocation164_spill] sm:$0xff] %v13661_v12  ;;  %18294 = vst [vmem:[#allocation165_spill] sm:$0xff] %v13669_v60 }
 0x2a5   :  { %18292 = vst [vmem:[#allocation163_spill] sm:$0xff] %v13653_v39  ;;  %3877 = vmatpush1.bf16.msra.mxu1 %v13653_v39  ;;  %v2192_v29 = vadd.f32 %v11228_v9, %v1832_v44  ;;  %v1152_v28 = vadd.f32 %v840_v55, %v479_v37  ;;  %v1517_v45 = vmul.f32 %v11188_v57, %v13363_v25 }
 0x2a6   :  { %v1556_v8 = vmul.f32 %v11186_v2, %v13363_v25  ;;  %v13671_v51 = vpack.c.bf16 %v2541_v22, %v2502_v1  ;;  %v2231_v62 = vadd.f32 %v11226_v4, %v1871_v17  ;;  %v1191_v63 = vadd.f32 %v879_v36, %v518_v49  ;;  %v13685_v1 = vpop.f32.mrf.mxu1 }
 0x2a7   :  { %v481_v54 = vmul.f32 %v13363_v25, %v18089_v10  ;;  %v2504_v24 = vmax.f32 %v2192_v29, 0.0  ;;  %v1829_v12 = vadd.f32 %v1517_v45, %v1152_v28  ;;  %v520_v55 = vmul.f32 %v13363_v25, %v18091_v32  ;;  %18296 = vst [vmem:[#allocation167_spill] sm:$0xff] %v13685_v1  ;;  %v18297_v29 = vld [vmem:[#allocation6_spill] sm:$0xff]  ;;  %v18298_v28 = vld [vmem:[#allocation140_spill] sm:$0xff] }
 0x2a8   :  { %18295 = vst [vmem:[#allocation166_spill] sm:$0xff] %v13671_v51  ;;  %v842_v37 = vmul.f32 %v18092_v14, %v18264_v27  ;;  %3825 = vmatprep.subr.bf16.mxu0 %v13671_v51  ;;  %v2543_v44 = vmax.f32 %v2231_v62, 0.0  ;;  %v1868_v60 = vadd.f32 %v1556_v8, %v1191_v63  ;;  %v881_v22 = vmul.f32 %v11151_v31, %v18264_v27  ;;  %v13694_v62 = vpop.f32.mrf.mxu0 }
 0x2a9   :  { %v1519_v49 = vmul.f32 %v11188_v57, %v13386_v20  ;;  %v2189_v17 = vadd.f32 %v11228_v9, %v1829_v12  ;;  %v1558_v25 = vmul.f32 %v11186_v2, %v13386_v20  ;;  %v13692_v45 = vrot.slane %v18298_v28, %v18297_v29  ;;  %18299 = vst [vmem:[#allocation6_spill] sm:$0xff] %v13694_v62 }
 0x2aa   :  { %v1154_v36 = vadd.f32 %v842_v37, %v481_v54  ;;  %v13696_v8 = vpack.c.bf16 %v2543_v44, %v2504_v24  ;;  %v2228_v27 = vadd.f32 %v11226_v4, %v1868_v60  ;;  %v1193_v63 = vadd.f32 %v881_v22, %v520_v55  ;;  %v18302_v37 = vld [vmem:[#allocation2_spill] sm:$0xff]  ;;  %v13714_v55 = vpop.f32.mrf.mxu1 }
 0x2ab   :  { %v13701_v1 = vrot.slane %v18298_v28, %v18301_v56  ;;  %v2501_v12 = vmax.f32 %v2189_v17, 0.0  ;;  %v13705_v40 = vrot.slane %v13692_v45, %v18302_v37  ;;  %v718_v29 = vmul.f32 %v18259_v30, %v10794_v42  ;;  %18303 = vst [vmem:[#allocation4_spill] sm:$0xff] %v13714_v55 }
 0x2ac   :  { %18300 = vst [vmem:[#allocation140_spill] sm:$0xff] %v13696_v8  ;;  %v1831_v54 = vadd.f32 %v1519_v49, %v1154_v36  ;;  %3878 = vmatprep.subr.bf16.mxu1 %v13696_v8  ;;  %v2540_v24 = vmax.f32 %v2228_v27, 0.0  ;;  %v1870_v44 = vadd.f32 %v1558_v25, %v1193_v63  ;;  %v757_v60 = vmul.f32 %v18259_v30, %v10837_v38  ;;  %v13725_v25 = vpop.f32.mrf.mxu0 }
 0x2ad   :  { %v1079_v56 = vmul.f32 %v10792_v41, %v13692_v45  ;;  %v1118_v49 = vmul.f32 %v10835_v43, %v13692_v45  ;;  %v13721_v17 = vrot.slane %v13701_v1, %v18302_v37  ;;  %v719_v36 = vmul.f32 %v13705_v40, %v10794_v42  ;;  %18304 = vst [vmem:[#allocation2_spill] sm:$0xff] %v13725_v25  ;;  %v18306_v37 = vld [vmem:[#allocation46_spill] sm:$0xff] }
 0x2ae   :  { %v2191_v22 = vadd.f32 %v11228_v9, %v1831_v54  ;;  %v13727_v28 = vpack.c.bf16 %v2540_v24, %v2501_v12  ;;  %v2230_v27 = vadd.f32 %v11226_v4, %v1870_v44  ;;  %v758_v54 = vmul.f32 %v13705_v40, %v10837_v38  ;;  %v13742_v44 = vpop.f32.mrf.mxu1  ;;  %v13747_v25 = vpop.f32.mrf.mxu0 }
 0x2af   :  { %v1391_v63 = vadd.f32 %v1079_v56, %v718_v29  ;;  %v1430_v62 = vadd.f32 %v1118_v49, %v757_v60  ;;  %v1756_v52 = vmul.f32 %v13721_v17, %v10864_v7  ;;  %v1795_v47 = vmul.f32 %v13721_v17, %v18306_v37  ;;  %18307 = vst [vmem:[#allocation46_spill] sm:$0xff] %v13742_v44 }
 0x2b0   :  { %18305 = vst [vmem:[#allocation168_spill] sm:$0xff] %v13727_v28  ;;  %v2503_v55 = vmax.f32 %v2191_v22, 0.0  ;;  %3826 = vmatpush1.bf16.msra.mxu0 %v13727_v28  ;;  %v2542_v23 = vmax.f32 %v2230_v27, 0.0  ;;  %v1080_v12 = vmul.f32 %v10792_v41, %v13701_v1  ;;  %v1119_v29 = vmul.f32 %v10835_v43, %v13701_v1  ;;  %18308 = vst [vmem:[#allocation169_spill] sm:$0xff] %v13747_v25  ;;  %v18412_v25 = vld [vmem:[#allocation30_spill] sm:$0xff] }
 0x2b1   :  { %v1757_v24 = vmul.f32 0.0, %v10864_v7  ;;  %v2068_v60 = vadd.f32 %v1756_v52, %v1391_v63  ;;  %v2107_v56 = vadd.f32 %v1795_v47, %v1430_v62  ;;  %v1796_v22 = vmul.f32 0.0, %v18306_v37  ;;  %v13758_v47 = vld [vmem:[%s17463_s3 + $0x10] sm:$0xff]   ;;  %v13771_v63 = vpop.f32.mrf.mxu1 }
 0x2b2   :  { %v717_v49 = vmul.f32 %v13386_v20, %v10794_v42  ;;  %v13749_v27 = vpack.c.bf16 %v2542_v23, %v2503_v55  ;;  %v1392_v8 = vadd.f32 %v1080_v12, %v719_v36  ;;  %v1431_v19 = vadd.f32 %v1119_v29, %v758_v54  ;;  %v18310_v42 = vld [vmem:[#allocation22_spill] sm:$0xff] }
 0x2b3   :  { %v756_v51 = vmul.f32 %v13386_v20, %v10837_v38  ;;  %v2428_v28 = vadd.f32 %v10988_v33, %v2068_v60  ;;  %v2467_v44 = vadd.f32 %v10986_v35, %v2107_v56  ;;  %10031 = vmatmul.mubr.msk.bf16.vlgmr.msra.gmra.mxu0 %vm2956_vm0, %v13758_v47  ;;  %v1078_v23 = vmul.f32 %v10792_v41, %v18310_v42  ;;  %v13774_v41 = vpop.f32.mrf.mxu0 }
 0x2b4   :  { %18309 = vst [vmem:[#allocation170_spill] sm:$0xff] %v13749_v27  ;;  %v1117_v52 = vmul.f32 %v10835_v43, %v18310_v42  ;;  %3879 = vmatpush1.bf16.msra.mxu1 %v13749_v27  ;;  %v2069_v38 = vadd.f32 %v1757_v24, %v1392_v8  ;;  %v2108_v62 = vadd.f32 %v1796_v22, %v1431_v19  ;;  %18311 = vst [vmem:[#allocation22_spill] sm:$0xff] %v13771_v63 }
 0x2b5   :  { %v1755_v55 = vmul.f32 %v10864_v7, %v13705_v40  ;;  %v1794_v36 = vmul.f32 %v18306_v37, %v13705_v40  ;;  %v2740_v54 = vmax.f32 %v2428_v28, 0.0  ;;  %v2779_v12 = vmax.f32 %v2467_v44, 0.0  ;;  %3853 = vmatprep.mubr.bf16.mxu0 %v18156_v46  ;;  %18312 = vst [vmem:[#allocation171_spill] sm:$0xff] %v13774_v41  ;;  %v18407_v41 = vld [vmem:[#allocation82_spill] sm:$0xff] }
 0x2b6   :  { %v1390_v29 = vadd.f32 %v1078_v23, %v717_v49  ;;  %v1429_v60 = vadd.f32 %v1117_v52, %v756_v51  ;;  %v2429_v43 = vadd.f32 %v10988_v33, %v2069_v38  ;;  %v2468_v19 = vadd.f32 %v10986_v35, %v2108_v62  ;;  %v13793_v23 = vpop.f32.mrf.mxu1 }
 0x2b7   :  { %v640_v7 = vmul.f32 %v18259_v30, %v18068_v11  ;;  %v679_v8 = vmul.f32 %v18259_v30, %v18069_v3  ;;  %v13782_v37 = vpack.c.bf16 %v2779_v12, %v2740_v54  ;;  %10033 = vmatmul.mubr.msk.bf16.vlgmr.msra.gmra.mxu1 %vm2956_vm0, %v13758_v47  ;;  %v1001_v24 = vmul.f32 %v18071_v53, %v13692_v45 }
 0x2b8   :  { %v2067_v51 = vadd.f32 %v1755_v55, %v1390_v29  ;;  %v2106_v28 = vadd.f32 %v1794_v36, %v1429_v60  ;;  %v2741_v44 = vmax.f32 %v2429_v43, 0.0  ;;  %v2780_v56 = vmax.f32 %v2468_v19, 0.0  ;;  %3906 = vmatprep.mubr.bf16.mxu1 %v18156_v46  ;;  %18314 = vst [vmem:[#allocation173_spill] sm:$0xff] %v13793_v23  ;;  %v13800_v36 = vpop.f32.mrf.mxu0 }
 0x2b9   :  { %18313 = vst [vmem:[#allocation172_spill] sm:$0xff] %v13782_v37  ;;  %v1040_v22 = vmul.f32 %v18073_v26, %v13692_v45  ;;  %v1678_v49 = vmul.f32 %v13721_v17, %v18075_v13  ;;  %3925 = vmatprep.subr.bf16.mxu0 %v13782_v37  ;;  %v1313_v62 = vadd.f32 %v1001_v24, %v640_v7  ;;  %18315 = vst [vmem:[#allocation174_spill] sm:$0xff] %v13800_v36  ;;  %v13813_v7 = vld [vmem:[%s17463_s3 + $0x18] sm:$0xff]   ;;  %v18406_v36 = vld [vmem:[#allocation78_spill] sm:$0xff] }
 0x2ba   :  { %v2427_v52 = vadd.f32 %v10988_v33, %v2067_v51  ;;  %v2466_v38 = vadd.f32 %v10986_v35, %v2106_v28  ;;  %v1717_v55 = vmul.f32 %v13721_v17, %v18076_v18  ;;  %v13802_v54 = vpack.c.bf16 %v2780_v56, %v2741_v44  ;;  %v13823_v44 = vpop.f32.mrf.mxu1 }
 0x2bb   :  { %v1352_v12 = vadd.f32 %v1040_v22, %v679_v8  ;;  %v641_v29 = vmul.f32 %v13705_v40, %v18068_v11  ;;  %v680_v60 = vmul.f32 %v13705_v40, %v18069_v3  ;;  %v1990_v33 = vadd.f32 %v1678_v49, %v1313_v62  ;;  %10032 = vmatmul.mubr.msk.bf16.gmra.mxu0 %vm2956_vm0, %v13813_v7 }
 0x2bc   :  { %18316 = vst [vmem:[#allocation175_spill] sm:$0xff] %v13802_v54  ;;  %v2739_v43 = vmax.f32 %v2427_v52, 0.0  ;;  %v2778_v19 = vmax.f32 %v2466_v38, 0.0  ;;  %v1002_v35 = vmul.f32 %v18071_v53, %v13701_v1  ;;  %10299 = vmatprep.subr.bf16.mxu1 %v13802_v54  ;;  %v1041_v51 = vmul.f32 %v18073_v26, %v13701_v1  ;;  %3949 = vmatprep.mubr.bf16.mxu0 %v18156_v46  ;;  %v13831_v38 = vpop.f32.mrf.mxu0 }
 0x2bd   :  { %v2029_v8 = vadd.f32 %v1717_v55, %v1352_v12  ;;  %v1679_v28 = vmul.f32 0.0, %v18075_v13  ;;  %v1718_v24 = vmul.f32 0.0, %v18076_v18  ;;  %18317 = vst [vmem:[#allocation176_spill] sm:$0xff] %v13823_v44  ;;  %10300 = vmatpush3.bf16.msra.mxu1 %v13802_v54  ;;  %v2350_v22 = vadd.f32 %v11098_v6, %v1990_v33  ;;  %18318 = vst [vmem:[#allocation177_spill] sm:$0xff] %v13831_v38  ;;  %v18418_v54 = vld [vmem:[#allocation83_spill] sm:$0xff] }
 0x2be   :  { %v13825_v56 = vpack.c.bf16 %v2778_v19, %v2739_v43  ;;  %v1314_v49 = vadd.f32 %v1002_v35, %v641_v29  ;;  %v639_v52 = vmul.f32 %v13386_v20, %v18068_v11  ;;  %v1353_v55 = vadd.f32 %v1041_v51, %v680_v60 }
 0x2bf   :  { %v2389_v62 = vadd.f32 %v11096_v16, %v2029_v8  ;;  %v678_v12 = vmul.f32 %v13386_v20, %v18069_v3  ;;  %v1000_v43 = vmul.f32 %v18071_v53, %v18310_v42  ;;  %v2662_v19 = vmax.f32 %v2350_v22, 0.0  ;;  %10034 = vmatmul.mubr.msk.bf16.gmra.mxu1 %vm2956_vm0, %v13813_v7  ;;  %v13849_v53 = vpop.f32.mrf.mxu1 }
 0x2c0   :  { %3926 = vmatpush1.bf16.msra.mxu0 %v13825_v56  ;;  %v1991_v44 = vadd.f32 %v1679_v28, %v1314_v49  ;;  %v1039_v29 = vmul.f32 %v18073_v26, %v18310_v42  ;;  %v1677_v11 = vmul.f32 %v18075_v13, %v13705_v40  ;;  %v2030_v33 = vadd.f32 %v1718_v24, %v1353_v55  ;;  %v13856_v28 = vpop.f32.mrf.mxu0 }
 0x2c1   :  { %v2701_v60 = vmax.f32 %v2389_v62, 0.0  ;;  %v1312_v35 = vadd.f32 %v1000_v43, %v639_v52  ;;  %v1716_v3 = vmul.f32 %v18076_v18, %v13705_v40  ;;  %10307 = vmatprep.mubr.msk.bf16.mxu1 %vm2956_vm0, %v13758_v47  ;;  %18319 = vst [vmem:[#allocation178_spill] sm:$0xff] %v13849_v53  ;;  %v562_v13 = vmul.f32 %v18259_v30, %v18082_v21  ;;  %v18405_v53 = vld [vmem:[#allocation27_spill] sm:$0xff] }
 0x2c2   :  { %v2351_v8 = vadd.f32 %v11098_v6, %v1991_v44  ;;  %v1351_v26 = vadd.f32 %v1039_v29, %v678_v12  ;;  %v601_v51 = vmul.f32 %v18259_v30, %v18084_v59  ;;  %18320 = vst [vmem:[#allocation179_spill] sm:$0xff] %v13856_v28  ;;  %v2390_v18 = vadd.f32 %v11096_v16, %v2030_v33  ;;  %v18401_v28 = vld [vmem:[#allocation80_spill] sm:$0xff] }
 0x2c3   :  { %v13858_v24 = vpack.c.bf16 %v2701_v60, %v2662_v19  ;;  %v1989_v22 = vadd.f32 %v1677_v11, %v1312_v35  ;;  %v923_v49 = vmul.f32 %v18085_v48, %v13692_v45  ;;  %v962_v44 = vmul.f32 %v11033_v34, %v13692_v45  ;;  %v13871_v11 = vpop.f32.mrf.mxu1 }
 0x2c4   :  { %v2663_v52 = vmax.f32 %v2351_v8, 0.0  ;;  %v2028_v62 = vadd.f32 %v1716_v3, %v1351_v26  ;;  %v1600_v55 = vmul.f32 %v13721_v17, %v18113_v61  ;;  %v2702_v12 = vmax.f32 %v2390_v18, 0.0  ;;  %18322 = vst [vmem:[#allocation181_spill] sm:$0xff] %v13871_v11  ;;  %v13878_v8 = vpop.f32.mrf.mxu0  ;;  %v18400_v11 = vld [vmem:[#allocation8_spill] sm:$0xff] }
 0x2c5   :  { %18321 = vst [vmem:[#allocation180_spill] sm:$0xff] %v13858_v24  ;;  %3927 = vmatprep.subr.bf16.mxu0 %v13858_v24  ;;  %v2349_v43 = vadd.f32 %v11098_v6, %v1989_v22  ;;  %v1235_v19 = vadd.f32 %v923_v49, %v562_v13  ;;  %v1639_v29 = vmul.f32 %v13721_v17, %v18114_v50  ;;  %18323 = vst [vmem:[#allocation182_spill] sm:$0xff] %v13878_v8 }
 0x2c6   :  { %v2388_v60 = vadd.f32 %v11096_v16, %v2028_v62  ;;  %v1274_v33 = vadd.f32 %v962_v44, %v601_v51  ;;  %v563_v35 = vmul.f32 %v13705_v40, %v18082_v21  ;;  %v602_v3 = vmul.f32 %v13705_v40, %v18084_v59 }
 0x2c7   :  { %v13880_v26 = vpack.c.bf16 %v2702_v12, %v2663_v52  ;;  %v2661_v6 = vmax.f32 %v2349_v43, 0.0  ;;  %v1912_v13 = vadd.f32 %v1600_v55, %v1235_v19  ;;  %v924_v18 = vmul.f32 %v18085_v48, %v13701_v1  ;;  %v13892_v12 = vpop.f32.mrf.mxu1 }
 0x2c8   :  { %v2700_v22 = vmax.f32 %v2388_v60, 0.0  ;;  %v1951_v49 = vadd.f32 %v1639_v29, %v1274_v33  ;;  %v963_v16 = vmul.f32 %v11033_v34, %v13701_v1  ;;  %v1601_v51 = vmul.f32 0.0, %v18113_v61  ;;  %18325 = vst [vmem:[#allocation184_spill] sm:$0xff] %v13892_v12  ;;  %v13900_v33 = vpop.f32.mrf.mxu0 }
 0x2c9   :  { %18324 = vst [vmem:[#allocation183_spill] sm:$0xff] %v13880_v26  ;;  %10301 = vmatprep.subr.bf16.mxu1 %v13880_v26  ;;  %v2272_v62 = vadd.f32 %v11208_v58, %v1912_v13  ;;  %v1236_v44 = vadd.f32 %v924_v18, %v563_v35  ;;  %v1640_v52 = vmul.f32 0.0, %v18114_v50  ;;  %v561_v55 = vmul.f32 %v13386_v20, %v18082_v21 }
 0x2ca   :  { %v13894_v43 = vpack.c.bf16 %v2700_v22, %v2661_v6  ;;  %10302 = vmatpush3.bf16.msra.mxu1 %v13880_v26  ;;  %v2311_v19 = vadd.f32 %v11206_v15, %v1951_v49  ;;  %v1275_v29 = vadd.f32 %v963_v16, %v602_v3  ;;  %v600_v60 = vmul.f32 %v13386_v20, %v18084_v59  ;;  %v18417_v26 = vld [vmem:[#allocation85_spill] sm:$0xff] }
 0x2cb   :  { %18326 = vst [vmem:[#allocation185_spill] sm:$0xff] %v13900_v33  ;;  %v2584_v35 = vmax.f32 %v2272_v62, 0.0  ;;  %v1913_v13 = vadd.f32 %v1601_v51, %v1236_v44  ;;  %v922_v18 = vmul.f32 %v18085_v48, %v18310_v42  ;;  %v961_v21 = vmul.f32 %v11033_v34, %v18310_v42  ;;  %v13914_v62 = vpop.f32.mrf.mxu1  ;;  %v18395_v33 = vld [vmem:[#allocation60_spill] sm:$0xff] }
 0x2cc   :  { %3928 = vmatpush1.bf16.msra.mxu0 %v13894_v43  ;;  %v2623_v6 = vmax.f32 %v2311_v19, 0.0  ;;  %v1952_v22 = vadd.f32 %v1640_v52, %v1275_v29  ;;  %v1599_v3 = vmul.f32 %v18113_v61, %v13705_v40  ;;  %v1638_v59 = vmul.f32 %v18114_v50, %v13705_v40  ;;  %18327 = vst [vmem:[#allocation186_spill] sm:$0xff] %v13914_v62  ;;  %v13923_v50 = vpop.f32.mrf.mxu0  ;;  %v18394_v62 = vld [vmem:[#allocation41_spill] sm:$0xff] }
 0x2cd   :  { %v2273_v49 = vadd.f32 %v11208_v58, %v1913_v13  ;;  %v1234_v16 = vadd.f32 %v922_v18, %v561_v55  ;;  %v1273_v51 = vadd.f32 %v961_v21, %v600_v60  ;;  %v484_v48 = vmul.f32 %v18259_v30, %v18089_v10  ;;  %18329 = vst [vmem:[#allocation188_spill] sm:$0xff] %v13923_v50 }
 0x2ce   :  { %v13916_v34 = vpack.c.bf16 %v2623_v6, %v2584_v35  ;;  %v2312_v44 = vadd.f32 %v11206_v15, %v1952_v22  ;;  %v523_v52 = vmul.f32 %v18259_v30, %v18091_v32  ;;  %v845_v61 = vmul.f32 %v18092_v14, %v13692_v45 }
 0x2cf   :  { %v2585_v19 = vmax.f32 %v2273_v49, 0.0  ;;  %v1911_v55 = vadd.f32 %v1599_v3, %v1234_v16  ;;  %v1950_v29 = vadd.f32 %v1638_v59, %v1273_v51  ;;  %v884_v60 = vmul.f32 %v11151_v31, %v13692_v45  ;;  %v13936_v59 = vpop.f32.mrf.mxu1 }
 0x2d0   :  { %18328 = vst [vmem:[#allocation187_spill] sm:$0xff] %v13916_v34  ;;  %3929 = vmatprep.subr.bf16.mxu0 %v13916_v34  ;;  %v2624_v35 = vmax.f32 %v2312_v44, 0.0  ;;  %v1157_v13 = vadd.f32 %v845_v61, %v484_v48  ;;  %v1522_v18 = vmul.f32 %v13721_v17, %v11188_v57  ;;  %v1561_v30 = vmul.f32 %v13721_v17, %v11186_v2  ;;  %v13944_v17 = vpop.f32.mrf.mxu0 }
 0x2d1   :  { %v2271_v21 = vadd.f32 %v11208_v58, %v1911_v55  ;;  %v2310_v6 = vadd.f32 %v11206_v15, %v1950_v29  ;;  %v1196_v22 = vadd.f32 %v884_v60, %v523_v52  ;;  %v485_v3 = vmul.f32 %v13705_v40, %v18089_v10  ;;  %18330 = vst [vmem:[#allocation189_spill] sm:$0xff] %v13936_v59  ;;  %v18393_v59 = vld [vmem:[#allocation7_spill] sm:$0xff] }
 0x2d2   :  { %v13938_v45 = vpack.c.bf16 %v2624_v35, %v2585_v19  ;;  %v1834_v49 = vadd.f32 %v1522_v18, %v1157_v13  ;;  %v524_v16 = vmul.f32 %v13705_v40, %v18091_v32  ;;  %v846_v51 = vmul.f32 %v18092_v14, %v13701_v1  ;;  %18332 = vst [vmem:[#allocation191_spill] sm:$0xff] %v13944_v17  ;;  %v18389_v17 = vld [vmem:[#allocation44_spill] sm:$0xff] }
 0x2d3   :  { %v2583_v58 = vmax.f32 %v2271_v21, 0.0  ;;  %v2622_v48 = vmax.f32 %v2310_v6, 0.0  ;;  %v1873_v15 = vadd.f32 %v1561_v30, %v1196_v22  ;;  %v885_v44 = vmul.f32 %v11151_v31, %v13701_v1  ;;  %v13958_v1 = vpop.f32.mrf.mxu1  ;;  %v13964_v22 = vpop.f32.mrf.mxu0 }
 0x2d4   :  { %18331 = vst [vmem:[#allocation190_spill] sm:$0xff] %v13938_v45  ;;  %10303 = vmatprep.subr.bf16.mxu1 %v13938_v45  ;;  %v2194_v52 = vadd.f32 %v11228_v9, %v1834_v49  ;;  %v1158_v61 = vadd.f32 %v846_v51, %v485_v3  ;;  %v1523_v19 = vmul.f32 0.0, %v11188_v57  ;;  %v1562_v55 = vmul.f32 0.0, %v11186_v2  ;;  %18333 = vst [vmem:[#allocation192_spill] sm:$0xff] %v13958_v1  ;;  %v18388_v1 = vld [vmem:[#allocation62_spill] sm:$0xff] }
 0x2d5   :  { %v13952_v29 = vpack.c.bf16 %v2622_v48, %v2583_v58  ;;  %10304 = vmatpush3.bf16.msra.mxu1 %v13938_v45  ;;  %v2233_v60 = vadd.f32 %v11226_v4, %v1873_v15  ;;  %v1197_v35 = vadd.f32 %v885_v44, %v524_v16  ;;  %v483_v13 = vmul.f32 %v13386_v20, %v18089_v10  ;;  %v13977_v15 = vpop.f32.mrf.mxu1 }
 0x2d6   :  { %v2506_v18 = vmax.f32 %v2194_v52, 0.0  ;;  %v1835_v30 = vadd.f32 %v1523_v19, %v1158_v61  ;;  %v522_v21 = vmul.f32 %v13386_v20, %v18091_v32  ;;  %v844_v6 = vmul.f32 %v18092_v14, %v18310_v42  ;;  %18334 = vst [vmem:[#allocation193_spill] sm:$0xff] %v13964_v22  ;;  %18335 = vst [vmem:[#allocation194_spill] sm:$0xff] %v13977_v15  ;;  %v13979_v61 = vpop.f32.mrf.mxu0 }
 0x2d7   :  { %3930 = vmatpush1.bf16.msra.mxu0 %v13952_v29  ;;  %v2545_v3 = vmax.f32 %v2233_v60, 0.0  ;;  %v1874_v49 = vadd.f32 %v1562_v55, %v1197_v35  ;;  %v883_v16 = vmul.f32 %v11151_v31, %v18310_v42  ;;  %v1521_v10 = vmul.f32 %v11188_v57, %v13705_v40  ;;  %18336 = vst [vmem:[#allocation195_spill] sm:$0xff] %v13979_v61  ;;  %v18383_v61 = vld [vmem:[#allocation25_spill] sm:$0xff] }
 0x2d8   :  { %v2195_v51 = vadd.f32 %v11228_v9, %v1835_v30  ;;  %v1156_v58 = vadd.f32 %v844_v6, %v483_v13  ;;  %v1560_v32 = vmul.f32 %v11186_v2, %v13705_v40  ;;  %v13986_v40 = vpop.f32.mrf.mxu1  ;;  %v13988_v60 = vpop.f32.mrf.mxu0  ;;  %v18345_v6 = vld [vmem:[#allocation67_spill] sm:$0xff] }
 0x2d9   :  { %v13974_v20 = vpack.c.bf16 %v2545_v3, %v2506_v18  ;;  %v2234_v14 = vadd.f32 %v11226_v4, %v1874_v49  ;;  %v1195_v48 = vadd.f32 %v883_v16, %v522_v21  ;;  %18338 = vst [vmem:[#allocation197_spill] sm:$0xff] %v13986_v40  ;;  %18339 = vst [vmem:[#allocation198_spill] sm:$0xff] %v13988_v60  ;;  %v18340_v18 = vld [vmem:[#allocation58_spill] sm:$0xff]  ;;  %v18344_v21 = vld [vmem:[#allocation55_spill] sm:$0xff] }
 0x2da   :  { %v2507_v44 = vmax.f32 %v2195_v51, 0.0  ;;  %v1833_v52 = vadd.f32 %v1521_v10, %v1156_v58  ;;  %v13995_v30 = vpop.f32.mrf.mxu1  ;;  %v18348_v16 = vld [vmem:[#allocation66_spill] sm:$0xff]  ;;  %v18349_v10 = vld [vmem:[#allocation64_spill] sm:$0xff] }
 0x2db   :  { %3931 = vmatprep.subr.bf16.mxu0 %v13974_v20  ;;  %v2546_v57 = vmax.f32 %v2234_v14, 0.0  ;;  %v1872_v31 = vadd.f32 %v1560_v32, %v1195_v48  ;;  %18341 = vst [vmem:[#allocation58_spill] sm:$0xff] %v13995_v30  ;;  %v18350_v51 = vld [vmem:[#allocation72_spill] sm:$0xff]  ;;  %v18353_v14 = vld [vmem:[#allocation71_spill] sm:$0xff]  ;;  %v18382_v40 = vld [vmem:[#allocation54_spill] sm:$0xff] }
 0x2dc   :  { %v2193_v42 = vadd.f32 %v11228_v9, %v1833_v52  ;;  %v13997_v9 = vpop.f32.mrf.mxu0  ;;  %v14006_v3 = vpop.f32.mrf.mxu1  ;;  %v18355_v48 = vld [vmem:[#allocation76_spill] sm:$0xff]  ;;  %v18381_v30 = vld [vmem:[#allocation59_spill] sm:$0xff] }
 0x2dd   :  { %v13983_v19 = vpack.c.bf16 %v2546_v57, %v2507_v44  ;;  %v2232_v2 = vadd.f32 %v11226_v4, %v1872_v31  ;;  %18342 = vst [vmem:[#allocation199_spill] sm:$0xff] %v13997_v9  ;;  %v18343_v4 = vld [vmem:[#allocation57_spill] sm:$0xff]  ;;  %v14036_v57 = vld [vmem:[%s17463_s3] sm:$0xff]   ;;  %v18358_v31 = vld [vmem:[#allocation75_spill] sm:$0xff] }
 0x2de   :  { %v2505_v55 = vmax.f32 %v2193_v42, 0.0  ;;  %18346 = vst [vmem:[#allocation57_spill] sm:$0xff] %v14006_v3  ;;  %v14010_v49 = vpop.f32.mrf.mxu0  ;;  %v14017_v58 = vpop.f32.mrf.mxu1  ;;  %v18359_v42 = vld [vmem:[#allocation73_spill] sm:$0xff]  ;;  %v18376_v3 = vld [vmem:[#allocation52_spill] sm:$0xff]  ;;  %v18377_v9 = vld [vmem:[#allocation63_spill] sm:$0xff] }
 0x2df   :  { %18337 = vst [vmem:[#allocation196_spill] sm:$0xff] %v13983_v19  ;;  %10305 = vmatprep.subr.bf16.mxu1 %v13983_v19  ;;  %v2544_v35 = vmax.f32 %v2232_v2, 0.0  ;;  %18347 = vst [vmem:[#allocation55_spill] sm:$0xff] %v14010_v49  ;;  %v18360_v2 = vld [vmem:[#allocation47_spill] sm:$0xff] }
 0x2e0   :  { %10306 = vmatpush3.bf16.msra.mxu1 %v13983_v19  ;;  %18351 = vst [vmem:[#allocation67_spill] sm:$0xff] %v14017_v58  ;;  %v14019_v32 = vpop.f32.mrf.mxu0  ;;  %v14025_v44 = vpop.f32.mrf.mxu1  ;;  %v18375_v58 = vld [vmem:[#allocation29_spill] sm:$0xff]  ;;  %v18413_v19 = vld [vmem:[#allocation86_spill] sm:$0xff] }
 0x2e1   :  { %v13992_v13 = vpack.c.bf16 %v2544_v35, %v2505_v55  ;;  %4096 = vmatprep.subr.bf16.mxu1 %v18340_v18  ;;  %18352 = vst [vmem:[#allocation66_spill] sm:$0xff] %v14019_v32  ;;  %18356 = vst [vmem:[#allocation64_spill] sm:$0xff] %v14025_v44  ;;  %v18363_v35 = vld [vmem:[#allocation48_spill] sm:$0xff] }
 0x2e2   :  { %v14029_v52 = vpop.f32.mrf.mxu0  ;;  %v14041_v55 = vpop.f32.mrf.mxu1  ;;  %v18370_v44 = vld [vmem:[#allocation28_spill] sm:$0xff] }
 0x2e3   :  { %3932 = vmatpush1.bf16.msra.mxu0 %v13992_v13  ;;  %10308 = vmatmul.mubr.msk.bf16.vlgmr.msra.gmra.mxu1 %vm2956_vm0, %v13813_v7  ;;  %18357 = vst [vmem:[#allocation72_spill] sm:$0xff] %v14029_v52  ;;  %18361 = vst [vmem:[#allocation71_spill] sm:$0xff] %v14041_v55  ;;  %v14063_v52 = vld [vmem:[%s17463_s3 + $0x8] sm:$0xff]   ;;  %v18369_v55 = vld [vmem:[#allocation49_spill] sm:$0xff] }
 0x2e4   :  { %4043 = vmatprep.subr.bf16.mxu0 %v18343_v4  ;;  %4097 = vmatpush1.bf16.msra.mxu1 %v18344_v21  ;;  %v18364_v4 = vld [vmem:[#allocation77_spill] sm:$0xff]  ;;  %v18371_v32 = vld [vmem:[#allocation24_spill] sm:$0xff] }
 0x2e5   :  { %4098 = vmatprep.subr.bf16.mxu1 %v18345_v6  ;;  %4120 = vmatprep.mubr.bf16.mxu1 %v18156_v46 }
 0x2e6   :  { %10035 = vmatmul.mubr.msk.bf16.vlgmr.msra.gmra.mxu0 %vm2956_vm0, %v13758_v47  ;;  %v18354_v47 = vld [vmem:[#allocation69_spill] sm:$0xff] }
 0x2e7   :  { %4044 = vmatpush1.bf16.msra.mxu0 %v18156_v46  ;;  %3959 = vmatprep.mubr.bf16.mxu0 %v18156_v46 }
 0x2e8   :  { %4045 = vmatprep.subr.bf16.mxu0 %v18348_v16  ;;  %4099 = vmatpush1.bf16.msra.mxu1 %v18349_v10  ;;  %v18365_v16 = vld [vmem:[#allocation23_spill] sm:$0xff] }
 0x2e9   :  { %4100 = vmatprep.subr.bf16.mxu1 %v18350_v51 }
 0x2eb   :  { %4046 = vmatpush1.bf16.msra.mxu0 %v18156_v46 }
 0x2ec   :  { %4047 = vmatprep.subr.bf16.mxu0 %v18353_v14  ;;  %4101 = vmatpush1.bf16.msra.mxu1 %v18354_v47  ;;  %v14052_v14 = vpop.f32.mrf.mxu1 }
 0x2ed   :  { %4102 = vmatprep.subr.bf16.mxu1 %v18355_v48  ;;  %18366 = vst [vmem:[#allocation76_spill] sm:$0xff] %v14052_v14 }
 0x2ee   :  { %10036 = vmatmul.mubr.msk.bf16.gmra.mxu0 %vm2956_vm0, %v13813_v7  ;;  %v14043_v7 = vpop.f32.mrf.mxu0  ;;  %v14068_v14 = vpop.f32.mrf.mxu1 }
 0x2ef   :  { %4048 = vmatpush1.bf16.msra.mxu0 %v18156_v46  ;;  %4067 = vmatprep.mubr.bf16.mxu0 %v18156_v46  ;;  %18362 = vst [vmem:[#allocation69_spill] sm:$0xff] %v14043_v7  ;;  %v18368_v7 = vld [vmem:[#allocation56_spill] sm:$0xff]  ;;  %18372 = vst [vmem:[#allocation73_spill] sm:$0xff] %v14068_v14 }
 0x2f0   :  { %4049 = vmatprep.subr.bf16.mxu0 %v18358_v31  ;;  %4103 = vmatpush1.bf16.msra.mxu1 %v18359_v42  ;;  %v14056_v31 = vpop.f32.mrf.mxu0  ;;  %v14079_v60 = vpop.f32.mrf.mxu1 }
 0x2f1   :  { %4202 = vmatprep.subr.bf16.mxu1 %v18360_v2  ;;  %18367 = vst [vmem:[#allocation75_spill] sm:$0xff] %v14056_v31  ;;  %v18374_v31 = vld [vmem:[#allocation65_spill] sm:$0xff]  ;;  %18378 = vst [vmem:[#allocation48_spill] sm:$0xff] %v14079_v60  ;;  %v18386_v60 = vld [vmem:[#allocation74_spill] sm:$0xff] }
 0x2f2   :  { %v14070_v49 = vpop.f32.mrf.mxu0  ;;  %v14090_v22 = vpop.f32.mrf.mxu1 }
 0x2f3   :  { %4050 = vmatpush1.bf16.msra.mxu0 %v18156_v46  ;;  %10043 = vmatmul.mubr.msk.bf16.vlgmr.msra.gmra.mxu1 %vm2956_vm0, %v14036_v57  ;;  %18373 = vst [vmem:[#allocation47_spill] sm:$0xff] %v14070_v49  ;;  %v18380_v49 = vld [vmem:[#allocation70_spill] sm:$0xff]  ;;  %18384 = vst [vmem:[#allocation23_spill] sm:$0xff] %v14090_v22 }
 0x2f4   :  { %4149 = vmatprep.subr.bf16.mxu0 %v18363_v35  ;;  %4203 = vmatpush1.bf16.msra.mxu1 %v18364_v4  ;;  %v14083_v14 = vpop.f32.mrf.mxu0  ;;  %v14101_v50 = vpop.f32.mrf.mxu1 }
 0x2f5   :  { %4204 = vmatprep.subr.bf16.mxu1 %v18365_v16  ;;  %4130 = vmatprep.mubr.bf16.mxu1 %v18156_v46  ;;  %18379 = vst [vmem:[#allocation77_spill] sm:$0xff] %v14083_v14  ;;  %v18387_v14 = vld [vmem:[#allocation40_spill] sm:$0xff]  ;;  %18390 = vst [vmem:[#allocation49_spill] sm:$0xff] %v14101_v50  ;;  %v18398_v50 = vld [vmem:[#allocation50_spill] sm:$0xff] }
 0x2f6   :  { %10041 = vmatmul.mubr.msk.bf16.vlgmr.msra.gmra.mxu0 %vm2956_vm0, %v14036_v57  ;;  %v14092_v15 = vpop.f32.mrf.mxu0  ;;  %v14112_v8 = vpop.f32.mrf.mxu1 }
 0x2f7   :  { %4150 = vmatpush1.bf16.msra.mxu0 %v18368_v7  ;;  %4077 = vmatprep.mubr.bf16.mxu0 %v18156_v46  ;;  %18385 = vst [vmem:[#allocation56_spill] sm:$0xff] %v14092_v15  ;;  %v18392_v15 = vld [vmem:[#allocation43_spill] sm:$0xff]  ;;  %18396 = vst [vmem:[#allocation24_spill] sm:$0xff] %v14112_v8 }
 0x2f8   :  { %4151 = vmatprep.subr.bf16.mxu0 %v18369_v55  ;;  %4205 = vmatpush1.bf16.msra.mxu1 %v18370_v44  ;;  %v14105_v22 = vpop.f32.mrf.mxu0  ;;  %v14123_v38 = vpop.f32.mrf.mxu1 }
 0x2f9   :  { %4206 = vmatprep.subr.bf16.mxu1 %v18371_v32  ;;  %18391 = vst [vmem:[#allocation28_spill] sm:$0xff] %v14105_v22  ;;  %v18399_v22 = vld [vmem:[#allocation61_spill] sm:$0xff]  ;;  %18402 = vst [vmem:[#allocation29_spill] sm:$0xff] %v14123_v38 }
 0x2fa   :  { %v14114_v12 = vpop.f32.mrf.mxu0  ;;  %v14134_v23 = vpop.f32.mrf.mxu1  ;;  %v18410_v38 = vld [vmem:[#allocation53_spill] sm:$0xff] }
 0x2fb   :  { %4152 = vmatpush1.bf16.msra.mxu0 %v18374_v31  ;;  %10044 = vmatmul.mubr.msk.bf16.gmra.mxu1 %vm2956_vm0, %v14063_v52  ;;  %18397 = vst [vmem:[#allocation65_spill] sm:$0xff] %v14114_v12  ;;  %v18404_v12 = vld [vmem:[#allocation51_spill] sm:$0xff]  ;;  %18408 = vst [vmem:[#allocation63_spill] sm:$0xff] %v14134_v23 }
 0x2fc   :  { %4153 = vmatprep.subr.bf16.mxu0 %v18375_v58  ;;  %4207 = vmatpush1.bf16.msra.mxu1 %v18376_v3  ;;  %v14127_v8 = vpop.f32.mrf.mxu0  ;;  %v14145_v45 = vpop.f32.mrf.mxu1 }
 0x2fd   :  { %4208 = vmatprep.subr.bf16.mxu1 %v18377_v9  ;;  %4226 = vmatprep.mubr.bf16.mxu1 %v18156_v46  ;;  %18403 = vst [vmem:[#allocation52_spill] sm:$0xff] %v14127_v8  ;;  %v18411_v8 = vld [vmem:[#allocation81_spill] sm:$0xff]  ;;  %18414 = vst [vmem:[#allocation59_spill] sm:$0xff] %v14145_v45  ;;  %v18422_v45 = vld [vmem:[#allocation26_spill] sm:$0xff] }
 0x2fe   :  { %10042 = vmatmul.mubr.msk.bf16.gmra.mxu0 %vm2956_vm0, %v14063_v52  ;;  %v14136_v63 = vpop.f32.mrf.mxu0 }
 0x2ff   :  { %4154 = vmatpush1.bf16.msra.mxu0 %v18380_v49  ;;  %4173 = vmatprep.mubr.bf16.mxu0 %v18156_v46  ;;  %18409 = vst [vmem:[#allocation70_spill] sm:$0xff] %v14136_v63  ;;  %v18416_v63 = vld [vmem:[#allocation68_spill] sm:$0xff] }
 0x300   :  { %4155 = vmatprep.subr.bf16.mxu0 %v18381_v30  ;;  %4209 = vmatpush1.bf16.msra.mxu1 %v18382_v40  ;;  %v14149_v23 = vpop.f32.mrf.mxu0 }
 0x301   :  { %4308 = vmatprep.subr.bf16.mxu1 %v18383_v61  ;;  %18415 = vst [vmem:[#allocation54_spill] sm:$0xff] %v14149_v23  ;;  %v18423_v23 = vld [vmem:[#allocation89_spill] sm:$0xff] }
 0x303   :  { %4156 = vmatpush1.bf16.msra.mxu0 %v18386_v60  ;;  %10047 = vmatmul.mubr.msk.bf16.vlgmr.msra.gmra.mxu1 %vm2956_vm0, %v14036_v57 }
 0x304   :  { %4255 = vmatprep.subr.bf16.mxu0 %v18387_v14  ;;  %4309 = vmatpush1.bf16.msra.mxu1 %v18388_v1 }
 0x305   :  { %4310 = vmatprep.subr.bf16.mxu1 %v18389_v17  ;;  %4236 = vmatprep.mubr.bf16.mxu1 %v18156_v46 }
 0x306   :  { %10045 = vmatmul.mubr.msk.bf16.vlgmr.msra.gmra.mxu0 %vm2956_vm0, %v14036_v57 }
 0x307   :  { %4256 = vmatpush1.bf16.msra.mxu0 %v18392_v15  ;;  %4183 = vmatprep.mubr.bf16.mxu0 %v18156_v46 }
 0x308   :  { %4257 = vmatprep.subr.bf16.mxu0 %v18393_v59  ;;  %4311 = vmatpush1.bf16.msra.mxu1 %v18394_v62  ;;  %v18437_v62 = vld [vmem:[#allocation98_spill] sm:$0xff] }
 0x309   :  { %4312 = vmatprep.subr.bf16.mxu1 %v18395_v33 }
 0x30b   :  { %4258 = vmatpush1.bf16.msra.mxu0 %v18398_v50  ;;  %10048 = vmatmul.mubr.msk.bf16.gmra.mxu1 %vm2956_vm0, %v14063_v52 }
 0x30c   :  { %4259 = vmatprep.subr.bf16.mxu0 %v18399_v22  ;;  %4313 = vmatpush1.bf16.msra.mxu1 %v18400_v11  ;;  %v18430_v11 = vld [vmem:[#allocation91_spill] sm:$0xff] }
 0x30d   :  { %4314 = vmatprep.subr.bf16.mxu1 %v18401_v28  ;;  %4332 = vmatprep.mubr.bf16.mxu1 %v18156_v46  ;;  %v18425_v28 = vld [vmem:[#allocation32_spill] sm:$0xff] }
 0x30e   :  { %10046 = vmatmul.mubr.msk.bf16.gmra.mxu0 %vm2956_vm0, %v14063_v52 }
 0x30f   :  { %4260 = vmatpush1.bf16.msra.mxu0 %v18404_v12  ;;  %4279 = vmatprep.mubr.bf16.mxu0 %v18156_v46 }
 0x310   :  { %4261 = vmatprep.subr.bf16.mxu0 %v18405_v53  ;;  %4315 = vmatpush1.bf16.msra.mxu1 %v18406_v36  ;;  %v18424_v36 = vld [vmem:[#allocation87_spill] sm:$0xff] }
 0x311   :  { %4414 = vmatprep.subr.bf16.mxu1 %v18407_v41  ;;  %v14158_v41 = vpop.f32.mrf.mxu0 }
 0x312   :  { %18421 = vst [vmem:[#allocation74_spill] sm:$0xff] %v14158_v41  ;;  %v18428_v41 = vld [vmem:[#allocation45_spill] sm:$0xff] }
 0x313   :  { %4262 = vmatpush1.bf16.msra.mxu0 %v18410_v38  ;;  %10051 = vmatmul.mubr.msk.bf16.vlgmr.msra.gmra.mxu1 %vm2956_vm0, %v14036_v57 }
 0x314   :  { %4361 = vmatprep.subr.bf16.mxu0 %v18411_v8  ;;  %4415 = vmatpush1.bf16.msra.mxu1 %v18412_v25  ;;  %v18419_v25 = vld [vmem:[#allocation90_spill] sm:$0xff] }
 0x315   :  { %4416 = vmatprep.subr.bf16.mxu1 %v18413_v19  ;;  %4342 = vmatprep.mubr.bf16.mxu1 %v18156_v46  ;;  %v14156_v19 = vpop.f32.mrf.mxu1 }
 0x316   :  { %10049 = vmatmul.mubr.msk.bf16.vlgmr.msra.gmra.mxu0 %vm2956_vm0, %v14036_v57  ;;  %18420 = vst [vmem:[#allocation25_spill] sm:$0xff] %v14156_v19  ;;  %v14171_v19 = vpop.f32.mrf.mxu0 }
 0x317   :  { %4362 = vmatpush1.bf16.msra.mxu0 %v18416_v63  ;;  %4289 = vmatprep.mubr.bf16.mxu0 %v18156_v46  ;;  %18427 = vst [vmem:[#allocation62_spill] sm:$0xff] %v14171_v19  ;;  %v18435_v19 = vld [vmem:[#allocation10_spill] sm:$0xff] }
 0x318   :  { %4363 = vmatprep.subr.bf16.mxu0 %v18417_v26  ;;  %4417 = vmatpush1.bf16.msra.mxu1 %v18418_v54  ;;  %v14167_v54 = vpop.f32.mrf.mxu1  ;;  %v14180_v33 = vpop.f32.mrf.mxu0 }
 0x319   :  { %4418 = vmatprep.subr.bf16.mxu1 %v18419_v25  ;;  %18426 = vst [vmem:[#allocation40_spill] sm:$0xff] %v14167_v54  ;;  %v18429_v25 = vld [vmem:[#allocation31_spill] sm:$0xff]  ;;  %18433 = vst [vmem:[#allocation43_spill] sm:$0xff] %v14180_v33  ;;  %v18440_v33 = vld [vmem:[#allocation9_spill] sm:$0xff] }
 0x31a   :  { %v18434_v54 = vld [vmem:[#allocation79_spill] sm:$0xff] }
 0x31b   :  { %4364 = vmatpush1.bf16.msra.mxu0 %v18422_v45  ;;  %10052 = vmatmul.mubr.msk.bf16.gmra.mxu1 %vm2956_vm0, %v14063_v52 }
 0x31c   :  { %4365 = vmatprep.subr.bf16.mxu0 %v18423_v23  ;;  %4419 = vmatpush1.bf16.msra.mxu1 %v18424_v36  ;;  %v18431_v36 = vld [vmem:[#allocation94_spill] sm:$0xff] }
 0x31d   :  { %4420 = vmatprep.subr.bf16.mxu1 %v18425_v28  ;;  %4438 = vmatprep.mubr.bf16.mxu1 %v18156_v46  ;;  %v14178_v28 = vpop.f32.mrf.mxu1 }
 0x31e   :  { %10050 = vmatmul.mubr.msk.bf16.gmra.mxu0 %vm2956_vm0, %v14063_v52  ;;  %18432 = vst [vmem:[#allocation44_spill] sm:$0xff] %v14178_v28  ;;  %v14193_v28 = vpop.f32.mrf.mxu0 }
 0x31f   :  { %4366 = vmatpush1.bf16.msra.mxu0 %v18428_v41  ;;  %4385 = vmatprep.mubr.bf16.mxu0 %v18156_v46  ;;  %v18436_v41 = vld [vmem:[#allocation11_spill] sm:$0xff]  ;;  %18439 = vst [vmem:[#allocation50_spill] sm:$0xff] %v14193_v28  ;;  %v18447_v28 = vld [vmem:[#allocation101_spill] sm:$0xff] }
 0x320   :  { %4367 = vmatprep.subr.bf16.mxu0 %v18429_v25  ;;  %4421 = vmatpush1.bf16.msra.mxu1 %v18430_v11  ;;  %v14189_v11 = vpop.f32.mrf.mxu1  ;;  %v18449_v25 = vld [vmem:[#allocation34_spill] sm:$0xff] }
 0x321   :  { %4520 = vmatprep.subr.bf16.mxu1 %v18431_v36  ;;  %18438 = vst [vmem:[#allocation7_spill] sm:$0xff] %v14189_v11  ;;  %v18441_v36 = vld [vmem:[#allocation97_spill] sm:$0xff]  ;;  %v18446_v11 = vld [vmem:[#allocation84_spill] sm:$0xff] }
 0x323   :  { %4368 = vmatpush1.bf16.msra.mxu0 %v18434_v54  ;;  %10055 = vmatmul.mubr.msk.bf16.vlgmr.msra.gmra.mxu1 %vm2956_vm0, %v14036_v57  ;;  %v14202_v54 = vpop.f32.mrf.mxu0 }
 0x324   :  { %4467 = vmatprep.subr.bf16.mxu0 %v18435_v19  ;;  %4521 = vmatpush1.bf16.msra.mxu1 %v18436_v41  ;;  %v18442_v19 = vld [vmem:[#allocation95_spill] sm:$0xff]  ;;  %v18443_v41 = vld [vmem:[#allocation102_spill] sm:$0xff]  ;;  %18445 = vst [vmem:[#allocation51_spill] sm:$0xff] %v14202_v54  ;;  %v18452_v54 = vld [vmem:[#allocation88_spill] sm:$0xff] }
 0x325   :  { %4522 = vmatprep.subr.bf16.mxu1 %v18437_v62  ;;  %4448 = vmatprep.mubr.bf16.mxu1 %v18156_v46  ;;  %v14200_v62 = vpop.f32.mrf.mxu1 }
 0x326   :  { %10053 = vmatmul.mubr.msk.bf16.vlgmr.msra.gmra.mxu0 %vm2956_vm0, %v14036_v57  ;;  %18444 = vst [vmem:[#allocation61_spill] sm:$0xff] %v14200_v62  ;;  %v14215_v62 = vpop.f32.mrf.mxu0 }
 0x327   :  { %4468 = vmatpush1.bf16.msra.mxu0 %v18440_v33  ;;  %4395 = vmatprep.mubr.bf16.mxu0 %v18156_v46  ;;  %v18448_v33 = vld [vmem:[#allocation99_spill] sm:$0xff]  ;;  %18451 = vst [vmem:[#allocation53_spill] sm:$0xff] %v14215_v62  ;;  %v18459_v62 = vld [vmem:[#allocation106_spill] sm:$0xff] }
 0x328   :  { %4469 = vmatprep.subr.bf16.mxu0 %v18441_v36  ;;  %4523 = vmatpush1.bf16.msra.mxu1 %v18442_v19  ;;  %v14211_v19 = vpop.f32.mrf.mxu1  ;;  %v18461_v36 = vld [vmem:[#allocation111_spill] sm:$0xff] }
 0x329   :  { %4524 = vmatprep.subr.bf16.mxu1 %v18443_v41  ;;  %18450 = vst [vmem:[#allocation27_spill] sm:$0xff] %v14211_v19  ;;  %v18453_v41 = vld [vmem:[#allocation33_spill] sm:$0xff] }
 0x32a   :  { %v18458_v19 = vld [vmem:[#allocation93_spill] sm:$0xff] }
 0x32b   :  { %4470 = vmatpush1.bf16.msra.mxu0 %v18446_v11  ;;  %10056 = vmatmul.mubr.msk.bf16.gmra.mxu1 %vm2956_vm0, %v14063_v52  ;;  %v14224_v11 = vpop.f32.mrf.mxu0 }
 0x32c   :  { %4471 = vmatprep.subr.bf16.mxu0 %v18447_v28  ;;  %4525 = vmatpush1.bf16.msra.mxu1 %v18448_v33  ;;  %v18454_v28 = vld [vmem:[#allocation103_spill] sm:$0xff]  ;;  %18457 = vst [vmem:[#allocation68_spill] sm:$0xff] %v14224_v11  ;;  %v18464_v11 = vld [vmem:[#allocation12_spill] sm:$0xff] }
 0x32d   :  { %4526 = vmatprep.subr.bf16.mxu1 %v18449_v25  ;;  %4544 = vmatprep.mubr.bf16.mxu1 %v18156_v46  ;;  %v18455_v33 = vld [vmem:[#allocation107_spill] sm:$0xff]  ;;  %v14222_v25 = vpop.f32.mrf.mxu1 }
 0x32e   :  { %10054 = vmatmul.mubr.msk.bf16.gmra.mxu0 %vm2956_vm0, %v14063_v52  ;;  %18456 = vst [vmem:[#allocation81_spill] sm:$0xff] %v14222_v25  ;;  %v14237_v25 = vpop.f32.mrf.mxu0 }
 0x32f   :  { %4472 = vmatpush1.bf16.msra.mxu0 %v18452_v54  ;;  %4491 = vmatprep.mubr.bf16.mxu0 %v18156_v46  ;;  %v18460_v54 = vld [vmem:[#allocation13_spill] sm:$0xff]  ;;  %18463 = vst [vmem:[#allocation26_spill] sm:$0xff] %v14237_v25  ;;  %v18471_v25 = vld [vmem:[#allocation114_spill] sm:$0xff] }
 0x330   :  { %4473 = vmatprep.subr.bf16.mxu0 %v18453_v41  ;;  %4527 = vmatpush1.bf16.msra.mxu1 %v18454_v28  ;;  %v14233_v28 = vpop.f32.mrf.mxu1  ;;  %v18473_v41 = vld [vmem:[#allocation36_spill] sm:$0xff] }
 0x331   :  { %4626 = vmatprep.subr.bf16.mxu1 %v18455_v33  ;;  %18462 = vst [vmem:[#allocation85_spill] sm:$0xff] %v14233_v28  ;;  %v18465_v33 = vld [vmem:[#allocation110_spill] sm:$0xff]  ;;  %v18470_v28 = vld [vmem:[#allocation96_spill] sm:$0xff] }
 0x333   :  { %4474 = vmatpush1.bf16.msra.mxu0 %v18458_v19  ;;  %10059 = vmatmul.mubr.msk.bf16.vlgmr.msra.gmra.mxu1 %vm2956_vm0, %v14036_v57  ;;  %v14246_v19 = vpop.f32.mrf.mxu0 }
 0x334   :  { %4573 = vmatprep.subr.bf16.mxu0 %v18459_v62  ;;  %4627 = vmatpush1.bf16.msra.mxu1 %v18460_v54  ;;  %v18466_v62 = vld [vmem:[#allocation108_spill] sm:$0xff]  ;;  %v18467_v54 = vld [vmem:[#allocation115_spill] sm:$0xff]  ;;  %18469 = vst [vmem:[#allocation200_spill] sm:$0xff] %v14246_v19 }
 0x335   :  { %4628 = vmatprep.subr.bf16.mxu1 %v18461_v36  ;;  %4554 = vmatprep.mubr.bf16.mxu1 %v18156_v46  ;;  %v14244_v36 = vpop.f32.mrf.mxu1  ;;  %v18476_v19 = vld [vmem:[#allocation100_spill] sm:$0xff] }
 0x336   :  { %10057 = vmatmul.mubr.msk.bf16.vlgmr.msra.gmra.mxu0 %vm2956_vm0, %v14036_v57  ;;  %18468 = vst [vmem:[#allocation89_spill] sm:$0xff] %v14244_v36  ;;  %v14259_v36 = vpop.f32.mrf.mxu0 }
 0x337   :  { %4574 = vmatpush1.bf16.msra.mxu0 %v18464_v11  ;;  %4501 = vmatprep.mubr.bf16.mxu0 %v18156_v46  ;;  %v18472_v11 = vld [vmem:[#allocation112_spill] sm:$0xff]  ;;  %18475 = vst [vmem:[#allocation202_spill] sm:$0xff] %v14259_v36 }
 0x338   :  { %4575 = vmatprep.subr.bf16.mxu0 %v18465_v33  ;;  %4629 = vmatpush1.bf16.msra.mxu1 %v18466_v62  ;;  %v14255_v62 = vpop.f32.mrf.mxu1  ;;  %v18483_v36 = vld [vmem:[#allocation16_spill] sm:$0xff]  ;;  %v18485_v33 = vld [vmem:[#allocation122_spill] sm:$0xff] }
 0x339   :  { %4630 = vmatprep.subr.bf16.mxu1 %v18467_v54  ;;  %18474 = vst [vmem:[#allocation201_spill] sm:$0xff] %v14255_v62  ;;  %v18477_v54 = vld [vmem:[#allocation35_spill] sm:$0xff]  ;;  %v18482_v62 = vld [vmem:[#allocation92_spill] sm:$0xff] }
 0x33b   :  { %4576 = vmatpush1.bf16.msra.mxu0 %v18470_v28  ;;  %10060 = vmatmul.mubr.msk.bf16.gmra.mxu1 %vm2956_vm0, %v14063_v52  ;;  %v14268_v28 = vpop.f32.mrf.mxu0 }
 0x33c   :  { %4577 = vmatprep.subr.bf16.mxu0 %v18471_v25  ;;  %4631 = vmatpush1.bf16.msra.mxu1 %v18472_v11  ;;  %v18478_v25 = vld [vmem:[#allocation116_spill] sm:$0xff]  ;;  %v18479_v11 = vld [vmem:[#allocation105_spill] sm:$0xff]  ;;  %18481 = vst [vmem:[#allocation204_spill] sm:$0xff] %v14268_v28  ;;  %v18488_v28 = vld [vmem:[#allocation14_spill] sm:$0xff] }
 0x33d   :  { %4632 = vmatprep.subr.bf16.mxu1 %v18473_v41  ;;  %4650 = vmatprep.mubr.bf16.mxu1 %v18156_v46  ;;  %v14266_v41 = vpop.f32.mrf.mxu1 }
 0x33e   :  { %10058 = vmatmul.mubr.msk.bf16.gmra.mxu0 %vm2956_vm0, %v14063_v52  ;;  %18480 = vst [vmem:[#allocation203_spill] sm:$0xff] %v14266_v41  ;;  %v14281_v41 = vpop.f32.mrf.mxu0 }
 0x33f   :  { %4578 = vmatpush1.bf16.msra.mxu0 %v18476_v19  ;;  %4597 = vmatprep.mubr.bf16.mxu0 %v18156_v46  ;;  %v18484_v19 = vld [vmem:[#allocation104_spill] sm:$0xff]  ;;  %18487 = vst [vmem:[#allocation206_spill] sm:$0xff] %v14281_v41  ;;  %v18495_v41 = vld [vmem:[#allocation125_spill] sm:$0xff] }
 0x340   :  { %4579 = vmatprep.subr.bf16.mxu0 %v18477_v54  ;;  %4633 = vmatpush1.bf16.msra.mxu1 %v18478_v25  ;;  %v14277_v25 = vpop.f32.mrf.mxu1  ;;  %v18497_v54 = vld [vmem:[#allocation18_spill] sm:$0xff] }
 0x341   :  { %4732 = vmatprep.subr.bf16.mxu1 %v18479_v11  ;;  %18486 = vst [vmem:[#allocation205_spill] sm:$0xff] %v14277_v25  ;;  %v18489_v11 = vld [vmem:[#allocation121_spill] sm:$0xff] }
 0x342   :  { %v18494_v25 = vld [vmem:[#allocation109_spill] sm:$0xff] }
 0x343   :  { %4580 = vmatpush1.bf16.msra.mxu0 %v18482_v62  ;;  %10063 = vmatmul.mubr.msk.bf16.vlgmr.msra.gmra.mxu1 %vm2956_vm0, %v14036_v57  ;;  %v14290_v62 = vpop.f32.mrf.mxu0 }
 0x344   :  { %4679 = vmatprep.subr.bf16.mxu0 %v18483_v36  ;;  %4733 = vmatpush1.bf16.msra.mxu1 %v18484_v19  ;;  %v18490_v36 = vld [vmem:[#allocation119_spill] sm:$0xff]  ;;  %v18491_v19 = vld [vmem:[#allocation126_spill] sm:$0xff]  ;;  %18493 = vst [vmem:[#allocation208_spill] sm:$0xff] %v14290_v62  ;;  %v18500_v62 = vld [vmem:[#allocation113_spill] sm:$0xff] }
 0x345   :  { %4734 = vmatprep.subr.bf16.mxu1 %v18485_v33  ;;  %4660 = vmatprep.mubr.bf16.mxu1 %v18156_v46  ;;  %v14288_v33 = vpop.f32.mrf.mxu1 }
 0x346   :  { %10061 = vmatmul.mubr.msk.bf16.vlgmr.msra.gmra.mxu0 %vm2956_vm0, %v14036_v57  ;;  %18492 = vst [vmem:[#allocation207_spill] sm:$0xff] %v14288_v33  ;;  %v14303_v33 = vpop.f32.mrf.mxu0 }
 0x347   :  { %4680 = vmatpush1.bf16.msra.mxu0 %v18488_v28  ;;  %4607 = vmatprep.mubr.bf16.mxu0 %v18156_v46  ;;  %v18496_v28 = vld [vmem:[#allocation123_spill] sm:$0xff]  ;;  %18499 = vst [vmem:[#allocation210_spill] sm:$0xff] %v14303_v33  ;;  %v18507_v33 = vld [vmem:[#allocation129_spill] sm:$0xff] }
 0x348   :  { %4681 = vmatprep.subr.bf16.mxu0 %v18489_v11  ;;  %4735 = vmatpush1.bf16.msra.mxu1 %v18490_v36  ;;  %v14299_v36 = vpop.f32.mrf.mxu1  ;;  %v18509_v11 = vld [vmem:[#allocation134_spill] sm:$0xff] }
 0x349   :  { %4736 = vmatprep.subr.bf16.mxu1 %v18491_v19  ;;  %18498 = vst [vmem:[#allocation209_spill] sm:$0xff] %v14299_v36  ;;  %v18501_v19 = vld [vmem:[#allocation37_spill] sm:$0xff]  ;;  %v18506_v36 = vld [vmem:[#allocation118_spill] sm:$0xff] }
 0x34b   :  { %4682 = vmatpush1.bf16.msra.mxu0 %v18494_v25  ;;  %10064 = vmatmul.mubr.msk.bf16.gmra.mxu1 %vm2956_vm0, %v14063_v52  ;;  %v14312_v25 = vpop.f32.mrf.mxu0 }
 0x34c   :  { %4683 = vmatprep.subr.bf16.mxu0 %v18495_v41  ;;  %4737 = vmatpush1.bf16.msra.mxu1 %v18496_v28  ;;  %v18502_v41 = vld [vmem:[#allocation127_spill] sm:$0xff]  ;;  %v18503_v28 = vld [vmem:[#allocation130_spill] sm:$0xff]  ;;  %18505 = vst [vmem:[#allocation212_spill] sm:$0xff] %v14312_v25 }
 0x34d   :  { %4738 = vmatprep.subr.bf16.mxu1 %v18497_v54  ;;  %4756 = vmatprep.mubr.bf16.mxu1 %v18156_v46  ;;  %v14310_v54 = vpop.f32.mrf.mxu1  ;;  %v18512_v25 = vld [vmem:[#allocation15_spill] sm:$0xff] }
 0x34e   :  { %10062 = vmatmul.mubr.msk.bf16.gmra.mxu0 %vm2956_vm0, %v14063_v52  ;;  %18504 = vst [vmem:[#allocation211_spill] sm:$0xff] %v14310_v54  ;;  %v14325_v54 = vpop.f32.mrf.mxu0 }
 0x34f   :  { %4684 = vmatpush1.bf16.msra.mxu0 %v18500_v62  ;;  %4703 = vmatprep.mubr.bf16.mxu0 %v18156_v46  ;;  %v18508_v62 = vld [vmem:[#allocation17_spill] sm:$0xff]  ;;  %18511 = vst [vmem:[#allocation214_spill] sm:$0xff] %v14325_v54 }
 0x350   :  { %4685 = vmatprep.subr.bf16.mxu0 %v18501_v19  ;;  %4739 = vmatpush1.bf16.msra.mxu1 %v18502_v41  ;;  %v14321_v41 = vpop.f32.mrf.mxu1  ;;  %v18519_v54 = vld [vmem:[#allocation137_spill] sm:$0xff] }
 0x351   :  { %4838 = vmatprep.subr.bf16.mxu1 %v18503_v28  ;;  %18510 = vst [vmem:[#allocation213_spill] sm:$0xff] %v14321_v41  ;;  %v18513_v28 = vld [vmem:[#allocation133_spill] sm:$0xff]  ;;  %v18518_v41 = vld [vmem:[#allocation120_spill] sm:$0xff] }
 0x352   :  { %v18521_v19 = vld [vmem:[#allocation5_spill] sm:$0xff] }
 0x353   :  { %4686 = vmatpush1.bf16.msra.mxu0 %v18506_v36  ;;  %10067 = vmatmul.mubr.msk.bf16.vlgmr.msra.gmra.mxu1 %vm2956_vm0, %v14036_v57  ;;  %v14334_v36 = vpop.f32.mrf.mxu0 }
 0x354   :  { %4785 = vmatprep.subr.bf16.mxu0 %v18507_v33  ;;  %4839 = vmatpush1.bf16.msra.mxu1 %v18508_v62  ;;  %v18514_v33 = vld [vmem:[#allocation131_spill] sm:$0xff]  ;;  %v18515_v62 = vld [vmem:[#allocation138_spill] sm:$0xff]  ;;  %18517 = vst [vmem:[#allocation215_spill] sm:$0xff] %v14334_v36  ;;  %v18524_v36 = vld [vmem:[#allocation124_spill] sm:$0xff] }
 0x355   :  { %4840 = vmatprep.subr.bf16.mxu1 %v18509_v11  ;;  %4766 = vmatprep.mubr.bf16.mxu1 %v18156_v46  ;;  %v14332_v11 = vpop.f32.mrf.mxu1 }
 0x356   :  { %10065 = vmatmul.mubr.msk.bf16.vlgmr.msra.gmra.mxu0 %vm2956_vm0, %v14036_v57  ;;  %18516 = vst [vmem:[#allocation133_spill] sm:$0xff] %v14332_v11  ;;  %v14347_v11 = vpop.f32.mrf.mxu0 }
 0x357   :  { %4786 = vmatpush1.bf16.msra.mxu0 %v18512_v25  ;;  %4713 = vmatprep.mubr.bf16.mxu0 %v18156_v46  ;;  %v18520_v25 = vld [vmem:[#allocation135_spill] sm:$0xff]  ;;  %18523 = vst [vmem:[#allocation217_spill] sm:$0xff] %v14347_v11  ;;  %v18530_v11 = vld [vmem:[#allocation20_spill] sm:$0xff] }
 0x358   :  { %4787 = vmatprep.subr.bf16.mxu0 %v18513_v28  ;;  %4841 = vmatpush1.bf16.msra.mxu1 %v18514_v33  ;;  %v14343_v33 = vpop.f32.mrf.mxu1 }
 0x359   :  { %4842 = vmatprep.subr.bf16.mxu1 %v18515_v62  ;;  %18522 = vst [vmem:[#allocation216_spill] sm:$0xff] %v14343_v33  ;;  %v18525_v62 = vld [vmem:[#allocation39_spill] sm:$0xff]  ;;  %v18529_v33 = vld [vmem:[#allocation117_spill] sm:$0xff] }
 0x35b   :  { %4788 = vmatpush1.bf16.msra.mxu0 %v18518_v41  ;;  %10068 = vmatmul.mubr.msk.bf16.gmra.mxu1 %vm2956_vm0, %v14063_v52  ;;  %v18532_v41 = vld [vmem:[#allocation143_spill] sm:$0xff] }
 0x35c   :  { %4789 = vmatprep.subr.bf16.mxu0 %v18519_v54  ;;  %4843 = vmatpush1.bf16.msra.mxu1 %v18520_v25  ;;  %v18526_v54 = vld [vmem:[#allocation139_spill] sm:$0xff]  ;;  %v14356_v25 = vpop.f32.mrf.mxu0 }
 0x35d   :  { %4844 = vmatprep.subr.bf16.mxu1 %v18521_v19  ;;  %4862 = vmatprep.mubr.bf16.mxu1 %v18156_v46  ;;  %v14354_v19 = vpop.f32.mrf.mxu1  ;;  %18528 = vst [vmem:[#allocation218_spill] sm:$0xff] %v14356_v25  ;;  %v18535_v25 = vld [vmem:[#allocation19_spill] sm:$0xff] }
 0x35e   :  { %10066 = vmatmul.mubr.msk.bf16.gmra.mxu0 %vm2956_vm0, %v14063_v52  ;;  %18527 = vst [vmem:[#allocation39_spill] sm:$0xff] %v14354_v19  ;;  %v14369_v19 = vpop.f32.mrf.mxu0 }
 0x35f   :  { %4790 = vmatpush1.bf16.msra.mxu0 %v18524_v36  ;;  %4809 = vmatprep.mubr.bf16.mxu0 %v18156_v46  ;;  %v18531_v36 = vld [vmem:[#allocation42_spill] sm:$0xff]  ;;  %18534 = vst [vmem:[#allocation219_spill] sm:$0xff] %v14369_v19  ;;  %v18541_v19 = vld [vmem:[#allocation148_spill] sm:$0xff] }
 0x360   :  { %4791 = vmatprep.subr.bf16.mxu0 %v18525_v62  ;;  %4845 = vmatpush1.bf16.msra.mxu1 %v18526_v54  ;;  %v14365_v54 = vpop.f32.mrf.mxu1 }
 0x361   :  { %4944 = vmatprep.subr.bf16.mxu1 %v13486_v5  ;;  %18533 = vst [vmem:[#allocation117_spill] sm:$0xff] %v14365_v54  ;;  %v18536_v5 = vld [vmem:[#allocation142_spill] sm:$0xff]  ;;  %v18540_v54 = vld [vmem:[#allocation132_spill] sm:$0xff] }
 0x363   :  { %4792 = vmatpush1.bf16.msra.mxu0 %v18529_v33  ;;  %10071 = vmatmul.mubr.msk.bf16.vlgmr.msra.gmra.mxu1 %vm2956_vm0, %v14036_v57 }
 0x364   :  { %4891 = vmatprep.subr.bf16.mxu0 %v18530_v11  ;;  %4945 = vmatpush1.bf16.msra.mxu1 %v18531_v36  ;;  %v18537_v11 = vld [vmem:[#allocation128_spill] sm:$0xff]  ;;  %v14378_v36 = vpop.f32.mrf.mxu0 }
 0x365   :  { %4946 = vmatprep.subr.bf16.mxu1 %v18532_v41  ;;  %4872 = vmatprep.mubr.bf16.mxu1 %v18156_v46  ;;  %v14376_v41 = vpop.f32.mrf.mxu1  ;;  %18539 = vst [vmem:[#allocation142_spill] sm:$0xff] %v14378_v36  ;;  %v18544_v36 = vld [vmem:[#allocation136_spill] sm:$0xff] }
 0x366   :  { %10069 = vmatmul.mubr.msk.bf16.vlgmr.msra.gmra.mxu0 %vm2956_vm0, %v14036_v57  ;;  %18538 = vst [vmem:[#allocation19_spill] sm:$0xff] %v14376_v41  ;;  %v14391_v41 = vpop.f32.mrf.mxu0 }
 0x367   :  { %4892 = vmatpush1.bf16.msra.mxu0 %v18535_v25  ;;  %4819 = vmatprep.mubr.bf16.mxu0 %v18156_v46  ;;  %18543 = vst [vmem:[#allocation220_spill] sm:$0xff] %v14391_v41 }
 0x368   :  { %4893 = vmatprep.subr.bf16.mxu0 %v18536_v5  ;;  %4947 = vmatpush1.bf16.msra.mxu1 %v18537_v11  ;;  %v14387_v11 = vpop.f32.mrf.mxu1 }
 0x369   :  { %4948 = vmatprep.subr.bf16.mxu1 %v13653_v39  ;;  %18542 = vst [vmem:[#allocation132_spill] sm:$0xff] %v14387_v11  ;;  %v18545_v39 = vld [vmem:[#allocation168_spill] sm:$0xff]  ;;  %v18549_v11 = vld [vmem:[#allocation3_spill] sm:$0xff] }
 0x36b   :  { %4894 = vmatpush1.bf16.msra.mxu0 %v18540_v54  ;;  %10072 = vmatmul.mubr.msk.bf16.gmra.mxu1 %vm2956_vm0, %v14063_v52 }
 0x36c   :  { %4895 = vmatprep.subr.bf16.mxu0 %v13627_v0  ;;  %4949 = vmatpush1.bf16.msra.mxu1 %v18541_v19  ;;  %v18546_v0 = vld [vmem:[#allocation166_spill] sm:$0xff]  ;;  %v14400_v19 = vpop.f32.mrf.mxu0 }
 0x36d   :  { %4950 = vmatprep.subr.bf16.mxu1 %v13749_v27  ;;  %4968 = vmatprep.mubr.bf16.mxu1 %v18156_v46  ;;  %v14398_v27 = vpop.f32.mrf.mxu1  ;;  %18548 = vst [vmem:[#allocation168_spill] sm:$0xff] %v14400_v19  ;;  %v18552_v19 = vld [vmem:[#allocation38_spill] sm:$0xff] }
 0x36e   :  { %10070 = vmatmul.mubr.msk.bf16.gmra.mxu0 %vm2956_vm0, %v14063_v52  ;;  %18547 = vst [vmem:[#allocation136_spill] sm:$0xff] %v14398_v27  ;;  %v14413_v27 = vpop.f32.mrf.mxu0 }
 0x36f   :  { %4896 = vmatpush1.bf16.msra.mxu0 %v18544_v36  ;;  %4915 = vmatprep.mubr.bf16.mxu0 %v18156_v46  ;;  %v14409_v41 = vpop.f32.mrf.mxu1  ;;  %18551 = vst [vmem:[#allocation221_spill] sm:$0xff] %v14413_v27 }
 0x370   :  { %4897 = vmatprep.subr.bf16.mxu0 %v18545_v39  ;;  %4951 = vmatpush1.bf16.msra.mxu1 %v18546_v0  ;;  %18550 = vst [vmem:[#allocation3_spill] sm:$0xff] %v14409_v41  ;;  %v14422_v0 = vpop.f32.mrf.mxu0  ;;  %v18555_v41 = vld [vmem:[#allocation141_spill] sm:$0xff] }
 0x371   :  { %10311 = vmatprep.subr.bf16.mxu1 %v13782_v37  ;;  %18554 = vst [vmem:[#allocation222_spill] sm:$0xff] %v14422_v0 }
 0x372   :  { %v14436_v0 = vpop.f32.mrf.mxu0 }
 0x373   :  { %4898 = vmatpush1.bf16.msra.mxu0 %v18549_v11  ;;  %10075 = vmatmul.mubr.msk.bf16.vlgmr.msra.gmra.mxu1 %vm2956_vm0, %v14036_v57  ;;  %18557 = vst [vmem:[#allocation223_spill] sm:$0xff] %v14436_v0 }
 0x374   :  { %4997 = vmatprep.subr.bf16.mxu0 %v13825_v56  ;;  %10312 = vmatpush3.bf16.msra.mxu1 %v13782_v37  ;;  %v14420_v37 = vpop.f32.mrf.mxu1 }
 0x375   :  { %10313 = vmatprep.subr.bf16.mxu1 %v13858_v24  ;;  %4978 = vmatprep.mubr.bf16.mxu1 %v18156_v46  ;;  %18553 = vst [vmem:[#allocation38_spill] sm:$0xff] %v14420_v37  ;;  %v18558_v37 = vld [vmem:[#allocation153_spill] sm:$0xff] }
 0x376   :  { %10073 = vmatmul.mubr.msk.bf16.vlgmr.msra.gmra.mxu0 %vm2956_vm0, %v14036_v57  ;;  %v14432_v27 = vpop.f32.mrf.mxu1 }
 0x377   :  { %4998 = vmatpush1.bf16.msra.mxu0 %v18552_v19  ;;  %4925 = vmatprep.mubr.bf16.mxu0 %v18156_v46  ;;  %18556 = vst [vmem:[#allocation141_spill] sm:$0xff] %v14432_v27  ;;  %v18561_v27 = vld [vmem:[#allocation140_spill] sm:$0xff] }
 0x378   :  { %4999 = vmatprep.subr.bf16.mxu0 %v13894_v43  ;;  %10314 = vmatpush3.bf16.msra.mxu1 %v13858_v24  ;;  %v14445_v24 = vpop.f32.mrf.mxu0 }
 0x379   :  { %10315 = vmatprep.subr.bf16.mxu1 %v13916_v34  ;;  %18560 = vst [vmem:[#allocation224_spill] sm:$0xff] %v14445_v24  ;;  %v18642_v24 = vld [vmem:[#allocation125_spill] sm:$0xff] }
 0x37b   :  { %5000 = vmatpush1.bf16.msra.mxu0 %v18555_v41  ;;  %10076 = vmatmul.mubr.msk.bf16.gmra.mxu1 %vm2956_vm0, %v14063_v52 }
 0x37c   :  { %5001 = vmatprep.subr.bf16.mxu0 %v13952_v29  ;;  %10316 = vmatpush3.bf16.msra.mxu1 %v13916_v34  ;;  %v14443_v34 = vpop.f32.mrf.mxu1 }
 0x37d   :  { %10317 = vmatprep.subr.bf16.mxu1 %v13974_v20  ;;  %10319 = vmatprep.mubr.msk.bf16.mxu1 %vm2956_vm0, %v14036_v57  ;;  %18559 = vst [vmem:[#allocation153_spill] sm:$0xff] %v14443_v34 }
 0x37e   :  { %10074 = vmatmul.mubr.msk.bf16.gmra.mxu0 %vm2956_vm0, %v14063_v52  ;;  %v14454_v0 = vpop.f32.mrf.mxu1 }
 0x37f   :  { %5002 = vmatpush1.bf16.msra.mxu0 %v18558_v37  ;;  %5021 = vmatprep.mubr.bf16.mxu0 %v18156_v46  ;;  %18562 = vst [vmem:[#allocation140_spill] sm:$0xff] %v14454_v0  ;;  %v18640_v0 = vld [vmem:[#allocation109_spill] sm:$0xff] }
 0x380   :  { %5003 = vmatprep.subr.bf16.mxu0 %v13992_v13  ;;  %10318 = vmatpush3.bf16.msra.mxu1 %v13974_v20 }
 0x381   :  { %5173 = vmatprep.subr.bf16.mxu1 %v18363_v35  ;;  %v14458_v35 = vpop.f32.mrf.mxu0 }
 0x382   :  { %18563 = vst [vmem:[#allocation225_spill] sm:$0xff] %v14458_v35  ;;  %v18634_v35 = vld [vmem:[#allocation121_spill] sm:$0xff] }
 0x383   :  { %5004 = vmatpush1.bf16.msra.mxu0 %v18561_v27  ;;  %10320 = vmatmul.mubr.msk.bf16.vlgmr.msra.gmra.mxu1 %vm2956_vm0, %v14063_v52 }
 0x384   :  { %5120 = vmatprep.subr.bf16.mxu0 %v18340_v18  ;;  %5174 = vmatpush1.bf16.msra.mxu1 %v18368_v7  ;;  %v14465_v18 = vpop.f32.mrf.mxu1 }
 0x385   :  { %5175 = vmatprep.subr.bf16.mxu1 %v18369_v55  ;;  %5197 = vmatprep.mubr.bf16.mxu1 %v18156_v46  ;;  %18564 = vst [vmem:[#allocation226_spill] sm:$0xff] %v14465_v18  ;;  %v14467_v55 = vpop.f32.mrf.mxu0 }
 0x386   :  { %10077 = vmatmul.mubr.msk.bf16.vlgmr.msra.gmra.mxu0 %vm2956_vm0, %v14036_v57  ;;  %18565 = vst [vmem:[#allocation227_spill] sm:$0xff] %v14467_v55  ;;  %v18595_v57 = vld [vmem:[#allocation10_spill] sm:$0xff]  ;;  %v18631_v55 = vld [vmem:[#allocation107_spill] sm:$0xff] }
 0x387   :  { %5121 = vmatpush1.bf16.msra.mxu0 %v18344_v21  ;;  %5031 = vmatprep.mubr.bf16.mxu0 %v18156_v46  ;;  %v14473_v21 = vpop.f32.mrf.mxu1 }
 0x388   :  { %5122 = vmatprep.subr.bf16.mxu0 %v18345_v6  ;;  %5176 = vmatpush1.bf16.msra.mxu1 %v18374_v31  ;;  %18566 = vst [vmem:[#allocation228_spill] sm:$0xff] %v14473_v21  ;;  %v14477_v6 = vpop.f32.mrf.mxu0 }
 0x389   :  { %5177 = vmatprep.subr.bf16.mxu1 %v18375_v58  ;;  %18567 = vst [vmem:[#allocation229_spill] sm:$0xff] %v14477_v6  ;;  %v14511_v58 = vld [vmem:[%s17463_s3 + $0x28] sm:$0xff]  }
 0x38b   :  { %5123 = vmatpush1.bf16.msra.mxu0 %v18349_v10  ;;  %v14484_v10 = vld [vmem:[%s17463_s3 + $0x20] sm:$0xff]  }
 0x38c   :  { %5124 = vmatprep.subr.bf16.mxu0 %v18350_v51  ;;  %5178 = vmatpush1.bf16.msra.mxu1 %v18380_v49  ;;  %v14491_v49 = vpop.f32.mrf.mxu0 }
 0x38d   :  { %5179 = vmatprep.subr.bf16.mxu1 %v18381_v30  ;;  %v14489_v30 = vpop.f32.mrf.mxu1  ;;  %18569 = vst [vmem:[#allocation231_spill] sm:$0xff] %v14491_v49  ;;  %v18628_v49 = vld [vmem:[#allocation92_spill] sm:$0xff] }
 0x38e   :  { %10078 = vmatmul.mubr.msk.bf16.gmra.mxu0 %vm2956_vm0, %v14063_v52  ;;  %18568 = vst [vmem:[#allocation230_spill] sm:$0xff] %v14489_v30  ;;  %v14504_v51 = vpop.f32.mrf.mxu0  ;;  %v18630_v30 = vld [vmem:[#allocation103_spill] sm:$0xff] }
 0x38f   :  { %5125 = vmatpush1.bf16.msra.mxu0 %v18354_v47  ;;  %5144 = vmatprep.mubr.bf16.mxu0 %v18156_v46  ;;  %18571 = vst [vmem:[#allocation233_spill] sm:$0xff] %v14504_v51  ;;  %v18625_v51 = vld [vmem:[#allocation35_spill] sm:$0xff] }
 0x390   :  { %5126 = vmatprep.subr.bf16.mxu0 %v18355_v48  ;;  %5180 = vmatpush1.bf16.msra.mxu1 %v18386_v60  ;;  %v14500_v60 = vpop.f32.mrf.mxu1  ;;  %v18592_v48 = vld [vmem:[#allocation80_spill] sm:$0xff] }
 0x391   :  { %5279 = vmatprep.subr.bf16.mxu1 %v18387_v14  ;;  %18570 = vst [vmem:[#allocation232_spill] sm:$0xff] %v14500_v60  ;;  %v18600_v14 = vld [vmem:[#allocation9_spill] sm:$0xff]  ;;  %v18629_v60 = vld [vmem:[#allocation16_spill] sm:$0xff] }
 0x393   :  { %5127 = vmatpush1.bf16.msra.mxu0 %v18359_v42  ;;  %10089 = vmatmul.mubr.msk.bf16.vlgmr.msra.gmra.mxu1 %vm2956_vm0, %v14484_v10 }
 0x394   :  { %5226 = vmatprep.subr.bf16.mxu0 %v18360_v2  ;;  %5280 = vmatpush1.bf16.msra.mxu1 %v18392_v15  ;;  %v14518_v15 = vpop.f32.mrf.mxu0  ;;  %v18597_v2 = vld [vmem:[#allocation78_spill] sm:$0xff] }
 0x395   :  { %5281 = vmatprep.subr.bf16.mxu1 %v18393_v59  ;;  %5207 = vmatprep.mubr.bf16.mxu1 %v18156_v46  ;;  %v14516_v59 = vpop.f32.mrf.mxu1  ;;  %18573 = vst [vmem:[#allocation235_spill] sm:$0xff] %v14518_v15 }
 0x396   :  { %10087 = vmatmul.mubr.msk.bf16.vlgmr.msra.gmra.mxu0 %vm2956_vm0, %v14484_v10  ;;  %18572 = vst [vmem:[#allocation234_spill] sm:$0xff] %v14516_v59 }
 0x397   :  { %5227 = vmatpush1.bf16.msra.mxu0 %v18364_v4  ;;  %5154 = vmatprep.mubr.bf16.mxu0 %v18156_v46  ;;  %v14526_v47 = vpop.f32.mrf.mxu1 }
 0x398   :  { %5228 = vmatprep.subr.bf16.mxu0 %v18365_v16  ;;  %5282 = vmatpush1.bf16.msra.mxu1 %v18398_v50  ;;  %18574 = vst [vmem:[#allocation236_spill] sm:$0xff] %v14526_v47  ;;  %v14531_v50 = vpop.f32.mrf.mxu0  ;;  %v18599_v16 = vld [vmem:[#allocation82_spill] sm:$0xff] }
 0x399   :  { %5283 = vmatprep.subr.bf16.mxu1 %v18399_v22  ;;  %18575 = vst [vmem:[#allocation237_spill] sm:$0xff] %v14531_v50  ;;  %v18622_v50 = vld [vmem:[#allocation95_spill] sm:$0xff]  ;;  %v18623_v47 = vld [vmem:[#allocation102_spill] sm:$0xff] }
 0x39b   :  { %5229 = vmatpush1.bf16.msra.mxu0 %v18370_v44  ;;  %10090 = vmatmul.mubr.msk.bf16.gmra.mxu1 %vm2956_vm0, %v14511_v58  ;;  %v18593_v44 = vld [vmem:[#allocation79_spill] sm:$0xff] }
 0x39c   :  { %5230 = vmatprep.subr.bf16.mxu0 %v18371_v32  ;;  %5284 = vmatpush1.bf16.msra.mxu1 %v18404_v12  ;;  %v14537_v12 = vpop.f32.mrf.mxu1 }
 0x39d   :  { %5285 = vmatprep.subr.bf16.mxu1 %v18405_v53  ;;  %5303 = vmatprep.mubr.bf16.mxu1 %v18156_v46  ;;  %18576 = vst [vmem:[#allocation238_spill] sm:$0xff] %v14537_v12  ;;  %v14540_v53 = vpop.f32.mrf.mxu0 }
 0x39e   :  { %10088 = vmatmul.mubr.msk.bf16.gmra.mxu0 %vm2956_vm0, %v14511_v58  ;;  %18577 = vst [vmem:[#allocation239_spill] sm:$0xff] %v14540_v53  ;;  %v18621_v53 = vld [vmem:[#allocation114_spill] sm:$0xff] }
 0x39f   :  { %5231 = vmatpush1.bf16.msra.mxu0 %v18376_v3  ;;  %5250 = vmatprep.mubr.bf16.mxu0 %v18156_v46  ;;  %v18590_v3 = vld [vmem:[#allocation8_spill] sm:$0xff] }
 0x3a0   :  { %5232 = vmatprep.subr.bf16.mxu0 %v18377_v9  ;;  %5286 = vmatpush1.bf16.msra.mxu1 %v18410_v38  ;;  %v18586_v9 = vld [vmem:[#allocation45_spill] sm:$0xff] }
 0x3a1   :  { %5385 = vmatprep.subr.bf16.mxu1 %v18411_v8 }
 0x3a3   :  { %5233 = vmatpush1.bf16.msra.mxu0 %v18382_v40  ;;  %10093 = vmatmul.mubr.msk.bf16.vlgmr.msra.gmra.mxu1 %vm2956_vm0, %v14484_v10  ;;  %v14547_v22 = vpop.f32.mrf.mxu1  ;;  %v18585_v40 = vld [vmem:[#allocation60_spill] sm:$0xff] }
 0x3a4   :  { %5332 = vmatprep.subr.bf16.mxu0 %v18383_v61  ;;  %5386 = vmatpush1.bf16.msra.mxu1 %v18416_v63  ;;  %18578 = vst [vmem:[#allocation240_spill] sm:$0xff] %v14547_v22  ;;  %v18583_v61 = vld [vmem:[#allocation41_spill] sm:$0xff]  ;;  %v18620_v22 = vld [vmem:[#allocation96_spill] sm:$0xff] }
 0x3a5   :  { %5387 = vmatprep.subr.bf16.mxu1 %v18417_v26  ;;  %5313 = vmatprep.mubr.bf16.mxu1 %v18156_v46  ;;  %v14561_v63 = vpop.f32.mrf.mxu1 }
 0x3a6   :  { %v14551_v38 = vpop.f32.mrf.mxu0  ;;  %10091 = vmatmul.mubr.msk.bf16.vlgmr.msra.gmra.mxu0 %vm2956_vm0, %v14484_v10  ;;  %18581 = vst [vmem:[#allocation243_spill] sm:$0xff] %v14561_v63 }
 0x3a7   :  { %18579 = vst [vmem:[#allocation241_spill] sm:$0xff] %v14551_v38  ;;  %5333 = vmatpush1.bf16.msra.mxu0 %v18388_v1  ;;  %5260 = vmatprep.mubr.bf16.mxu0 %v18156_v46  ;;  %v18617_v38 = vld [vmem:[#allocation110_spill] sm:$0xff] }
 0x3a8   :  { %v14557_v8 = vpop.f32.mrf.mxu0  ;;  %5334 = vmatprep.subr.bf16.mxu0 %v18389_v17  ;;  %5388 = vmatpush1.bf16.msra.mxu1 %v18422_v45  ;;  %v14573_v17 = vpop.f32.mrf.mxu1  ;;  %v18588_v45 = vld [vmem:[#allocation31_spill] sm:$0xff] }
 0x3a9   :  { %18580 = vst [vmem:[#allocation242_spill] sm:$0xff] %v14557_v8  ;;  %5389 = vmatprep.subr.bf16.mxu1 %v18423_v23  ;;  %18587 = vst [vmem:[#allocation60_spill] sm:$0xff] %v14573_v17  ;;  %v18615_v17 = vld [vmem:[#allocation94_spill] sm:$0xff] }
 0x3aa   :  { %v14564_v26 = vpop.f32.mrf.mxu0  ;;  %v14587_v52 = vpop.f32.mrf.mxu1 }
 0x3ab   :  { %18582 = vst [vmem:[#allocation244_spill] sm:$0xff] %v14564_v26  ;;  %5335 = vmatpush1.bf16.msra.mxu0 %v18583_v61  ;;  %10094 = vmatmul.mubr.msk.bf16.gmra.mxu1 %vm2956_vm0, %v14511_v58  ;;  %18594 = vst [vmem:[#allocation8_spill] sm:$0xff] %v14587_v52  ;;  %v18601_v61 = vld [vmem:[#allocation97_spill] sm:$0xff]  ;;  %v18614_v52 = vld [vmem:[#allocation91_spill] sm:$0xff] }
 0x3ac   :  { %v14569_v1 = vpop.f32.mrf.mxu0  ;;  %5336 = vmatprep.subr.bf16.mxu0 %v18585_v40  ;;  %5390 = vmatpush1.bf16.msra.mxu1 %v18586_v9  ;;  %v18602_v9 = vld [vmem:[#allocation30_spill] sm:$0xff] }
 0x3ad   :  { %18584 = vst [vmem:[#allocation41_spill] sm:$0xff] %v14569_v1  ;;  %5391 = vmatprep.subr.bf16.mxu1 %v18588_v45  ;;  %5409 = vmatprep.mubr.bf16.mxu1 %v18156_v46  ;;  %v18613_v1 = vld [vmem:[#allocation106_spill] sm:$0xff] }
 0x3ae   :  { %v14577_v23 = vpop.f32.mrf.mxu0  ;;  %10092 = vmatmul.mubr.msk.bf16.gmra.mxu0 %vm2956_vm0, %v14511_v58 }
 0x3af   :  { %18589 = vst [vmem:[#allocation45_spill] sm:$0xff] %v14577_v23  ;;  %5337 = vmatpush1.bf16.msra.mxu0 %v18590_v3  ;;  %5356 = vmatprep.mubr.bf16.mxu0 %v18156_v46 }
 0x3b0   :  { %v14583_v32 = vpop.f32.mrf.mxu0  ;;  %5338 = vmatprep.subr.bf16.mxu0 %v18592_v48  ;;  %5392 = vmatpush1.bf16.msra.mxu1 %v18593_v44  ;;  %v18603_v48 = vld [vmem:[#allocation86_spill] sm:$0xff]  ;;  %v18604_v44 = vld [vmem:[#allocation84_spill] sm:$0xff] }
 0x3b1   :  { %18591 = vst [vmem:[#allocation31_spill] sm:$0xff] %v14583_v32  ;;  %5491 = vmatprep.subr.bf16.mxu1 %v18595_v57  ;;  %v18612_v32 = vld [vmem:[#allocation93_spill] sm:$0xff] }
 0x3b2   :  { %v14590_v42 = vpop.f32.mrf.mxu0 }
 0x3b3   :  { %18596 = vst [vmem:[#allocation80_spill] sm:$0xff] %v14590_v42  ;;  %5339 = vmatpush1.bf16.msra.mxu0 %v18597_v2  ;;  %v14593_v7 = vpop.f32.mrf.mxu1  ;;  %10097 = vmatmul.mubr.msk.bf16.vlgmr.msra.gmra.mxu1 %vm2956_vm0, %v14484_v10  ;;  %v18605_v2 = vld [vmem:[#allocation101_spill] sm:$0xff] }
 0x3b4   :  { %v14597_v4 = vpop.f32.mrf.mxu0  ;;  %5438 = vmatprep.subr.bf16.mxu0 %v18599_v16  ;;  %5492 = vmatpush1.bf16.msra.mxu1 %v18600_v14  ;;  %v18606_v14 = vld [vmem:[#allocation83_spill] sm:$0xff]  ;;  %v18609_v42 = vld [vmem:[#allocation33_spill] sm:$0xff] }
 0x3b5   :  { %18598 = vst [vmem:[#allocation79_spill] sm:$0xff] %v14597_v4  ;;  %v14601_v31 = vpop.f32.mrf.mxu1  ;;  %5493 = vmatprep.subr.bf16.mxu1 %v18601_v61  ;;  %5419 = vmatprep.mubr.bf16.mxu1 %v18156_v46  ;;  %v18607_v4 = vld [vmem:[#allocation90_spill] sm:$0xff] }
 0x3b6   :  { %v14605_v40 = vpop.f32.mrf.mxu0  ;;  %10095 = vmatmul.mubr.msk.bf16.vlgmr.msra.gmra.mxu0 %vm2956_vm0, %v14484_v10 }
 0x3b7   :  { %5439 = vmatpush1.bf16.msra.mxu0 %v18602_v9  ;;  %v14610_v45 = vpop.f32.mrf.mxu1  ;;  %5366 = vmatprep.mubr.bf16.mxu0 %v18156_v46 }
 0x3b8   :  { %v14613_v3 = vpop.f32.mrf.mxu0  ;;  %5440 = vmatprep.subr.bf16.mxu0 %v18603_v48  ;;  %5494 = vmatpush1.bf16.msra.mxu1 %v18604_v44  ;;  %v18608_v48 = vld [vmem:[#allocation88_spill] sm:$0xff] }
 0x3b9   :  { %v14617_v57 = vpop.f32.mrf.mxu1  ;;  %5495 = vmatprep.subr.bf16.mxu1 %v18605_v2 }
 0x3ba   :  { %v14620_v16 = vpop.f32.mrf.mxu0 }
 0x3bb   :  { %5441 = vmatpush1.bf16.msra.mxu0 %v18606_v14  ;;  %v14623_v61 = vpop.f32.mrf.mxu1  ;;  %10098 = vmatmul.mubr.msk.bf16.gmra.mxu1 %vm2956_vm0, %v14511_v58  ;;  %v18610_v14 = vld [vmem:[#allocation87_spill] sm:$0xff] }
 0x3bc   :  { %v14627_v9 = vpop.f32.mrf.mxu0  ;;  %5442 = vmatprep.subr.bf16.mxu0 %v18607_v4  ;;  %5496 = vmatpush1.bf16.msra.mxu1 %v18608_v48  ;;  %v18611_v48 = vld [vmem:[#allocation32_spill] sm:$0xff] }
 0x3bd   :  { %v14631_v44 = vpop.f32.mrf.mxu1  ;;  %5497 = vmatprep.subr.bf16.mxu1 %v18609_v42  ;;  %5515 = vmatprep.mubr.bf16.mxu1 %v18156_v46 }
 0x3be   :  { %v14635_v2 = vpop.f32.mrf.mxu0  ;;  %10096 = vmatmul.mubr.msk.bf16.gmra.mxu0 %vm2956_vm0, %v14511_v58 }
 0x3bf   :  { %5443 = vmatpush1.bf16.msra.mxu0 %v18610_v14  ;;  %v14640_v8 = vpop.f32.mrf.mxu1  ;;  %5462 = vmatprep.mubr.bf16.mxu0 %v18156_v46 }
 0x3c0   :  { %v14643_v4 = vpop.f32.mrf.mxu0  ;;  %5444 = vmatprep.subr.bf16.mxu0 %v18611_v48  ;;  %5498 = vmatpush1.bf16.msra.mxu1 %v18612_v32  ;;  %v18616_v48 = vld [vmem:[#allocation12_spill] sm:$0xff] }
 0x3c1   :  { %v14647_v42 = vpop.f32.mrf.mxu1  ;;  %5597 = vmatprep.subr.bf16.mxu1 %v18613_v1 }
 0x3c2   :  { %v14650_v23 = vpop.f32.mrf.mxu0 }
 0x3c3   :  { %5445 = vmatpush1.bf16.msra.mxu0 %v18614_v52  ;;  %v14653_v26 = vpop.f32.mrf.mxu1  ;;  %10101 = vmatmul.mubr.msk.bf16.vlgmr.msra.gmra.mxu1 %vm2956_vm0, %v14484_v10  ;;  %v18618_v52 = vld [vmem:[#allocation11_spill] sm:$0xff] }
 0x3c4   :  { %v14657_v14 = vpop.f32.mrf.mxu0  ;;  %5544 = vmatprep.subr.bf16.mxu0 %v18615_v17  ;;  %5598 = vmatpush1.bf16.msra.mxu1 %v18616_v48  ;;  %v18619_v48 = vld [vmem:[#allocation98_spill] sm:$0xff] }
 0x3c5   :  { %v14661_v32 = vpop.f32.mrf.mxu1  ;;  %5599 = vmatprep.subr.bf16.mxu1 %v18617_v38  ;;  %5525 = vmatprep.mubr.bf16.mxu1 %v18156_v46 }
 0x3c6   :  { %v14665_v1 = vpop.f32.mrf.mxu0  ;;  %10099 = vmatmul.mubr.msk.bf16.vlgmr.msra.gmra.mxu0 %vm2956_vm0, %v14484_v10 }
 0x3c7   :  { %5545 = vmatpush1.bf16.msra.mxu0 %v18618_v52  ;;  %v14670_v63 = vpop.f32.mrf.mxu1  ;;  %5472 = vmatprep.mubr.bf16.mxu0 %v18156_v46 }
 0x3c8   :  { %v14673_v17 = vpop.f32.mrf.mxu0  ;;  %5546 = vmatprep.subr.bf16.mxu0 %v18619_v48  ;;  %5600 = vmatpush1.bf16.msra.mxu1 %v18620_v22  ;;  %v18624_v48 = vld [vmem:[#allocation100_spill] sm:$0xff] }
 0x3c9   :  { %v14677_v38 = vpop.f32.mrf.mxu1  ;;  %5601 = vmatprep.subr.bf16.mxu1 %v18621_v53 }
 0x3ca   :  { %v14680_v12 = vpop.f32.mrf.mxu0 }
 0x3cb   :  { %5547 = vmatpush1.bf16.msra.mxu0 %v18622_v50  ;;  %v14683_v15 = vpop.f32.mrf.mxu1  ;;  %10102 = vmatmul.mubr.msk.bf16.gmra.mxu1 %vm2956_vm0, %v14511_v58  ;;  %v18626_v50 = vld [vmem:[#allocation99_spill] sm:$0xff] }
 0x3cc   :  { %v14687_v52 = vpop.f32.mrf.mxu0  ;;  %5548 = vmatprep.subr.bf16.mxu0 %v18623_v47  ;;  %5602 = vmatpush1.bf16.msra.mxu1 %v18624_v48  ;;  %v18627_v48 = vld [vmem:[#allocation34_spill] sm:$0xff] }
 0x3cd   :  { %v14691_v22 = vpop.f32.mrf.mxu1  ;;  %5603 = vmatprep.subr.bf16.mxu1 %v18625_v51  ;;  %5621 = vmatprep.mubr.bf16.mxu1 %v18156_v46 }
 0x3ce   :  { %v14695_v53 = vpop.f32.mrf.mxu0  ;;  %10100 = vmatmul.mubr.msk.bf16.gmra.mxu0 %vm2956_vm0, %v14511_v58 }
 0x3cf   :  { %5549 = vmatpush1.bf16.msra.mxu0 %v18626_v50  ;;  %v14700_v59 = vpop.f32.mrf.mxu1  ;;  %5568 = vmatprep.mubr.bf16.mxu0 %v18156_v46 }
 0x3d0   :  { %v14703_v47 = vpop.f32.mrf.mxu0  ;;  %5550 = vmatprep.subr.bf16.mxu0 %v18627_v48  ;;  %5604 = vmatpush1.bf16.msra.mxu1 %v18628_v49  ;;  %v18632_v48 = vld [vmem:[#allocation14_spill] sm:$0xff] }
 0x3d1   :  { %v14707_v51 = vpop.f32.mrf.mxu1  ;;  %5703 = vmatprep.subr.bf16.mxu1 %v18629_v60 }
 0x3d2   :  { %v14710_v6 = vpop.f32.mrf.mxu0 }
 0x3d3   :  { %5551 = vmatpush1.bf16.msra.mxu0 %v18630_v30  ;;  %v14713_v21 = vpop.f32.mrf.mxu1  ;;  %10105 = vmatmul.mubr.msk.bf16.vlgmr.msra.gmra.mxu1 %vm2956_vm0, %v14484_v10  ;;  %v18636_v30 = vld [vmem:[#allocation13_spill] sm:$0xff] }
 0x3d4   :  { %v14717_v50 = vpop.f32.mrf.mxu0  ;;  %5650 = vmatprep.subr.bf16.mxu0 %v18631_v55  ;;  %5704 = vmatpush1.bf16.msra.mxu1 %v18632_v48  ;;  %v18639_v48 = vld [vmem:[#allocation111_spill] sm:$0xff] }
 0x3d5   :  { %v14721_v49 = vpop.f32.mrf.mxu1  ;;  %5705 = vmatprep.subr.bf16.mxu1 %v18634_v35  ;;  %5631 = vmatprep.mubr.bf16.mxu1 %v18156_v46 }
 0x3d6   :  { %18633 = vst [vmem:[#allocation10_spill] sm:$0xff] %v14721_v49  ;;  %v14725_v60 = vpop.f32.mrf.mxu0  ;;  %10103 = vmatmul.mubr.msk.bf16.vlgmr.msra.gmra.mxu0 %vm2956_vm0, %v14484_v10 }
 0x3d7   :  { %18635 = vst [vmem:[#allocation78_spill] sm:$0xff] %v14725_v60  ;;  %5651 = vmatpush1.bf16.msra.mxu0 %v18636_v30  ;;  %v14730_v18 = vpop.f32.mrf.mxu1  ;;  %5578 = vmatprep.mubr.bf16.mxu0 %v18156_v46  ;;  %v18644_v60 = vld [vmem:[#allocation108_spill] sm:$0xff] }
 0x3d8   :  { %18637 = vst [vmem:[#allocation82_spill] sm:$0xff] %v14730_v18  ;;  %v14733_v55 = vpop.f32.mrf.mxu0  ;;  %5652 = vmatprep.subr.bf16.mxu0 %v18639_v48  ;;  %5706 = vmatpush1.bf16.msra.mxu1 %v18640_v0  ;;  %v18647_v18 = vld [vmem:[#allocation115_spill] sm:$0xff]  ;;  %v18648_v48 = vld [vmem:[#allocation113_spill] sm:$0xff] }
 0x3d9   :  { %18638 = vst [vmem:[#allocation9_spill] sm:$0xff] %v14733_v55  ;;  %v14737_v35 = vpop.f32.mrf.mxu1  ;;  %5707 = vmatprep.subr.bf16.mxu1 %v18642_v24 }
 0x3da   :  { %18641 = vst [vmem:[#allocation97_spill] sm:$0xff] %v14737_v35  ;;  %v14740_v34 = vpop.f32.mrf.mxu0  ;;  %v18650_v35 = vld [vmem:[#allocation37_spill] sm:$0xff] }
 0x3db   :  { %18643 = vst [vmem:[#allocation30_spill] sm:$0xff] %v14740_v34  ;;  %5653 = vmatpush1.bf16.msra.mxu0 %v18644_v60  ;;  %v14743_v49 = vpop.f32.mrf.mxu1  ;;  %10106 = vmatmul.mubr.msk.bf16.gmra.mxu1 %vm2956_vm0, %v14511_v58  ;;  %v18652_v60 = vld [vmem:[#allocation112_spill] sm:$0xff] }
 0x3dc   :  { %18645 = vst [vmem:[#allocation86_spill] sm:$0xff] %v14743_v49  ;;  %v14747_v30 = vpop.f32.mrf.mxu0  ;;  %5654 = vmatprep.subr.bf16.mxu0 %v18647_v18  ;;  %5708 = vmatpush1.bf16.msra.mxu1 %v18648_v48  ;;  %v18654_v48 = vld [vmem:[#allocation36_spill] sm:$0xff] }
 0x3dd   :  { %18646 = vst [vmem:[#allocation84_spill] sm:$0xff] %v14747_v30  ;;  %v14751_v0 = vpop.f32.mrf.mxu1  ;;  %5709 = vmatprep.subr.bf16.mxu1 %v18650_v35  ;;  %5727 = vmatprep.mubr.bf16.mxu1 %v18156_v46  ;;  %v18657_v30 = vld [vmem:[#allocation129_spill] sm:$0xff]  ;;  %v18659_v34 = vld [vmem:[#allocation116_spill] sm:$0xff] }
 0x3de   :  { %18649 = vst [vmem:[#allocation101_spill] sm:$0xff] %v14751_v0  ;;  %v14755_v24 = vpop.f32.mrf.mxu0  ;;  %10104 = vmatmul.mubr.msk.bf16.gmra.mxu0 %vm2956_vm0, %v14511_v58  ;;  %v18655_v0 = vld [vmem:[#allocation118_spill] sm:$0xff] }
 0x3df   :  { %18651 = vst [vmem:[#allocation83_spill] sm:$0xff] %v14755_v24  ;;  %5655 = vmatpush1.bf16.msra.mxu0 %v18652_v60  ;;  %v14760_v49 = vpop.f32.mrf.mxu1  ;;  %5674 = vmatprep.mubr.bf16.mxu0 %v18156_v46 }
 0x3e0   :  { %18653 = vst [vmem:[#allocation90_spill] sm:$0xff] %v14760_v49  ;;  %v14763_v18 = vpop.f32.mrf.mxu0  ;;  %5656 = vmatprep.subr.bf16.mxu0 %v18654_v48  ;;  %5710 = vmatpush1.bf16.msra.mxu1 %v18655_v0  ;;  %v18662_v49 = vld [vmem:[#allocation105_spill] sm:$0xff]  ;;  %v18663_v48 = vld [vmem:[#allocation15_spill] sm:$0xff] }
 0x3e1   :  { %v14767_v35 = vpop.f32.mrf.mxu1  ;;  %5809 = vmatprep.subr.bf16.mxu1 %v18657_v30 }
 0x3e2   :  { %18656 = vst [vmem:[#allocation88_spill] sm:$0xff] %v14767_v35  ;;  %v14770_v24 = vpop.f32.mrf.mxu0 }
 0x3e3   :  { %18658 = vst [vmem:[#allocation33_spill] sm:$0xff] %v14770_v24  ;;  %5657 = vmatpush1.bf16.msra.mxu0 %v18659_v34  ;;  %v14773_v55 = vpop.f32.mrf.mxu1  ;;  %10109 = vmatmul.mubr.msk.bf16.vlgmr.msra.gmra.mxu1 %vm2956_vm0, %v14484_v10  ;;  %v18666_v34 = vld [vmem:[#allocation104_spill] sm:$0xff]  ;;  %v18672_v24 = vld [vmem:[#allocation119_spill] sm:$0xff] }
 0x3e4   :  { %18660 = vst [vmem:[#allocation87_spill] sm:$0xff] %v14773_v55  ;;  %v14777_v60 = vpop.f32.mrf.mxu0  ;;  %5756 = vmatprep.subr.bf16.mxu0 %v18662_v49  ;;  %5810 = vmatpush1.bf16.msra.mxu1 %v18663_v48  ;;  %v18668_v48 = vld [vmem:[#allocation122_spill] sm:$0xff] }
 0x3e5   :  { %18661 = vst [vmem:[#allocation32_spill] sm:$0xff] %v14777_v60  ;;  %v14781_v0 = vpop.f32.mrf.mxu1  ;;  %5811 = vmatprep.subr.bf16.mxu1 %v18513_v28  ;;  %5737 = vmatprep.mubr.bf16.mxu1 %v18156_v46  ;;  %v18670_v60 = vld [vmem:[#allocation137_spill] sm:$0xff] }
 0x3e6   :  { %18664 = vst [vmem:[#allocation93_spill] sm:$0xff] %v14781_v0  ;;  %v14785_v30 = vpop.f32.mrf.mxu0  ;;  %10107 = vmatmul.mubr.msk.bf16.vlgmr.msra.gmra.mxu0 %vm2956_vm0, %v14484_v10  ;;  %v18669_v0 = vld [vmem:[#allocation120_spill] sm:$0xff] }
 0x3e7   :  { %18665 = vst [vmem:[#allocation106_spill] sm:$0xff] %v14785_v30  ;;  %5757 = vmatpush1.bf16.msra.mxu0 %v18666_v34  ;;  %v14790_v55 = vpop.f32.mrf.mxu1  ;;  %5684 = vmatprep.mubr.bf16.mxu0 %v18156_v46 }
 0x3e8   :  { %18667 = vst [vmem:[#allocation91_spill] sm:$0xff] %v14790_v55  ;;  %v14793_v49 = vpop.f32.mrf.mxu0  ;;  %5758 = vmatprep.subr.bf16.mxu0 %v18668_v48  ;;  %5812 = vmatpush1.bf16.msra.mxu1 %v18669_v0  ;;  %v18675_v55 = vld [vmem:[#allocation126_spill] sm:$0xff]  ;;  %v18676_v48 = vld [vmem:[#allocation124_spill] sm:$0xff] }
 0x3e9   :  { %v14797_v28 = vpop.f32.mrf.mxu1  ;;  %5813 = vmatprep.subr.bf16.mxu1 %v18670_v60 }
 0x3ea   :  { %v14800_v30 = vpop.f32.mrf.mxu0 }
 0x3eb   :  { %18671 = vst [vmem:[#allocation94_spill] sm:$0xff] %v14800_v30  ;;  %5759 = vmatpush1.bf16.msra.mxu0 %v18672_v24  ;;  %v14803_v35 = vpop.f32.mrf.mxu1  ;;  %10110 = vmatmul.mubr.msk.bf16.gmra.mxu1 %vm2956_vm0, %v14511_v58  ;;  %v18679_v24 = vld [vmem:[#allocation123_spill] sm:$0xff] }
 0x3ec   :  { %18673 = vst [vmem:[#allocation12_spill] sm:$0xff] %v14803_v35  ;;  %v14807_v34 = vpop.f32.mrf.mxu0  ;;  %5760 = vmatprep.subr.bf16.mxu0 %v18675_v55  ;;  %5814 = vmatpush1.bf16.msra.mxu1 %v18676_v48  ;;  %v18681_v48 = vld [vmem:[#allocation18_spill] sm:$0xff] }
 0x3ed   :  { %18674 = vst [vmem:[#allocation110_spill] sm:$0xff] %v14807_v34  ;;  %v14811_v0 = vpop.f32.mrf.mxu1  ;;  %5815 = vmatprep.subr.bf16.mxu1 %v18525_v62  ;;  %5833 = vmatprep.mubr.bf16.mxu1 %v18156_v46  ;;  %v18683_v34 = vld [vmem:[#allocation127_spill] sm:$0xff] }
 0x3ee   :  { %18677 = vst [vmem:[#allocation11_spill] sm:$0xff] %v14811_v0  ;;  %v14815_v60 = vpop.f32.mrf.mxu0  ;;  %10108 = vmatmul.mubr.msk.bf16.gmra.mxu0 %vm2956_vm0, %v14511_v58  ;;  %v18682_v0 = vld [vmem:[#allocation20_spill] sm:$0xff] }
 0x3ef   :  { %18678 = vst [vmem:[#allocation98_spill] sm:$0xff] %v14815_v60  ;;  %5761 = vmatpush1.bf16.msra.mxu0 %v18679_v24  ;;  %v14820_v35 = vpop.f32.mrf.mxu1  ;;  %5780 = vmatprep.mubr.bf16.mxu0 %v18156_v46 }
 0x3f0   :  { %18680 = vst [vmem:[#allocation96_spill] sm:$0xff] %v14820_v35  ;;  %v14823_v55 = vpop.f32.mrf.mxu0  ;;  %5762 = vmatprep.subr.bf16.mxu0 %v18681_v48  ;;  %5816 = vmatpush1.bf16.msra.mxu1 %v18529_v33  ;;  %v18686_v35 = vld [vmem:[#allocation130_spill] sm:$0xff] }
 0x3f1   :  { %v14827_v62 = vpop.f32.mrf.mxu1  ;;  %5915 = vmatprep.subr.bf16.mxu1 %v18682_v0 }
 0x3f2   :  { %v14830_v60 = vpop.f32.mrf.mxu0 }
 0x3f3   :  { %5763 = vmatpush1.bf16.msra.mxu0 %v18683_v34  ;;  %v14833_v30 = vpop.f32.mrf.mxu1  ;;  %10113 = vmatmul.mubr.msk.bf16.vlgmr.msra.gmra.mxu1 %vm2956_vm0, %v14484_v10  ;;  %v18689_v34 = vld [vmem:[#allocation17_spill] sm:$0xff] }
 0x3f4   :  { %18684 = vst [vmem:[#allocation114_spill] sm:$0xff] %v14833_v30  ;;  %v14837_v24 = vpop.f32.mrf.mxu0  ;;  %5862 = vmatprep.subr.bf16.mxu0 %v18686_v35  ;;  %5916 = vmatpush1.bf16.msra.mxu1 %v18535_v25  ;;  %v18691_v25 = vld [vmem:[#allocation134_spill] sm:$0xff]  ;;  %v18693_v30 = vld [vmem:[#allocation131_spill] sm:$0xff] }
 0x3f5   :  { %18685 = vst [vmem:[#allocation95_spill] sm:$0xff] %v14837_v24  ;;  %v14841_v33 = vpop.f32.mrf.mxu1  ;;  %5917 = vmatprep.subr.bf16.mxu1 %v18536_v5  ;;  %5843 = vmatprep.mubr.bf16.mxu1 %v18156_v46 }
 0x3f6   :  { %18687 = vst [vmem:[#allocation102_spill] sm:$0xff] %v14841_v33  ;;  %v14845_v0 = vpop.f32.mrf.mxu0  ;;  %10111 = vmatmul.mubr.msk.bf16.vlgmr.msra.gmra.mxu0 %vm2956_vm0, %v14484_v10  ;;  %v18692_v33 = vld [vmem:[#allocation158_spill] sm:$0xff] }
 0x3f7   :  { %18688 = vst [vmem:[#allocation100_spill] sm:$0xff] %v14845_v0  ;;  %5863 = vmatpush1.bf16.msra.mxu0 %v18689_v34  ;;  %v14850_v48 = vpop.f32.mrf.mxu1  ;;  %5790 = vmatprep.mubr.bf16.mxu0 %v18156_v46 }
 0x3f8   :  { %18690 = vst [vmem:[#allocation35_spill] sm:$0xff] %v14850_v48  ;;  %v14853_v35 = vpop.f32.mrf.mxu0  ;;  %5864 = vmatprep.subr.bf16.mxu0 %v18691_v25  ;;  %5918 = vmatpush1.bf16.msra.mxu1 %v18540_v54  ;;  %v18695_v48 = vld [vmem:[#allocation138_spill] sm:$0xff] }
 0x3f9   :  { %v14857_v5 = vpop.f32.mrf.mxu1  ;;  %5919 = vmatprep.subr.bf16.mxu1 %v18692_v33 }
 0x3fa   :  { %v14860_v0 = vpop.f32.mrf.mxu0 }
 0x3fb   :  { %5865 = vmatpush1.bf16.msra.mxu0 %v18693_v30  ;;  %v14863_v24 = vpop.f32.mrf.mxu1  ;;  %10114 = vmatmul.mubr.msk.bf16.gmra.mxu1 %vm2956_vm0, %v14511_v58  ;;  %v18698_v30 = vld [vmem:[#allocation135_spill] sm:$0xff] }
 0x3fc   :  { %v14867_v34 = vpop.f32.mrf.mxu0  ;;  %5866 = vmatprep.subr.bf16.mxu0 %v18695_v48  ;;  %5920 = vmatpush1.bf16.msra.mxu1 %v18544_v36  ;;  %v18700_v36 = vld [vmem:[#allocation5_spill] sm:$0xff] }
 0x3fd   :  { %18694 = vst [vmem:[#allocation99_spill] sm:$0xff] %v14867_v34  ;;  %v14871_v54 = vpop.f32.mrf.mxu1  ;;  %5921 = vmatprep.subr.bf16.mxu1 %v18545_v39  ;;  %5939 = vmatprep.mubr.bf16.mxu1 %v18156_v46 }
 0x3fe   :  { %18696 = vst [vmem:[#allocation34_spill] sm:$0xff] %v14871_v54  ;;  %v14875_v33 = vpop.f32.mrf.mxu0  ;;  %10112 = vmatmul.mubr.msk.bf16.gmra.mxu0 %vm2956_vm0, %v14511_v58 }
 0x3ff   :  { %18697 = vst [vmem:[#allocation92_spill] sm:$0xff] %v14875_v33  ;;  %5867 = vmatpush1.bf16.msra.mxu0 %v18698_v30  ;;  %v14880_v25 = vpop.f32.mrf.mxu1  ;;  %5886 = vmatprep.mubr.bf16.mxu0 %v18156_v46  ;;  %v18701_v33 = vld [vmem:[#allocation139_spill] sm:$0xff] }
 0x400   :  { %18699 = vst [vmem:[#allocation16_spill] sm:$0xff] %v14880_v25  ;;  %v14883_v48 = vpop.f32.mrf.mxu0  ;;  %5868 = vmatprep.subr.bf16.mxu0 %v18700_v36  ;;  %5922 = vmatpush1.bf16.msra.mxu1 %v18549_v11  ;;  %v18703_v25 = vld [vmem:[#allocation21_spill] sm:$0xff] }
 0x401   :  { %v14887_v39 = vpop.f32.mrf.mxu1  ;;  %6021 = vmatprep.subr.bf16.mxu1 %v13825_v56 }
 0x402   :  { %v14890_v54 = vpop.f32.mrf.mxu0 }
 0x403   :  { %5869 = vmatpush1.bf16.msra.mxu0 %v18701_v33  ;;  %v14893_v34 = vpop.f32.mrf.mxu1  ;;  %10117 = vmatmul.mubr.msk.bf16.vlgmr.msra.gmra.mxu1 %vm2956_vm0, %v14484_v10  ;;  %v18706_v33 = vld [vmem:[#allocation42_spill] sm:$0xff] }
 0x404   :  { %v14897_v30 = vpop.f32.mrf.mxu0  ;;  %5968 = vmatprep.subr.bf16.mxu0 %v18703_v25  ;;  %6022 = vmatpush1.bf16.msra.mxu1 %v18552_v19  ;;  %v18708_v19 = vld [vmem:[#allocation143_spill] sm:$0xff] }
 0x405   :  { %18702 = vst [vmem:[#allocation103_spill] sm:$0xff] %v14897_v30  ;;  %v14901_v11 = vpop.f32.mrf.mxu1  ;;  %6023 = vmatprep.subr.bf16.mxu1 %v13894_v43  ;;  %5949 = vmatprep.mubr.bf16.mxu1 %v18156_v46 }
 0x406   :  { %18704 = vst [vmem:[#allocation107_spill] sm:$0xff] %v14901_v11  ;;  %v14905_v56 = vpop.f32.mrf.mxu0  ;;  %10115 = vmatmul.mubr.msk.bf16.vlgmr.msra.gmra.mxu0 %vm2956_vm0, %v14484_v10 }
 0x407   :  { %18705 = vst [vmem:[#allocation14_spill] sm:$0xff] %v14905_v56  ;;  %5969 = vmatpush1.bf16.msra.mxu0 %v18706_v33  ;;  %v14910_v36 = vpop.f32.mrf.mxu1  ;;  %5896 = vmatprep.mubr.bf16.mxu0 %v18156_v46  ;;  %v18709_v56 = vld [vmem:[#allocation128_spill] sm:$0xff] }
 0x408   :  { %v14913_v25 = vpop.f32.mrf.mxu0  ;;  %5970 = vmatprep.subr.bf16.mxu0 %v18708_v19  ;;  %6024 = vmatpush1.bf16.msra.mxu1 %v18555_v41 }
 0x409   :  { %18707 = vst [vmem:[#allocation121_spill] sm:$0xff] %v14913_v25  ;;  %v14917_v43 = vpop.f32.mrf.mxu1  ;;  %6025 = vmatprep.subr.bf16.mxu1 %v13952_v29  ;;  %v18711_v25 = vld [vmem:[#allocation163_spill] sm:$0xff] }
 0x40a   :  { %v14920_v11 = vpop.f32.mrf.mxu0 }
 0x40b   :  { %5971 = vmatpush1.bf16.msra.mxu0 %v18709_v56  ;;  %v14923_v30 = vpop.f32.mrf.mxu1  ;;  %10118 = vmatmul.mubr.msk.bf16.gmra.mxu1 %vm2956_vm0, %v14511_v58  ;;  %v18714_v56 = vld [vmem:[#allocation148_spill] sm:$0xff] }
 0x40c   :  { %v14927_v33 = vpop.f32.mrf.mxu0  ;;  %5972 = vmatprep.subr.bf16.mxu0 %v18711_v25  ;;  %6026 = vmatpush1.bf16.msra.mxu1 %v18558_v37  ;;  %v18716_v37 = vld [vmem:[#allocation170_spill] sm:$0xff] }
 0x40d   :  { %18710 = vst [vmem:[#allocation13_spill] sm:$0xff] %v14927_v33  ;;  %v14931_v41 = vpop.f32.mrf.mxu1  ;;  %6027 = vmatprep.subr.bf16.mxu1 %v13992_v13  ;;  %6045 = vmatprep.mubr.bf16.mxu1 %v18156_v46 }
 0x40e   :  { %18712 = vst [vmem:[#allocation111_spill] sm:$0xff] %v14931_v41  ;;  %v14935_v29 = vpop.f32.mrf.mxu0  ;;  %10116 = vmatmul.mubr.msk.bf16.gmra.mxu0 %vm2956_vm0, %v14511_v58  ;;  %v18719_v41 = vld [vmem:[#allocation166_spill] sm:$0xff] }
 0x40f   :  { %18713 = vst [vmem:[#allocation109_spill] sm:$0xff] %v14935_v29  ;;  %5973 = vmatpush1.bf16.msra.mxu0 %v18714_v56  ;;  %v14940_v19 = vpop.f32.mrf.mxu1  ;;  %5992 = vmatprep.mubr.bf16.mxu0 %v18156_v46 }
 0x410   :  { %v14943_v25 = vpop.f32.mrf.mxu0  ;;  %5974 = vmatprep.subr.bf16.mxu0 %v18716_v37  ;;  %6028 = vmatpush1.bf16.msra.mxu1 %v18561_v27 }
 0x411   :  { %18715 = vst [vmem:[#allocation125_spill] sm:$0xff] %v14943_v25  ;;  %v14947_v13 = vpop.f32.mrf.mxu1  ;;  %10323 = vmatprep.subr.bf16.mxu1 %v18156_v46  ;;  %v18722_v25 = vld [vmem:[#allocation175_spill] sm:$0xff] }
 0x412   :  { %18717 = vst [vmem:[#allocation108_spill] sm:$0xff] %v14947_v13  ;;  %v14950_v29 = vpop.f32.mrf.mxu0  ;;  %v18731_v13 = vld [vmem:[#allocation180_spill] sm:$0xff] }
 0x413   :  { %18718 = vst [vmem:[#allocation115_spill] sm:$0xff] %v14950_v29  ;;  %5975 = vmatpush1.bf16.msra.mxu0 %v18719_v41  ;;  %v14953_v33 = vpop.f32.mrf.mxu1  ;;  %10121 = vmatmul.mubr.msk.bf16.vlgmr.msra.gmra.mxu1 %vm2956_vm0, %v14484_v10  ;;  %v18725_v41 = vld [vmem:[#allocation172_spill] sm:$0xff] }
 0x414   :  { %18720 = vst [vmem:[#allocation113_spill] sm:$0xff] %v14953_v33  ;;  %v14957_v56 = vpop.f32.mrf.mxu0  ;;  %6074 = vmatprep.subr.bf16.mxu0 %v18722_v25  ;;  %6055 = vmatprep.mubr.bf16.mxu1 %v18156_v46  ;;  %v18728_v25 = vld [vmem:[#allocation183_spill] sm:$0xff] }
 0x415   :  { %18721 = vst [vmem:[#allocation37_spill] sm:$0xff] %v14957_v56  ;;  %v14961_v27 = vpop.f32.mrf.mxu1  ;;  %10324 = vmatpush3.bf16.msra.mxu1 %v18156_v46 }
 0x416   :  { %18723 = vst [vmem:[#allocation112_spill] sm:$0xff] %v14961_v27  ;;  %v14964_v37 = vpop.f32.mrf.mxu0  ;;  %10119 = vmatmul.mubr.msk.bf16.vlgmr.msra.gmra.mxu0 %vm2956_vm0, %v14484_v10 }
 0x417   :  { %18724 = vst [vmem:[#allocation36_spill] sm:$0xff] %v14964_v37  ;;  %6075 = vmatpush1.bf16.msra.mxu0 %v18725_v41  ;;  %v14969_v33 = vpop.f32.mrf.mxu1  ;;  %6002 = vmatprep.mubr.bf16.mxu0 %v18156_v46 }
 0x418   :  { %18726 = vst [vmem:[#allocation118_spill] sm:$0xff] %v14969_v33  ;;  %v14972_v56 = vpop.f32.mrf.mxu0  ;;  %6076 = vmatprep.subr.bf16.mxu0 %v18728_v25  ;;  %v18734_v33 = vld [vmem:[#allocation190_spill] sm:$0xff] }
 0x419   :  { %18727 = vst [vmem:[#allocation129_spill] sm:$0xff] %v14972_v56  ;;  %v14975_v29 = vpop.f32.mrf.mxu1 }
 0x41a   :  { %18729 = vst [vmem:[#allocation116_spill] sm:$0xff] %v14975_v29  ;;  %v14977_v27 = vpop.f32.mrf.mxu0 }
 0x41b   :  { %18730 = vst [vmem:[#allocation105_spill] sm:$0xff] %v14977_v27  ;;  %6077 = vmatpush1.bf16.msra.mxu0 %v18731_v13  ;;  %v14980_v37 = vpop.f32.mrf.mxu1  ;;  %10122 = vmatmul.mubr.msk.bf16.gmra.mxu1 %vm2956_vm0, %v14511_v58  ;;  %v18737_v13 = vld [vmem:[#allocation187_spill] sm:$0xff] }
 0x41c   :  { %18732 = vst [vmem:[#allocation15_spill] sm:$0xff] %v14980_v37  ;;  %v14984_v41 = vpop.f32.mrf.mxu0  ;;  %6078 = vmatprep.subr.bf16.mxu0 %v18734_v33  ;;  %10325 = vmatprep.mubr.msk.bf16.mxu1 %vm2956_vm0, %v14484_v10 }
 0x41d   :  { %18733 = vst [vmem:[#allocation104_spill] sm:$0xff] %v14984_v41  ;;  %v14989_v56 = vpop.f32.mrf.mxu1  ;;  %v18740_v41 = vld [vmem:[#allocation196_spill] sm:$0xff] }
 0x41e   :  { %18735 = vst [vmem:[#allocation122_spill] sm:$0xff] %v14989_v56  ;;  %v14991_v25 = vpop.f32.mrf.mxu0  ;;  %10120 = vmatmul.mubr.msk.bf16.gmra.mxu0 %vm2956_vm0, %v14511_v58 }
 0x41f   :  { %18736 = vst [vmem:[#allocation120_spill] sm:$0xff] %v14991_v25  ;;  %6079 = vmatpush1.bf16.msra.mxu0 %v18737_v13  ;;  %v14996_v37 = vpop.f32.mrf.mxu1  ;;  %6098 = vmatprep.mubr.bf16.mxu0 %v18156_v46 }
 0x420   :  { %18738 = vst [vmem:[#allocation137_spill] sm:$0xff] %v14996_v37  ;;  %v14999_v27 = vpop.f32.mrf.mxu0  ;;  %6080 = vmatprep.subr.bf16.mxu0 %v18740_v41 }
 0x421   :  { %18739 = vst [vmem:[#allocation119_spill] sm:$0xff] %v14999_v27  ;;  %v15002_v33 = vpop.f32.mrf.mxu1 }
 0x422   :  { %18741 = vst [vmem:[#allocation126_spill] sm:$0xff] %v15002_v33  ;;  %v15004_v29 = vpop.f32.mrf.mxu0 }
 0x423   :  { %18742 = vst [vmem:[#allocation124_spill] sm:$0xff] %v15004_v29  ;;  %6081 = vmatpush1.bf16.msra.mxu0 %v13974_v20  ;;  %v15007_v25 = vpop.f32.mrf.mxu1  ;;  %10326 = vmatmul.mubr.msk.bf16.vlgmr.msra.gmra.mxu1 %vm2956_vm0, %v14511_v58 }
 0x424   :  { %18743 = vst [vmem:[#allocation123_spill] sm:$0xff] %v15007_v25  ;;  %v15011_v13 = vpop.f32.mrf.mxu0  ;;  %6784 = vmatprep.mubr.bf16.mxu1 %v18156_v46 }
 0x425   :  { %18744 = vst [vmem:[#allocation18_spill] sm:$0xff] %v15011_v13  ;;  %v15014_v37 = vpop.f32.mrf.mxu1 }
 0x426   :  { %18745 = vst [vmem:[#allocation20_spill] sm:$0xff] %v15014_v37  ;;  %v15016_v27 = vpop.f32.mrf.mxu0  ;;  %10123 = vmatmul.mubr.msk.bf16.vlgmr.msra.gmra.mxu0 %vm2956_vm0, %v14484_v10 }
 0x427   :  { %18746 = vst [vmem:[#allocation127_spill] sm:$0xff] %v15016_v27  ;;  %v15020_v41 = vpop.f32.mrf.mxu1  ;;  %6108 = vmatprep.mubr.bf16.mxu0 %v18156_v46 }
 0x428   :  { %18747 = vst [vmem:[#allocation130_spill] sm:$0xff] %v15020_v41  ;;  %v15023_v20 = vpop.f32.mrf.mxu0 }
 0x429   :  { %18748 = vst [vmem:[#allocation17_spill] sm:$0xff] %v15023_v20  ;;  %v15025_v25 = vpop.f32.mrf.mxu1 }
 0x42a   :  { %18749 = vst [vmem:[#allocation134_spill] sm:$0xff] %v15025_v25  ;;  %v15027_v29 = vpop.f32.mrf.mxu0 }
 0x42b   :  { %18750 = vst [vmem:[#allocation158_spill] sm:$0xff] %v15027_v29  ;;  %v15029_v13 = vpop.f32.mrf.mxu1 }
 0x42c   :  { %18751 = vst [vmem:[#allocation131_spill] sm:$0xff] %v15029_v13  ;;  %v15031_v33 = vpop.f32.mrf.mxu0 }
 0x42d   :  { %18752 = vst [vmem:[#allocation138_spill] sm:$0xff] %v15031_v33  ;;  %v15033_v37 = vpop.f32.mrf.mxu1 }
 0x42e   :  { %18753 = vst [vmem:[#allocation135_spill] sm:$0xff] %v15033_v37  ;;  %v15035_v27 = vpop.f32.mrf.mxu0  ;;  %10124 = vmatmul.mubr.msk.bf16.gmra.mxu0 %vm2956_vm0, %v14511_v58 }
 0x42f   :  { %18754 = vst [vmem:[#allocation5_spill] sm:$0xff] %v15035_v27  ;;  %v15039_v10 = vpop.f32.mrf.mxu1  ;;  %6827 = vmatprep.mubr.bf16.mxu0 %v18156_v46  ;;  %v18819_v46 = vld [vmem:[#allocation10_spill] sm:$0xff] }
 0x430   :  { %18755 = vst [vmem:[#allocation139_spill] sm:$0xff] %v15039_v10  ;;  %v15042_v20 = vpop.f32.mrf.mxu0 }
 0x431   :  { %18756 = vst [vmem:[#allocation21_spill] sm:$0xff] %v15042_v20  ;;  %v15044_v25 = vpop.f32.mrf.mxu1 }
 0x432   :  { %18757 = vst [vmem:[#allocation42_spill] sm:$0xff] %v15044_v25  ;;  %v15046_v29 = vpop.f32.mrf.mxu0 }
 0x433   :  { %18758 = vst [vmem:[#allocation143_spill] sm:$0xff] %v15046_v29  ;;  %v15048_v13 = vpop.f32.mrf.mxu1 }
 0x434   :  { %18759 = vst [vmem:[#allocation128_spill] sm:$0xff] %v15048_v13  ;;  %v15050_v33 = vpop.f32.mrf.mxu0 }
 0x435   :  { %18760 = vst [vmem:[#allocation163_spill] sm:$0xff] %v15050_v33  ;;  %v15052_v37 = vpop.f32.mrf.mxu1 }
 0x436   :  { %18761 = vst [vmem:[#allocation148_spill] sm:$0xff] %v15052_v37  ;;  %v15054_v27 = vpop.f32.mrf.mxu0 }
 0x437   :  { %18762 = vst [vmem:[#allocation170_spill] sm:$0xff] %v15054_v27  ;;  %v15056_v41 = vpop.f32.mrf.mxu1 }
 0x438   :  { %18763 = vst [vmem:[#allocation166_spill] sm:$0xff] %v15056_v41  ;;  %v15058_v58 = vpop.f32.mrf.mxu0 }
 0x439   :  { %18764 = vst [vmem:[#allocation175_spill] sm:$0xff] %v15058_v58  ;;  %v15060_v10 = vpop.f32.mrf.mxu1  ;;  %v18775_v58 = vld [vmem:[#allocation145_spill] sm:$0xff] }
 0x43a   :  { %18765 = vst [vmem:[#allocation172_spill] sm:$0xff] %v15060_v10  ;;  %v15062_v56 = vpop.f32.mrf.mxu0  ;;  %v15082_v10 = vadd.f32 %v14593_v7, %v18775_v58  ;;  %v18781_v7 = vld [vmem:[#allocation152_spill] sm:$0xff] }
 0x43b   :  { %18766 = vst [vmem:[#allocation183_spill] sm:$0xff] %v15062_v56  ;;  %v15064_v20 = vpop.f32.mrf.mxu1  ;;  %v18776_v56 = vld [vmem:[#allocation147_spill] sm:$0xff]  ;;  %v15104_v58 = vadd.f32 %v14617_v57, %v18781_v7  ;;  %v18788_v7 = vld [vmem:[#allocation154_spill] sm:$0xff] }
 0x43c   :  { %18767 = vst [vmem:[#allocation180_spill] sm:$0xff] %v15064_v20  ;;  %v15066_v25 = vpop.f32.mrf.mxu0  ;;  %v15086_v20 = vadd.f32 %v14601_v31, %v18776_v56  ;;  %v18783_v56 = vld [vmem:[#allocation149_spill] sm:$0xff] }
 0x43d   :  { %18768 = vst [vmem:[#allocation190_spill] sm:$0xff] %v15066_v25  ;;  %v15068_v29 = vpop.f32.mrf.mxu1 }
 0x43e   :  { %18769 = vst [vmem:[#allocation187_spill] sm:$0xff] %v15068_v29  ;;  %v15070_v13 = vpop.f32.mrf.mxu0  ;;  %v18778_v29 = vld [vmem:[#allocation144_spill] sm:$0xff] }
 0x43f   :  { %18770 = vst [vmem:[#allocation196_spill] sm:$0xff] %v15070_v13  ;;  %v15072_v33 = vpop.f32.mrf.mxu1  ;;  %v15092_v13 = vadd.f32 %v14605_v40, %v18778_v29  ;;  %v18784_v40 = vld [vmem:[#allocation151_spill] sm:$0xff] }
 0x440   :  { %18771 = vst [vmem:[#allocation245_spill] sm:$0xff] %v15072_v33  ;;  %v15074_v37 = vpop.f32.mrf.mxu0  ;;  %v18779_v33 = vld [vmem:[#allocation146_spill] sm:$0xff]  ;;  %v15114_v29 = vadd.f32 %v14627_v9, %v18784_v40  ;;  %v18790_v9 = vld [vmem:[#allocation160_spill] sm:$0xff] }
 0x441   :  { %18772 = vst [vmem:[#allocation246_spill] sm:$0xff] %v15074_v37  ;;  %v15076_v27 = vpop.f32.mrf.mxu1  ;;  %v15096_v37 = vadd.f32 %v14613_v3, %v18779_v33  ;;  %v18785_v3 = vld [vmem:[#allocation155_spill] sm:$0xff]  ;;  %v15136_v40 = vadd.f32 %v14640_v8, %v18790_v9 }
 0x442   :  { %18773 = vst [vmem:[#allocation247_spill] sm:$0xff] %v15076_v27  ;;  %v15078_v41 = vpop.f32.mrf.mxu0  ;;  %v18780_v27 = vld [vmem:[#allocation150_spill] sm:$0xff]  ;;  %v15118_v33 = vadd.f32 %v14623_v61, %v18785_v3 }
 0x443   :  { %18774 = vst [vmem:[#allocation248_spill] sm:$0xff] %v15078_v41  ;;  %v15100_v41 = vadd.f32 %v14610_v45, %v18780_v27  ;;  %v15106_v31 = vpop.f32.mrf.mxu1  ;;  %v18786_v45 = vld [vmem:[#allocation157_spill] sm:$0xff]  ;;  %v18791_v61 = vld [vmem:[#allocation162_spill] sm:$0xff] }
 0x444   :  { %v15088_v25 = vpop.f32.mrf.mxu0  ;;  %18782 = vst [vmem:[#allocation147_spill] sm:$0xff] %v15106_v31  ;;  %v15122_v27 = vadd.f32 %v14631_v44, %v18786_v45  ;;  %v15128_v31 = vadd.f32 %v14635_v2, %v18788_v7  ;;  %v15140_v3 = vadd.f32 %v14647_v42, %v18791_v61  ;;  %v18792_v44 = vld [vmem:[#allocation159_spill] sm:$0xff]  ;;  %v18794_v7 = vld [vmem:[#allocation164_spill] sm:$0xff]  ;;  %v18797_v42 = vld [vmem:[#allocation165_spill] sm:$0xff] }
 0x445   :  { %18777 = vst [vmem:[#allocation145_spill] sm:$0xff] %v15088_v25  ;;  %v15110_v25 = vadd.f32 %v14620_v16, %v18783_v56  ;;  %v18789_v16 = vld [vmem:[#allocation156_spill] sm:$0xff]  ;;  %v15144_v45 = vadd.f32 %v14650_v23, %v18792_v44  ;;  %v15162_v61 = vadd.f32 %v14665_v1, %v18797_v42  ;;  %v18798_v23 = vld [vmem:[#allocation6_spill] sm:$0xff]  ;;  %v18803_v1 = vld [vmem:[#allocation169_spill] sm:$0xff] }
 0x446   :  { %v15124_v57 = vpop.f32.mrf.mxu0  ;;  %v15132_v56 = vadd.f32 %v14643_v4, %v18789_v16  ;;  %v15152_v4 = vadd.f32 %v14653_v26, %v18794_v7  ;;  %v18795_v16 = vld [vmem:[#allocation167_spill] sm:$0xff]  ;;  %v15166_v44 = vadd.f32 %v14673_v17, %v18798_v23  ;;  %v18800_v26 = vld [vmem:[#allocation46_spill] sm:$0xff]  ;;  %v15184_v42 = vadd.f32 %v14687_v52, %v18803_v1  ;;  %v18809_v52 = vld [vmem:[#allocation176_spill] sm:$0xff] }
 0x447   :  { %18787 = vst [vmem:[#allocation144_spill] sm:$0xff] %v15124_v57  ;;  %v18793_v57 = vld [vmem:[#allocation161_spill] sm:$0xff]  ;;  %v15156_v8 = vadd.f32 %v14661_v32, %v18795_v16  ;;  %v15174_v7 = vadd.f32 %v14677_v38, %v18800_v26  ;;  %v15176_v32 = vpop.f32.mrf.mxu1  ;;  %v18802_v16 = vld [vmem:[#allocation2_spill] sm:$0xff]  ;;  %v18807_v26 = vld [vmem:[#allocation171_spill] sm:$0xff]  ;;  %v15206_v1 = vadd.f32 %v14700_v59, %v18809_v52 }
 0x448   :  { %v15148_v2 = vadd.f32 %v14657_v14, %v18793_v57  ;;  %v15158_v9 = vpop.f32.mrf.mxu0  ;;  %v18799_v14 = vld [vmem:[#allocation4_spill] sm:$0xff]  ;;  %18801 = vst [vmem:[#allocation150_spill] sm:$0xff] %v15176_v32  ;;  %v18804_v17 = vld [vmem:[#allocation22_spill] sm:$0xff]  ;;  %v15198_v32 = vadd.f32 %v14695_v53, %v18807_v26  ;;  %v18816_v26 = vld [vmem:[#allocation181_spill] sm:$0xff] }
 0x449   :  { %18796 = vst [vmem:[#allocation146_spill] sm:$0xff] %v15158_v9  ;;  %v15170_v57 = vadd.f32 %v14670_v63, %v18799_v14  ;;  %v15180_v9 = vadd.f32 %v14680_v12, %v18802_v16  ;;  %v15188_v23 = vadd.f32 %v14683_v15, %v18804_v17  ;;  %v18805_v63 = vld [vmem:[#allocation173_spill] sm:$0xff]  ;;  %v18808_v12 = vld [vmem:[#allocation174_spill] sm:$0xff] }
 0x44a   :  { %v15192_v14 = vadd.f32 %v14691_v22, %v18805_v63  ;;  %v15194_v38 = vpop.f32.mrf.mxu0  ;;  %v15202_v16 = vadd.f32 %v14703_v47, %v18808_v12  ;;  %v18810_v15 = vld [vmem:[#allocation178_spill] sm:$0xff]  ;;  %v18812_v22 = vld [vmem:[#allocation177_spill] sm:$0xff]  ;;  %v15222_v47 = vadd.f32 %v14713_v21, %v18816_v26  ;;  %v18818_v12 = vld [vmem:[#allocation184_spill] sm:$0xff] }
 0x44b   :  { %18806 = vst [vmem:[#allocation152_spill] sm:$0xff] %v15194_v38  ;;  %v15210_v17 = vadd.f32 %v14707_v51, %v18810_v15  ;;  %v15214_v63 = vadd.f32 %v14710_v6, %v18812_v22  ;;  %v18814_v38 = vld [vmem:[#allocation179_spill] sm:$0xff]  ;;  %v15226_v59 = vadd.f32 %v18819_v46, %v18818_v12  ;;  %v18822_v51 = vld [vmem:[#allocation182_spill] sm:$0xff]  ;;  %v18825_v6 = vld [vmem:[#allocation185_spill] sm:$0xff]  ;;  %v15246_v46 = vpop.f32.mrf.mxu1 }
 0x44c   :  { %v15218_v53 = vadd.f32 %v14717_v50, %v18814_v38  ;;  %18817 = vst [vmem:[#allocation157_spill] sm:$0xff] %v15222_v47  ;;  %v15228_v52 = vpop.f32.mrf.mxu0  ;;  %v18823_v15 = vld [vmem:[#allocation78_spill] sm:$0xff]  ;;  %v18826_v22 = vld [vmem:[#allocation9_spill] sm:$0xff]  ;;  %18834 = vst [vmem:[#allocation164_spill] sm:$0xff] %v15246_v46 }
 0x44d   :  { %18811 = vst [vmem:[#allocation149_spill] sm:$0xff] %v15210_v17  ;;  %18813 = vst [vmem:[#allocation151_spill] sm:$0xff] %v15214_v63  ;;  %v15232_v17 = vadd.f32 %v18823_v15, %v18822_v51  ;;  %v15236_v63 = vadd.f32 %v18826_v22, %v18825_v6  ;;  %v18828_v50 = vld [vmem:[#allocation186_spill] sm:$0xff]  ;;  %v18831_v21 = vld [vmem:[#allocation189_spill] sm:$0xff] }
 0x44e   :  { %18815 = vst [vmem:[#allocation155_spill] sm:$0xff] %v15218_v53  ;;  %18820 = vst [vmem:[#allocation154_spill] sm:$0xff] %v15226_v59  ;;  %v18829_v38 = vld [vmem:[#allocation82_spill] sm:$0xff]  ;;  %v18832_v26 = vld [vmem:[#allocation97_spill] sm:$0xff] }
 0x44f   :  { %18821 = vst [vmem:[#allocation156_spill] sm:$0xff] %v15228_v52  ;;  %18824 = vst [vmem:[#allocation160_spill] sm:$0xff] %v15232_v17  ;;  %v15240_v53 = vadd.f32 %v18829_v38, %v18828_v50  ;;  %v15244_v47 = vadd.f32 %v18832_v26, %v18831_v21  ;;  %v18835_v12 = vld [vmem:[#allocation188_spill] sm:$0xff]  ;;  %v18836_v52 = vld [vmem:[#allocation30_spill] sm:$0xff]  ;;  %v15264_v21 = vpop.f32.mrf.mxu0 }
 0x450   :  { %18827 = vst [vmem:[#allocation162_spill] sm:$0xff] %v15236_v63  ;;  %v15250_v59 = vadd.f32 %v18836_v52, %v18835_v12  ;;  %v18838_v51 = vld [vmem:[#allocation191_spill] sm:$0xff]  ;;  %v18839_v15 = vld [vmem:[#allocation84_spill] sm:$0xff]  ;;  %v18842_v22 = vld [vmem:[#allocation86_spill] sm:$0xff] }
 0x451   :  { %18830 = vst [vmem:[#allocation159_spill] sm:$0xff] %v15240_v53  ;;  %18833 = vst [vmem:[#allocation161_spill] sm:$0xff] %v15244_v47  ;;  %v15254_v17 = vadd.f32 %v18839_v15, %v18838_v51  ;;  %v18841_v6 = vld [vmem:[#allocation192_spill] sm:$0xff]  ;;  %v18844_v50 = vld [vmem:[#allocation194_spill] sm:$0xff] }
 0x452   :  { %18837 = vst [vmem:[#allocation167_spill] sm:$0xff] %v15250_v59  ;;  %v15258_v63 = vadd.f32 %v18842_v22, %v18841_v6  ;;  %v18845_v38 = vld [vmem:[#allocation101_spill] sm:$0xff]  ;;  %18847 = vst [vmem:[#allocation46_spill] sm:$0xff] %v15264_v21  ;;  %v18849_v46 = vld [vmem:[#allocation83_spill] sm:$0xff] }
 0x453   :  { %18840 = vst [vmem:[#allocation165_spill] sm:$0xff] %v15254_v17  ;;  %v15262_v53 = vadd.f32 %v18845_v38, %v18844_v50  ;;  %v18848_v26 = vld [vmem:[#allocation193_spill] sm:$0xff]  ;;  %v18851_v52 = vld [vmem:[#allocation195_spill] sm:$0xff]  ;;  %v18854_v15 = vld [vmem:[#allocation90_spill] sm:$0xff] }
 0x454   :  { %18843 = vst [vmem:[#allocation6_spill] sm:$0xff] %v15258_v63  ;;  %v15268_v47 = vadd.f32 %v18849_v46, %v18848_v26  ;;  %v15272_v12 = vadd.f32 %v14763_v18, %v18851_v52  ;;  %v18853_v51 = vld [vmem:[#allocation197_spill] sm:$0xff]  ;;  %v18855_v6 = vld [vmem:[#allocation58_spill] sm:$0xff]  ;;  %v18856_v22 = vld [vmem:[#allocation88_spill] sm:$0xff] }
 0x455   :  { %18846 = vst [vmem:[#allocation4_spill] sm:$0xff] %v15262_v53  ;;  %v15276_v17 = vadd.f32 %v18854_v15, %v18853_v51  ;;  %v15280_v63 = vadd.f32 %v18856_v22, %v18855_v6  ;;  %v18858_v50 = vld [vmem:[#allocation198_spill] sm:$0xff]  ;;  %v18859_v38 = vld [vmem:[#allocation33_spill] sm:$0xff]  ;;  %v18860_v21 = vld [vmem:[#allocation199_spill] sm:$0xff]  ;;  %v15298_v15 = vpop.f32.mrf.mxu0  ;;  %v15300_v6 = vpop.permute.xlu0 %6340 }
 0x456   :  { %18850 = vst [vmem:[#allocation2_spill] sm:$0xff] %v15268_v47  ;;  %18852 = vst [vmem:[#allocation169_spill] sm:$0xff] %v15272_v12  ;;  %v15284_v53 = vadd.f32 %v18859_v38, %v18858_v50  ;;  %v18861_v59 = vld [vmem:[#allocation32_spill] sm:$0xff]  ;;  %v18863_v26 = vld [vmem:[#allocation57_spill] sm:$0xff] }
 0x457   :  { %18857 = vst [vmem:[#allocation22_spill] sm:$0xff] %v15280_v63  ;;  %v15288_v46 = vadd.f32 %v18861_v59, %v18860_v21  ;;  %v18864_v47 = vld [vmem:[#allocation87_spill] sm:$0xff]  ;;  %v18867_v12 = vld [vmem:[#allocation93_spill] sm:$0xff]  ;;  %18869 = vst [vmem:[#allocation176_spill] sm:$0xff] %v15298_v15 }
 0x458   :  { %v15292_v18 = vadd.f32 %v18864_v47, %v18863_v26  ;;  %v18866_v52 = vld [vmem:[#allocation67_spill] sm:$0xff]  ;;  %v18871_v63 = vld [vmem:[#allocation106_spill] sm:$0xff]  ;;  %v18875_v21 = vld [vmem:[#allocation64_spill] sm:$0xff] }
 0x459   :  { %18862 = vst [vmem:[#allocation173_spill] sm:$0xff] %v15288_v46  ;;  %v15296_v51 = vadd.f32 %v18867_v12, %v18866_v52  ;;  %v18870_v22 = vld [vmem:[#allocation55_spill] sm:$0xff]  ;;  %v18873_v38 = vld [vmem:[#allocation66_spill] sm:$0xff]  ;;  %v15318_v52 = vpop.f32.mrf.mxu1  ;;  %v18881_v15 = vld [vmem:[#allocation72_spill] sm:$0xff] }
 0x45a   :  { %18865 = vst [vmem:[#allocation171_spill] sm:$0xff] %v15292_v18  ;;  %v15304_v50 = vadd.f32 %v18871_v63, %v18870_v22  ;;  %v15308_v59 = vadd.f32 %v14793_v49, %v18873_v38  ;;  %v18876_v46 = vld [vmem:[#allocation91_spill] sm:$0xff]  ;;  %18880 = vst [vmem:[#allocation184_spill] sm:$0xff] %v15318_v52  ;;  %v18883_v63 = vld [vmem:[#allocation69_spill] sm:$0xff] }
 0x45b   :  { %18868 = vst [vmem:[#allocation174_spill] sm:$0xff] %v15296_v51  ;;  %v15312_v47 = vadd.f32 %v18876_v46, %v18875_v21  ;;  %v18878_v26 = vld [vmem:[#allocation71_spill] sm:$0xff]  ;;  %v18882_v51 = vld [vmem:[#allocation94_spill] sm:$0xff]  ;;  %v18886_v49 = vld [vmem:[#allocation76_spill] sm:$0xff] }
 0x45c   :  { %18872 = vst [vmem:[#allocation178_spill] sm:$0xff] %v15304_v50  ;;  %18874 = vst [vmem:[#allocation177_spill] sm:$0xff] %v15308_v59  ;;  %v15316_v12 = vadd.f32 %v14797_v28, %v18878_v26  ;;  %v15322_v18 = vadd.f32 %v18882_v51, %v18881_v15  ;;  %v18884_v22 = vld [vmem:[#allocation110_spill] sm:$0xff]  ;;  %v18887_v38 = vld [vmem:[#allocation12_spill] sm:$0xff]  ;;  %v15336_v28 = vpop.f32.mrf.mxu0  ;;  %v15338_v26 = vpop.permute.xlu1 %6345 }
 0x45d   :  { %18877 = vst [vmem:[#allocation179_spill] sm:$0xff] %v15312_v47  ;;  %v15326_v50 = vadd.f32 %v18884_v22, %v18883_v63  ;;  %v15330_v59 = vadd.f32 %v18887_v38, %v18886_v49  ;;  %v18889_v46 = vld [vmem:[#allocation73_spill] sm:$0xff]  ;;  %v18890_v21 = vld [vmem:[#allocation11_spill] sm:$0xff]  ;;  %18892 = vst [vmem:[#allocation185_spill] sm:$0xff] %v15336_v28 }
 0x45e   :  { %18879 = vst [vmem:[#allocation181_spill] sm:$0xff] %v15316_v12  ;;  %v15334_v47 = vadd.f32 %v18890_v21, %v18889_v46  ;;  %v18893_v52 = vld [vmem:[#allocation75_spill] sm:$0xff]  ;;  %v18894_v12 = vld [vmem:[#allocation98_spill] sm:$0xff]  ;;  %v18898_v22 = vld [vmem:[#allocation48_spill] sm:$0xff]  ;;  %v5199_v21 = vpop.f32.mrf.mxu1 }
 0x45f   :  { %18885 = vst [vmem:[#allocation10_spill] sm:$0xff] %v15326_v50  ;;  %18888 = vst [vmem:[#allocation182_spill] sm:$0xff] %v15330_v59  ;;  %v15342_v51 = vadd.f32 %v18894_v12, %v18893_v52  ;;  %v18896_v15 = vld [vmem:[#allocation47_spill] sm:$0xff]  ;;  %v18899_v50 = vld [vmem:[#allocation96_spill] sm:$0xff] }
 0x460   :  { %18891 = vst [vmem:[#allocation78_spill] sm:$0xff] %v15334_v47  ;;  %v15346_v63 = vadd.f32 %v14823_v55, %v18896_v15  ;;  %v15350_v49 = vadd.f32 %v18899_v50, %v18898_v22  ;;  %v18900_v38 = vld [vmem:[#allocation23_spill] sm:$0xff]  ;;  %v18902_v28 = vld [vmem:[#allocation77_spill] sm:$0xff]  ;;  %v18904_v59 = vld [vmem:[#allocation56_spill] sm:$0xff]  ;;  %v6170_v50 = vadd.f32 %v5199_v21, %v15082_v10 }
 0x461   :  { %18895 = vst [vmem:[#allocation9_spill] sm:$0xff] %v15342_v51  ;;  %v15354_v46 = vadd.f32 %v14827_v62, %v18900_v38  ;;  %v15358_v47 = vadd.f32 %v14830_v60, %v18902_v28  ;;  %v18905_v12 = vld [vmem:[#allocation95_spill] sm:$0xff]  ;;  %v18907_v51 = vld [vmem:[#allocation49_spill] sm:$0xff]  ;;  %v18908_v55 = vld [vmem:[#allocation114_spill] sm:$0xff] }
 0x462   :  { %18897 = vst [vmem:[#allocation186_spill] sm:$0xff] %v15346_v63  ;;  %v15362_v52 = vadd.f32 %v18905_v12, %v18904_v59  ;;  %v15366_v15 = vadd.f32 %v18908_v55, %v18907_v51  ;;  %v15368_v63 = vpop.f32.mrf.mxu0  ;;  %v18910_v22 = vld [vmem:[#allocation28_spill] sm:$0xff]  ;;  %v18917_v12 = vld [vmem:[#allocation29_spill] sm:$0xff]  ;;  %v5201_v55 = vpop.f32.mrf.mxu1  ;;  %v18922_v21 = vld [vmem:[#allocation63_spill] sm:$0xff] }
 0x463   :  { %18901 = vst [vmem:[#allocation82_spill] sm:$0xff] %v15354_v46  ;;  %18903 = vst [vmem:[#allocation189_spill] sm:$0xff] %v15358_v47  ;;  %v18911_v62 = vld [vmem:[#allocation100_spill] sm:$0xff]  ;;  %v18913_v46 = vld [vmem:[#allocation65_spill] sm:$0xff] }
 0x464   :  { %18906 = vst [vmem:[#allocation97_spill] sm:$0xff] %v15362_v52  ;;  %18909 = vst [vmem:[#allocation188_spill] sm:$0xff] %v15368_v63  ;;  %v15373_v38 = vadd.f32 %v18911_v62, %v18910_v22  ;;  %v15377_v60 = vadd.f32 %v14853_v35, %v18913_v46  ;;  %v18915_v28 = vld [vmem:[#allocation24_spill] sm:$0xff]  ;;  %v18916_v47 = vld [vmem:[#allocation102_spill] sm:$0xff]  ;;  %v15393_v22 = vadd.f32 %v14857_v5, %v18922_v21  ;;  %v5146_v46 = vpop.f32.mrf.mxu0 }
 0x465   :  { %v15381_v59 = vadd.f32 %v18916_v47, %v18915_v28  ;;  %v18918_v52 = vld [vmem:[#allocation35_spill] sm:$0xff]  ;;  %v18920_v63 = vld [vmem:[#allocation52_spill] sm:$0xff]  ;;  %v6171_v47 = vadd.f32 %v5201_v55, %v15086_v20  ;;  %v15400_v28 = vpop.permute.xlu0 %6330  ;;  %v18931_v5 = vld [vmem:[#allocation34_spill] sm:$0xff] }
 0x466   :  { %18912 = vst [vmem:[#allocation30_spill] sm:$0xff] %v15373_v38  ;;  %18914 = vst [vmem:[#allocation191_spill] sm:$0xff] %v15377_v60  ;;  %v15385_v51 = vadd.f32 %v18918_v52, %v18917_v12  ;;  %v15389_v10 = vadd.f32 %v14860_v0, %v18920_v63  ;;  %v18924_v62 = vld [vmem:[#allocation59_spill] sm:$0xff]  ;;  %v18926_v52 = vld [vmem:[#allocation70_spill] sm:$0xff] }
 0x467   :  { %18923 = vst [vmem:[#allocation86_spill] sm:$0xff] %v15393_v22  ;;  %v15397_v35 = vadd.f32 %v14863_v24, %v18924_v62  ;;  %v18927_v12 = vld [vmem:[#allocation99_spill] sm:$0xff]  ;;  %v18929_v0 = vld [vmem:[#allocation92_spill] sm:$0xff]  ;;  %v6168_v24 = vadd.f32 %v5146_v46, %v15092_v13  ;;  %v5203_v62 = vpop.f32.mrf.mxu1 }
 0x468   :  { %18919 = vst [vmem:[#allocation84_spill] sm:$0xff] %v15385_v51  ;;  %18921 = vst [vmem:[#allocation192_spill] sm:$0xff] %v15389_v10  ;;  %v15404_v60 = vadd.f32 %v18927_v12, %v18926_v52  ;;  %v18928_v51 = vld [vmem:[#allocation54_spill] sm:$0xff]  ;;  %v18930_v10 = vld [vmem:[#allocation25_spill] sm:$0xff]  ;;  %v6350_v52 = vadd.f32 %v15400_v28, %v6170_v50  ;;  %v5148_v12 = vpop.f32.mrf.mxu0 }
 0x469   :  { %18925 = vst [vmem:[#allocation194_spill] sm:$0xff] %v15397_v35  ;;  %v15408_v63 = vadd.f32 %v18929_v0, %v18928_v51  ;;  %v15412_v21 = vadd.f32 %v18931_v5, %v18930_v10  ;;  %v18932_v35 = vld [vmem:[#allocation74_spill] sm:$0xff]  ;;  %v18934_v55 = vld [vmem:[#allocation40_spill] sm:$0xff]  ;;  %v6209_v51 = vadd.f32 %v5203_v62, %v15100_v41  ;;  %v15425_v0 = vpop.permute.xlu1 %6335  ;;  %v5205_v50 = vpop.f32.mrf.mxu1  ;;  %v6351_v62 = vadd.f32 %v15400_v28, %v6171_v47 }
 0x46a   :  { %v15417_v20 = vadd.f32 %v14883_v48, %v18932_v35  ;;  %v18935_v22 = vld [vmem:[#allocation16_spill] sm:$0xff]  ;;  %v18937_v10 = vld [vmem:[#allocation62_spill] sm:$0xff]  ;;  %v18940_v48 = vld [vmem:[#allocation7_spill] sm:$0xff] }
 0x46b   :  { %v15421_v38 = vadd.f32 %v18935_v22, %v18934_v55  ;;  %v15429_v5 = vadd.f32 %v14890_v54, %v18937_v10  ;;  %v18939_v13 = vld [vmem:[#allocation44_spill] sm:$0xff]  ;;  %v15437_v35 = vadd.f32 %v14893_v34, %v18940_v48  ;;  %v6169_v22 = vadd.f32 %v5148_v12, %v15096_v37  ;;  %v18942_v55 = vld [vmem:[#allocation43_spill] sm:$0xff]  ;;  %v18947_v34 = vld [vmem:[#allocation61_spill] sm:$0xff]  ;;  %v5209_v12 = vpop.f32.mrf.mxu1 }
 0x46c   :  { %18933 = vst [vmem:[#allocation101_spill] sm:$0xff] %v15417_v20  ;;  %v15433_v46 = vadd.f32 %v14887_v39, %v18939_v13  ;;  %v18943_v20 = vld [vmem:[#allocation103_spill] sm:$0xff]  ;;  %v6389_v54 = vadd.f32 %v15425_v0, %v6209_v51  ;;  %v6210_v10 = vadd.f32 %v5205_v50, %v15104_v58  ;;  %v18945_v39 = vld [vmem:[#allocation50_spill] sm:$0xff]  ;;  %v6348_v37 = vadd.f32 %v15400_v28, %v6168_v24 }
 0x46d   :  { %18936 = vst [vmem:[#allocation193_spill] sm:$0xff] %v15421_v38  ;;  %18938 = vst [vmem:[#allocation83_spill] sm:$0xff] %v15429_v5  ;;  %v15442_v41 = vadd.f32 %v18943_v20, %v18942_v55  ;;  %v5150_v38 = vpop.f32.mrf.mxu0  ;;  %v18946_v13 = vld [vmem:[#allocation14_spill] sm:$0xff]  ;;  %v18948_v48 = vld [vmem:[#allocation107_spill] sm:$0xff]  ;;  %v6506_v55 = vmax.f32 %v6350_v52, 0.0  ;;  %v6248_v58 = vadd.f32 %v5209_v12, %v15118_v33 }
 0x46e   :  { %18941 = vst [vmem:[#allocation195_spill] sm:$0xff] %v15437_v35  ;;  %v15449_v5 = vadd.f32 %v18946_v13, %v18945_v39  ;;  %v15453_v35 = vadd.f32 %v18948_v48, %v18947_v34  ;;  %v6207_v20 = vadd.f32 %v5150_v38, %v15110_v25  ;;  %v6545_v47 = vmax.f32 %v6389_v54, 0.0  ;;  %v18950_v50 = vld [vmem:[#allocation27_spill] sm:$0xff]  ;;  %v5211_v48 = vpop.f32.mrf.mxu1 }
 0x46f   :  { %18944 = vst [vmem:[#allocation197_spill] sm:$0xff] %v15442_v41  ;;  %v5152_v41 = vpop.f32.mrf.mxu0  ;;  %v6390_v51 = vadd.f32 %v15425_v0, %v6210_v10  ;;  %v15461_v39 = vadd.f32 %v14910_v36, %v18950_v50  ;;  %v6349_v13 = vadd.f32 %v15400_v28, %v6169_v22  ;;  %v6507_v25 = vmax.f32 %v6351_v62, 0.0  ;;  %v18953_v22 = vld [vmem:[#allocation51_spill] sm:$0xff] }
 0x470   :  { %18949 = vst [vmem:[#allocation90_spill] sm:$0xff] %v15453_v35  ;;  %v6387_v34 = vadd.f32 %v15425_v0, %v6207_v20  ;;  %v6208_v24 = vadd.f32 %v5152_v41, %v15114_v29  ;;  %v15466_v38 = vpack.c.bf16 %v6545_v47, %v6506_v55  ;;  %v6249_v10 = vadd.f32 %v5211_v48, %v15122_v27  ;;  %v5213_v50 = vpop.f32.mrf.mxu1 }
 0x471   :  { %18951 = vst [vmem:[#allocation58_spill] sm:$0xff] %v15461_v39  ;;  %v6546_v52 = vmax.f32 %v6390_v51, 0.0  ;;  %v5156_v54 = vpop.f32.mrf.mxu0  ;;  %v6504_v35 = vmax.f32 %v6348_v37, 0.0  ;;  %v18954_v39 = vld [vmem:[#allocation121_spill] sm:$0xff]  ;;  %v6428_v29 = vadd.f32 %v15300_v6, %v6248_v58  ;;  %v6287_v62 = vadd.f32 %v5213_v50, %v15136_v40 }
 0x472   :  { %18952 = vst [vmem:[#allocation88_spill] sm:$0xff] %v15466_v38  ;;  %v6543_v33 = vmax.f32 %v6387_v34, 0.0  ;;  %v6388_v12 = vadd.f32 %v15425_v0, %v6208_v24  ;;  %v6246_v36 = vadd.f32 %v5156_v54, %v15128_v31  ;;  %v15473_v20 = vadd.f32 %v18954_v39, %v18953_v22  ;;  %v5215_v34 = vpop.f32.mrf.mxu1  ;;  %v18957_v31 = vld [vmem:[#allocation81_spill] sm:$0xff] }
 0x473   :  { %v5158_v41 = vpop.f32.mrf.mxu0  ;;  %v15477_v55 = vpack.c.bf16 %v6546_v52, %v6507_v25  ;;  %v6505_v47 = vmax.f32 %v6349_v13, 0.0  ;;  %v15484_v24 = vadd.f32 %v14917_v43, %v18957_v31  ;;  %v6429_v39 = vadd.f32 %v15300_v6, %v6249_v10  ;;  %v18958_v25 = vld [vmem:[#allocation53_spill] sm:$0xff] }
 0x474   :  { %v15479_v27 = vpack.c.bf16 %v6543_v33, %v6504_v35  ;;  %v6544_v37 = vmax.f32 %v6388_v12, 0.0  ;;  %v6247_v51 = vadd.f32 %v5158_v41, %v15132_v56  ;;  %v6467_v58 = vadd.f32 %v15338_v26, %v6287_v62  ;;  %v5305_v52 = vpop.f32.mrf.mxu1  ;;  %v18960_v22 = vld [vmem:[#allocation85_spill] sm:$0xff] }
 0x475   :  { %18955 = vst [vmem:[#allocation198_spill] sm:$0xff] %v15477_v55  ;;  %v5160_v48 = vpop.f32.mrf.mxu0  ;;  %v6288_v40 = vadd.f32 %v5215_v34, %v15140_v3  ;;  %v15491_v13 = vadd.f32 %v14920_v11, %v18958_v25  ;;  %v6426_v35 = vadd.f32 %v15300_v6, %v6246_v36  ;;  %v6584_v43 = vmax.f32 %v6428_v29, 0.0 }
 0x476   :  { %18956 = vst [vmem:[#allocation33_spill] sm:$0xff] %v15479_v27  ;;  %v6285_v56 = vadd.f32 %v5160_v48, %v15144_v45  ;;  %v15495_v54 = vpack.c.bf16 %v6544_v37, %v6505_v47  ;;  %v6623_v33 = vmax.f32 %v6467_v58, 0.0  ;;  %v6174_v50 = vadd.f32 %v5305_v52, %v15152_v4  ;;  %v5307_v41 = vpop.f32.mrf.mxu1 }
 0x477   :  { %v5162_v12 = vpop.f32.mrf.mxu0  ;;  %v6468_v10 = vadd.f32 %v15338_v26, %v6288_v40  ;;  %v15501_v3 = vadd.f32 %v14923_v30, %v18960_v22  ;;  %v6427_v11 = vadd.f32 %v15300_v6, %v6247_v51  ;;  %v6585_v62 = vmax.f32 %v6429_v39, 0.0  ;;  %v18962_v51 = vld [vmem:[#allocation68_spill] sm:$0xff]  ;;  %v18963_v40 = vld [vmem:[#allocation13_spill] sm:$0xff] }
 0x478   :  { %18959 = vst [vmem:[#allocation199_spill] sm:$0xff] %v15495_v54  ;;  %v6465_v36 = vadd.f32 %v15338_v26, %v6285_v56  ;;  %v6286_v45 = vadd.f32 %v5162_v12, %v15148_v2  ;;  %v15506_v47 = vpack.c.bf16 %v6623_v33, %v6584_v43  ;;  %v6175_v34 = vadd.f32 %v5307_v41, %v15156_v8  ;;  %v5309_v58 = vpop.f32.mrf.mxu1  ;;  %v18966_v12 = vld [vmem:[#allocation89_spill] sm:$0xff] }
 0x479   :  { %v6624_v29 = vmax.f32 %v6468_v10, 0.0  ;;  %v5252_v37 = vpop.f32.mrf.mxu0  ;;  %v6582_v31 = vmax.f32 %v6426_v35, 0.0  ;;  %v15513_v25 = vadd.f32 %v18963_v40, %v18962_v51  ;;  %v6354_v2 = vadd.f32 %v15400_v28, %v6174_v50  ;;  %v18967_v10 = vld [vmem:[#allocation111_spill] sm:$0xff]  ;;  %v18969_v41 = vld [vmem:[#allocation109_spill] sm:$0xff] }
 0x47a   :  { %18961 = vst [vmem:[#allocation32_spill] sm:$0xff] %v15506_v47  ;;  %v6621_v4 = vmax.f32 %v6465_v36, 0.0  ;;  %v6466_v48 = vadd.f32 %v15338_v26, %v6286_v45  ;;  %v6172_v30 = vadd.f32 %v5252_v37, %v15162_v61  ;;  %v6213_v56 = vadd.f32 %v5309_v58, %v15170_v57  ;;  %v5311_v61 = vpop.f32.mrf.mxu1  ;;  %v18971_v51 = vld [vmem:[#allocation201_spill] sm:$0xff] }
 0x47b   :  { %v5254_v39 = vpop.f32.mrf.mxu0  ;;  %v15517_v52 = vpack.c.bf16 %v6624_v29, %v6585_v62  ;;  %v6583_v8 = vmax.f32 %v6427_v11, 0.0  ;;  %v15524_v22 = vadd.f32 %v18967_v10, %v18966_v12  ;;  %v6355_v36 = vadd.f32 %v15400_v28, %v6175_v34  ;;  %v18968_v11 = vld [vmem:[#allocation26_spill] sm:$0xff] }
 0x47c   :  { %v15519_v35 = vpack.c.bf16 %v6621_v4, %v6582_v31  ;;  %v6622_v43 = vmax.f32 %v6466_v48, 0.0  ;;  %v6173_v33 = vadd.f32 %v5254_v39, %v15166_v44  ;;  %v6393_v50 = vadd.f32 %v15425_v0, %v6213_v56  ;;  %v5315_v31 = vpop.f32.mrf.mxu1 }
 0x47d   :  { %18964 = vst [vmem:[#allocation57_spill] sm:$0xff] %v15517_v52  ;;  %v5256_v45 = vpop.f32.mrf.mxu0  ;;  %v6214_v57 = vadd.f32 %v5311_v61, %v15174_v7  ;;  %6807 = vmatprep.subr.bf16.mxu0 %v15517_v52  ;;  %v15532_v62 = vadd.f32 %v18969_v41, %v18968_v11  ;;  %v6352_v44 = vadd.f32 %v15400_v28, %v6172_v30  ;;  %v6510_v34 = vmax.f32 %v6354_v2, 0.0 }
 0x47e   :  { %18965 = vst [vmem:[#allocation87_spill] sm:$0xff] %v15519_v35  ;;  %v6211_v29 = vadd.f32 %v5256_v45, %v15180_v9  ;;  %v15536_v37 = vpack.c.bf16 %v6622_v43, %v6583_v8  ;;  %6808 = vmatpush1.bf16.msra.mxu0 %v15506_v47  ;;  %v6549_v4 = vmax.f32 %v6393_v50, 0.0  ;;  %v6252_v58 = vadd.f32 %v5315_v31, %v15188_v23  ;;  %v5317_v2 = vpop.f32.mrf.mxu1  ;;  %v18973_v45 = vld [vmem:[#allocation200_spill] sm:$0xff]  ;;  %v18974_v50 = vld [vmem:[#allocation125_spill] sm:$0xff] }
 0x47f   :  { %v5258_v48 = vpop.f32.mrf.mxu0  ;;  %v6394_v7 = vadd.f32 %v15425_v0, %v6214_v57  ;;  %6809 = vmatprep.subr.bf16.mxu0 %v15477_v55  ;;  %v15544_v40 = vadd.f32 %v14940_v19, %v18971_v51  ;;  %v6353_v9 = vadd.f32 %v15400_v28, %v6173_v33  ;;  %v6511_v56 = vmax.f32 %v6355_v36, 0.0  ;;  %v15557_v19 = vld [vmem:[%s17466_s5 + $0x8] sm:$0xff]  }
 0x480   :  { %18970 = vst [vmem:[#allocation67_spill] sm:$0xff] %v15536_v37  ;;  %v6391_v30 = vadd.f32 %v15425_v0, %v6211_v29  ;;  %v6212_v39 = vadd.f32 %v5258_v48, %v15184_v42  ;;  %6764 = vmatprep.subr.bf16.mxu1 %v15536_v37  ;;  %v15550_v8 = vpack.c.bf16 %v6549_v4, %v6510_v34  ;;  %v6508_v33 = vmax.f32 %v6352_v44, 0.0  ;;  %v5319_v36 = vpop.f32.mrf.mxu1 }
 0x481   :  { %v6550_v43 = vmax.f32 %v6394_v7, 0.0  ;;  %v5262_v23 = vpop.f32.mrf.mxu0  ;;  %6765 = vmatpush1.bf16.msra.mxu1 %v15519_v35  ;;  %v6253_v61 = vadd.f32 %v5317_v2, %v15192_v14  ;;  %v15565_v57 = vadd.f32 %v18974_v50, %v18973_v45  ;;  %v6432_v14 = vadd.f32 %v15300_v6, %v6252_v58  ;;  %v18977_v58 = vld [vmem:[#allocation149_spill] sm:$0xff] }
 0x482   :  { %18972 = vst [vmem:[#allocation93_spill] sm:$0xff] %v15550_v8  ;;  %v6547_v12 = vmax.f32 %v6391_v30, 0.0  ;;  %v6392_v42 = vadd.f32 %v15425_v0, %v6212_v39  ;;  %v6250_v10 = vadd.f32 %v5262_v23, %v15198_v32  ;;  %6766 = vmatprep.subr.bf16.mxu1 %v15495_v54  ;;  %6810 = vmatpush1.bf16.msra.mxu0 %v15466_v38  ;;  %v6509_v29 = vmax.f32 %v6353_v9, 0.0  ;;  %v5321_v4 = vpop.f32.mrf.mxu1  ;;  %v18979_v9 = vld [vmem:[#allocation108_spill] sm:$0xff]  ;;  %v18983_v45 = vld [vmem:[#allocation157_spill] sm:$0xff] }
 0x483   :  { %v5264_v11 = vpop.f32.mrf.mxu0  ;;  %v6291_v41 = vadd.f32 %v5319_v36, %v15206_v1  ;;  %v15569_v44 = vpack.c.bf16 %v6550_v43, %v6511_v56  ;;  %v6433_v48 = vadd.f32 %v15300_v6, %v6253_v61  ;;  %v6292_v30 = vadd.f32 %v5321_v4, %v18977_v58  ;;  %v18978_v1 = vld [vmem:[#allocation203_spill] sm:$0xff]  ;;  %v18998_v54 = vld [vmem:[#allocation161_spill] sm:$0xff] }
 0x484   :  { %v15571_v31 = vpack.c.bf16 %v6547_v12, %v6508_v33  ;;  %v6548_v32 = vmax.f32 %v6392_v42, 0.0  ;;  %v6251_v34 = vadd.f32 %v5264_v11, %v15202_v16  ;;  %v15582_v39 = vadd.f32 %v18979_v9, %v18978_v1  ;;  %v18980_v16 = vld [vmem:[#allocation151_spill] sm:$0xff]  ;;  %v5411_v43 = vpop.f32.mrf.mxu1  ;;  %v18984_v11 = vld [vmem:[#allocation202_spill] sm:$0xff] }
 0x485   :  { %18975 = vst [vmem:[#allocation55_spill] sm:$0xff] %v15569_v44  ;;  %v5266_v7 = vpop.f32.mrf.mxu0  ;;  %v6471_v51 = vadd.f32 %v15338_v26, %v6291_v41  ;;  %6767 = vmatpush1.bf16.msra.mxu1 %v15479_v27  ;;  %10131 = vmatmul.mubr.msk.bf16.vlgmr.msra.gmra.mxu0 %vm6748_vm1, %v15557_v19  ;;  %v6430_v2 = vadd.f32 %v15300_v6, %v6250_v10  ;;  %v18982_v61 = vmov 0   ;;  %v6588_v33 = vmax.f32 %v6432_v14, 0.0  ;;  %v18985_v41 = vld [vmem:[#allocation115_spill] sm:$0xff]  ;;  %v18988_v9 = vld [vmem:[#allocation154_spill] sm:$0xff] }
 0x486   :  { %18976 = vst [vmem:[#allocation106_spill] sm:$0xff] %v15571_v31  ;;  %v6289_v56 = vadd.f32 %v5266_v7, %v18980_v16  ;;  %v15586_v23 = vpack.c.bf16 %v6548_v32, %v6509_v29  ;;  %6913 = vmatprep.mubr.bf16.mxu0 %v18982_v61  ;;  %v6472_v36 = vadd.f32 %v15338_v26, %v6292_v30  ;;  %v18986_v58 = vld [vmem:[#allocation155_spill] sm:$0xff]  ;;  %v5413_v32 = vpop.f32.mrf.mxu1  ;;  %v6589_v14 = vmax.f32 %v6433_v48, 0.0 }
 0x487   :  { %v6627_v12 = vmax.f32 %v6471_v51, 0.0  ;;  %v5268_v42 = vpop.f32.mrf.mxu0  ;;  %v6178_v50 = vadd.f32 %v5411_v43, %v18983_v45  ;;  %v15593_v4 = vadd.f32 %v18985_v41, %v18984_v11  ;;  %v6431_v10 = vadd.f32 %v15300_v6, %v6251_v34  ;;  %v18990_v41 = vld [vmem:[#allocation205_spill] sm:$0xff] }
 0x488   :  { %18981 = vst [vmem:[#allocation66_spill] sm:$0xff] %v15586_v23  ;;  %v6469_v7 = vadd.f32 %v15338_v26, %v6289_v56  ;;  %v6290_v29 = vadd.f32 %v5268_v42, %v18986_v58  ;;  %10130 = vmatmul.mubr.msk.bf16.vlgmr.msra.gmra.mxu1 %vm6748_vm1, %v15557_v19  ;;  %v6628_v30 = vmax.f32 %v6472_v36, 0.0  ;;  %v6179_v16 = vadd.f32 %v5413_v32, %v18988_v9  ;;  %v18989_v56 = vld [vmem:[#allocation160_spill] sm:$0xff]  ;;  %v5415_v42 = vpop.f32.mrf.mxu1  ;;  %v18991_v58 = vld [vmem:[#allocation113_spill] sm:$0xff] }
 0x489   :  { %v15600_v51 = vpack.c.bf16 %v6627_v12, %v6588_v33  ;;  %v5358_v1 = vpop.f32.mrf.mxu0  ;;  %6870 = vmatprep.mubr.bf16.mxu1 %v18982_v61  ;;  %v6586_v43 = vmax.f32 %v6430_v2, 0.0  ;;  %v15608_v55 = vadd.f32 %v18991_v58, %v18990_v41  ;;  %v6358_v48 = vadd.f32 %v15400_v28, %v6178_v50  ;;  %v18992_v12 = vld [vmem:[#allocation159_spill] sm:$0xff] }
 0x48a   :  { %v6625_v45 = vmax.f32 %v6469_v7, 0.0  ;;  %v6470_v34 = vadd.f32 %v15338_v26, %v6290_v29  ;;  %v6176_v11 = vadd.f32 %v5358_v1, %v18989_v56  ;;  %v6217_v36 = vadd.f32 %v5415_v42, %v18992_v12  ;;  %v18995_v7 = vld [vmem:[#allocation162_spill] sm:$0xff]  ;;  %v5417_v27 = vpop.f32.mrf.mxu1  ;;  %v18996_v1 = vld [vmem:[#allocation204_spill] sm:$0xff]  ;;  %v18997_v56 = vld [vmem:[#allocation37_spill] sm:$0xff] }
 0x48b   :  { %18987 = vst [vmem:[#allocation64_spill] sm:$0xff] %v15600_v51  ;;  %v5360_v33 = vpop.f32.mrf.mxu0  ;;  %v15612_v52 = vpack.c.bf16 %v6628_v30, %v6589_v14  ;;  %v6587_v32 = vmax.f32 %v6431_v10, 0.0  ;;  %v15619_v35 = vadd.f32 %v18997_v56, %v18996_v1  ;;  %v6359_v41 = vadd.f32 %v15400_v28, %v6179_v16  ;;  %v18999_v10 = vld [vmem:[#allocation207_spill] sm:$0xff]  ;;  %v19000_v14 = vld [vmem:[#allocation112_spill] sm:$0xff]  ;;  %v19005_v56 = vld [vmem:[#allocation206_spill] sm:$0xff] }
 0x48c   :  { %v15614_v9 = vpack.c.bf16 %v6625_v45, %v6586_v43  ;;  %v6626_v2 = vmax.f32 %v6470_v34, 0.0  ;;  %v6177_v29 = vadd.f32 %v5360_v33, %v18995_v7  ;;  %v6397_v50 = vadd.f32 %v15425_v0, %v6217_v36  ;;  %v19002_v45 = vld [vmem:[#allocation167_spill] sm:$0xff]  ;;  %v5421_v12 = vpop.f32.mrf.mxu1 }
 0x48d   :  { %18993 = vst [vmem:[#allocation91_spill] sm:$0xff] %v15612_v52  ;;  %v5362_v58 = vpop.f32.mrf.mxu0  ;;  %v6218_v42 = vadd.f32 %v5417_v27, %v18998_v54  ;;  %6893 = vmatprep.subr.bf16.mxu0 %v15612_v52  ;;  %v15627_v30 = vadd.f32 %v19000_v14, %v18999_v10  ;;  %v6356_v43 = vadd.f32 %v15400_v28, %v6176_v11  ;;  %v6514_v16 = vmax.f32 %v6358_v48, 0.0  ;;  %v19004_v54 = vld [vmem:[#allocation6_spill] sm:$0xff]  ;;  %v19006_v10 = vld [vmem:[#allocation36_spill] sm:$0xff] }
 0x48e   :  { %18994 = vst [vmem:[#allocation71_spill] sm:$0xff] %v15614_v9  ;;  %v6215_v34 = vadd.f32 %v5362_v58, %v19002_v45  ;;  %v15631_v33 = vpack.c.bf16 %v6626_v2, %v6587_v32  ;;  %6894 = vmatpush1.bf16.msra.mxu0 %v15600_v51  ;;  %v6553_v7 = vmax.f32 %v6397_v50, 0.0  ;;  %v6256_v1 = vadd.f32 %v5421_v12, %v19004_v54  ;;  %v19007_v2 = vld [vmem:[#allocation165_spill] sm:$0xff]  ;;  %v5423_v48 = vpop.f32.mrf.mxu1  ;;  %v19009_v54 = vld [vmem:[#allocation4_spill] sm:$0xff]  ;;  %v19010_v52 = vld [vmem:[#allocation2_spill] sm:$0xff] }
 0x48f   :  { %19001 = vst [vmem:[#allocation72_spill] sm:$0xff] %v15627_v30  ;;  %v5364_v36 = vpop.f32.mrf.mxu0  ;;  %v6398_v27 = vadd.f32 %v15425_v0, %v6218_v42  ;;  %6895 = vmatprep.subr.bf16.mxu0 %v15569_v44  ;;  %v15639_v14 = vadd.f32 %v19006_v10, %v19005_v56  ;;  %v6357_v11 = vadd.f32 %v15400_v28, %v6177_v29  ;;  %v6515_v50 = vmax.f32 %v6359_v41, 0.0  ;;  %v19011_v41 = vld [vmem:[#allocation209_spill] sm:$0xff] }
 0x490   :  { %19003 = vst [vmem:[#allocation94_spill] sm:$0xff] %v15631_v33  ;;  %v6395_v32 = vadd.f32 %v15425_v0, %v6215_v34  ;;  %v6216_v58 = vadd.f32 %v5364_v36, %v19007_v2  ;;  %6850 = vmatprep.subr.bf16.mxu1 %v15631_v33  ;;  %v15645_v45 = vpack.c.bf16 %v6553_v7, %v6514_v16  ;;  %v6512_v56 = vmax.f32 %v6356_v43, 0.0  ;;  %v5425_v36 = vpop.f32.mrf.mxu1  ;;  %v19012_v16 = vld [vmem:[#allocation118_spill] sm:$0xff]  ;;  %v19029_v51 = vld [vmem:[#allocation105_spill] sm:$0xff] }
 0x491   :  { %v6554_v42 = vmax.f32 %v6398_v27, 0.0  ;;  %v5368_v12 = vpop.f32.mrf.mxu0  ;;  %6851 = vmatpush1.bf16.msra.mxu1 %v15614_v9  ;;  %v6257_v44 = vadd.f32 %v5423_v48, %v19009_v54  ;;  %v15655_v7 = vadd.f32 %v19012_v16, %v19011_v41  ;;  %v6436_v27 = vadd.f32 %v15300_v6, %v6256_v1  ;;  %v19016_v1 = vld [vmem:[#allocation22_spill] sm:$0xff]  ;;  %v19036_v30 = vld [vmem:[#allocation181_spill] sm:$0xff] }
 0x492   :  { %19008 = vst [vmem:[#allocation69_spill] sm:$0xff] %v15645_v45  ;;  %v6551_v10 = vmax.f32 %v6395_v32, 0.0  ;;  %v6396_v29 = vadd.f32 %v15425_v0, %v6216_v58  ;;  %v6254_v34 = vadd.f32 %v5368_v12, %v19010_v52  ;;  %6852 = vmatprep.subr.bf16.mxu1 %v15586_v23  ;;  %6896 = vmatpush1.bf16.msra.mxu0 %v15550_v8  ;;  %v6513_v32 = vmax.f32 %v6357_v11, 0.0  ;;  %v19015_v12 = vld [vmem:[#allocation169_spill] sm:$0xff]  ;;  %v5427_v9 = vpop.f32.mrf.mxu1 }
 0x493   :  { %v5370_v2 = vpop.f32.mrf.mxu0  ;;  %v6295_v48 = vadd.f32 %v5425_v36, %v15276_v17  ;;  %v15659_v43 = vpack.c.bf16 %v6554_v42, %v6515_v50  ;;  %v6437_v23 = vadd.f32 %v15300_v6, %v6257_v44  ;;  %v6296_v16 = vadd.f32 %v5427_v9, %v19016_v1  ;;  %v19017_v17 = vld [vmem:[#allocation208_spill] sm:$0xff]  ;;  %v19018_v11 = vld [vmem:[#allocation129_spill] sm:$0xff]  ;;  %v19022_v1 = vld [vmem:[#allocation211_spill] sm:$0xff] }
 0x494   :  { %v15661_v58 = vpack.c.bf16 %v6551_v10, %v6512_v56  ;;  %v6552_v52 = vmax.f32 %v6396_v29, 0.0  ;;  %v6255_v54 = vadd.f32 %v5370_v2, %v19015_v12  ;;  %v15672_v50 = vadd.f32 %v19018_v11, %v19017_v17  ;;  %v5517_v10 = vpop.f32.mrf.mxu1 }
 0x495   :  { %19013 = vst [vmem:[#allocation110_spill] sm:$0xff] %v15659_v43  ;;  %v5372_v8 = vpop.f32.mrf.mxu0  ;;  %v6475_v41 = vadd.f32 %v15338_v26, %v6295_v48  ;;  %6853 = vmatpush1.bf16.msra.mxu1 %v15571_v31  ;;  %10133 = vmatmul.mubr.msk.bf16.vlgmr.msra.gmra.mxu0 %vm6748_vm1, %v15557_v19  ;;  %v6434_v42 = vadd.f32 %v15300_v6, %v6254_v34  ;;  %v6592_v29 = vmax.f32 %v6436_v27, 0.0  ;;  %v19021_v48 = vld [vmem:[#allocation171_spill] sm:$0xff]  ;;  %v19023_v31 = vld [vmem:[#allocation116_spill] sm:$0xff]  ;;  %v6593_v27 = vmax.f32 %v6437_v23, 0.0 }
 0x496   :  { %19014 = vst [vmem:[#allocation76_spill] sm:$0xff] %v15661_v58  ;;  %19019 = vst [vmem:[#allocation12_spill] sm:$0xff] %v15672_v50  ;;  %v6293_v56 = vadd.f32 %v5372_v8, %v15284_v53  ;;  %v15676_v44 = vpack.c.bf16 %v6552_v52, %v6513_v32  ;;  %6999 = vmatprep.mubr.bf16.mxu0 %v18982_v61  ;;  %v6476_v9 = vadd.f32 %v15338_v26, %v6296_v16  ;;  %v19024_v8 = vld [vmem:[#allocation173_spill] sm:$0xff]  ;;  %v5519_v52 = vpop.f32.mrf.mxu1 }
 0x497   :  { %v6631_v36 = vmax.f32 %v6475_v41, 0.0  ;;  %v5374_v2 = vpop.f32.mrf.mxu0  ;;  %v6182_v12 = vadd.f32 %v5517_v10, %v19021_v48  ;;  %v15683_v17 = vadd.f32 %v19023_v31, %v19022_v1  ;;  %v6435_v34 = vadd.f32 %v15300_v6, %v6255_v54  ;;  %v19026_v10 = vld [vmem:[#allocation174_spill] sm:$0xff] }
 0x498   :  { %19020 = vst [vmem:[#allocation73_spill] sm:$0xff] %v15676_v44  ;;  %v6473_v53 = vadd.f32 %v15338_v26, %v6293_v56  ;;  %v6294_v32 = vadd.f32 %v5374_v2, %v19024_v8  ;;  %10132 = vmatmul.mubr.msk.bf16.vlgmr.msra.gmra.mxu1 %vm6748_vm1, %v15557_v19  ;;  %v6632_v16 = vmax.f32 %v6476_v9, 0.0  ;;  %v6183_v48 = vadd.f32 %v5519_v52, %v19026_v10  ;;  %v19027_v56 = vld [vmem:[#allocation178_spill] sm:$0xff]  ;;  %v5521_v2 = vpop.f32.mrf.mxu1 }
 0x499   :  { %v15690_v41 = vpack.c.bf16 %v6631_v36, %v6592_v29  ;;  %v5464_v11 = vpop.f32.mrf.mxu0  ;;  %6956 = vmatprep.mubr.bf16.mxu1 %v18982_v61  ;;  %v6590_v31 = vmax.f32 %v6434_v42, 0.0  ;;  %v19028_v8 = vld [vmem:[#allocation210_spill] sm:$0xff]  ;;  %v6362_v23 = vadd.f32 %v15400_v28, %v6182_v12  ;;  %v19030_v36 = vld [vmem:[#allocation179_spill] sm:$0xff]  ;;  %v6591_v52 = vmax.f32 %v6435_v34, 0.0  ;;  %v19037_v34 = vld [vmem:[#allocation212_spill] sm:$0xff] }
 0x49a   :  { %v6629_v1 = vmax.f32 %v6473_v53, 0.0  ;;  %v6474_v54 = vadd.f32 %v15338_v26, %v6294_v32  ;;  %v6180_v33 = vadd.f32 %v5464_v11, %v19027_v56  ;;  %v15698_v38 = vadd.f32 %v19029_v51, %v19028_v8  ;;  %v19033_v53 = vld [vmem:[#allocation177_spill] sm:$0xff]  ;;  %v5523_v47 = vpop.f32.mrf.mxu1  ;;  %v19035_v56 = vld [vmem:[#allocation15_spill] sm:$0xff] }
 0x49b   :  { %19025 = vst [vmem:[#allocation11_spill] sm:$0xff] %v15690_v41  ;;  %v5466_v29 = vpop.f32.mrf.mxu0  ;;  %v6221_v9 = vadd.f32 %v5521_v2, %v19030_v36  ;;  %v15702_v37 = vpack.c.bf16 %v6632_v16, %v6593_v27  ;;  %v19034_v11 = vld [vmem:[#allocation213_spill] sm:$0xff]  ;;  %v6363_v51 = vadd.f32 %v15400_v28, %v6183_v48  ;;  %v6222_v2 = vadd.f32 %v5523_v47, %v19036_v30  ;;  %v19038_v27 = vld [vmem:[#allocation104_spill] sm:$0xff]  ;;  %v19041_v30 = vld [vmem:[#allocation182_spill] sm:$0xff] }
 0x49c   :  { %v15704_v10 = vpack.c.bf16 %v6629_v1, %v6590_v31  ;;  %v6630_v42 = vmax.f32 %v6474_v54, 0.0  ;;  %v6181_v32 = vadd.f32 %v5466_v29, %v19033_v53  ;;  %v15709_v50 = vadd.f32 %v19035_v56, %v19034_v11  ;;  %v5527_v29 = vpop.f32.mrf.mxu1  ;;  %v19042_v11 = vld [vmem:[#allocation133_spill] sm:$0xff]  ;;  %v19043_v56 = vld [vmem:[#allocation122_spill] sm:$0xff] }
 0x49d   :  { %19031 = vst [vmem:[#allocation75_spill] sm:$0xff] %v15702_v37  ;;  %v5468_v8 = vpop.f32.mrf.mxu0  ;;  %v6401_v12 = vadd.f32 %v15425_v0, %v6221_v9  ;;  %6979 = vmatprep.subr.bf16.mxu0 %v15702_v37  ;;  %v15717_v16 = vadd.f32 %v19038_v27, %v19037_v34  ;;  %v6360_v31 = vadd.f32 %v15400_v28, %v6180_v33  ;;  %v6518_v48 = vmax.f32 %v6362_v23, 0.0 }
 0x49e   :  { %19032 = vst [vmem:[#allocation98_spill] sm:$0xff] %v15704_v10  ;;  %v6219_v1 = vadd.f32 %v5468_v8, %v15322_v18  ;;  %v15721_v54 = vpack.c.bf16 %v6630_v42, %v6591_v52  ;;  %6980 = vmatpush1.bf16.msra.mxu0 %v15690_v41  ;;  %v6402_v47 = vadd.f32 %v15425_v0, %v6222_v2  ;;  %v19044_v52 = vld [vmem:[#allocation10_spill] sm:$0xff]  ;;  %v5529_v23 = vpop.f32.mrf.mxu1  ;;  %v6519_v8 = vmax.f32 %v6363_v51, 0.0 }
 0x49f   :  { %19039 = vst [vmem:[#allocation47_spill] sm:$0xff] %v15717_v16  ;;  %v6557_v36 = vmax.f32 %v6401_v12, 0.0  ;;  %v5470_v9 = vpop.f32.mrf.mxu0  ;;  %v6260_v53 = vadd.f32 %v5527_v29, %v19041_v30  ;;  %6981 = vmatprep.subr.bf16.mxu0 %v15659_v43  ;;  %v15729_v34 = vadd.f32 %v19043_v56, %v19042_v11  ;;  %v6361_v18 = vadd.f32 %v15400_v28, %v6181_v32  ;;  %v19046_v29 = vld [vmem:[#allocation78_spill] sm:$0xff]  ;;  %v19047_v43 = vld [vmem:[#allocation9_spill] sm:$0xff] }
 0x4a0   :  { %19040 = vst [vmem:[#allocation48_spill] sm:$0xff] %v15721_v54  ;;  %v6399_v33 = vadd.f32 %v15425_v0, %v6219_v1  ;;  %v6220_v42 = vadd.f32 %v5470_v9, %v19044_v52  ;;  %6936 = vmatprep.subr.bf16.mxu1 %v15721_v54  ;;  %v6558_v2 = vmax.f32 %v6402_v47, 0.0  ;;  %v6261_v30 = vadd.f32 %v5529_v23, %v19046_v29  ;;  %v5531_v9 = vpop.f32.mrf.mxu1  ;;  %v19048_v51 = vld [vmem:[#allocation214_spill] sm:$0xff] }
 0x4a1   :  { %v15735_v12 = vpack.c.bf16 %v6557_v36, %v6518_v48  ;;  %v5474_v27 = vpop.f32.mrf.mxu0  ;;  %6937 = vmatpush1.bf16.msra.mxu1 %v15704_v10  ;;  %v6516_v11 = vmax.f32 %v6360_v31, 0.0  ;;  %v19049_v48 = vld [vmem:[#allocation120_spill] sm:$0xff]  ;;  %v6440_v47 = vadd.f32 %v15300_v6, %v6260_v53  ;;  %v6299_v23 = vadd.f32 %v5531_v9, %v15350_v49  ;;  %v19053_v53 = vld [vmem:[#allocation82_spill] sm:$0xff] }
 0x4a2   :  { %v6555_v56 = vmax.f32 %v6399_v33, 0.0  ;;  %v6400_v32 = vadd.f32 %v15425_v0, %v6220_v42  ;;  %v6258_v1 = vadd.f32 %v5474_v27, %v19047_v43  ;;  %6938 = vmatprep.subr.bf16.mxu1 %v15676_v44  ;;  %6982 = vmatpush1.bf16.msra.mxu0 %v15645_v45  ;;  %v15745_v36 = vadd.f32 %v19049_v48, %v19048_v51  ;;  %v19052_v27 = vld [vmem:[#allocation186_spill] sm:$0xff]  ;;  %v5533_v37 = vpop.f32.mrf.mxu1  ;;  %v19054_v49 = vld [vmem:[#allocation216_spill] sm:$0xff] }
 0x4a3   :  { %19045 = vst [vmem:[#allocation96_spill] sm:$0xff] %v15735_v12  ;;  %v5476_v52 = vpop.f32.mrf.mxu0  ;;  %v15749_v31 = vpack.c.bf16 %v6558_v2, %v6519_v8  ;;  %v6517_v33 = vmax.f32 %v6361_v18, 0.0  ;;  %v6441_v10 = vadd.f32 %v15300_v6, %v6261_v30  ;;  %v6479_v51 = vadd.f32 %v15338_v26, %v6299_v23  ;;  %v19055_v18 = vld [vmem:[#allocation137_spill] sm:$0xff]  ;;  %v19065_v45 = vld [vmem:[#allocation126_spill] sm:$0xff] }
 0x4a4   :  { %v15751_v42 = vpack.c.bf16 %v6555_v56, %v6516_v11  ;;  %v6556_v43 = vmax.f32 %v6400_v32, 0.0  ;;  %v6259_v29 = vadd.f32 %v5476_v52, %v19052_v27  ;;  %v6300_v48 = vadd.f32 %v5533_v37, %v19053_v53  ;;  %v19056_v11 = vld [vmem:[#allocation189_spill] sm:$0xff]  ;;  %v5623_v32 = vpop.f32.mrf.mxu1  ;;  %v19058_v53 = vld [vmem:[#allocation215_spill] sm:$0xff] }
 0x4a5   :  { %19050 = vst [vmem:[#allocation23_spill] sm:$0xff] %v15749_v31  ;;  %v5478_v44 = vpop.f32.mrf.mxu0  ;;  %6939 = vmatpush1.bf16.msra.mxu1 %v15661_v58  ;;  %10135 = vmatmul.mubr.msk.bf16.vlgmr.msra.gmra.mxu0 %vm6748_vm1, %v15557_v19  ;;  %v15762_v8 = vadd.f32 %v19055_v18, %v19054_v49  ;;  %v6438_v2 = vadd.f32 %v15300_v6, %v6258_v1  ;;  %v6596_v9 = vmax.f32 %v6440_v47, 0.0  ;;  %v6635_v52 = vmax.f32 %v6479_v51, 0.0  ;;  %v19059_v58 = vld [vmem:[#allocation119_spill] sm:$0xff]  ;;  %v19061_v18 = vld [vmem:[#allocation97_spill] sm:$0xff] }
 0x4a6   :  { %19051 = vst [vmem:[#allocation77_spill] sm:$0xff] %v15751_v42  ;;  %v6297_v56 = vadd.f32 %v5478_v44, %v19056_v11  ;;  %v15766_v30 = vpack.c.bf16 %v6556_v43, %v6517_v33  ;;  %7085 = vmatprep.mubr.bf16.mxu0 %v18982_v61  ;;  %v6480_v37 = vadd.f32 %v15338_v26, %v6300_v48  ;;  %v5625_v43 = vpop.f32.mrf.mxu1  ;;  %v6597_v47 = vmax.f32 %v6441_v10, 0.0 }
 0x4a7   :  { %v5480_v23 = vpop.f32.mrf.mxu0  ;;  %v6186_v27 = vadd.f32 %v5623_v32, %v15366_v15  ;;  %v15773_v49 = vadd.f32 %v19059_v58, %v19058_v53  ;;  %v6439_v1 = vadd.f32 %v15300_v6, %v6259_v29  ;;  %v15780_v51 = vpack.c.bf16 %v6635_v52, %v6596_v9  ;;  %v19067_v52 = vld [vmem:[#allocation84_spill] sm:$0xff] }
 0x4a8   :  { %19057 = vst [vmem:[#allocation56_spill] sm:$0xff] %v15766_v30  ;;  %v6477_v44 = vadd.f32 %v15338_v26, %v6297_v56  ;;  %v6298_v33 = vadd.f32 %v5480_v23, %v19061_v18  ;;  %10134 = vmatmul.mubr.msk.bf16.vlgmr.msra.gmra.mxu1 %vm6748_vm1, %v15557_v19  ;;  %v6636_v48 = vmax.f32 %v6480_v37, 0.0  ;;  %v6187_v15 = vadd.f32 %v5625_v43, %v15381_v59  ;;  %v19063_v56 = vld [vmem:[#allocation30_spill] sm:$0xff]  ;;  %v5627_v23 = vpop.f32.mrf.mxu1  ;;  %v19064_v18 = vld [vmem:[#allocation39_spill] sm:$0xff] }
 0x4a9   :  { %19060 = vst [vmem:[#allocation95_spill] sm:$0xff] %v15773_v49  ;;  %19062 = vst [vmem:[#allocation49_spill] sm:$0xff] %v15780_v51  ;;  %v5570_v11 = vpop.f32.mrf.mxu0  ;;  %7042 = vmatprep.mubr.bf16.mxu1 %v18982_v61  ;;  %v6594_v58 = vmax.f32 %v6438_v2, 0.0  ;;  %v15788_v54 = vadd.f32 %v19065_v45, %v19064_v18  ;;  %v6366_v10 = vadd.f32 %v15400_v28, %v6186_v27  ;;  %v6595_v59 = vmax.f32 %v6439_v1, 0.0  ;;  %v19074_v1 = vld [vmem:[#allocation117_spill] sm:$0xff] }
 0x4aa   :  { %v6633_v32 = vmax.f32 %v6477_v44, 0.0  ;;  %v6478_v29 = vadd.f32 %v15338_v26, %v6298_v33  ;;  %v6184_v53 = vadd.f32 %v5570_v11, %v19063_v56  ;;  %v6225_v37 = vadd.f32 %v5627_v23, %v19067_v52  ;;  %v19070_v44 = vld [vmem:[#allocation191_spill] sm:$0xff]  ;;  %v5629_v49 = vpop.f32.mrf.mxu1  ;;  %v19071_v11 = vld [vmem:[#allocation217_spill] sm:$0xff]  ;;  %v19072_v56 = vld [vmem:[#allocation124_spill] sm:$0xff] }
 0x4ab   :  { %19066 = vst [vmem:[#allocation114_spill] sm:$0xff] %v15788_v54  ;;  %v5572_v9 = vpop.f32.mrf.mxu0  ;;  %v15792_v41 = vpack.c.bf16 %v6636_v48, %v6597_v47  ;;  %v15799_v16 = vadd.f32 %v19072_v56, %v19071_v11  ;;  %v6367_v45 = vadd.f32 %v15400_v28, %v6187_v15  ;;  %v19073_v54 = vld [vmem:[#allocation86_spill] sm:$0xff]  ;;  %v19075_v47 = vld [vmem:[#allocation123_spill] sm:$0xff]  ;;  %v6522_v15 = vmax.f32 %v6366_v10, 0.0 }
 0x4ac   :  { %v15794_v43 = vpack.c.bf16 %v6633_v32, %v6594_v58  ;;  %v6634_v2 = vmax.f32 %v6478_v29, 0.0  ;;  %v6185_v33 = vadd.f32 %v5572_v9, %v19070_v44  ;;  %v6405_v27 = vadd.f32 %v15425_v0, %v6225_v37  ;;  %v19076_v32 = vld [vmem:[#allocation192_spill] sm:$0xff]  ;;  %v5633_v52 = vpop.f32.mrf.mxu1  ;;  %v19079_v56 = vld [vmem:[#allocation218_spill] sm:$0xff] }
 0x4ad   :  { %19068 = vst [vmem:[#allocation28_spill] sm:$0xff] %v15792_v41  ;;  %v5574_v18 = vpop.f32.mrf.mxu0  ;;  %v6226_v23 = vadd.f32 %v5629_v49, %v19073_v54  ;;  %7065 = vmatprep.subr.bf16.mxu0 %v15792_v41  ;;  %v15807_v48 = vadd.f32 %v19075_v47, %v19074_v1  ;;  %v6364_v58 = vadd.f32 %v15400_v28, %v6184_v53  ;;  %v19078_v49 = vld [vmem:[#allocation194_spill] sm:$0xff] }
 0x4ae   :  { %19069 = vst [vmem:[#allocation100_spill] sm:$0xff] %v15794_v43  ;;  %v6223_v29 = vadd.f32 %v5574_v18, %v19076_v32  ;;  %v15811_v9 = vpack.c.bf16 %v6634_v2, %v6595_v59  ;;  %7066 = vmatpush1.bf16.msra.mxu0 %v15780_v51  ;;  %v6561_v44 = vmax.f32 %v6405_v27, 0.0  ;;  %v6264_v11 = vadd.f32 %v5633_v52, %v19078_v49  ;;  %v19080_v1 = vld [vmem:[#allocation18_spill] sm:$0xff]  ;;  %v5635_v10 = vpop.f32.mrf.mxu1 }
 0x4af   :  { %v5576_v37 = vpop.f32.mrf.mxu0  ;;  %v6406_v54 = vadd.f32 %v15425_v0, %v6226_v23  ;;  %7067 = vmatprep.subr.bf16.mxu0 %v15749_v31  ;;  %v15819_v47 = vadd.f32 %v19080_v1, %v19079_v56  ;;  %v6365_v53 = vadd.f32 %v15400_v28, %v6185_v33  ;;  %v6523_v18 = vmax.f32 %v6367_v45, 0.0  ;;  %v19082_v45 = vld [vmem:[#allocation19_spill] sm:$0xff]  ;;  %v19085_v1 = vld [vmem:[#allocation193_spill] sm:$0xff] }
 0x4b0   :  { %19077 = vst [vmem:[#allocation65_spill] sm:$0xff] %v15811_v9  ;;  %v6403_v59 = vadd.f32 %v15425_v0, %v6223_v29  ;;  %v6224_v2 = vadd.f32 %v5576_v37, %v15404_v60  ;;  %7022 = vmatprep.subr.bf16.mxu1 %v15811_v9  ;;  %v15825_v27 = vpack.c.bf16 %v6561_v44, %v6522_v15  ;;  %v6520_v49 = vmax.f32 %v6364_v58, 0.0  ;;  %v5637_v60 = vpop.f32.mrf.mxu1  ;;  %v19083_v15 = vld [vmem:[#allocation20_spill] sm:$0xff] }
 0x4b1   :  { %v6562_v23 = vmax.f32 %v6406_v54, 0.0  ;;  %v5580_v32 = vpop.f32.mrf.mxu0  ;;  %7023 = vmatpush1.bf16.msra.mxu1 %v15794_v43  ;;  %v6265_v52 = vadd.f32 %v5635_v10, %v15412_v21  ;;  %v15835_v44 = vadd.f32 %v19083_v15, %v19082_v45  ;;  %v6444_v37 = vadd.f32 %v15300_v6, %v6264_v11  ;;  %v19088_v10 = vld [vmem:[#allocation101_spill] sm:$0xff] }
 0x4b2   :  { %19081 = vst [vmem:[#allocation24_spill] sm:$0xff] %v15825_v27  ;;  %v6559_v56 = vmax.f32 %v6403_v59, 0.0  ;;  %v6404_v33 = vadd.f32 %v15425_v0, %v6224_v2  ;;  %v6262_v29 = vadd.f32 %v5580_v32, %v15408_v63  ;;  %7024 = vmatprep.subr.bf16.mxu1 %v15766_v30  ;;  %7068 = vmatpush1.bf16.msra.mxu0 %v15735_v12  ;;  %v6521_v59 = vmax.f32 %v6365_v53, 0.0  ;;  %v5639_v31 = vpop.f32.mrf.mxu1  ;;  %v19090_v53 = vld [vmem:[#allocation127_spill] sm:$0xff]  ;;  %v19100_v30 = vld [vmem:[#allocation136_spill] sm:$0xff]  ;;  %v19101_v12 = vld [vmem:[#allocation134_spill] sm:$0xff] }
 0x4b3   :  { %19084 = vst [vmem:[#allocation102_spill] sm:$0xff] %v15835_v44  ;;  %v5582_v54 = vpop.f32.mrf.mxu0  ;;  %v6303_v21 = vadd.f32 %v5637_v60, %v19085_v1  ;;  %v15839_v58 = vpack.c.bf16 %v6562_v23, %v6523_v18  ;;  %v6445_v41 = vadd.f32 %v15300_v6, %v6265_v52  ;;  %v6304_v11 = vadd.f32 %v5639_v31, %v15433_v46  ;;  %v19089_v18 = vld [vmem:[#allocation219_spill] sm:$0xff] }
 0x4b4   :  { %v15841_v2 = vpack.c.bf16 %v6559_v56, %v6520_v49  ;;  %v6560_v63 = vmax.f32 %v6404_v33, 0.0  ;;  %v6263_v32 = vadd.f32 %v5582_v54, %v19088_v10  ;;  %v15852_v23 = vadd.f32 %v19090_v53, %v19089_v18  ;;  %v19091_v56 = vld [vmem:[#allocation83_spill] sm:$0xff]  ;;  %v5729_v60 = vpop.f32.mrf.mxu1  ;;  %v19094_v10 = vld [vmem:[#allocation132_spill] sm:$0xff]  ;;  %v19096_v53 = vld [vmem:[#allocation197_spill] sm:$0xff] }
 0x4b5   :  { %19086 = vst [vmem:[#allocation29_spill] sm:$0xff] %v15839_v58  ;;  %v5584_v43 = vpop.f32.mrf.mxu0  ;;  %v6483_v45 = vadd.f32 %v15338_v26, %v6303_v21  ;;  %7025 = vmatpush1.bf16.msra.mxu1 %v15751_v42  ;;  %10137 = vmatmul.mubr.msk.bf16.vlgmr.msra.gmra.mxu0 %vm6748_vm1, %v15557_v19  ;;  %v6442_v49 = vadd.f32 %v15300_v6, %v6262_v29  ;;  %v6600_v15 = vmax.f32 %v6444_v37, 0.0  ;;  %v19093_v31 = vld [vmem:[#allocation195_spill] sm:$0xff]  ;;  %v19095_v42 = vld [vmem:[#allocation130_spill] sm:$0xff] }
 0x4b6   :  { %19087 = vst [vmem:[#allocation35_spill] sm:$0xff] %v15841_v2  ;;  %v6301_v33 = vadd.f32 %v5584_v43, %v19091_v56  ;;  %v15856_v52 = vpack.c.bf16 %v6560_v63, %v6521_v59  ;;  %7171 = vmatprep.mubr.bf16.mxu0 %v18982_v61  ;;  %v6484_v46 = vadd.f32 %v15338_v26, %v6304_v11  ;;  %v5731_v63 = vpop.f32.mrf.mxu1  ;;  %v19097_v37 = vld [vmem:[#allocation142_spill] sm:$0xff]  ;;  %v6601_v11 = vmax.f32 %v6445_v41, 0.0 }
 0x4b7   :  { %v6639_v54 = vmax.f32 %v6483_v45, 0.0  ;;  %v5586_v1 = vpop.f32.mrf.mxu0  ;;  %v6190_v21 = vadd.f32 %v5729_v60, %v19093_v31  ;;  %v15863_v18 = vadd.f32 %v19095_v42, %v19094_v10  ;;  %v6443_v29 = vadd.f32 %v15300_v6, %v6263_v32  ;;  %v19098_v45 = vld [vmem:[#allocation17_spill] sm:$0xff] }
 0x4b8   :  { %19092 = vst [vmem:[#allocation52_spill] sm:$0xff] %v15856_v52  ;;  %v6481_v43 = vadd.f32 %v15338_v26, %v6301_v33  ;;  %v6302_v59 = vadd.f32 %v5586_v1, %v19096_v53  ;;  %10136 = vmatmul.mubr.msk.bf16.vlgmr.msra.gmra.mxu1 %vm6748_vm1, %v15557_v19  ;;  %v15872_v56 = vadd.f32 %v19098_v45, %v19097_v37  ;;  %v6640_v31 = vmax.f32 %v6484_v46, 0.0  ;;  %v5733_v53 = vpop.f32.mrf.mxu1 }
 0x4b9   :  { %v15874_v60 = vpack.c.bf16 %v6639_v54, %v6600_v15  ;;  %v5676_v42 = vpop.f32.mrf.mxu0  ;;  %7128 = vmatprep.mubr.bf16.mxu1 %v18982_v61  ;;  %v6598_v32 = vmax.f32 %v6442_v49, 0.0  ;;  %v15881_v9 = vadd.f32 %v19101_v12, %v19100_v30  ;;  %v6370_v37 = vadd.f32 %v15400_v28, %v6190_v21  ;;  %v19103_v15 = vld [vmem:[#allocation58_spill] sm:$0xff]  ;;  %v19107_v12 = vld [vmem:[#allocation168_spill] sm:$0xff]  ;;  %v19109_v21 = vld [vmem:[#allocation3_spill] sm:$0xff] }
 0x4ba   :  { %19099 = vst [vmem:[#allocation63_spill] sm:$0xff] %v15872_v56  ;;  %v6637_v10 = vmax.f32 %v6481_v43, 0.0  ;;  %v6482_v33 = vadd.f32 %v15338_v26, %v6302_v59  ;;  %v6188_v1 = vadd.f32 %v5676_v42, %v15449_v5  ;;  %v6229_v54 = vadd.f32 %v5733_v53, %v19103_v15  ;;  %v5735_v59 = vpop.f32.mrf.mxu1  ;;  %v19105_v5 = vld [vmem:[#allocation220_spill] sm:$0xff]  ;;  %v19106_v42 = vld [vmem:[#allocation158_spill] sm:$0xff] }
 0x4bb   :  { %19102 = vst [vmem:[#allocation59_spill] sm:$0xff] %v15881_v9  ;;  %v5678_v41 = vpop.f32.mrf.mxu0  ;;  %v15885_v46 = vpack.c.bf16 %v6640_v31, %v6601_v11  ;;  %v6599_v45 = vmax.f32 %v6443_v29, 0.0  ;;  %v15892_v56 = vadd.f32 %v19106_v42, %v19105_v5  ;;  %v19108_v30 = vld [vmem:[#allocation138_spill] sm:$0xff]  ;;  %v19110_v9 = vld [vmem:[#allocation131_spill] sm:$0xff] }
 0x4bc   :  { %v15887_v51 = vpack.c.bf16 %v6637_v10, %v6598_v32  ;;  %v6638_v49 = vmax.f32 %v6482_v33, 0.0  ;;  %v6189_v43 = vadd.f32 %v5678_v41, %v15473_v20  ;;  %v15896_v44 = vadd.f32 %v19108_v30, %v19107_v12  ;;  %v19111_v31 = vld [vmem:[#allocation38_spill] sm:$0xff]  ;;  %v19112_v20 = vld [vmem:[#allocation135_spill] sm:$0xff]  ;;  %v5739_v15 = vpop.f32.mrf.mxu1  ;;  %v19113_v30 = vld [vmem:[#allocation221_spill] sm:$0xff] }
 0x4bd   :  { %19104 = vst [vmem:[#allocation70_spill] sm:$0xff] %v15885_v46  ;;  %v15900_v53 = vadd.f32 %v19110_v9, %v19109_v21  ;;  %v5680_v11 = vpop.f32.mrf.mxu0  ;;  %v6409_v29 = vadd.f32 %v15425_v0, %v6229_v54  ;;  %7151 = vmatprep.subr.bf16.mxu0 %v15885_v46  ;;  %v15906_v32 = vadd.f32 %v19112_v20, %v19111_v31  ;;  %v6526_v9 = vmax.f32 %v6370_v37, 0.0  ;;  %v19114_v21 = vld [vmem:[#allocation5_spill] sm:$0xff] }
 0x4be   :  { %v6368_v10 = vadd.f32 %v15400_v28, %v6188_v1  ;;  %v6227_v33 = vadd.f32 %v5680_v11, %v15491_v13  ;;  %v15910_v41 = vpack.c.bf16 %v6638_v49, %v6599_v45  ;;  %7152 = vmatpush1.bf16.msra.mxu0 %v15874_v60  ;;  %v6230_v54 = vadd.f32 %v5735_v59, %v15484_v24  ;;  %v5741_v37 = vpop.f32.mrf.mxu1  ;;  %v19115_v49 = vld [vmem:[#allocation141_spill] sm:$0xff]  ;;  %v19116_v11 = vld [vmem:[#allocation139_spill] sm:$0xff] }
 0x4bf   :  { %v6565_v5 = vmax.f32 %v6409_v29, 0.0  ;;  %v5682_v42 = vpop.f32.mrf.mxu0  ;;  %v6268_v12 = vadd.f32 %v5739_v15, %v15501_v3  ;;  %7153 = vmatprep.subr.bf16.mxu0 %v15839_v58  ;;  %v15918_v31 = vadd.f32 %v19114_v21, %v19113_v30  ;;  %v6369_v13 = vadd.f32 %v15400_v28, %v6189_v43  ;;  %v19117_v3 = vld [vmem:[#allocation90_spill] sm:$0xff]  ;;  %v19130_v58 = vld [vmem:[#allocation224_spill] sm:$0xff] }
 0x4c0   :  { %v6407_v1 = vadd.f32 %v15425_v0, %v6227_v33  ;;  %v6228_v45 = vadd.f32 %v5682_v42, %v15513_v25  ;;  %7108 = vmatprep.subr.bf16.mxu1 %v15910_v41  ;;  %v15926_v24 = vadd.f32 %v19116_v11, %v19115_v49  ;;  %v6191_v59 = vadd.f32 %v5731_v63, %v19117_v3  ;;  %v5743_v30 = vpop.f32.mrf.mxu1  ;;  %v19119_v21 = vld [vmem:[#allocation222_spill] sm:$0xff]  ;;  %v19120_v63 = vld [vmem:[#allocation21_spill] sm:$0xff] }
 0x4c1   :  { %v15929_v29 = vpack.c.bf16 %v6565_v5, %v6526_v9  ;;  %v5686_v20 = vpop.f32.mrf.mxu0  ;;  %7109 = vmatpush1.bf16.msra.mxu1 %v15887_v51  ;;  %v6269_v43 = vadd.f32 %v5741_v37, %v15524_v22  ;;  %v6524_v15 = vmax.f32 %v6368_v10, 0.0  ;;  %v15939_v9 = vadd.f32 %v19120_v63, %v19119_v21  ;;  %v19123_v63 = vld [vmem:[#allocation153_spill] sm:$0xff] }
 0x4c2   :  { %v6563_v33 = vmax.f32 %v6407_v1, 0.0  ;;  %v6408_v25 = vadd.f32 %v15425_v0, %v6228_v45  ;;  %v6266_v42 = vadd.f32 %v5686_v20, %v15532_v62  ;;  %7110 = vmatprep.subr.bf16.mxu1 %v15856_v52  ;;  %7154 = vmatpush1.bf16.msra.mxu0 %v15825_v27  ;;  %v6410_v5 = vadd.f32 %v15425_v0, %v6230_v54  ;;  %v5745_v11 = vpop.f32.mrf.mxu1 }
 0x4c3   :  { %19118 = vst [vmem:[#allocation99_spill] sm:$0xff] %v15929_v29  ;;  %v6448_v49 = vadd.f32 %v15300_v6, %v6268_v12  ;;  %v5688_v22 = vpop.f32.mrf.mxu0  ;;  %v6307_v10 = vadd.f32 %v5743_v30, %v15544_v40  ;;  %v6525_v1 = vmax.f32 %v6369_v13, 0.0  ;;  %v6449_v3 = vadd.f32 %v15300_v6, %v6269_v43 }
 0x4c4   :  { %v15944_v45 = vpack.c.bf16 %v6563_v33, %v6524_v15  ;;  %v6564_v62 = vmax.f32 %v6408_v25, 0.0  ;;  %v6267_v37 = vadd.f32 %v5688_v22, %v15565_v57  ;;  %v6308_v54 = vadd.f32 %v5745_v11, %v15582_v39  ;;  %v5835_v57 = vpop.f32.mrf.mxu1  ;;  %v19124_v22 = vld [vmem:[#allocation42_spill] sm:$0xff] }
 0x4c5   :  { %v5690_v20 = vpop.f32.mrf.mxu0  ;;  %v6487_v21 = vadd.f32 %v15338_v26, %v6307_v10  ;;  %7111 = vmatpush1.bf16.msra.mxu1 %v15841_v2  ;;  %10139 = vmatmul.mubr.msk.bf16.vlgmr.msra.gmra.mxu0 %vm6748_vm1, %v15557_v19  ;;  %v6371_v40 = vadd.f32 %v15400_v28, %v6191_v59  ;;  %v6446_v12 = vadd.f32 %v15300_v6, %v6266_v42  ;;  %v6604_v43 = vmax.f32 %v6448_v49, 0.0 }
 0x4c6   :  { %19121 = vst [vmem:[#allocation54_spill] sm:$0xff] %v15944_v45  ;;  %v6305_v13 = vadd.f32 %v5690_v20, %v15593_v4  ;;  %v15956_v15 = vpack.c.bf16 %v6564_v62, %v6525_v1  ;;  %7257 = vmatprep.mubr.bf16.mxu0 %v18982_v61  ;;  %v6488_v30 = vadd.f32 %v15338_v26, %v6308_v54  ;;  %v5837_v1 = vpop.f32.mrf.mxu1  ;;  %v6566_v49 = vmax.f32 %v6410_v5, 0.0 }
 0x4c7   :  { %v6643_v33 = vmax.f32 %v6487_v21, 0.0  ;;  %v5692_v25 = vpop.f32.mrf.mxu0  ;;  %v6194_v39 = vadd.f32 %v5835_v57, %v15608_v55  ;;  %v15963_v10 = vadd.f32 %v19124_v22, %v19123_v63  ;;  %v6447_v59 = vadd.f32 %v15300_v6, %v6267_v37 }
 0x4c8   :  { %19122 = vst [vmem:[#allocation92_spill] sm:$0xff] %v15956_v15  ;;  %v6485_v4 = vadd.f32 %v15338_v26, %v6305_v13  ;;  %v6306_v42 = vadd.f32 %v5692_v25, %v15619_v35  ;;  %10138 = vmatmul.mubr.msk.bf16.vlgmr.msra.gmra.mxu1 %vm6748_vm1, %v15557_v19  ;;  %v6605_v62 = vmax.f32 %v6449_v3, 0.0  ;;  %v6644_v20 = vmax.f32 %v6488_v30, 0.0  ;;  %v5839_v57 = vpop.f32.mrf.mxu1 }
 0x4c9   :  { %v15970_v11 = vpack.c.bf16 %v6643_v33, %v6604_v43  ;;  %v5782_v55 = vpop.f32.mrf.mxu0  ;;  %7214 = vmatprep.mubr.bf16.mxu1 %v18982_v61  ;;  %v6602_v21 = vmax.f32 %v6446_v12, 0.0  ;;  %v6527_v35 = vmax.f32 %v6371_v40, 0.0  ;;  %v6374_v25 = vadd.f32 %v15400_v28, %v6194_v39  ;;  %v19127_v43 = vld [vmem:[#allocation223_spill] sm:$0xff]  ;;  %v19132_v40 = vld [vmem:[#allocation140_spill] sm:$0xff] }
 0x4ca   :  { %v6641_v54 = vmax.f32 %v6485_v4, 0.0  ;;  %v6486_v37 = vadd.f32 %v15338_v26, %v6306_v42  ;;  %v6192_v13 = vadd.f32 %v5782_v55, %v15639_v14  ;;  %v6233_v5 = vadd.f32 %v5839_v57, %v15655_v7  ;;  %v19128_v33 = vld [vmem:[#allocation143_spill] sm:$0xff]  ;;  %v5841_v42 = vpop.f32.mrf.mxu1  ;;  %v19133_v39 = vld [vmem:[#allocation128_spill] sm:$0xff] }
 0x4cb   :  { %19125 = vst [vmem:[#allocation25_spill] sm:$0xff] %v15970_v11  ;;  %v5784_v63 = vpop.f32.mrf.mxu0  ;;  %v15977_v3 = vpack.c.bf16 %v6644_v20, %v6605_v62  ;;  %v15981_v30 = vadd.f32 %v19128_v33, %v19127_v43  ;;  %v6603_v22 = vmax.f32 %v6447_v59, 0.0  ;;  %v19131_v14 = vld [vmem:[#allocation163_spill] sm:$0xff]  ;;  %v15991_v46 = vadd.f32 %v19133_v39, %v19132_v40  ;;  %v19135_v59 = vld [vmem:[#allocation226_spill] sm:$0xff]  ;;  %v19138_v33 = vld [vmem:[#allocation225_spill] sm:$0xff] }
 0x4cc   :  { %v15983_v12 = vpack.c.bf16 %v6641_v54, %v6602_v21  ;;  %v6642_v4 = vmax.f32 %v6486_v37, 0.0  ;;  %v15987_v55 = vadd.f32 %v19131_v14, %v19130_v58  ;;  %v6413_v62 = vadd.f32 %v15425_v0, %v6233_v5  ;;  %v19136_v21 = vld [vmem:[#allocation148_spill] sm:$0xff]  ;;  %v5845_v43 = vpop.f32.mrf.mxu1  ;;  %v19139_v14 = vld [vmem:[#allocation170_spill] sm:$0xff] }
 0x4cd   :  { %19126 = vst [vmem:[#allocation34_spill] sm:$0xff] %v15977_v3  ;;  %v5786_v7 = vpop.f32.mrf.mxu0  ;;  %7237 = vmatprep.subr.bf16.mxu0 %v15977_v3  ;;  %v15995_v20 = vpack.c.bf16 %v6566_v49, %v6527_v35  ;;  %v15999_v54 = vadd.f32 %v19136_v21, %v19135_v59  ;;  %v6372_v37 = vadd.f32 %v15400_v28, %v6192_v13  ;;  %v6530_v40 = vmax.f32 %v6374_v25, 0.0  ;;  %v19140_v59 = vld [vmem:[#allocation227_spill] sm:$0xff] }
 0x4ce   :  { %19129 = vst [vmem:[#allocation74_spill] sm:$0xff] %v15983_v12  ;;  %v6231_v58 = vadd.f32 %v5786_v7, %v15698_v38  ;;  %v16003_v57 = vpack.c.bf16 %v6642_v4, %v6603_v22  ;;  %7238 = vmatpush1.bf16.msra.mxu0 %v15970_v11  ;;  %v16008_v5 = vadd.f32 %v19139_v14, %v19138_v33  ;;  %v6569_v49 = vmax.f32 %v6413_v62, 0.0  ;;  %v19141_v13 = vld [vmem:[#allocation175_spill] sm:$0xff]  ;;  %v19142_v38 = vld [vmem:[#allocation228_spill] sm:$0xff]  ;;  %v19143_v22 = vld [vmem:[#allocation166_spill] sm:$0xff]  ;;  %v5847_v25 = vpop.f32.mrf.mxu1 }
 0x4cf   :  { %19134 = vst [vmem:[#allocation40_spill] sm:$0xff] %v15995_v20  ;;  %v5788_v35 = vpop.f32.mrf.mxu0  ;;  %v6272_v39 = vadd.f32 %v5845_v43, %v15709_v50  ;;  %7239 = vmatprep.subr.bf16.mxu0 %v15995_v20  ;;  %v16014_v21 = vadd.f32 %v19141_v13, %v19140_v59  ;;  %v16018_v4 = vadd.f32 %v19143_v22, %v19142_v38  ;;  %v19144_v62 = vld [vmem:[#allocation230_spill] sm:$0xff]  ;;  %v19145_v14 = vld [vmem:[#allocation172_spill] sm:$0xff]  ;;  %v6528_v38 = vmax.f32 %v6372_v37, 0.0 }
 0x4d0   :  { %19137 = vst [vmem:[#allocation16_spill] sm:$0xff] %v16003_v57  ;;  %v6411_v7 = vadd.f32 %v15425_v0, %v6231_v58  ;;  %v6234_v33 = vadd.f32 %v5841_v42, %v15683_v17  ;;  %7194 = vmatprep.subr.bf16.mxu1 %v16003_v57  ;;  %v16025_v50 = vadd.f32 %v19145_v14, %v19144_v62  ;;  %v19146_v43 = vld [vmem:[#allocation72_spill] sm:$0xff]  ;;  %v5849_v2 = vpop.f32.mrf.mxu1  ;;  %v19149_v62 = vld [vmem:[#allocation229_spill] sm:$0xff] }
 0x4d1   :  { %v6195_v20 = vadd.f32 %v5837_v1, %v19146_v43  ;;  %v16028_v3 = vpack.c.bf16 %v6569_v49, %v6530_v40  ;;  %v5792_v59 = vpop.f32.mrf.mxu0  ;;  %7195 = vmatpush1.bf16.msra.mxu1 %v15983_v12  ;;  %v6273_v13 = vadd.f32 %v5847_v25, %v15729_v34  ;;  %v19148_v58 = vld [vmem:[#allocation12_spill] sm:$0xff]  ;;  %v19150_v1 = vld [vmem:[#allocation183_spill] sm:$0xff]  ;;  %v6452_v34 = vadd.f32 %v15300_v6, %v6272_v39  ;;  %v19156_v39 = vld [vmem:[#allocation114_spill] sm:$0xff] }
 0x4d2   :  { %v6193_v22 = vadd.f32 %v5784_v63, %v19148_v58  ;;  %v6567_v17 = vmax.f32 %v6411_v7, 0.0  ;;  %v6270_v42 = vadd.f32 %v5792_v59, %v15745_v36  ;;  %7196 = vmatprep.subr.bf16.mxu1 %v15956_v15  ;;  %7240 = vmatpush1.bf16.msra.mxu0 %v15929_v29  ;;  %v16038_v40 = vadd.f32 %v19150_v1, %v19149_v62  ;;  %v19151_v49 = vld [vmem:[#allocation232_spill] sm:$0xff]  ;;  %v19154_v36 = vld [vmem:[#allocation47_spill] sm:$0xff]  ;;  %v5851_v15 = vpop.f32.mrf.mxu1 }
 0x4d3   :  { %19147 = vst [vmem:[#allocation62_spill] sm:$0xff] %v16028_v3  ;;  %v19152_v14 = vld [vmem:[#allocation180_spill] sm:$0xff]  ;;  %v5794_v37 = vpop.f32.mrf.mxu0  ;;  %v6311_v63 = vadd.f32 %v5849_v2, %v15762_v8  ;;  %v6232_v25 = vadd.f32 %v5788_v35, %v19154_v36  ;;  %v6414_v59 = vadd.f32 %v15425_v0, %v6234_v33  ;;  %v19155_v58 = vld [vmem:[#allocation95_spill] sm:$0xff]  ;;  %v6453_v62 = vadd.f32 %v15300_v6, %v6273_v13 }
 0x4d4   :  { %v16042_v43 = vadd.f32 %v19152_v14, %v19151_v49  ;;  %v16046_v7 = vpack.c.bf16 %v6567_v17, %v6528_v38  ;;  %v6271_v12 = vadd.f32 %v5794_v37, %v19155_v58  ;;  %v6312_v14 = vadd.f32 %v5851_v15, %v19156_v39  ;;  %v5941_v38 = vpop.f32.mrf.mxu1 }
 0x4d5   :  { %v5796_v1 = vpop.f32.mrf.mxu0  ;;  %v6491_v49 = vadd.f32 %v15338_v26, %v6311_v63  ;;  %7197 = vmatpush1.bf16.msra.mxu1 %v15944_v45  ;;  %10141 = vmatmul.mubr.msk.bf16.vlgmr.msra.gmra.mxu0 %vm6748_vm1, %v15557_v19  ;;  %v6373_v8 = vadd.f32 %v15400_v28, %v6193_v22  ;;  %v6375_v2 = vadd.f32 %v15400_v28, %v6195_v20  ;;  %v6608_v13 = vmax.f32 %v6452_v34, 0.0  ;;  %v19160_v45 = vld [vmem:[#allocation190_spill] sm:$0xff] }
 0x4d6   :  { %19153 = vst [vmem:[#allocation44_spill] sm:$0xff] %v16046_v7  ;;  %v6450_v35 = vadd.f32 %v15300_v6, %v6270_v42  ;;  %v6309_v33 = vadd.f32 %v5796_v1, %v15799_v16  ;;  %7343 = vmatprep.mubr.bf16.mxu0 %v18982_v61  ;;  %v6492_v63 = vadd.f32 %v15338_v26, %v6312_v14  ;;  %v5943_v58 = vpop.f32.mrf.mxu1  ;;  %v6570_v16 = vmax.f32 %v6414_v59, 0.0 }
 0x4d7   :  { %v6647_v17 = vmax.f32 %v6491_v49, 0.0  ;;  %v5798_v37 = vpop.f32.mrf.mxu0  ;;  %v6198_v15 = vadd.f32 %v5941_v38, %v15807_v48  ;;  %v6412_v36 = vadd.f32 %v15425_v0, %v6232_v25  ;;  %v6451_v22 = vadd.f32 %v15300_v6, %v6271_v12 }
 0x4d8   :  { %v6489_v20 = vadd.f32 %v15338_v26, %v6309_v33  ;;  %v6310_v42 = vadd.f32 %v5798_v37, %v15819_v47  ;;  %10140 = vmatmul.mubr.msk.bf16.vlgmr.msra.gmra.mxu1 %vm6748_vm1, %v15557_v19  ;;  %v6609_v34 = vmax.f32 %v6453_v62, 0.0  ;;  %v6648_v49 = vmax.f32 %v6492_v63, 0.0  ;;  %v5945_v33 = vpop.f32.mrf.mxu1 }
 0x4d9   :  { %v16070_v1 = vpack.c.bf16 %v6647_v17, %v6608_v13  ;;  %v5888_v39 = vpop.f32.mrf.mxu0  ;;  %7300 = vmatprep.mubr.bf16.mxu1 %v18982_v61  ;;  %v6606_v48 = vmax.f32 %v6450_v35, 0.0  ;;  %v6531_v47 = vmax.f32 %v6375_v2, 0.0  ;;  %v6378_v38 = vadd.f32 %v15400_v28, %v6198_v15 }
 0x4da   :  { %v6645_v25 = vmax.f32 %v6489_v20, 0.0  ;;  %v6490_v12 = vadd.f32 %v15338_v26, %v6310_v42  ;;  %v6196_v14 = vadd.f32 %v5888_v39, %v15852_v23  ;;  %v6237_v19 = vadd.f32 %v5945_v33, %v15863_v18  ;;  %v5947_v35 = vpop.f32.mrf.mxu1  ;;  %v19159_v20 = vld [vmem:[#allocation231_spill] sm:$0xff]  ;;  %v19161_v23 = vld [vmem:[#allocation234_spill] sm:$0xff] }
 0x4db   :  { %19157 = vst [vmem:[#allocation7_spill] sm:$0xff] %v16070_v1  ;;  %v5890_v37 = vpop.f32.mrf.mxu0  ;;  %v16077_v59 = vpack.c.bf16 %v6648_v49, %v6609_v34  ;;  %v6568_v62 = vmax.f32 %v6412_v36, 0.0  ;;  %v6607_v13 = vmax.f32 %v6451_v22, 0.0  ;;  %v16083_v42 = vadd.f32 %v19160_v45, %v19159_v20  ;;  %v19162_v39 = vld [vmem:[#allocation187_spill] sm:$0xff] }
 0x4dc   :  { %v16079_v17 = vpack.c.bf16 %v6645_v25, %v6606_v48  ;;  %v6646_v63 = vmax.f32 %v6490_v12, 0.0  ;;  %v16087_v2 = vadd.f32 %v19162_v39, %v19161_v23  ;;  %v6417_v29 = vadd.f32 %v15425_v0, %v6237_v19  ;;  %v5951_v45 = vpop.f32.mrf.mxu1  ;;  %v19165_v48 = vld [vmem:[#allocation233_spill] sm:$0xff]  ;;  %v19166_v25 = vld [vmem:[#allocation196_spill] sm:$0xff] }
 0x4dd   :  { %19158 = vst [vmem:[#allocation43_spill] sm:$0xff] %v16077_v59  ;;  %v5892_v15 = vpop.f32.mrf.mxu0  ;;  %7323 = vmatprep.subr.bf16.mxu0 %v16077_v59  ;;  %v16091_v18 = vpack.c.bf16 %v6570_v16, %v6531_v47  ;;  %v6529_v36 = vmax.f32 %v6373_v8, 0.0  ;;  %v6376_v22 = vadd.f32 %v15400_v28, %v6196_v14  ;;  %v16100_v12 = vadd.f32 %v19166_v25, %v19165_v48  ;;  %v19167_v8 = vld [vmem:[#allocation236_spill] sm:$0xff]  ;;  %v19168_v14 = vld [vmem:[#allocation245_spill] sm:$0xff] }
 0x4de   :  { %v6235_v34 = vadd.f32 %v5892_v15, %v15892_v56  ;;  %v16095_v49 = vpack.c.bf16 %v6646_v63, %v6607_v13  ;;  %7324 = vmatpush1.bf16.msra.mxu0 %v16070_v1  ;;  %v6534_v33 = vmax.f32 %v6378_v38, 0.0  ;;  %v6573_v19 = vmax.f32 %v6417_v29, 0.0  ;;  %v19169_v13 = vld [vmem:[#allocation59_spill] sm:$0xff]  ;;  %v5953_v39 = vpop.f32.mrf.mxu1  ;;  %v19172_v29 = vld [vmem:[#allocation246_spill] sm:$0xff]  ;;  %v19182_v59 = vld [vmem:[#allocation145_spill] sm:$0xff] }
 0x4df   :  { %19163 = vst [vmem:[#allocation103_spill] sm:$0xff] %v16091_v18  ;;  %v5894_v20 = vpop.f32.mrf.mxu0  ;;  %v6276_v16 = vadd.f32 %v5951_v45, %v15900_v53  ;;  %7325 = vmatprep.subr.bf16.mxu0 %v16091_v18  ;;  %v16106_v47 = vadd.f32 %v19168_v14, %v19167_v8  ;;  %v6238_v63 = vadd.f32 %v5947_v35, %v19169_v13  ;;  %v19171_v38 = vld [vmem:[#allocation235_spill] sm:$0xff]  ;;  %v19173_v53 = vld [vmem:[#allocation102_spill] sm:$0xff]  ;;  %v6532_v8 = vmax.f32 %v6376_v22, 0.0 }
 0x4e0   :  { %19164 = vst [vmem:[#allocation50_spill] sm:$0xff] %v16095_v49  ;;  %v6415_v56 = vadd.f32 %v15425_v0, %v6235_v34  ;;  %7280 = vmatprep.subr.bf16.mxu1 %v16095_v49  ;;  %v16111_v23 = vpack.c.bf16 %v6568_v62, %v6529_v36  ;;  %v16115_v15 = vadd.f32 %v19172_v29, %v19171_v38  ;;  %v19175_v35 = vld [vmem:[#allocation63_spill] sm:$0xff]  ;;  %v5955_v36 = vpop.f32.mrf.mxu1  ;;  %v19176_v38 = vld [vmem:[#allocation237_spill] sm:$0xff] }
 0x4e1   :  { %v6199_v45 = vadd.f32 %v5943_v58, %v19173_v53  ;;  %v16118_v48 = vpack.c.bf16 %v6573_v19, %v6534_v33  ;;  %v5898_v25 = vpop.f32.mrf.mxu0  ;;  %7281 = vmatpush1.bf16.msra.mxu1 %v16079_v17  ;;  %v6277_v34 = vadd.f32 %v5953_v39, %v15906_v32  ;;  %v6197_v14 = vadd.f32 %v5890_v37, %v19175_v35  ;;  %v19177_v58 = vld [vmem:[#allocation248_spill] sm:$0xff]  ;;  %v19178_v19 = vld [vmem:[#allocation238_spill] sm:$0xff]  ;;  %v19179_v29 = vld [vmem:[#allocation247_spill] sm:$0xff] }
 0x4e2   :  { %19170 = vst [vmem:[#allocation14_spill] sm:$0xff] %v16111_v23  ;;  %v6571_v13 = vmax.f32 %v6415_v56, 0.0  ;;  %v6274_v62 = vadd.f32 %v5898_v25, %v15918_v31  ;;  %7282 = vmatprep.subr.bf16.mxu1 %v16111_v23  ;;  %7326 = vmatpush1.bf16.msra.mxu0 %v16028_v3  ;;  %v16128_v33 = vadd.f32 %v19177_v58, %v19176_v38  ;;  %v5957_v35 = vpop.f32.mrf.mxu1 }
 0x4e3   :  { %19174 = vst [vmem:[#allocation61_spill] sm:$0xff] %v16118_v48  ;;  %v16132_v53 = vadd.f32 %v19179_v29, %v19178_v19  ;;  %v6456_v32 = vadd.f32 %v15300_v6, %v6276_v16  ;;  %v5900_v22 = vpop.f32.mrf.mxu0  ;;  %v6315_v37 = vadd.f32 %v5955_v36, %v15926_v24  ;;  %v6236_v31 = vadd.f32 %v5894_v20, %v15896_v44  ;;  %v16148_v24 = vld [vmem:[%s17466_s5 + $0x8] sm:$0xff]  }
 0x4e4   :  { %v16136_v56 = vpack.c.bf16 %v6571_v13, %v6532_v8  ;;  %v6418_v39 = vadd.f32 %v15425_v0, %v6238_v63  ;;  %v6275_v25 = vadd.f32 %v5900_v22, %v15939_v9  ;;  %v6457_v38 = vadd.f32 %v15300_v6, %v6277_v34  ;;  %v6047_v34 = vpop.f32.mrf.mxu1 }
 0x4e5   :  { %v5902_v58 = vpop.f32.mrf.mxu0  ;;  %v6495_v19 = vadd.f32 %v15338_v26, %v6315_v37  ;;  %7283 = vmatpush1.bf16.msra.mxu1 %v16046_v7  ;;  %v6316_v16 = vadd.f32 %v5957_v35, %v15963_v10  ;;  %10143 = vmatmul.mubr.msk.bf16.vlgmr.msra.gmra.mxu0 %vm6748_vm1, %v16148_v24  ;;  %v6377_v44 = vadd.f32 %v15400_v28, %v6197_v14  ;;  %v6612_v10 = vmax.f32 %v6456_v32, 0.0 }
 0x4e6   :  { %v6379_v9 = vadd.f32 %v15400_v28, %v6199_v45  ;;  %v6454_v20 = vadd.f32 %v15300_v6, %v6274_v62  ;;  %v6313_v63 = vadd.f32 %v5902_v58, %v15981_v30  ;;  %7429 = vmatprep.mubr.bf16.mxu0 %v18982_v61  ;;  %v6202_v29 = vadd.f32 %v6047_v34, %v15991_v46  ;;  %v6049_v37 = vpop.f32.mrf.mxu1 }
 0x4e7   :  { %v6651_v8 = vmax.f32 %v6495_v19, 0.0  ;;  %v5904_v13 = vpop.f32.mrf.mxu0  ;;  %v6496_v36 = vadd.f32 %v15338_v26, %v6316_v16  ;;  %v6416_v22 = vadd.f32 %v15425_v0, %v6236_v31  ;;  %v6455_v14 = vadd.f32 %v15300_v6, %v6275_v25 }
 0x4e8   :  { %v6493_v45 = vadd.f32 %v15338_v26, %v6313_v63  ;;  %v6314_v62 = vadd.f32 %v5904_v13, %v15987_v55  ;;  %10142 = vmatmul.mubr.msk.bf16.vlgmr.msra.gmra.mxu1 %vm6748_vm1, %v16148_v24  ;;  %v6574_v30 = vmax.f32 %v6418_v39, 0.0  ;;  %v6613_v32 = vmax.f32 %v6457_v38, 0.0  ;;  %v6051_v63 = vpop.f32.mrf.mxu1 }
 0x4e9   :  { %v16165_v35 = vpack.c.bf16 %v6651_v8, %v6612_v10  ;;  %v6652_v58 = vmax.f32 %v6496_v36, 0.0  ;;  %v5994_v19 = vpop.f32.mrf.mxu0  ;;  %7386 = vmatprep.mubr.bf16.mxu1 %v18982_v61  ;;  %v6610_v46 = vmax.f32 %v6454_v20, 0.0  ;;  %v6535_v55 = vmax.f32 %v6379_v9, 0.0 }
 0x4ea   :  { %v6649_v31 = vmax.f32 %v6493_v45, 0.0  ;;  %v6494_v25 = vadd.f32 %v15338_v26, %v6314_v62  ;;  %v6200_v16 = vadd.f32 %v5994_v19, %v16008_v5  ;;  %v6382_v34 = vadd.f32 %v15400_v28, %v6202_v29  ;;  %v6053_v20 = vpop.f32.mrf.mxu1  ;;  %v19181_v45 = vld [vmem:[#allocation239_spill] sm:$0xff]  ;;  %v19183_v5 = vld [vmem:[#allocation240_spill] sm:$0xff] }
 0x4eb   :  { %19180 = vst [vmem:[#allocation107_spill] sm:$0xff] %v16165_v35  ;;  %v5996_v13 = vpop.f32.mrf.mxu0  ;;  %v6241_v39 = vadd.f32 %v6051_v63, %v16018_v4  ;;  %v16172_v38 = vpack.c.bf16 %v6652_v58, %v6613_v32  ;;  %v6572_v10 = vmax.f32 %v6416_v22, 0.0  ;;  %v6611_v8 = vmax.f32 %v6455_v14, 0.0  ;;  %v19184_v19 = vld [vmem:[#allocation147_spill] sm:$0xff] }
 0x4ec   :  { %v16174_v36 = vpack.c.bf16 %v6649_v31, %v6610_v46  ;;  %v6650_v18 = vmax.f32 %v6494_v25, 0.0  ;;  %v16178_v62 = vadd.f32 %v19182_v59, %v19181_v45  ;;  %v5085_v9 = vadd.f32 %v19184_v19, %v19183_v5  ;;  %v6057_v46 = vpop.f32.mrf.mxu1  ;;  %v19186_v59 = vld [vmem:[#allocation243_spill] sm:$0xff]  ;;  %v19187_v31 = vld [vmem:[#allocation150_spill] sm:$0xff]  ;;  %v19190_v5 = vld [vmem:[#allocation60_spill] sm:$0xff] }
 0x4ed   :  { %v5998_v7 = vpop.f32.mrf.mxu0  ;;  %v6421_v29 = vadd.f32 %v15425_v0, %v6241_v39  ;;  %7409 = vmatprep.subr.bf16.mxu0 %v16172_v38  ;;  %v16184_v4 = vpack.c.bf16 %v6574_v30, %v6535_v55  ;;  %v6533_v22 = vmax.f32 %v6377_v44, 0.0  ;;  %v6380_v14 = vadd.f32 %v15400_v28, %v6200_v16  ;;  %v19188_v44 = vld [vmem:[#allocation241_spill] sm:$0xff]  ;;  %v19189_v16 = vld [vmem:[#allocation144_spill] sm:$0xff] }
 0x4ee   :  { %v6239_v32 = vadd.f32 %v5998_v7, %v16038_v40  ;;  %v16188_v58 = vpack.c.bf16 %v6650_v18, %v6611_v8  ;;  %7410 = vmatpush1.bf16.msra.mxu0 %v16165_v35  ;;  %v16193_v25 = vadd.f32 %v19187_v31, %v19186_v59  ;;  %v6538_v63 = vmax.f32 %v6382_v34, 0.0  ;;  %v6059_v8 = vpop.f32.mrf.mxu1  ;;  %v19191_v34 = vld [vmem:[#allocation164_spill] sm:$0xff] }
 0x4ef   :  { %v6577_v39 = vmax.f32 %v6421_v29, 0.0  ;;  %v6000_v45 = vpop.f32.mrf.mxu0  ;;  %v6280_v30 = vadd.f32 %v6057_v46, %v16042_v43  ;;  %7411 = vmatprep.subr.bf16.mxu0 %v16184_v4  ;;  %v5024_v55 = vadd.f32 %v19189_v16, %v19188_v44  ;;  %v6242_v7 = vadd.f32 %v6053_v20, %v16025_v50  ;;  %v19193_v31 = vld [vmem:[#allocation244_spill] sm:$0xff] }
 0x4f0   :  { %19185 = vst [vmem:[#allocation27_spill] sm:$0xff] %v16188_v58  ;;  %v6419_v40 = vadd.f32 %v15425_v0, %v6239_v32  ;;  %7366 = vmatprep.subr.bf16.mxu1 %v16188_v58  ;;  %v16202_v18 = vpack.c.bf16 %v6572_v10, %v6533_v22  ;;  %v5088_v19 = vadd.f32 %v19191_v34, %v19190_v5  ;;  %v6536_v32 = vmax.f32 %v6380_v14, 0.0  ;;  %v6061_v22 = vpop.f32.mrf.mxu1 }
 0x4f1   :  { %v6203_v29 = vadd.f32 %v6049_v37, %v15999_v54  ;;  %v16207_v43 = vpack.c.bf16 %v6577_v39, %v6538_v63  ;;  %v6004_v46 = vpop.f32.mrf.mxu0  ;;  %7367 = vmatpush1.bf16.msra.mxu1 %v16174_v36  ;;  %v6281_v59 = vadd.f32 %v6059_v8, %v16087_v2  ;;  %v6201_v50 = vadd.f32 %v5996_v13, %v16014_v21  ;;  %v19194_v54 = vld [vmem:[#allocation152_spill] sm:$0xff] }
 0x4f2   :  { %v6575_v20 = vmax.f32 %v6419_v40, 0.0  ;;  %v6278_v10 = vadd.f32 %v6004_v46, %v16100_v12  ;;  %7368 = vmatprep.subr.bf16.mxu1 %v16202_v18  ;;  %7412 = vmatpush1.bf16.msra.mxu0 %v16118_v48  ;;  %v5028_v37 = vadd.f32 %v19194_v54, %v19193_v31  ;;  %v19195_v63 = vld [vmem:[#allocation8_spill] sm:$0xff]  ;;  %v6460_v16 = vadd.f32 %v15300_v6, %v6280_v30  ;;  %v6063_v8 = vpop.f32.mrf.mxu1 }
 0x4f3   :  { %19192 = vst [vmem:[#allocation51_spill] sm:$0xff] %v16207_v43  ;;  %v19196_v39 = vld [vmem:[#allocation184_spill] sm:$0xff]  ;;  %v6006_v2 = vpop.f32.mrf.mxu0  ;;  %v6319_v14 = vadd.f32 %v6061_v22, %v16106_v47  ;;  %v6240_v12 = vadd.f32 %v6000_v45, %v16083_v42  ;;  %v6422_v13 = vadd.f32 %v15425_v0, %v6242_v7  ;;  %v6461_v5 = vadd.f32 %v15300_v6, %v6281_v59 }
 0x4f4   :  { %v5080_v44 = vadd.f32 %v19196_v39, %v19195_v63  ;;  %v16221_v21 = vpack.c.bf16 %v6575_v20, %v6536_v32  ;;  %v6279_v40 = vadd.f32 %v6006_v2, %v16115_v15  ;;  %v6320_v30 = vadd.f32 %v6063_v8, %v16132_v53  ;;  %v10327_v7 = vpop.f32.mrf.mxu1 }
 0x4f5   :  { %v6008_v34 = vpop.f32.mrf.mxu0  ;;  %v6499_v46 = vadd.f32 %v15338_v26, %v6319_v14  ;;  %7369 = vmatpush1.bf16.msra.mxu1 %v16136_v56  ;;  %10145 = vmatmul.mubr.msk.bf16.vlgmr.msra.gmra.mxu0 %vm6748_vm1, %v16148_v24  ;;  %v6381_v47 = vadd.f32 %v15400_v28, %v6201_v50  ;;  %v6383_v42 = vadd.f32 %v15400_v28, %v6203_v29  ;;  %v6616_v59 = vmax.f32 %v6460_v16, 0.0 }
 0x4f6   :  { %v6458_v45 = vadd.f32 %v15300_v6, %v6278_v10  ;;  %v6317_v15 = vadd.f32 %v6008_v34, %v16128_v33  ;;  %7515 = vmatprep.mubr.bf16.mxu0 %v18982_v61  ;;  %v6500_v22 = vadd.f32 %v15338_v26, %v6320_v30  ;;  %v6284_v53 = vadd.f32 %v10327_v7, %v5085_v9  ;;  %v6153_v10 = vpop.f32.mrf.mxu1 }
 0x4f7   :  { %v6655_v32 = vmax.f32 %v6499_v46, 0.0  ;;  %v6010_v20 = vpop.f32.mrf.mxu0  ;;  %v6420_v31 = vadd.f32 %v15425_v0, %v6240_v12  ;;  %v6459_v54 = vadd.f32 %v15300_v6, %v6279_v40  ;;  %v6578_v33 = vmax.f32 %v6422_v13, 0.0 }
 0x4f8   :  { %v6497_v50 = vadd.f32 %v15338_v26, %v6317_v15  ;;  %v6318_v29 = vadd.f32 %v6010_v20, %v16178_v62  ;;  %10144 = vmatmul.mubr.msk.bf16.vlgmr.msra.gmra.mxu1 %vm6748_vm1, %v16148_v24  ;;  %v6617_v63 = vmax.f32 %v6461_v5, 0.0  ;;  %v6656_v16 = vmax.f32 %v6500_v22, 0.0  ;;  %v10328_v8 = vpop.f32.mrf.mxu1 }
 0x4f9   :  { %v16244_v39 = vpack.c.bf16 %v6655_v32, %v6616_v59  ;;  %v6100_v2 = vpop.f32.mrf.mxu0  ;;  %7472 = vmatprep.mubr.bf16.mxu1 %v18982_v61  ;;  %v6614_v9 = vmax.f32 %v6458_v45, 0.0  ;;  %v6539_v34 = vmax.f32 %v6383_v42, 0.0  ;;  %v6464_v62 = vadd.f32 %v15300_v6, %v6284_v53 }
 0x4fa   :  { %v6653_v14 = vmax.f32 %v6497_v50, 0.0  ;;  %v6498_v12 = vadd.f32 %v15338_v26, %v6318_v29  ;;  %v6204_v40 = vadd.f32 %v6100_v2, %v5024_v55  ;;  %v6323_v30 = vadd.f32 %v10328_v8, %v5088_v19  ;;  %v6156_v32 = vpop.f32.mrf.mxu1  ;;  %v19200_v29 = vld [vmem:[#allocation46_spill] sm:$0xff] }
 0x4fb   :  { %19197 = vst [vmem:[#allocation121_spill] sm:$0xff] %v16244_v39  ;;  %v6102_v46 = vpop.f32.mrf.mxu0  ;;  %v16249_v15 = vpack.c.bf16 %v6656_v16, %v6617_v63  ;;  %v6576_v13 = vmax.f32 %v6420_v31, 0.0  ;;  %v6615_v5 = vmax.f32 %v6459_v54, 0.0  ;;  %v6537_v20 = vmax.f32 %v6381_v47, 0.0  ;;  %v19199_v54 = vld [vmem:[#allocation45_spill] sm:$0xff] }
 0x4fc   :  { %v16251_v7 = vpack.c.bf16 %v6653_v14, %v6614_v9  ;;  %v6654_v59 = vmax.f32 %v6498_v12, 0.0  ;;  %v6503_v22 = vadd.f32 %v15338_v26, %v6323_v30  ;;  %v6245_v50 = vadd.f32 %v6156_v32, %v5080_v44  ;;  %v19203_v14 = vld [vmem:[#allocation31_spill] sm:$0xff]  ;;  %v19204_v12 = vld [vmem:[#allocation176_spill] sm:$0xff]  ;;  %v19207_v32 = vld [vmem:[#allocation146_spill] sm:$0xff] }
 0x4fd   :  { %v6104_v45 = vpop.f32.mrf.mxu0  ;;  %7495 = vmatprep.subr.bf16.mxu0 %v16249_v15  ;;  %v16255_v55 = vpack.c.bf16 %v6578_v33, %v6539_v34  ;;  %v6384_v42 = vadd.f32 %v15400_v28, %v6204_v40  ;;  %v6206_v19 = vadd.f32 %v6153_v10, %v16193_v25  ;;  %v5034_v47 = vadd.f32 %v19200_v29, %v19199_v54  ;;  %v19202_v10 = vld [vmem:[#allocation156_spill] sm:$0xff]  ;;  %v19209_v54 = vld [vmem:[#allocation185_spill] sm:$0xff] }
 0x4fe   :  { %v6243_v53 = vadd.f32 %v6104_v45, %v5028_v37  ;;  %v16259_v31 = vpack.c.bf16 %v6654_v59, %v6615_v5  ;;  %7496 = vmatpush1.bf16.msra.mxu0 %v16244_v39  ;;  %v6620_v63 = vmax.f32 %v6464_v62, 0.0  ;;  %v6659_v16 = vmax.f32 %v6503_v22, 0.0  ;;  %v19201_v37 = vld [vmem:[#allocation41_spill] sm:$0xff] }
 0x4ff   :  { %v6106_v2 = vpop.f32.mrf.mxu0  ;;  %7497 = vmatprep.subr.bf16.mxu0 %v16255_v55  ;;  %v6425_v33 = vadd.f32 %v15425_v0, %v6245_v50  ;;  %v16268_v25 = vpack.c.bf16 %v6576_v13, %v6537_v20  ;;  %v5030_v9 = vadd.f32 %v19202_v10, %v19201_v37  ;;  %v5036_v40 = vadd.f32 %v19204_v12, %v19203_v14  ;;  %v19206_v13 = vld [vmem:[#allocation242_spill] sm:$0xff] }
 0x500   :  { %19198 = vst [vmem:[#allocation81_spill] sm:$0xff] %v16259_v31  ;;  %v6423_v44 = vadd.f32 %v15425_v0, %v6243_v53  ;;  %7452 = vmatprep.subr.bf16.mxu1 %v16259_v31  ;;  %v16274_v8 = vpack.c.bf16 %v6659_v16, %v6620_v63  ;;  %v6540_v62 = vmax.f32 %v6384_v42, 0.0  ;;  %v6386_v30 = vadd.f32 %v15400_v28, %v6206_v19  ;;  %v19208_v53 = vld [vmem:[#allocation80_spill] sm:$0xff] }
 0x501   :  { %v6110_v34 = vpop.f32.mrf.mxu0  ;;  %7453 = vmatpush1.bf16.msra.mxu1 %v16251_v7  ;;  %v5026_v20 = vadd.f32 %v19207_v32, %v19206_v13  ;;  %v6244_v45 = vadd.f32 %v6106_v2, %v5030_v9  ;;  %v17971_v50 = vmov 0.0   ;;  %v5038_v29 = vadd.f32 %v19209_v54, %v19208_v53  ;;  %v19211_v16 = vld [vmem:[#allocation188_spill] sm:$0xff] }
 0x502   :  { %19205 = vst [vmem:[#allocation53_spill] sm:$0xff] %v16274_v8  ;;  %v6579_v5 = vmax.f32 %v6423_v44, 0.0  ;;  %v6282_v59 = vadd.f32 %v6110_v34, %v5034_v47  ;;  %7454 = vmatprep.subr.bf16.mxu1 %v16268_v25  ;;  %7498 = vmatpush1.bf16.msra.mxu0 %v16207_v43  ;;  %v6581_v19 = vmax.f32 %v6425_v33, 0.0  ;;  %v19210_v47 = vld [vmem:[#allocation79_spill] sm:$0xff]  ;;  %v6542_v10 = vmax.f32 %v6386_v30, 0.0  ;;  %v19213_v13 = vld [vmem:[#allocation32_spill] sm:$0xff] }
 0x503   :  { %v6112_v22 = vpop.f32.mrf.mxu0  ;;  %10329 = vmatprep.subr.bf16.mxu0 %v17971_v50  ;;  %v5040_v44 = vadd.f32 %v19211_v16, %v19210_v47  ;;  %v6205_v2 = vadd.f32 %v6102_v46, %v5026_v20  ;;  %v6424_v33 = vadd.f32 %v15425_v0, %v6244_v45  ;;  %v19218_v47 = vld [vmem:[#allocation87_spill] sm:$0xff]  ;;  %v19219_v16 = vld [vmem:[#allocation94_spill] sm:$0xff] }
 0x504   :  { %v16285_v42 = vpack.c.bf16 %v6579_v5, %v6540_v62  ;;  %v6283_v63 = vadd.f32 %v6112_v22, %v5036_v40  ;;  %v6462_v9 = vadd.f32 %v15300_v6, %v6282_v59  ;;  %v16298_v40 = vpack.c.bf16 %v6581_v19, %v6542_v10  ;;  %v19216_v19 = vld [vmem:[#allocation199_spill] sm:$0xff] }
 0x505   :  { %v6114_v37 = vpop.f32.mrf.mxu0  ;;  %7455 = vmatpush1.bf16.msra.mxu1 %v16221_v21  ;;  %10147 = vmatmul.mubr.msk.bf16.vlgmr.msra.gmra.mxu0 %vm6748_vm1, %v16148_v24  ;;  %v6385_v30 = vadd.f32 %v15400_v28, %v6205_v2  ;;  %v6580_v32 = vmax.f32 %v6424_v33, 0.0  ;;  %v19214_v28 = vld [vmem:[#allocation67_spill] sm:$0xff]  ;;  %v19222_v2 = vld [vmem:[#allocation66_spill] sm:$0xff]  ;;  %v19227_v33 = vld [vmem:[#allocation57_spill] sm:$0xff] }
 0x506   :  { %v6321_v14 = vadd.f32 %v6114_v37, %v5038_v29  ;;  %10330 = vmatpush3.bf16.msra.mxu0 %v16274_v8  ;;  %10333 = vmatprep.mubr.msk.bf16.mxu0 %vm10427_vm2, %v17971_v50  ;;  %19212 = vst [vmem:[#allocation85_spill] sm:$0xff] %v16298_v40  ;;  %v6463_v34 = vadd.f32 %v15300_v6, %v6283_v63  ;;  %v6618_v5 = vmax.f32 %v6462_v9, 0.0  ;;  %v16325_v29 = vld [vmem:[%s17466_s5] sm:$0xff]   ;;  %v19217_v63 = vld [vmem:[#allocation64_spill] sm:$0xff]  ;;  %v19221_v37 = vld [vmem:[#allocation33_spill] sm:$0xff] }
 0x507   :  { %v6116_v12 = vpop.f32.mrf.mxu0  ;;  %10331 = vmatprep.subr.bf16.mxu0 %v17971_v50  ;;  %v6541_v22 = vmax.f32 %v6385_v30, 0.0  ;;  %v19223_v10 = vld [vmem:[#allocation11_spill] sm:$0xff]  ;;  %v19232_v30 = vld [vmem:[#allocation98_spill] sm:$0xff]  ;;  %v19244_v8 = vld [vmem:[#allocation28_spill] sm:$0xff] }
 0x508   :  { %v6501_v46 = vadd.f32 %v15338_v26, %v6321_v14  ;;  %v6322_v62 = vadd.f32 %v6116_v12, %v5040_v44  ;;  %10146 = vmatmul.mubr.msk.bf16.vlgmr.msra.gmra.mxu1 %vm6748_vm1, %v16148_v24  ;;  %v6619_v6 = vmax.f32 %v6463_v34, 0.0  ;;  %v19220_v44 = vld [vmem:[#allocation93_spill] sm:$0xff]  ;;  %v19224_v9 = vld [vmem:[#allocation71_spill] sm:$0xff]  ;;  %v19225_v14 = vld [vmem:[#allocation48_spill] sm:$0xff] }
 0x509   :  { %7558 = vmatprep.mubr.bf16.mxu1 %v18982_v61  ;;  %v16319_v54 = vpack.c.bf16 %v6580_v32, %v6541_v22  ;;  %v19228_v12 = vld [vmem:[#allocation106_spill] sm:$0xff]  ;;  %v19229_v34 = vld [vmem:[#allocation73_spill] sm:$0xff]  ;;  %v19236_v32 = vld [vmem:[#allocation76_spill] sm:$0xff] }
 0x50a   :  { %v6657_v59 = vmax.f32 %v6501_v46, 0.0  ;;  %v6502_v0 = vadd.f32 %v15338_v26, %v6322_v62  ;;  %10332 = vmatpush3.bf16.msra.mxu0 %v16298_v40  ;;  %v19215_v26 = vld [vmem:[#allocation88_spill] sm:$0xff]  ;;  %v19230_v46 = vld [vmem:[#allocation49_spill] sm:$0xff]  ;;  %v19231_v62 = vld [vmem:[#allocation198_spill] sm:$0xff] }
 0x50b   :  { %7673 = vmatprep.subr.bf16.mxu0 %v19213_v13  ;;  %v19239_v22 = vld [vmem:[#allocation100_spill] sm:$0xff]  ;;  %v19242_v50 = vld [vmem:[#allocation110_spill] sm:$0xff]  ;;  %v19243_v40 = vld [vmem:[#allocation99_spill] sm:$0xff] }
 0x50c   :  { %v16309_v20 = vpack.c.bf16 %v6657_v59, %v6618_v5  ;;  %v6658_v45 = vmax.f32 %v6502_v0, 0.0  ;;  %v19233_v5 = vld [vmem:[#allocation65_spill] sm:$0xff]  ;;  %v19234_v59 = vld [vmem:[#allocation96_spill] sm:$0xff]  ;;  %v19235_v0 = vld [vmem:[#allocation91_spill] sm:$0xff] }
 0x50d   :  { %10334 = vmatmul.mubr.msk.bf16.vlgmr.msra.gmra.mxu0 %vm6748_vm1, %v16148_v24 }
 0x50e   :  { %v16313_v53 = vpack.c.bf16 %v6658_v45, %v6619_v6  ;;  %7674 = vmatpush1.bf16.msra.mxu0 %v19214_v28  ;;  %7693 = vmatprep.mubr.bf16.mxu0 %v18982_v61  ;;  %v19237_v6 = vld [vmem:[#allocation56_spill] sm:$0xff]  ;;  %v19238_v45 = vld [vmem:[#allocation55_spill] sm:$0xff] }
 0x50f   :  { %7675 = vmatprep.subr.bf16.mxu0 %v19215_v26 }
 0x510   :  { %7538 = vmatprep.subr.bf16.mxu1 %v16313_v53 }
 0x511   :  { %7539 = vmatpush1.bf16.msra.mxu1 %v16309_v20 }
 0x512   :  { %7540 = vmatprep.subr.bf16.mxu1 %v16319_v54  ;;  %7676 = vmatpush1.bf16.msra.mxu0 %v19216_v19 }
 0x513   :  { %7759 = vmatprep.subr.bf16.mxu0 %v19217_v63 }
 0x515   :  { %7541 = vmatpush1.bf16.msra.mxu1 %v16285_v42  ;;  %10152 = vmatmul.mubr.msk.bf16.vlgmr.msra.gmra.mxu0 %vm6748_vm1, %v16325_v29 }
 0x516   :  { %7630 = vmatprep.subr.bf16.mxu1 %v19218_v47  ;;  %7760 = vmatpush1.bf16.msra.mxu0 %v19219_v16  ;;  %v19240_v47 = vld [vmem:[#allocation75_spill] sm:$0xff] }
 0x517   :  { %7761 = vmatprep.subr.bf16.mxu0 %v19220_v44  ;;  %7779 = vmatprep.mubr.bf16.mxu0 %v18982_v61 }
 0x518   :  { %10148 = vmatmul.mubr.msk.bf16.vlgmr.msra.gmra.mxu1 %vm6748_vm1, %v16148_v24  ;;  %v19226_v24 = vld [vmem:[#allocation69_spill] sm:$0xff] }
 0x519   :  { %7631 = vmatpush1.bf16.msra.mxu1 %v18982_v61  ;;  %7650 = vmatprep.mubr.bf16.mxu1 %v18982_v61 }
 0x51a   :  { %7632 = vmatprep.subr.bf16.mxu1 %v19221_v37  ;;  %7762 = vmatpush1.bf16.msra.mxu0 %v19222_v2  ;;  %v19241_v37 = vld [vmem:[#allocation77_spill] sm:$0xff] }
 0x51b   :  { %7845 = vmatprep.subr.bf16.mxu0 %v19223_v10 }
 0x51d   :  { %7633 = vmatpush1.bf16.msra.mxu1 %v18982_v61  ;;  %10154 = vmatmul.mubr.msk.bf16.vlgmr.msra.gmra.mxu0 %vm6748_vm1, %v16325_v29 }
 0x51e   :  { %7716 = vmatprep.subr.bf16.mxu1 %v19224_v9  ;;  %7846 = vmatpush1.bf16.msra.mxu0 %v19225_v14 }
 0x51f   :  { %7847 = vmatprep.subr.bf16.mxu0 %v19226_v24  ;;  %7865 = vmatprep.mubr.bf16.mxu0 %v18982_v61 }
 0x520   :  { %10151 = vmatmul.mubr.msk.bf16.vlgmr.msra.gmra.mxu1 %vm6748_vm1, %v16325_v29 }
 0x521   :  { %7717 = vmatpush1.bf16.msra.mxu1 %v19227_v33  ;;  %7736 = vmatprep.mubr.bf16.mxu1 %v18982_v61 }
 0x522   :  { %7718 = vmatprep.subr.bf16.mxu1 %v19228_v12  ;;  %7848 = vmatpush1.bf16.msra.mxu0 %v19229_v34 }
 0x523   :  { %7931 = vmatprep.subr.bf16.mxu0 %v19230_v46 }
 0x525   :  { %7719 = vmatpush1.bf16.msra.mxu1 %v19231_v62  ;;  %10156 = vmatmul.mubr.msk.bf16.vlgmr.msra.gmra.mxu0 %vm6748_vm1, %v16325_v29 }
 0x526   :  { %7802 = vmatprep.subr.bf16.mxu1 %v19232_v30  ;;  %7932 = vmatpush1.bf16.msra.mxu0 %v19233_v5 }
 0x527   :  { %7933 = vmatprep.subr.bf16.mxu0 %v19234_v59  ;;  %7951 = vmatprep.mubr.bf16.mxu0 %v18982_v61 }
 0x528   :  { %10153 = vmatmul.mubr.msk.bf16.vlgmr.msra.gmra.mxu1 %vm6748_vm1, %v16325_v29 }
 0x529   :  { %7803 = vmatpush1.bf16.msra.mxu1 %v19235_v0  ;;  %7822 = vmatprep.mubr.bf16.mxu1 %v18982_v61 }
 0x52a   :  { %7804 = vmatprep.subr.bf16.mxu1 %v19236_v32  ;;  %7934 = vmatpush1.bf16.msra.mxu0 %v19237_v6 }
 0x52b   :  { %8017 = vmatprep.subr.bf16.mxu0 %v15874_v60 }
 0x52d   :  { %7805 = vmatpush1.bf16.msra.mxu1 %v19238_v45  ;;  %10158 = vmatmul.mubr.msk.bf16.vlgmr.msra.gmra.mxu0 %vm6748_vm1, %v16325_v29 }
 0x52e   :  { %7888 = vmatprep.subr.bf16.mxu1 %v19239_v22  ;;  %8018 = vmatpush1.bf16.msra.mxu0 %v15910_v41 }
 0x52f   :  { %8019 = vmatprep.subr.bf16.mxu0 %v15825_v27  ;;  %8037 = vmatprep.mubr.bf16.mxu0 %v18982_v61  ;;  %v19247_v27 = vld [vmem:[#allocation23_spill] sm:$0xff] }
 0x530   :  { %10155 = vmatmul.mubr.msk.bf16.vlgmr.msra.gmra.mxu1 %vm6748_vm1, %v16325_v29 }
 0x531   :  { %7889 = vmatpush1.bf16.msra.mxu1 %v19240_v47  ;;  %7908 = vmatprep.mubr.bf16.mxu1 %v18982_v61 }
 0x532   :  { %7890 = vmatprep.subr.bf16.mxu1 %v19241_v37  ;;  %8020 = vmatpush1.bf16.msra.mxu0 %v15856_v52  ;;  %v19246_v52 = vld [vmem:[#allocation92_spill] sm:$0xff] }
 0x533   :  { %8103 = vmatprep.subr.bf16.mxu0 %v15970_v11  ;;  %v19245_v11 = vld [vmem:[#allocation35_spill] sm:$0xff] }
 0x535   :  { %7891 = vmatpush1.bf16.msra.mxu1 %v19242_v50  ;;  %10160 = vmatmul.mubr.msk.bf16.vlgmr.msra.gmra.mxu0 %vm6748_vm1, %v16325_v29 }
 0x536   :  { %7974 = vmatprep.subr.bf16.mxu1 %v15887_v51  ;;  %8104 = vmatpush1.bf16.msra.mxu0 %v16003_v57  ;;  %v19249_v57 = vld [vmem:[#allocation70_spill] sm:$0xff] }
 0x537   :  { %8105 = vmatprep.subr.bf16.mxu0 %v19243_v40  ;;  %8123 = vmatprep.mubr.bf16.mxu0 %v18982_v61  ;;  %v19248_v40 = vld [vmem:[#allocation74_spill] sm:$0xff] }
 0x538   :  { %10157 = vmatmul.mubr.msk.bf16.vlgmr.msra.gmra.mxu1 %vm6748_vm1, %v16325_v29 }
 0x539   :  { %7975 = vmatpush1.bf16.msra.mxu1 %v19244_v8  ;;  %7994 = vmatprep.mubr.bf16.mxu1 %v18982_v61 }
 0x53a   :  { %7976 = vmatprep.subr.bf16.mxu1 %v19245_v11  ;;  %8106 = vmatpush1.bf16.msra.mxu0 %v19246_v52  ;;  %v19251_v52 = vld [vmem:[#allocation29_spill] sm:$0xff] }
 0x53b   :  { %8189 = vmatprep.subr.bf16.mxu0 %v16070_v1  ;;  %v19250_v1 = vld [vmem:[#allocation54_spill] sm:$0xff] }
 0x53d   :  { %7977 = vmatpush1.bf16.msra.mxu1 %v19247_v27  ;;  %10162 = vmatmul.mubr.msk.bf16.vlgmr.msra.gmra.mxu0 %vm6748_vm1, %v16325_v29 }
 0x53e   :  { %8060 = vmatprep.subr.bf16.mxu1 %v19248_v40  ;;  %8190 = vmatpush1.bf16.msra.mxu0 %v16095_v49 }
 0x53f   :  { %8191 = vmatprep.subr.bf16.mxu0 %v16028_v3  ;;  %8209 = vmatprep.mubr.bf16.mxu0 %v18982_v61 }
 0x540   :  { %10159 = vmatmul.mubr.msk.bf16.vlgmr.msra.gmra.mxu1 %vm6748_vm1, %v16325_v29 }
 0x541   :  { %8061 = vmatpush1.bf16.msra.mxu1 %v19249_v57  ;;  %8080 = vmatprep.mubr.bf16.mxu1 %v18982_v61 }
 0x542   :  { %8062 = vmatprep.subr.bf16.mxu1 %v19250_v1  ;;  %8192 = vmatpush1.bf16.msra.mxu0 %v16111_v23  ;;  %v19253_v23 = vld [vmem:[#allocation34_spill] sm:$0xff] }
 0x543   :  { %8275 = vmatprep.subr.bf16.mxu0 %v16165_v35  ;;  %v19254_v35 = vld [vmem:[#allocation44_spill] sm:$0xff] }
 0x545   :  { %8063 = vmatpush1.bf16.msra.mxu1 %v19251_v52  ;;  %10164 = vmatmul.mubr.msk.bf16.vlgmr.msra.gmra.mxu0 %vm6748_vm1, %v16325_v29  ;;  %v16421_v3 = vpop.f32.mrf.mxu0 }
 0x546   :  { %8146 = vmatprep.subr.bf16.mxu1 %v16079_v17  ;;  %8276 = vmatpush1.bf16.msra.mxu0 %v16188_v58  ;;  %19252 = vst [vmem:[#allocation68_spill] sm:$0xff] %v16421_v3  ;;  %v19257_v58 = vld [vmem:[#allocation40_spill] sm:$0xff] }
 0x547   :  { %8277 = vmatprep.subr.bf16.mxu0 %v16118_v48  ;;  %8295 = vmatprep.mubr.bf16.mxu0 %v18982_v61  ;;  %v16432_v48 = vpop.f32.mrf.mxu0 }
 0x548   :  { %10161 = vmatmul.mubr.msk.bf16.vlgmr.msra.gmra.mxu1 %vm6748_vm1, %v16325_v29  ;;  %v16429_v49 = vpop.f32.mrf.mxu1  ;;  %19256 = vst [vmem:[#allocation89_spill] sm:$0xff] %v16432_v48  ;;  %v19260_v48 = vld [vmem:[#allocation43_spill] sm:$0xff] }
 0x549   :  { %8147 = vmatpush1.bf16.msra.mxu1 %v19253_v23  ;;  %8166 = vmatprep.mubr.bf16.mxu1 %v18982_v61  ;;  %19255 = vst [vmem:[#allocation13_spill] sm:$0xff] %v16429_v49  ;;  %v16443_v49 = vpop.f32.mrf.mxu0 }
 0x54a   :  { %8148 = vmatprep.subr.bf16.mxu1 %v19254_v35  ;;  %8278 = vmatpush1.bf16.msra.mxu0 %v16202_v18  ;;  %v16439_v3 = vpop.f32.mrf.mxu1  ;;  %19259 = vst [vmem:[#allocation26_spill] sm:$0xff] %v16443_v49 }
 0x54b   :  { %8361 = vmatprep.subr.bf16.mxu0 %v16244_v39  ;;  %19258 = vst [vmem:[#allocation111_spill] sm:$0xff] %v16439_v3  ;;  %v19262_v3 = vmov 0.0   ;;  %v19264_v39 = vld [vmem:[#allocation103_spill] sm:$0xff] }
 0x54d   :  { %8149 = vmatpush1.bf16.msra.mxu1 %v19257_v58  ;;  %10166 = vmatmul.mubr.msk.bf16.vlgmr.msra.gmra.mxu0 %vm6748_vm1, %v16325_v29 }
 0x54e   :  { %8232 = vmatprep.subr.bf16.mxu1 %v16174_v36  ;;  %8362 = vmatpush1.bf16.msra.mxu0 %v16259_v31  ;;  %v16451_v31 = vpop.f32.mrf.mxu1 }
 0x54f   :  { %8363 = vmatprep.subr.bf16.mxu0 %v16207_v43  ;;  %8381 = vmatprep.mubr.bf16.mxu0 %v18982_v61  ;;  %19261 = vst [vmem:[#allocation109_spill] sm:$0xff] %v16451_v31  ;;  %v16454_v43 = vpop.f32.mrf.mxu0 }
 0x550   :  { %10163 = vmatmul.mubr.msk.bf16.vlgmr.msra.gmra.mxu1 %vm6748_vm1, %v16325_v29  ;;  %19263 = vst [vmem:[#allocation201_spill] sm:$0xff] %v16454_v43  ;;  %v16461_v49 = vpop.f32.mrf.mxu1 }
 0x551   :  { %8233 = vmatpush1.bf16.msra.mxu1 %v19260_v48  ;;  %8252 = vmatprep.mubr.bf16.mxu1 %v18982_v61  ;;  %19265 = vst [vmem:[#allocation200_spill] sm:$0xff] %v16461_v49 }
 0x552   :  { %8234 = vmatprep.subr.bf16.mxu1 %v16136_v56  ;;  %8364 = vmatpush1.bf16.msra.mxu0 %v16268_v25 }
 0x553   :  { %10337 = vmatprep.subr.bf16.mxu0 %v19262_v3 }
 0x555   :  { %8235 = vmatpush1.bf16.msra.mxu1 %v19264_v39  ;;  %10168 = vmatmul.mubr.msk.bf16.vlgmr.msra.gmra.mxu0 %vm6748_vm1, %v16325_v29  ;;  %v16466_v31 = vpop.f32.mrf.mxu0 }
 0x556   :  { %8318 = vmatprep.subr.bf16.mxu1 %v16251_v7  ;;  %10338 = vmatpush3.bf16.msra.mxu0 %v16313_v53  ;;  %19266 = vst [vmem:[#allocation125_spill] sm:$0xff] %v16466_v31 }
 0x557   :  { %10339 = vmatprep.subr.bf16.mxu0 %v19262_v3  ;;  %10341 = vmatprep.mubr.msk.bf16.mxu0 %vm10427_vm2, %v19262_v3  ;;  %v16477_v49 = vpop.f32.mrf.mxu0 }
 0x558   :  { %10165 = vmatmul.mubr.msk.bf16.vlgmr.msra.gmra.mxu1 %vm6748_vm1, %v16325_v29  ;;  %v16474_v43 = vpop.f32.mrf.mxu1 }
 0x559   :  { %8319 = vmatpush1.bf16.msra.mxu1 %v16172_v38  ;;  %8338 = vmatprep.mubr.bf16.mxu1 %v18982_v61  ;;  %19267 = vst [vmem:[#allocation149_spill] sm:$0xff] %v16474_v43  ;;  %v16488_v43 = vpop.f32.mrf.mxu0 }
 0x55a   :  { %8320 = vmatprep.subr.bf16.mxu1 %v16221_v21  ;;  %10340 = vmatpush3.bf16.msra.mxu0 %v16319_v54  ;;  %v16484_v31 = vpop.f32.mrf.mxu1 }
 0x55b   :  { %8542 = vmatprep.subr.bf16.mxu0 %v19224_v9  ;;  %19268 = vst [vmem:[#allocation203_spill] sm:$0xff] %v16484_v31  ;;  %v16497_v9 = vld [vmem:[%s17466_s5 + $0x10] sm:$0xff]  }
 0x55d   :  { %8321 = vmatpush1.bf16.msra.mxu1 %v16184_v4  ;;  %10342 = vmatmul.mubr.msk.bf16.vlgmr.msra.gmra.mxu0 %vm6748_vm1, %v16325_v29 }
 0x55e   :  { %8404 = vmatprep.subr.bf16.mxu1 %v16309_v20  ;;  %8543 = vmatpush1.bf16.msra.mxu0 %v19227_v33  ;;  %v16501_v33 = vpop.f32.mrf.mxu1 }
 0x55f   :  { %8544 = vmatprep.subr.bf16.mxu0 %v19228_v12  ;;  %8562 = vmatprep.mubr.bf16.mxu0 %v18982_v61  ;;  %v16504_v12 = vpop.f32.mrf.mxu0 }
 0x560   :  { %10167 = vmatmul.mubr.msk.bf16.vlgmr.msra.gmra.mxu1 %vm6748_vm1, %v16325_v29  ;;  %v16511_v31 = vpop.f32.mrf.mxu1 }
 0x561   :  { %8405 = vmatpush1.bf16.msra.mxu1 %v16249_v15  ;;  %8424 = vmatprep.mubr.bf16.mxu1 %v18982_v61 }
 0x562   :  { %8406 = vmatprep.subr.bf16.mxu1 %v16285_v42  ;;  %8545 = vmatpush1.bf16.msra.mxu0 %v19231_v62 }
 0x563   :  { %8628 = vmatprep.subr.bf16.mxu0 %v19232_v30 }
 0x565   :  { %8407 = vmatpush1.bf16.msra.mxu1 %v16255_v55  ;;  %10175 = vmatmul.mubr.msk.bf16.vlgmr.msra.gmra.mxu0 %vm6748_vm1, %v16497_v9  ;;  %v16515_v62 = vpop.f32.mrf.mxu0 }
 0x566   :  { %8499 = vmatprep.subr.bf16.mxu1 %v19213_v13  ;;  %8629 = vmatpush1.bf16.msra.mxu0 %v19235_v0  ;;  %v19298_v0 = vld [vmem:[#allocation121_spill] sm:$0xff] }
 0x567   :  { %8630 = vmatprep.subr.bf16.mxu0 %v19236_v32  ;;  %8648 = vmatprep.mubr.bf16.mxu0 %v18982_v61  ;;  %v16526_v30 = vpop.f32.mrf.mxu0 }
 0x568   :  { %10169 = vmatmul.mubr.msk.bf16.vlgmr.msra.gmra.mxu1 %vm6748_vm1, %v16325_v29  ;;  %v16523_v13 = vpop.f32.mrf.mxu1 }
 0x569   :  { %8500 = vmatpush1.bf16.msra.mxu1 %v19214_v28  ;;  %8519 = vmatprep.mubr.bf16.mxu1 %v18982_v61 }
 0x56a   :  { %8501 = vmatprep.subr.bf16.mxu1 %v19215_v26  ;;  %8631 = vmatpush1.bf16.msra.mxu0 %v19238_v45  ;;  %v16533_v28 = vpop.f32.mrf.mxu1  ;;  %v16537_v26 = vpop.f32.mrf.mxu0 }
 0x56b   :  { %8714 = vmatprep.subr.bf16.mxu0 %v19239_v22 }
 0x56c   :  { %v16545_v29 = vpop.f32.mrf.mxu1 }
 0x56d   :  { %8502 = vmatpush1.bf16.msra.mxu1 %v19216_v19  ;;  %10177 = vmatmul.mubr.msk.bf16.vlgmr.msra.gmra.mxu0 %vm6748_vm1, %v16497_v9  ;;  %v16548_v19 = vpop.f32.mrf.mxu0 }
 0x56e   :  { %8585 = vmatprep.subr.bf16.mxu1 %v19217_v63  ;;  %8715 = vmatpush1.bf16.msra.mxu0 %v19240_v47  ;;  %v16555_v63 = vpop.f32.mrf.mxu1  ;;  %v19305_v47 = vld [vmem:[#allocation53_spill] sm:$0xff] }
 0x56f   :  { %8716 = vmatprep.subr.bf16.mxu0 %v19241_v37  ;;  %8734 = vmatprep.mubr.bf16.mxu0 %v18982_v61 }
 0x570   :  { %10174 = vmatmul.mubr.msk.bf16.vlgmr.msra.gmra.mxu1 %vm6748_vm1, %v16497_v9 }
 0x571   :  { %8586 = vmatpush1.bf16.msra.mxu1 %v19219_v16  ;;  %8605 = vmatprep.mubr.bf16.mxu1 %v18982_v61  ;;  %v19275_v16 = vld [vmem:[#allocation25_spill] sm:$0xff] }
 0x572   :  { %8587 = vmatprep.subr.bf16.mxu1 %v19220_v44  ;;  %8717 = vmatpush1.bf16.msra.mxu0 %v19242_v50  ;;  %v19279_v44 = vld [vmem:[#allocation99_spill] sm:$0xff] }
 0x573   :  { %8800 = vmatprep.subr.bf16.mxu0 %v15887_v51 }
 0x575   :  { %8588 = vmatpush1.bf16.msra.mxu1 %v19222_v2  ;;  %10179 = vmatmul.mubr.msk.bf16.vlgmr.msra.gmra.mxu0 %vm6748_vm1, %v16497_v9  ;;  %v16559_v50 = vpop.f32.mrf.mxu0  ;;  %v19282_v2 = vld [vmem:[#allocation92_spill] sm:$0xff] }
 0x576   :  { %8671 = vmatprep.subr.bf16.mxu1 %v19223_v10  ;;  %8801 = vmatpush1.bf16.msra.mxu0 %v19244_v8  ;;  %v19283_v10 = vld [vmem:[#allocation7_spill] sm:$0xff] }
 0x577   :  { %8802 = vmatprep.subr.bf16.mxu0 %v19245_v11  ;;  %8820 = vmatprep.mubr.bf16.mxu0 %v18982_v61  ;;  %v16570_v11 = vpop.f32.mrf.mxu0 }
 0x578   :  { %10176 = vmatmul.mubr.msk.bf16.vlgmr.msra.gmra.mxu1 %vm6748_vm1, %v16497_v9  ;;  %v16567_v51 = vpop.f32.mrf.mxu1 }
 0x579   :  { %8672 = vmatpush1.bf16.msra.mxu1 %v19225_v14  ;;  %8691 = vmatprep.mubr.bf16.mxu1 %v18982_v61 }
 0x57a   :  { %8673 = vmatprep.subr.bf16.mxu1 %v19226_v24  ;;  %8803 = vmatpush1.bf16.msra.mxu0 %v19247_v27  ;;  %v16577_v8 = vpop.f32.mrf.mxu1  ;;  %v16581_v27 = vpop.f32.mrf.mxu0  ;;  %v19287_v24 = vld [vmem:[#allocation62_spill] sm:$0xff] }
 0x57b   :  { %8886 = vmatprep.subr.bf16.mxu0 %v19248_v40 }
 0x57d   :  { %8674 = vmatpush1.bf16.msra.mxu1 %v19229_v34  ;;  %10181 = vmatmul.mubr.msk.bf16.vlgmr.msra.gmra.mxu0 %vm6748_vm1, %v16497_v9  ;;  %v19290_v34 = vld [vmem:[#allocation14_spill] sm:$0xff] }
 0x57e   :  { %8757 = vmatprep.subr.bf16.mxu1 %v19230_v46  ;;  %8887 = vmatpush1.bf16.msra.mxu0 %v19249_v57  ;;  %v16589_v57 = vpop.f32.mrf.mxu1  ;;  %v19291_v46 = vld [vmem:[#allocation107_spill] sm:$0xff] }
 0x57f   :  { %8888 = vmatprep.subr.bf16.mxu0 %v19250_v1  ;;  %8906 = vmatprep.mubr.bf16.mxu0 %v18982_v61  ;;  %19269 = vst [vmem:[#allocation108_spill] sm:$0xff] %v16589_v57  ;;  %v16592_v1 = vpop.f32.mrf.mxu0 }
 0x580   :  { %10178 = vmatmul.mubr.msk.bf16.vlgmr.msra.gmra.mxu1 %vm6748_vm1, %v16497_v9  ;;  %v16599_v40 = vpop.f32.mrf.mxu1 }
 0x581   :  { %8758 = vmatpush1.bf16.msra.mxu1 %v19233_v5  ;;  %8777 = vmatprep.mubr.bf16.mxu1 %v18982_v61  ;;  %19270 = vst [vmem:[#allocation151_spill] sm:$0xff] %v16599_v40 }
 0x582   :  { %8759 = vmatprep.subr.bf16.mxu1 %v19234_v59  ;;  %8889 = vmatpush1.bf16.msra.mxu0 %v19251_v52  ;;  %v19295_v59 = vld [vmem:[#allocation61_spill] sm:$0xff] }
 0x583   :  { %8972 = vmatprep.subr.bf16.mxu0 %v16079_v17  ;;  %v19271_v17 = vld [vmem:[#allocation24_spill] sm:$0xff] }
 0x585   :  { %8760 = vmatpush1.bf16.msra.mxu1 %v19237_v6  ;;  %10183 = vmatmul.mubr.msk.bf16.vlgmr.msra.gmra.mxu0 %vm6748_vm1, %v16497_v9  ;;  %v16603_v52 = vpop.f32.mrf.mxu0  ;;  %v19301_v6 = vld [vmem:[#allocation81_spill] sm:$0xff] }
 0x586   :  { %8843 = vmatprep.subr.bf16.mxu1 %v15874_v60  ;;  %8973 = vmatpush1.bf16.msra.mxu0 %v19253_v23 }
 0x587   :  { %8974 = vmatprep.subr.bf16.mxu0 %v19254_v35  ;;  %8992 = vmatprep.mubr.bf16.mxu0 %v18982_v61  ;;  %v16614_v23 = vpop.f32.mrf.mxu0  ;;  %v19274_v35 = vld [vmem:[#allocation52_spill] sm:$0xff] }
 0x588   :  { %10180 = vmatmul.mubr.msk.bf16.vlgmr.msra.gmra.mxu1 %vm6748_vm1, %v16497_v9  ;;  %v16611_v60 = vpop.f32.mrf.mxu1  ;;  %19273 = vst [vmem:[#allocation202_spill] sm:$0xff] %v16614_v23  ;;  %v19379_v23 = vld [vmem:[#allocation26_spill] sm:$0xff] }
 0x589   :  { %8844 = vmatpush1.bf16.msra.mxu1 %v15910_v41  ;;  %8863 = vmatprep.mubr.bf16.mxu1 %v18982_v61  ;;  %19272 = vst [vmem:[#allocation157_spill] sm:$0xff] %v16611_v60 }
 0x58a   :  { %8845 = vmatprep.subr.bf16.mxu1 %v19271_v17  ;;  %8975 = vmatpush1.bf16.msra.mxu0 %v19257_v58  ;;  %v16621_v41 = vpop.f32.mrf.mxu1  ;;  %v16625_v58 = vpop.f32.mrf.mxu0 }
 0x58b   :  { %9058 = vmatprep.subr.bf16.mxu0 %v16174_v36  ;;  %19276 = vst [vmem:[#allocation115_spill] sm:$0xff] %v16621_v41  ;;  %19277 = vst [vmem:[#allocation155_spill] sm:$0xff] %v16625_v58  ;;  %v19278_v36 = vld [vmem:[#allocation16_spill] sm:$0xff] }
 0x58d   :  { %8846 = vmatpush1.bf16.msra.mxu1 %v19274_v35  ;;  %10185 = vmatmul.mubr.msk.bf16.vlgmr.msra.gmra.mxu0 %vm6748_vm1, %v16497_v9  ;;  %v19308_v35 = vld [vmem:[#allocation85_spill] sm:$0xff] }
 0x58e   :  { %8929 = vmatprep.subr.bf16.mxu1 %v19275_v16  ;;  %9059 = vmatpush1.bf16.msra.mxu0 %v19260_v48  ;;  %v16633_v48 = vpop.f32.mrf.mxu1 }
 0x58f   :  { %9060 = vmatprep.subr.bf16.mxu0 %v16136_v56  ;;  %9078 = vmatprep.mubr.bf16.mxu0 %v18982_v61  ;;  %19280 = vst [vmem:[#allocation154_spill] sm:$0xff] %v16633_v48  ;;  %v16636_v56 = vpop.f32.mrf.mxu0 }
 0x590   :  { %10182 = vmatmul.mubr.msk.bf16.vlgmr.msra.gmra.mxu1 %vm6748_vm1, %v16497_v9  ;;  %19281 = vst [vmem:[#allocation160_spill] sm:$0xff] %v16636_v56  ;;  %v16643_v14 = vpop.f32.mrf.mxu1 }
 0x591   :  { %8930 = vmatpush1.bf16.msra.mxu1 %v19278_v36  ;;  %8949 = vmatprep.mubr.bf16.mxu1 %v18982_v61  ;;  %19284 = vst [vmem:[#allocation205_spill] sm:$0xff] %v16643_v14 }
 0x592   :  { %8931 = vmatprep.subr.bf16.mxu1 %v19279_v44  ;;  %9061 = vmatpush1.bf16.msra.mxu0 %v19264_v39 }
 0x593   :  { %9144 = vmatprep.subr.bf16.mxu0 %v16251_v7  ;;  %v19286_v7 = vld [vmem:[#allocation50_spill] sm:$0xff] }
 0x595   :  { %8932 = vmatpush1.bf16.msra.mxu1 %v19282_v2  ;;  %10187 = vmatmul.mubr.msk.bf16.vlgmr.msra.gmra.mxu0 %vm6748_vm1, %v16497_v9  ;;  %v16647_v39 = vpop.f32.mrf.mxu0 }
 0x596   :  { %9015 = vmatprep.subr.bf16.mxu1 %v19283_v10  ;;  %9145 = vmatpush1.bf16.msra.mxu0 %v16172_v38  ;;  %19285 = vst [vmem:[#allocation113_spill] sm:$0xff] %v16647_v39 }
 0x597   :  { %9146 = vmatprep.subr.bf16.mxu0 %v16221_v21  ;;  %9164 = vmatprep.mubr.bf16.mxu0 %v18982_v61  ;;  %v16658_v21 = vpop.f32.mrf.mxu0 }
 0x598   :  { %10184 = vmatmul.mubr.msk.bf16.vlgmr.msra.gmra.mxu1 %vm6748_vm1, %v16497_v9  ;;  %v16655_v38 = vpop.f32.mrf.mxu1  ;;  %19289 = vst [vmem:[#allocation162_spill] sm:$0xff] %v16658_v21 }
 0x599   :  { %9016 = vmatpush1.bf16.msra.mxu1 %v19286_v7  ;;  %9035 = vmatprep.mubr.bf16.mxu1 %v18982_v61  ;;  %19288 = vst [vmem:[#allocation159_spill] sm:$0xff] %v16655_v38  ;;  %v10393_v38 = vld [vmem:[%s17467_s7 + $0x4] ss:$20 sps:$4 sm:$0xff]  }
 0x59a   :  { %9017 = vmatprep.subr.bf16.mxu1 %v19287_v24  ;;  %9147 = vmatpush1.bf16.msra.mxu0 %v16184_v4  ;;  %v16665_v5 = vpop.f32.mrf.mxu1  ;;  %v16669_v4 = vpop.f32.mrf.mxu0 }
 0x59b   :  { %9230 = vmatprep.subr.bf16.mxu0 %v16309_v20  ;;  %19292 = vst [vmem:[#allocation204_spill] sm:$0xff] %v16665_v5  ;;  %19293 = vst [vmem:[#allocation37_spill] sm:$0xff] %v16669_v4  ;;  %v19294_v20 = vld [vmem:[#allocation27_spill] sm:$0xff] }
 0x59d   :  { %9018 = vmatpush1.bf16.msra.mxu1 %v19290_v34  ;;  %10189 = vmatmul.mubr.msk.bf16.vlgmr.msra.gmra.mxu0 %vm6748_vm1, %v16497_v9 }
 0x59e   :  { %9101 = vmatprep.subr.bf16.mxu1 %v19291_v46  ;;  %9231 = vmatpush1.bf16.msra.mxu0 %v16249_v15  ;;  %v16677_v15 = vpop.f32.mrf.mxu1 }
 0x59f   :  { %9232 = vmatprep.subr.bf16.mxu0 %v16285_v42  ;;  %9250 = vmatprep.mubr.bf16.mxu0 %v18982_v61  ;;  %19296 = vst [vmem:[#allocation161_spill] sm:$0xff] %v16677_v15  ;;  %v16680_v42 = vpop.f32.mrf.mxu0 }
 0x5a0   :  { %10186 = vmatmul.mubr.msk.bf16.vlgmr.msra.gmra.mxu1 %vm6748_vm1, %v16497_v9  ;;  %19297 = vst [vmem:[#allocation207_spill] sm:$0xff] %v16680_v42  ;;  %v16687_v32 = vpop.f32.mrf.mxu1 }
 0x5a1   :  { %9102 = vmatpush1.bf16.msra.mxu1 %v19294_v20  ;;  %9121 = vmatprep.mubr.bf16.mxu1 %v18982_v61  ;;  %19299 = vst [vmem:[#allocation112_spill] sm:$0xff] %v16687_v32 }
 0x5a2   :  { %9103 = vmatprep.subr.bf16.mxu1 %v19295_v59  ;;  %9233 = vmatpush1.bf16.msra.mxu0 %v16255_v55 }
 0x5a3   :  { %10345 = vmatprep.subr.bf16.mxu0 %v19262_v3 }
 0x5a5   :  { %9104 = vmatpush1.bf16.msra.mxu1 %v16202_v18  ;;  %10191 = vmatmul.mubr.msk.bf16.vlgmr.msra.gmra.mxu0 %vm6748_vm1, %v16497_v9  ;;  %v16691_v55 = vpop.f32.mrf.mxu0  ;;  %v19302_v18 = vld [vmem:[#allocation51_spill] sm:$0xff] }
 0x5a6   :  { %9187 = vmatprep.subr.bf16.mxu1 %v19298_v0  ;;  %10346 = vmatpush3.bf16.msra.mxu0 %v18982_v61  ;;  %19300 = vst [vmem:[#allocation167_spill] sm:$0xff] %v16691_v55 }
 0x5a7   :  { %10347 = vmatprep.mubr.msk.bf16.mxu0 %vm10427_vm2, %v19262_v3  ;;  %v16700_v22 = vpop.f32.mrf.mxu0 }
 0x5a8   :  { %10188 = vmatmul.mubr.msk.bf16.vlgmr.msra.gmra.mxu1 %vm6748_vm1, %v16497_v9  ;;  %v16698_v45 = vpop.f32.mrf.mxu1  ;;  %19304 = vst [vmem:[#allocation206_spill] sm:$0xff] %v16700_v22 }
 0x5a9   :  { %9188 = vmatpush1.bf16.msra.mxu1 %v19301_v6  ;;  %9207 = vmatprep.mubr.bf16.mxu1 %v18982_v61  ;;  %19303 = vst [vmem:[#allocation6_spill] sm:$0xff] %v16698_v45  ;;  %v16708_v17 = vpop.f32.mrf.mxu0 }
 0x5aa   :  { %9189 = vmatprep.subr.bf16.mxu1 %v19302_v18  ;;  %v16706_v37 = vpop.f32.mrf.mxu1  ;;  %19307 = vst [vmem:[#allocation165_spill] sm:$0xff] %v16708_v17 }
 0x5ab   :  { %19306 = vst [vmem:[#allocation36_spill] sm:$0xff] %v16706_v37 }
 0x5ac   :  { %v16715_v16 = vpop.f32.mrf.mxu1 }
 0x5ad   :  { %9190 = vmatpush1.bf16.msra.mxu1 %v16268_v25  ;;  %10348 = vmatmul.mubr.msk.bf16.vlgmr.msra.gmra.mxu0 %vm6748_vm1, %v16497_v9  ;;  %19309 = vst [vmem:[#allocation4_spill] sm:$0xff] %v16715_v16  ;;  %v16717_v25 = vpop.f32.mrf.mxu0 }
 0x5ae   :  { %9273 = vmatprep.subr.bf16.mxu1 %v19305_v47  ;;  %19310 = vst [vmem:[#allocation2_spill] sm:$0xff] %v16717_v25  ;;  %v16720_v36 = vpop.f32.mrf.mxu1 }
 0x5af   :  { %19311 = vst [vmem:[#allocation209_spill] sm:$0xff] %v16720_v36 }
 0x5b0   :  { %10190 = vmatmul.mubr.msk.bf16.vlgmr.msra.gmra.mxu1 %vm6748_vm1, %v16497_v9 }
 0x5b1   :  { %9274 = vmatpush1.bf16.msra.mxu1 %v16313_v53  ;;  %9293 = vmatprep.mubr.bf16.mxu1 %v18982_v61 }
 0x5b2   :  { %9275 = vmatprep.subr.bf16.mxu1 %v19308_v35 }
 0x5b5   :  { %9276 = vmatpush1.bf16.msra.mxu1 %v16319_v54  ;;  %v16722_v44 = vpop.f32.mrf.mxu0 }
 0x5b6   :  { %19312 = vst [vmem:[#allocation118_spill] sm:$0xff] %v16722_v44 }
 0x5b7   :  { %v16728_v53 = vpop.f32.mrf.mxu0 }
 0x5b8   :  { %10192 = vmatmul.mubr.msk.bf16.vlgmr.msra.gmra.mxu1 %vm6748_vm1, %v16497_v9  ;;  %v16726_v2 = vpop.f32.mrf.mxu1  ;;  %19314 = vst [vmem:[#allocation22_spill] sm:$0xff] %v16728_v53 }
 0x5b9   :  { %19313 = vst [vmem:[#allocation169_spill] sm:$0xff] %v16726_v2  ;;  %v16732_v10 = vpop.f32.mrf.mxu0  ;;  %9755 = vmatprep.mubr.bf16.mxu1 %v10393_v38 }
 0x5ba   :  { %v16730_v61 = vpop.f32.mrf.mxu1  ;;  %19316 = vst [vmem:[#allocation129_spill] sm:$0xff] %v16732_v10 }
 0x5bb   :  { %19315 = vst [vmem:[#allocation208_spill] sm:$0xff] %v16730_v61  ;;  %v16736_v24 = vpop.f32.mrf.mxu0 }
 0x5bc   :  { %v16734_v7 = vpop.f32.mrf.mxu1  ;;  %19318 = vst [vmem:[#allocation211_spill] sm:$0xff] %v16736_v24 }
 0x5bd   :  { %19317 = vst [vmem:[#allocation171_spill] sm:$0xff] %v16734_v7 }
 0x5be   :  { %v16740_v34 = vpop.f32.mrf.mxu1 }
 0x5bf   :  { %19320 = vst [vmem:[#allocation173_spill] sm:$0xff] %v16740_v34 }
 0x5c5   :  { %v16738_v54 = vpop.f32.mrf.mxu0 }
 0x5c6   :  { %19319 = vst [vmem:[#allocation116_spill] sm:$0xff] %v16738_v54 }
 0x5c7   :  { %v16742_v46 = vpop.f32.mrf.mxu0 }
 0x5c8   :  { %19321 = vst [vmem:[#allocation174_spill] sm:$0xff] %v16742_v46  ;;  %v16746_v9 = vpop.f32.mrf.mxu1 }
 0x5c9   :  { %v16744_v20 = vpop.f32.mrf.mxu0  ;;  %19323 = vst [vmem:[#allocation210_spill] sm:$0xff] %v16746_v9 }
 0x5ca   :  { %19322 = vst [vmem:[#allocation178_spill] sm:$0xff] %v16744_v20  ;;  %v16752_v6 = vpop.f32.mrf.mxu1 }
 0x5cb   :  { %v16748_v59 = vpop.f32.mrf.mxu0  ;;  %19326 = vst [vmem:[#allocation177_spill] sm:$0xff] %v16752_v6 }
 0x5cc   :  { %19324 = vst [vmem:[#allocation105_spill] sm:$0xff] %v16748_v59  ;;  %v16756_v35 = vpop.f32.mrf.mxu1 }
 0x5cd   :  { %v16750_v0 = vpop.f32.mrf.mxu0  ;;  %19328 = vst [vmem:[#allocation15_spill] sm:$0xff] %v16756_v35 }
 0x5ce   :  { %19325 = vst [vmem:[#allocation179_spill] sm:$0xff] %v16750_v0  ;;  %v16760_v34 = vpop.f32.mrf.mxu1 }
 0x5cf   :  { %v10335_v18 = vpop.f32.mrf.mxu0  ;;  %19329 = vst [vmem:[#allocation181_spill] sm:$0xff] %v16760_v34 }
 0x5d1   :  { %v16754_v47 = vpop.f32.mrf.mxu0 }
 0x5d2   :  { %19327 = vst [vmem:[#allocation213_spill] sm:$0xff] %v16754_v47 }
 0x5d3   :  { %v10336_v3 = vpop.f32.mrf.mxu0 }
 0x5d5   :  { %v16758_v7 = vpop.f32.mrf.mxu0 }
 0x5d7   :  { %v16762_v61 = vpop.f32.mrf.mxu0 }
 0x5d8   :  { %v16764_v20 = vpop.f32.mrf.mxu1 }
 0x5d9   :  { %19330 = vst [vmem:[#allocation212_spill] sm:$0xff] %v16764_v20  ;;  %v16766_v9 = vpop.f32.mrf.mxu0 }
 0x5da   :  { %v16768_v59 = vpop.f32.mrf.mxu1 }
 0x5db   :  { %19331 = vst [vmem:[#allocation104_spill] sm:$0xff] %v16768_v59  ;;  %v16770_v0 = vpop.f32.mrf.mxu0 }
 0x5dc   :  { %v16772_v18 = vpop.f32.mrf.mxu1 }
 0x5dd   :  { %19332 = vst [vmem:[#allocation182_spill] sm:$0xff] %v16772_v18  ;;  %v16774_v6 = vpop.f32.mrf.mxu0 }
 0x5de   :  { %v16776_v35 = vpop.f32.mrf.mxu1 }
 0x5df   :  { %19333 = vst [vmem:[#allocation133_spill] sm:$0xff] %v16776_v35  ;;  %v16778_v3 = vpop.f32.mrf.mxu0 }
 0x5e0   :  { %v16780_v47 = vpop.f32.mrf.mxu1 }
 0x5e1   :  { %v16782_v34 = vpop.f32.mrf.mxu0 }
 0x5e2   :  { %v16784_v2 = vpop.f32.mrf.mxu1 }
 0x5e3   :  { %v16786_v20 = vpop.f32.mrf.mxu0 }
 0x5e4   :  { %v16788_v46 = vpop.f32.mrf.mxu1 }
 0x5e5   :  { %v16790_v59 = vpop.f32.mrf.mxu0 }
 0x5e6   :  { %v16792_v36 = vpop.f32.mrf.mxu1 }
 0x5e7   :  { %v16794_v18 = vpop.f32.mrf.mxu0 }
 0x5e8   :  { %v16796_v54 = vpop.f32.mrf.mxu1 }
 0x5e9   :  { %v16798_v35 = vpop.f32.mrf.mxu0 }
 0x5ea   :  { %v16800_v16 = vpop.f32.mrf.mxu1 }
 0x5eb   :  { %v16802_v24 = vpop.f32.mrf.mxu0 }
 0x5ec   :  { %v16804_v37 = vpop.f32.mrf.mxu1 }
 0x5ed   :  { %v16806_v10 = vpop.f32.mrf.mxu0 }
 0x5ee   :  { %v16808_v45 = vpop.f32.mrf.mxu1 }
 0x5ef   :  { %v16810_v53 = vpop.f32.mrf.mxu0 }
 0x5f0   :  { %v16812_v32 = vpop.f32.mrf.mxu1 }
 0x5f1   :  { %v16814_v44 = vpop.f32.mrf.mxu0 }
 0x5f2   :  { %v16816_v15 = vpop.f32.mrf.mxu1 }
 0x5f3   :  { %v16818_v25 = vpop.f32.mrf.mxu0 }
 0x5f4   :  { %v16820_v5 = vpop.f32.mrf.mxu1 }
 0x5f5   :  { %v16822_v17 = vpop.f32.mrf.mxu0 }
 0x5f6   :  { %v16827_v22 = vpop.f32.mrf.mxu1 }
 0x5f7   :  { %v16829_v14 = vpop.f32.mrf.mxu0 }
 0x5f8   :  { %19334 = vst [vmem:[#allocation122_spill] sm:$0xff] %v16829_v14  ;;  %v16831_v55 = vpop.f32.mrf.mxu1  ;;  %v19376_v14 = vld [vmem:[#allocation68_spill] sm:$0xff] }
 0x5f9   :  { %v16833_v42 = vpop.f32.mrf.mxu0 }
 0x5fa   :  { %19335 = vst [vmem:[#allocation10_spill] sm:$0xff] %v16833_v42  ;;  %v16835_v48 = vpop.f32.mrf.mxu1 }
 0x5fb   :  { %19336 = vst [vmem:[#allocation78_spill] sm:$0xff] %v16835_v48  ;;  %v16837_v41 = vpop.f32.mrf.mxu0  ;;  %v19381_v48 = vld [vmem:[#allocation13_spill] sm:$0xff] }
 0x5fc   :  { %19337 = vst [vmem:[#allocation9_spill] sm:$0xff] %v16837_v41  ;;  %v16839_v4 = vpop.f32.mrf.mxu1 }
 0x5fd   :  { %19338 = vst [vmem:[#allocation214_spill] sm:$0xff] %v16839_v4  ;;  %v16841_v21 = vpop.f32.mrf.mxu0 }
 0x5fe   :  { %19339 = vst [vmem:[#allocation120_spill] sm:$0xff] %v16841_v21  ;;  %v16843_v60 = vpop.f32.mrf.mxu1 }
 0x5ff   :  { %19340 = vst [vmem:[#allocation186_spill] sm:$0xff] %v16843_v60  ;;  %v16845_v40 = vpop.f32.mrf.mxu0 }
 0x600   :  { %19341 = vst [vmem:[#allocation82_spill] sm:$0xff] %v16845_v40  ;;  %v16847_v39 = vpop.f32.mrf.mxu1 }
 0x601   :  { %19342 = vst [vmem:[#allocation216_spill] sm:$0xff] %v16847_v39  ;;  %v16849_v56 = vpop.f32.mrf.mxu0 }
 0x602   :  { %19343 = vst [vmem:[#allocation137_spill] sm:$0xff] %v16849_v56  ;;  %v16851_v38 = vpop.f32.mrf.mxu1 }
 0x603   :  { %19344 = vst [vmem:[#allocation189_spill] sm:$0xff] %v16851_v38  ;;  %v16853_v57 = vpop.f32.mrf.mxu0 }
 0x604   :  { %19345 = vst [vmem:[#allocation215_spill] sm:$0xff] %v16853_v57  ;;  %v16855_v42 = vpop.f32.mrf.mxu1 }
 0x605   :  { %19346 = vst [vmem:[#allocation119_spill] sm:$0xff] %v16855_v42  ;;  %v16857_v58 = vpop.f32.mrf.mxu0 }
 0x606   :  { %19347 = vst [vmem:[#allocation97_spill] sm:$0xff] %v16857_v58  ;;  %v16859_v41 = vpop.f32.mrf.mxu1  ;;  %v10399_v58 = vld [vmem:[%s17467_s7 + $0xc] ss:$20 sps:$4 sm:$0xff]  }
 0x607   :  { %19348 = vst [vmem:[#allocation30_spill] sm:$0xff] %v16859_v41  ;;  %v16861_v4 = vpop.f32.mrf.mxu0  ;;  %9804 = vmatprep.mubr.bf16.mxu0 %v10399_v58 }
 0x608   :  { %19349 = vst [vmem:[#allocation39_spill] sm:$0xff] %v16861_v4  ;;  %v16863_v21 = vpop.f32.mrf.mxu1 }
 0x609   :  { %19350 = vst [vmem:[#allocation126_spill] sm:$0xff] %v16863_v21  ;;  %v16865_v60 = vpop.f32.mrf.mxu0 }
 0x60a   :  { %19351 = vst [vmem:[#allocation84_spill] sm:$0xff] %v16865_v60  ;;  %v16867_v40 = vpop.f32.mrf.mxu1 }
 0x60b   :  { %19352 = vst [vmem:[#allocation191_spill] sm:$0xff] %v16867_v40  ;;  %v16869_v39 = vpop.f32.mrf.mxu0 }
 0x60c   :  { %19353 = vst [vmem:[#allocation217_spill] sm:$0xff] %v16869_v39  ;;  %v16871_v56 = vpop.f32.mrf.mxu1 }
 0x60d   :  { %19354 = vst [vmem:[#allocation124_spill] sm:$0xff] %v16871_v56  ;;  %v16873_v38 = vpop.f32.mrf.mxu0 }
 0x60e   :  { %19355 = vst [vmem:[#allocation86_spill] sm:$0xff] %v16873_v38  ;;  %v16878_v57 = vpop.f32.mrf.mxu1 }
 0x60f   :  { %19356 = vst [vmem:[#allocation117_spill] sm:$0xff] %v16878_v57  ;;  %v16880_v41 = vpop.f32.mrf.mxu0 }
 0x610   :  { %19357 = vst [vmem:[#allocation123_spill] sm:$0xff] %v16880_v41  ;;  %v16882_v21 = vpop.f32.mrf.mxu1 }
 0x611   :  { %19358 = vst [vmem:[#allocation192_spill] sm:$0xff] %v16882_v21  ;;  %v16884_v60 = vpop.f32.mrf.mxu0 }
 0x612   :  { %19359 = vst [vmem:[#allocation194_spill] sm:$0xff] %v16884_v60  ;;  %v16886_v40 = vpop.f32.mrf.mxu1 }
 0x613   :  { %19360 = vst [vmem:[#allocation218_spill] sm:$0xff] %v16886_v40  ;;  %v16888_v39 = vpop.f32.mrf.mxu0 }
 0x614   :  { %19361 = vst [vmem:[#allocation18_spill] sm:$0xff] %v16888_v39  ;;  %v16890_v56 = vpop.f32.mrf.mxu1 }
 0x615   :  { %19362 = vst [vmem:[#allocation19_spill] sm:$0xff] %v16890_v56  ;;  %v16892_v38 = vpop.f32.mrf.mxu0 }
 0x616   :  { %19363 = vst [vmem:[#allocation20_spill] sm:$0xff] %v16892_v38  ;;  %v16894_v4 = vpop.f32.mrf.mxu1 }
 0x617   :  { %19364 = vst [vmem:[#allocation193_spill] sm:$0xff] %v16894_v4  ;;  %v16896_v42 = vpop.f32.mrf.mxu0 }
 0x618   :  { %19365 = vst [vmem:[#allocation101_spill] sm:$0xff] %v16896_v42  ;;  %v16898_v57 = vpop.f32.mrf.mxu1 }
 0x619   :  { %19366 = vst [vmem:[#allocation219_spill] sm:$0xff] %v16898_v57  ;;  %v16900_v41 = vpop.f32.mrf.mxu0 }
 0x61a   :  { %19367 = vst [vmem:[#allocation127_spill] sm:$0xff] %v16900_v41  ;;  %v16902_v58 = vpop.f32.mrf.mxu1  ;;  %v7696_v41 = vadd.f32 %v16758_v7, %v19376_v14  ;;  %v7784_v14 = vadd.f32 %v16778_v3, %v16477_v49  ;;  %v19385_v49 = vld [vmem:[#allocation200_spill] sm:$0xff]  ;;  %v19392_v3 = vld [vmem:[#allocation122_spill] sm:$0xff] }
 0x61b   :  { %19368 = vst [vmem:[#allocation83_spill] sm:$0xff] %v16902_v58  ;;  %v16904_v21 = vpop.f32.mrf.mxu0 }
 0x61c   :  { %19369 = vst [vmem:[#allocation195_spill] sm:$0xff] %v16904_v21  ;;  %v16906_v60 = vpop.f32.mrf.mxu1  ;;  %v19378_v21 = vld [vmem:[#allocation89_spill] sm:$0xff] }
 0x61d   :  { %19370 = vst [vmem:[#allocation132_spill] sm:$0xff] %v16906_v60  ;;  %v16908_v40 = vpop.f32.mrf.mxu0  ;;  %v7698_v60 = vadd.f32 %v16762_v61, %v19378_v21  ;;  %v19383_v21 = vld [vmem:[#allocation111_spill] sm:$0xff] }
 0x61e   :  { %19371 = vst [vmem:[#allocation130_spill] sm:$0xff] %v16908_v40  ;;  %v16910_v39 = vpop.f32.mrf.mxu1  ;;  %v7700_v40 = vadd.f32 %v16766_v9, %v19379_v23  ;;  %v16938_v61 = vadd.f32 %v16784_v2, %v19383_v21  ;;  %v19384_v23 = vld [vmem:[#allocation109_spill] sm:$0xff]  ;;  %v16960_v2 = vadd.f32 %v16794_v18, %v16526_v30  ;;  %v16980_v30 = vadd.f32 %v16802_v24, %v16548_v19 }
 0x61f   :  { %19372 = vst [vmem:[#allocation197_spill] sm:$0xff] %v16910_v39  ;;  %v10343_v56 = vpop.f32.mrf.mxu0  ;;  %v19380_v39 = vld [vmem:[#allocation201_spill] sm:$0xff]  ;;  %v16997_v19 = vadd.f32 %v16808_v45, %v16511_v31  ;;  %v17001_v24 = vadd.f32 %v16812_v32, %v16523_v13 }
 0x620   :  { %v16912_v38 = vpop.f32.mrf.mxu1  ;;  %v7702_v56 = vadd.f32 %v16770_v0, %v19380_v39  ;;  %v16942_v39 = vadd.f32 %v16788_v46, %v19384_v23  ;;  %v16952_v0 = vadd.f32 %v16792_v36, %v19385_v49  ;;  %v19396_v49 = vld [vmem:[#allocation214_spill] sm:$0xff] }
 0x621   :  { %19373 = vst [vmem:[#allocation142_spill] sm:$0xff] %v16912_v38  ;;  %v16914_v4 = vpop.f32.mrf.mxu0 }
 0x622   :  { %19374 = vst [vmem:[#allocation17_spill] sm:$0xff] %v16914_v4  ;;  %v16916_v42 = vpop.f32.mrf.mxu1  ;;  %v7653_v4 = vadd.f32 %v16780_v47, %v19381_v48  ;;  %v7786_v48 = vadd.f32 %v16782_v34, %v16488_v43  ;;  %v16964_v34 = vpop.permute.xlu0 %9427 }
 0x623   :  { %19375 = vst [vmem:[#allocation136_spill] sm:$0xff] %v16916_v42  ;;  %v10344_v57 = vpop.f32.mrf.mxu0  ;;  %v19382_v42 = vld [vmem:[#allocation125_spill] sm:$0xff] }
 0x624   :  { %v16920_v58 = vpop.f32.mrf.mxu1  ;;  %v7782_v57 = vadd.f32 %v16774_v6, %v19382_v42  ;;  %v16948_v42 = vadd.f32 %v16786_v20, %v16504_v12  ;;  %v19386_v12 = vld [vmem:[#allocation149_spill] sm:$0xff]  ;;  %v19387_v6 = vld [vmem:[#allocation203_spill] sm:$0xff] }
 0x625   :  { %19377 = vst [vmem:[#allocation134_spill] sm:$0xff] %v16920_v58  ;;  %v8564_v38 = vpop.f32.mrf.mxu0  ;;  %v16968_v20 = vadd.f32 %v16796_v54, %v19386_v12  ;;  %v16972_v36 = vadd.f32 %v16800_v16, %v19387_v6  ;;  %v16988_v54 = vadd.f32 %v16806_v10, %v16559_v50  ;;  %v17009_v50 = vadd.f32 %v16814_v44, %v16581_v27  ;;  %v19398_v12 = vld [vmem:[#allocation9_spill] sm:$0xff] }
 0x626   :  { %v16934_v7 = vpop.f32.mrf.mxu1  ;;  %v9347_v58 = vadd.f32 %v8564_v38, %v7696_v41  ;;  %v16956_v41 = vadd.f32 %v16790_v59, %v16515_v62  ;;  %v16976_v62 = vadd.f32 %v16798_v35, %v16537_v26  ;;  %v16993_v26 = vpop.permute.xlu1 %9432  ;;  %v17025_v27 = vadd.f32 %v16827_v22, %v16555_v63  ;;  %v19390_v22 = vld [vmem:[#allocation78_spill] sm:$0xff] }
 0x627   :  { %v8566_v9 = vpop.f32.mrf.mxu0  ;;  %v17029_v44 = vadd.f32 %v16818_v25, %v16592_v1  ;;  %v17040_v63 = vadd.f32 %v16831_v55, %v16567_v51  ;;  %v17044_v1 = vadd.f32 %v19390_v22, %v16577_v8  ;;  %v19391_v25 = vld [vmem:[#allocation202_spill] sm:$0xff]  ;;  %v19395_v55 = vld [vmem:[#allocation108_spill] sm:$0xff]  ;;  %v19403_v22 = vld [vmem:[#allocation157_spill] sm:$0xff] }
 0x628   :  { %v16962_v46 = vpop.f32.mrf.mxu1  ;;  %v9348_v43 = vadd.f32 %v8566_v9, %v7698_v60  ;;  %v16984_v60 = vadd.f32 %v16804_v37, %v16501_v33  ;;  %v9437_v16 = vadd.f32 %v16964_v34, %v9347_v58  ;;  %v17005_v33 = vadd.f32 %v16810_v53, %v16570_v11  ;;  %v19394_v38 = vld [vmem:[#allocation10_spill] sm:$0xff]  ;;  %v19397_v8 = vld [vmem:[#allocation160_spill] sm:$0xff] }
 0x629   :  { %v8568_v59 = vpop.f32.mrf.mxu0  ;;  %v17021_v11 = vadd.f32 %v16820_v5, %v16545_v29  ;;  %v17062_v6 = vadd.f32 %v19398_v12, %v19397_v8  ;;  %v19410_v8 = vld [vmem:[#allocation189_spill] sm:$0xff] }
 0x62a   :  { %v16991_v47 = vpop.f32.mrf.mxu1  ;;  %v9386_v18 = vadd.f32 %v8568_v59, %v7700_v40  ;;  %v17013_v40 = vadd.f32 %v16816_v15, %v16533_v28  ;;  %v9438_v31 = vadd.f32 %v16964_v34, %v9348_v43  ;;  %v17033_v28 = vadd.f32 %v16822_v17, %v16603_v52  ;;  %v19393_v17 = vld [vmem:[#allocation155_spill] sm:$0xff]  ;;  %v19399_v59 = vld [vmem:[#allocation113_spill] sm:$0xff] }
 0x62b   :  { %v8570_v37 = vpop.f32.mrf.mxu0  ;;  %v9515_v53 = vmax.f32 %v9437_v16, 0.0  ;;  %v17048_v52 = vadd.f32 %v19392_v3, %v19391_v25  ;;  %v17052_v58 = vadd.f32 %v19394_v38, %v19393_v17  ;;  %v17058_v43 = vadd.f32 %v19396_v49, %v19395_v55  ;;  %v19400_v16 = vld [vmem:[#allocation120_spill] sm:$0xff]  ;;  %v19405_v17 = vld [vmem:[#allocation162_spill] sm:$0xff] }
 0x62c   :  { %v17016_v45 = vpop.f32.mrf.mxu1  ;;  %v9476_v13 = vadd.f32 %v16993_v26, %v9386_v18  ;;  %v9387_v32 = vadd.f32 %v8570_v37, %v7702_v56  ;;  %v9516_v21 = vmax.f32 %v9438_v31, 0.0  ;;  %v17066_v18 = vadd.f32 %v19400_v16, %v19399_v59  ;;  %v19401_v31 = vld [vmem:[#allocation151_spill] sm:$0xff]  ;;  %v19404_v25 = vld [vmem:[#allocation216_spill] sm:$0xff]  ;;  %v19406_v38 = vld [vmem:[#allocation82_spill] sm:$0xff] }
 0x62d   :  { %19388 = vst [vmem:[#allocation58_spill] sm:$0xff] %v17016_v45  ;;  %v8650_v15 = vpop.f32.mrf.mxu0  ;;  %v17077_v3 = vadd.f32 %v19404_v25, %v19403_v22  ;;  %v19413_v22 = vld [vmem:[#allocation207_spill] sm:$0xff] }
 0x62e   :  { %v9554_v10 = vmax.f32 %v9476_v13, 0.0  ;;  %v17035_v35 = vpop.f32.mrf.mxu1  ;;  %v9477_v29 = vadd.f32 %v16993_v26, %v9387_v32  ;;  %v9351_v5 = vadd.f32 %v8650_v15, %v7782_v57  ;;  %v19402_v32 = vld [vmem:[#allocation186_spill] sm:$0xff]  ;;  %v19414_v25 = vld [vmem:[#allocation215_spill] sm:$0xff] }
 0x62f   :  { %19389 = vst [vmem:[#allocation220_spill] sm:$0xff] %v17035_v35  ;;  %v8652_v56 = vpop.f32.mrf.mxu0  ;;  %v17070_v15 = vadd.f32 %v19402_v32, %v19401_v31  ;;  %v19412_v31 = vld [vmem:[#allocation119_spill] sm:$0xff]  ;;  %v19418_v35 = vld [vmem:[#allocation30_spill] sm:$0xff] }
 0x630   :  { %v17054_v23 = vpack.c.bf16 %v9554_v10, %v9515_v53  ;;  %v9555_v57 = vmax.f32 %v9477_v29, 0.0  ;;  %v8521_v9 = vpop.f32.mrf.mxu1  ;;  %v9352_v51 = vadd.f32 %v8652_v56, %v7784_v14  ;;  %v9441_v14 = vadd.f32 %v16964_v34, %v9351_v5 }
 0x631   :  { %v9345_v37 = vadd.f32 %v8521_v9, %v7653_v4  ;;  %v8654_v13 = vpop.f32.mrf.mxu0  ;;  %v17081_v56 = vadd.f32 %v19406_v38, %v19405_v17  ;;  %v19407_v4 = vld [vmem:[#allocation37_spill] sm:$0xff]  ;;  %v17101_v17 = vadd.f32 %v19414_v25, %v19413_v22 }
 0x632   :  { %v17072_v53 = vpack.c.bf16 %v9555_v57, %v9516_v21  ;;  %v8523_v10 = vpop.f32.mrf.mxu1  ;;  %v9390_v29 = vadd.f32 %v8654_v13, %v7786_v48  ;;  %v19408_v9 = vld [vmem:[#allocation137_spill] sm:$0xff]  ;;  %v19409_v57 = vld [vmem:[#allocation115_spill] sm:$0xff]  ;;  %v9442_v48 = vadd.f32 %v16964_v34, %v9352_v51  ;;  %v19411_v13 = vld [vmem:[#allocation154_spill] sm:$0xff] }
 0x633   :  { %v17085_v55 = vadd.f32 %v19408_v9, %v19407_v4  ;;  %v9346_v49 = vadd.f32 %v8523_v10, %v16938_v61  ;;  %v8656_v21 = vpop.f32.mrf.mxu0  ;;  %v17090_v5 = vadd.f32 %v19410_v8, %v19409_v57  ;;  %v17097_v32 = vadd.f32 %v19412_v31, %v19411_v13  ;;  %v19416_v57 = vld [vmem:[#allocation97_spill] sm:$0xff] }
 0x634   :  { %v8525_v12 = vpop.f32.mrf.mxu1  ;;  %v9480_v59 = vadd.f32 %v16993_v26, %v9390_v29  ;;  %v9391_v16 = vadd.f32 %v8656_v21, %v16948_v42  ;;  %v9435_v61 = vadd.f32 %v16964_v34, %v9345_v37  ;;  %v9519_v4 = vmax.f32 %v9441_v14, 0.0  ;;  %v19415_v21 = vld [vmem:[#allocation167_spill] sm:$0xff] }
 0x635   :  { %v9384_v10 = vadd.f32 %v8525_v12, %v16942_v39  ;;  %v8736_v38 = vpop.f32.mrf.mxu0  ;;  %v17109_v8 = vadd.f32 %v19416_v57, %v19415_v21  ;;  %v9436_v13 = vadd.f32 %v16964_v34, %v9346_v49  ;;  %v9520_v39 = vmax.f32 %v9442_v48, 0.0  ;;  %v19417_v49 = vld [vmem:[#allocation205_spill] sm:$0xff] }
 0x636   :  { %v9558_v51 = vmax.f32 %v9480_v59, 0.0  ;;  %v8527_v9 = vpop.f32.mrf.mxu1  ;;  %v9481_v29 = vadd.f32 %v16993_v26, %v9391_v16  ;;  %v9355_v42 = vadd.f32 %v8736_v38, %v16956_v41  ;;  %v9513_v25 = vmax.f32 %v9435_v61, 0.0 }
 0x637   :  { %v9474_v31 = vadd.f32 %v16993_v26, %v9384_v10  ;;  %v9385_v37 = vadd.f32 %v8527_v9, %v16952_v0  ;;  %v8738_v22 = vpop.f32.mrf.mxu0  ;;  %v17121_v10 = vadd.f32 %v19418_v35, %v19417_v49  ;;  %v9514_v9 = vmax.f32 %v9436_v13, 0.0 }
 0x638   :  { %v17114_v12 = vpack.c.bf16 %v9558_v51, %v9519_v4  ;;  %v9559_v14 = vmax.f32 %v9481_v29, 0.0  ;;  %v8607_v59 = vpop.f32.mrf.mxu1  ;;  %v9356_v16 = vadd.f32 %v8738_v22, %v16960_v2  ;;  %v9445_v48 = vadd.f32 %v16964_v34, %v9355_v42 }
 0x639   :  { %v9552_v41 = vmax.f32 %v9474_v31, 0.0  ;;  %v9475_v38 = vadd.f32 %v16993_v26, %v9385_v37  ;;  %v9349_v21 = vadd.f32 %v8607_v59, %v16968_v20  ;;  %v8740_v57 = vpop.f32.mrf.mxu0  ;;  %v19419_v20 = vld [vmem:[#allocation206_spill] sm:$0xff]  ;;  %v19420_v37 = vld [vmem:[#allocation39_spill] sm:$0xff] }
 0x63a   :  { %v17123_v0 = vpack.c.bf16 %v9559_v14, %v9520_v39  ;;  %v8609_v4 = vpop.f32.mrf.mxu1  ;;  %v9394_v51 = vadd.f32 %v8740_v57, %v16976_v62  ;;  %v17132_v22 = vadd.f32 %v19420_v37, %v19419_v20  ;;  %v9446_v35 = vadd.f32 %v16964_v34, %v9356_v16  ;;  %v19421_v59 = vld [vmem:[#allocation159_spill] sm:$0xff]  ;;  %v19422_v62 = vld [vmem:[#allocation126_spill] sm:$0xff]  ;;  %v19423_v20 = vld [vmem:[#allocation165_spill] sm:$0xff] }
 0x63b   :  { %v17127_v2 = vpack.c.bf16 %v9552_v41, %v9513_v25  ;;  %v9553_v61 = vmax.f32 %v9475_v38, 0.0  ;;  %v9350_v29 = vadd.f32 %v8609_v4, %v16972_v36  ;;  %v8742_v31 = vpop.f32.mrf.mxu0  ;;  %v17139_v13 = vadd.f32 %v19422_v62, %v19421_v59 }
 0x63c   :  { %v8611_v39 = vpop.f32.mrf.mxu1  ;;  %v9484_v14 = vadd.f32 %v16993_v26, %v9394_v51  ;;  %v9395_v42 = vadd.f32 %v8742_v31, %v16980_v30  ;;  %v9439_v36 = vadd.f32 %v16964_v34, %v9349_v21  ;;  %v9523_v57 = vmax.f32 %v9445_v48, 0.0  ;;  %v19424_v30 = vld [vmem:[#allocation84_spill] sm:$0xff] }
 0x63d   :  { %v17141_v25 = vpack.c.bf16 %v9553_v61, %v9514_v9  ;;  %v9388_v41 = vadd.f32 %v8611_v39, %v16984_v60  ;;  %v8822_v38 = vpop.f32.mrf.mxu0  ;;  %v17149_v31 = vadd.f32 %v19424_v30, %v19423_v20  ;;  %v9440_v37 = vadd.f32 %v16964_v34, %v9350_v29  ;;  %v19425_v29 = vld [vmem:[#allocation204_spill] sm:$0xff]  ;;  %v19426_v30 = vld [vmem:[#allocation191_spill] sm:$0xff] }
 0x63e   :  { %v9562_v49 = vmax.f32 %v9484_v14, 0.0  ;;  %v8613_v4 = vpop.f32.mrf.mxu1  ;;  %v9485_v16 = vadd.f32 %v16993_v26, %v9395_v42  ;;  %v9359_v51 = vadd.f32 %v8822_v38, %v16988_v54  ;;  %v9524_v60 = vmax.f32 %v9446_v35, 0.0 }
 0x63f   :  { %v9478_v9 = vadd.f32 %v16993_v26, %v9388_v41  ;;  %v9389_v21 = vadd.f32 %v8613_v4, %v16997_v19  ;;  %v8824_v61 = vpop.f32.mrf.mxu0  ;;  %v9517_v42 = vmax.f32 %v9439_v36, 0.0  ;;  %v17161_v41 = vadd.f32 %v19426_v30, %v19425_v29 }
 0x640   :  { %v9563_v39 = vmax.f32 %v9485_v16, 0.0  ;;  %v8693_v48 = vpop.f32.mrf.mxu1  ;;  %v9360_v14 = vadd.f32 %v8824_v61, %v17005_v33  ;;  %v17155_v59 = vpack.c.bf16 %v9562_v49, %v9523_v57  ;;  %v9449_v19 = vadd.f32 %v16964_v34, %v9359_v51 }
 0x641   :  { %v9556_v54 = vmax.f32 %v9478_v9, 0.0  ;;  %v9479_v62 = vadd.f32 %v16993_v26, %v9389_v21  ;;  %v9353_v38 = vadd.f32 %v8693_v48, %v17001_v24  ;;  %v8826_v20 = vpop.f32.mrf.mxu0  ;;  %v9518_v33 = vmax.f32 %v9440_v37, 0.0  ;;  %v19427_v24 = vld [vmem:[#allocation2_spill] sm:$0xff]  ;;  %v19428_v21 = vld [vmem:[#allocation217_spill] sm:$0xff] }
 0x642   :  { %v8695_v35 = vpop.f32.mrf.mxu1  ;;  %v9398_v4 = vadd.f32 %v8826_v20, %v17009_v50  ;;  %v17165_v16 = vpack.c.bf16 %v9563_v39, %v9524_v60  ;;  %v17172_v61 = vadd.f32 %v19428_v21, %v19427_v24  ;;  %v9450_v48 = vadd.f32 %v16964_v34, %v9360_v14  ;;  %v19429_v60 = vld [vmem:[#allocation161_spill] sm:$0xff]  ;;  %v19430_v39 = vld [vmem:[#allocation124_spill] sm:$0xff]  ;;  %v19431_v24 = vld [vmem:[#allocation118_spill] sm:$0xff] }
 0x643   :  { %v17167_v57 = vpack.c.bf16 %v9556_v54, %v9517_v42  ;;  %v9557_v36 = vmax.f32 %v9479_v62, 0.0  ;;  %v9354_v49 = vadd.f32 %v8695_v35, %v17013_v40  ;;  %v8828_v9 = vpop.f32.mrf.mxu0  ;;  %v17179_v37 = vadd.f32 %v19430_v39, %v19429_v60 }
 0x644   :  { %v8697_v29 = vpop.f32.mrf.mxu1  ;;  %v9488_v51 = vadd.f32 %v16993_v26, %v9398_v4  ;;  %v9399_v50 = vadd.f32 %v8828_v9, %v17029_v44  ;;  %v9443_v40 = vadd.f32 %v16964_v34, %v9353_v38  ;;  %v9527_v20 = vmax.f32 %v9449_v19, 0.0  ;;  %v19432_v44 = vld [vmem:[#allocation86_spill] sm:$0xff] }
 0x645   :  { %v17181_v42 = vpack.c.bf16 %v9557_v36, %v9518_v33  ;;  %v9392_v54 = vadd.f32 %v8697_v29, %v17021_v11  ;;  %v8908_v62 = vpop.f32.mrf.mxu0  ;;  %v17189_v9 = vadd.f32 %v19432_v44, %v19431_v24  ;;  %v9444_v21 = vadd.f32 %v16964_v34, %v9354_v49  ;;  %v19433_v44 = vld [vmem:[#allocation112_spill] sm:$0xff]  ;;  %v19434_v49 = vld [vmem:[#allocation117_spill] sm:$0xff] }
 0x646   :  { %v9566_v30 = vmax.f32 %v9488_v51, 0.0  ;;  %v8699_v35 = vpop.f32.mrf.mxu1  ;;  %v9489_v14 = vadd.f32 %v16993_v26, %v9399_v50  ;;  %v9363_v4 = vadd.f32 %v8908_v62, %v17033_v28  ;;  %v9528_v11 = vmax.f32 %v9450_v48, 0.0 }
 0x647   :  { %v9482_v33 = vadd.f32 %v16993_v26, %v9392_v54  ;;  %v9393_v38 = vadd.f32 %v8699_v35, %v17025_v27  ;;  %v8910_v36 = vpop.f32.mrf.mxu0  ;;  %v9521_v50 = vmax.f32 %v9443_v40, 0.0  ;;  %v17199_v45 = vadd.f32 %v19434_v49, %v19433_v44 }
 0x648   :  { %v9567_v29 = vmax.f32 %v9489_v14, 0.0  ;;  %v8779_v19 = vpop.f32.mrf.mxu1  ;;  %v9364_v51 = vadd.f32 %v8910_v36, %v17048_v52  ;;  %v9605_v60 = vpack.c.bf16 %v9566_v30, %v9527_v20  ;;  %v9453_v27 = vadd.f32 %v16964_v34, %v9363_v4 }
 0x649   :  { %v9560_v39 = vmax.f32 %v9482_v33, 0.0  ;;  %v9483_v28 = vadd.f32 %v16993_v26, %v9393_v38  ;;  %v9357_v62 = vadd.f32 %v8779_v19, %v17040_v63  ;;  %v8912_v24 = vpop.f32.mrf.mxu0  ;;  %v9522_v14 = vmax.f32 %v9444_v21, 0.0  ;;  %v19435_v33 = vld [vmem:[#allocation22_spill] sm:$0xff]  ;;  %v19436_v63 = vld [vmem:[#allocation123_spill] sm:$0xff]  ;;  %v19438_v21 = vld [vmem:[#allocation192_spill] sm:$0xff] }
 0x64a   :  { %v8781_v54 = vpop.f32.mrf.mxu1  ;;  %v9402_v48 = vadd.f32 %v8912_v24, %v17052_v58  ;;  %v9606_v35 = vpack.c.bf16 %v9567_v29, %v9528_v11  ;;  %v17208_v38 = vadd.f32 %v19436_v63, %v19435_v33  ;;  %v9454_v36 = vadd.f32 %v16964_v34, %v9364_v51  ;;  %v19437_v58 = vld [vmem:[#allocation6_spill] sm:$0xff] }
 0x64b   :  { %v9561_v52 = vmax.f32 %v9483_v28, 0.0  ;;  %v9358_v40 = vadd.f32 %v8781_v54, %v17044_v1  ;;  %v8914_v20 = vpop.f32.mrf.mxu0  ;;  %v17204_v30 = vpack.c.bf16 %v9560_v39, %v9521_v50  ;;  %v17215_v11 = vadd.f32 %v19438_v21, %v19437_v58  ;;  %v19439_v54 = vld [vmem:[#allocation129_spill] sm:$0xff]  ;;  %v19442_v58 = vld [vmem:[#allocation218_spill] sm:$0xff] }
 0x64c   :  { %v8783_v19 = vpop.f32.mrf.mxu1  ;;  %v9492_v4 = vadd.f32 %v16993_v26, %v9402_v48  ;;  %v9403_v44 = vadd.f32 %v8914_v20, %v17062_v6  ;;  %10231 = vmatprep.subr.bf16.mxu1 %v9606_v35  ;;  %v9447_v1 = vadd.f32 %v16964_v34, %v9357_v62  ;;  %v9531_v51 = vmax.f32 %v9453_v27, 0.0  ;;  %v19440_v48 = vld [vmem:[#allocation194_spill] sm:$0xff] }
 0x64d   :  { %v9396_v29 = vadd.f32 %v8783_v19, %v17058_v43  ;;  %v8994_v50 = vpop.f32.mrf.mxu0  ;;  %10232 = vmatpush3.bf16.msra.mxu1 %v17123_v0  ;;  %v17220_v39 = vpack.c.bf16 %v9561_v52, %v9522_v14  ;;  %v17226_v35 = vadd.f32 %v19440_v48, %v19439_v54  ;;  %v9448_v62 = vadd.f32 %v16964_v34, %v9358_v40  ;;  %v19441_v40 = vld [vmem:[#allocation36_spill] sm:$0xff] }
 0x64e   :  { %v9570_v28 = vmax.f32 %v9492_v4, 0.0  ;;  %v8785_v24 = vpop.f32.mrf.mxu1  ;;  %v9493_v49 = vadd.f32 %v16993_v26, %v9403_v44  ;;  %v9367_v6 = vadd.f32 %v8994_v50, %v17066_v18  ;;  %10233 = vmatprep.subr.bf16.mxu1 %v9605_v60  ;;  %v9532_v52 = vmax.f32 %v9454_v36, 0.0 }
 0x64f   :  { %v9486_v43 = vadd.f32 %v16993_v26, %v9396_v29  ;;  %v9397_v0 = vadd.f32 %v8785_v24, %v17070_v15  ;;  %v8996_v14 = vpop.f32.mrf.mxu0  ;;  %v9525_v18 = vmax.f32 %v9447_v1, 0.0  ;;  %v17239_v15 = vadd.f32 %v19442_v58, %v19441_v40  ;;  %v19443_v24 = vld [vmem:[#allocation211_spill] sm:$0xff]  ;;  %v19448_v40 = vld [vmem:[#allocation20_spill] sm:$0xff] }
 0x650   :  { %v17231_v27 = vpack.c.bf16 %v9570_v28, %v9531_v51  ;;  %v9571_v20 = vmax.f32 %v9493_v49, 0.0  ;;  %v8865_v33 = vpop.f32.mrf.mxu1  ;;  %v9368_v63 = vadd.f32 %v8996_v14, %v17081_v56  ;;  %v9457_v21 = vadd.f32 %v16964_v34, %v9367_v6  ;;  %v19444_v49 = vld [vmem:[#allocation18_spill] sm:$0xff]  ;;  %v19446_v14 = vld [vmem:[#allocation19_spill] sm:$0xff] }
 0x651   :  { %v9564_v60 = vmax.f32 %v9486_v43, 0.0  ;;  %v9487_v19 = vadd.f32 %v16993_v26, %v9397_v0  ;;  %v9361_v4 = vadd.f32 %v8865_v33, %v17077_v3  ;;  %v8998_v44 = vpop.f32.mrf.mxu0  ;;  %10234 = vmatpush3.bf16.msra.mxu1 %v17114_v12  ;;  %v9526_v1 = vmax.f32 %v9448_v62, 0.0  ;;  %v19445_v0 = vld [vmem:[#allocation4_spill] sm:$0xff] }
 0x652   :  { %v17241_v36 = vpack.c.bf16 %v9571_v20, %v9532_v52  ;;  %v8867_v29 = vpop.f32.mrf.mxu1  ;;  %v9406_v56 = vadd.f32 %v8998_v44, %v17085_v55  ;;  %v17248_v12 = vadd.f32 %v19444_v49, %v19443_v24  ;;  %v9458_v54 = vadd.f32 %v16964_v34, %v9368_v63  ;;  %v19447_v44 = vld [vmem:[#allocation116_spill] sm:$0xff] }
 0x653   :  { %v9565_v50 = vmax.f32 %v9487_v19, 0.0  ;;  %v9362_v51 = vadd.f32 %v8867_v29, %v17090_v5  ;;  %v9000_v28 = vpop.f32.mrf.mxu0  ;;  %v9603_v3 = vpack.c.bf16 %v9564_v60, %v9525_v18  ;;  %v17255_v55 = vadd.f32 %v19446_v14, %v19445_v0 }
 0x654   :  { %v8869_v48 = vpop.f32.mrf.mxu1  ;;  %v9496_v43 = vadd.f32 %v16993_v26, %v9406_v56  ;;  %v9407_v6 = vadd.f32 %v9000_v28, %v17101_v17  ;;  %v9451_v62 = vadd.f32 %v16964_v34, %v9361_v4  ;;  %v9535_v33 = vmax.f32 %v9457_v21, 0.0 }
 0x655   :  { %v9400_v5 = vadd.f32 %v8869_v48, %v17097_v32  ;;  %v9604_v52 = vpack.c.bf16 %v9565_v50, %v9526_v1  ;;  %v9080_v20 = vpop.f32.mrf.mxu0  ;;  %v17263_v17 = vadd.f32 %v19448_v40, %v19447_v44  ;;  %v9452_v58 = vadd.f32 %v16964_v34, %v9362_v51  ;;  %v19454_v44 = vld [vmem:[#allocation219_spill] sm:$0xff] }
 0x656   :  { %v9574_v18 = vmax.f32 %v9496_v43, 0.0  ;;  %v8871_v60 = vpop.f32.mrf.mxu1  ;;  %v9497_v63 = vadd.f32 %v16993_v26, %v9407_v6  ;;  %v9371_v19 = vadd.f32 %v9080_v20, %v17109_v8  ;;  %v9536_v56 = vmax.f32 %v9458_v54, 0.0  ;;  %v19450_v43 = vld [vmem:[#allocation193_spill] sm:$0xff] }
 0x657   :  { %v9490_v29 = vadd.f32 %v16993_v26, %v9400_v5  ;;  %v9401_v4 = vadd.f32 %v8871_v60, %v17121_v10  ;;  %10235 = vmatprep.subr.bf16.mxu1 %v9604_v52  ;;  %v9082_v32 = vpop.f32.mrf.mxu0  ;;  %v9529_v28 = vmax.f32 %v9451_v62, 0.0  ;;  %v19449_v10 = vld [vmem:[#allocation209_spill] sm:$0xff] }
 0x658   :  { %v17268_v21 = vpack.c.bf16 %v9574_v18, %v9535_v33  ;;  %v9575_v1 = vmax.f32 %v9497_v63, 0.0  ;;  %v8951_v50 = vpop.f32.mrf.mxu1  ;;  %10236 = vmatpush3.bf16.msra.mxu1 %v17181_v42  ;;  %v9372_v8 = vadd.f32 %v9082_v32, %v17132_v22  ;;  %v17276_v6 = vadd.f32 %v19450_v43, %v19449_v10  ;;  %v19452_v20 = vld [vmem:[#allocation101_spill] sm:$0xff] }
 0x659   :  { %v9568_v24 = vmax.f32 %v9490_v29, 0.0  ;;  %v9491_v49 = vadd.f32 %v16993_v26, %v9401_v4  ;;  %v9365_v51 = vadd.f32 %v8951_v50, %v17139_v13  ;;  %10237 = vmatprep.subr.bf16.mxu1 %v9603_v3  ;;  %v9084_v48 = vpop.f32.mrf.mxu0  ;;  %v9461_v0 = vadd.f32 %v16964_v34, %v9371_v19  ;;  %v19451_v3 = vld [vmem:[#allocation174_spill] sm:$0xff]  ;;  %v19453_v19 = vld [vmem:[#allocation169_spill] sm:$0xff] }
 0x65a   :  { %v17278_v54 = vpack.c.bf16 %v9575_v1, %v9536_v56  ;;  %v8953_v14 = vpop.f32.mrf.mxu1  ;;  %v9410_v42 = vadd.f32 %v9084_v48, %v17149_v31  ;;  %v9530_v22 = vmax.f32 %v9452_v58, 0.0  ;;  %v17287_v33 = vadd.f32 %v19452_v20, %v19451_v3  ;;  %v19455_v50 = vld [vmem:[#allocation178_spill] sm:$0xff] }
 0x65b   :  { %v17282_v62 = vpack.c.bf16 %v9568_v24, %v9529_v28  ;;  %v9569_v5 = vmax.f32 %v9491_v49, 0.0  ;;  %v9366_v52 = vadd.f32 %v8953_v14, %v17161_v41  ;;  %v9086_v13 = vpop.f32.mrf.mxu0  ;;  %v9462_v18 = vadd.f32 %v16964_v34, %v9372_v8  ;;  %v19456_v8 = vld [vmem:[#allocation127_spill] sm:$0xff] }
 0x65c   :  { %v8955_v60 = vpop.f32.mrf.mxu1  ;;  %v9500_v63 = vadd.f32 %v16993_v26, %v9410_v42  ;;  %10238 = vmatpush3.bf16.msra.mxu1 %v17167_v57  ;;  %v9411_v31 = vadd.f32 %v9086_v13, %v17172_v61  ;;  %v17295_v40 = vadd.f32 %v19454_v44, %v19453_v19  ;;  %v9455_v41 = vadd.f32 %v16964_v34, %v9365_v51  ;;  %v19459_v19 = vld [vmem:[#allocation105_spill] sm:$0xff] }
 0x65d   :  { %v17297_v58 = vpack.c.bf16 %v9569_v5, %v9530_v22  ;;  %v9404_v29 = vadd.f32 %v8955_v60, %v17179_v37  ;;  %10239 = vmatprep.subr.bf16.mxu1 %v17165_v16  ;;  %v9166_v4 = vpop.f32.mrf.mxu0  ;;  %v9539_v32 = vmax.f32 %v9461_v0, 0.0  ;;  %v17306_v28 = vadd.f32 %v19456_v8, %v19455_v50 }
 0x65e   :  { %v9578_v56 = vmax.f32 %v9500_v63, 0.0  ;;  %v8957_v1 = vpop.f32.mrf.mxu1  ;;  %v9501_v57 = vadd.f32 %v16993_v26, %v9411_v31  ;;  %v9375_v61 = vadd.f32 %v9166_v4, %v17189_v9  ;;  %v9456_v24 = vadd.f32 %v16964_v34, %v9366_v52  ;;  %v19458_v52 = vld [vmem:[#allocation83_spill] sm:$0xff] }
 0x65f   :  { %v9494_v49 = vadd.f32 %v16993_v26, %v9404_v29  ;;  %v9405_v37 = vadd.f32 %v8957_v1, %v17199_v45  ;;  %v9168_v51 = vpop.f32.mrf.mxu0  ;;  %v9540_v16 = vmax.f32 %v9462_v18, 0.0  ;;  %v9533_v9 = vmax.f32 %v9455_v41, 0.0  ;;  %v19457_v45 = vld [vmem:[#allocation208_spill] sm:$0xff] }
 0x660   :  { %v9579_v48 = vmax.f32 %v9501_v57, 0.0  ;;  %v9037_v10 = vpop.f32.mrf.mxu1  ;;  %10240 = vmatpush3.bf16.msra.mxu1 %v17072_v53  ;;  %v9376_v43 = vadd.f32 %v9168_v51, %v17208_v38  ;;  %v17313_v0 = vpack.c.bf16 %v9578_v56, %v9539_v32  ;;  %v8257_v13 = vadd.f32 %v19458_v52, %v19457_v45  ;;  %v19461_v32 = vld [vmem:[#allocation171_spill] sm:$0xff]  ;;  %v19462_v56 = vld [vmem:[#allocation132_spill] sm:$0xff]  ;;  %v19464_v51 = vld [vmem:[#allocation130_spill] sm:$0xff] }
 0x661   :  { %v9572_v14 = vmax.f32 %v9494_v49, 0.0  ;;  %v9495_v42 = vadd.f32 %v16993_v26, %v9405_v37  ;;  %v9369_v22 = vadd.f32 %v9037_v10, %v17215_v11  ;;  %10241 = vmatprep.subr.bf16.mxu1 %v17155_v59  ;;  %v9170_v5 = vpop.f32.mrf.mxu0  ;;  %v9465_v3 = vadd.f32 %v16964_v34, %v9375_v61  ;;  %v19460_v59 = vld [vmem:[#allocation195_spill] sm:$0xff] }
 0x662   :  { %v9039_v20 = vpop.f32.mrf.mxu1  ;;  %v9414_v53 = vadd.f32 %v9170_v5, %v17226_v35  ;;  %v17322_v38 = vpack.c.bf16 %v9579_v48, %v9540_v16  ;;  %v9534_v18 = vmax.f32 %v9456_v24, 0.0  ;;  %v8390_v44 = vadd.f32 %v19460_v59, %v19459_v19 }
 0x663   :  { %v17324_v60 = vpack.c.bf16 %v9572_v14, %v9533_v9  ;;  %v9573_v63 = vmax.f32 %v9495_v42, 0.0  ;;  %v9370_v31 = vadd.f32 %v9039_v20, %v17239_v15  ;;  %v9172_v11 = vpop.f32.mrf.mxu0  ;;  %v9466_v41 = vadd.f32 %v16964_v34, %v9376_v43  ;;  %v19465_v20 = vld [vmem:[#allocation173_spill] sm:$0xff] }
 0x664   :  { %v9041_v29 = vpop.f32.mrf.mxu1  ;;  %v9504_v4 = vadd.f32 %v16993_v26, %v9414_v53  ;;  %10242 = vmatpush3.bf16.msra.mxu1 %v17054_v23  ;;  %v9415_v35 = vadd.f32 %v9172_v11, %v17248_v12  ;;  %v8259_v1 = vadd.f32 %v19462_v56, %v19461_v32  ;;  %v9459_v15 = vadd.f32 %v16964_v34, %v9369_v22  ;;  %v19463_v12 = vld [vmem:[#allocation179_spill] sm:$0xff]  ;;  %v19468_v32 = vld [vmem:[#allocation142_spill] sm:$0xff] }
 0x665   :  { %v17335_v57 = vpack.c.bf16 %v9573_v63, %v9534_v18  ;;  %v9408_v61 = vadd.f32 %v9041_v29, %v17255_v55  ;;  %10243 = vmatprep.subr.bf16.mxu1 %v17220_v39  ;;  %v9252_v50 = vpop.f32.mrf.mxu0  ;;  %v9543_v8 = vmax.f32 %v9465_v3, 0.0  ;;  %v8470_v16 = vadd.f32 %v19464_v51, %v19463_v12  ;;  %v19470_v12 = vld [vmem:[#allocation17_spill] sm:$0xff] }
 0x666   :  { %v9582_v24 = vmax.f32 %v9504_v4, 0.0  ;;  %v9043_v49 = vpop.f32.mrf.mxu1  ;;  %v9505_v37 = vadd.f32 %v16993_v26, %v9415_v35  ;;  %v9379_v23 = vadd.f32 %v9252_v50, %v17263_v17  ;;  %v9460_v48 = vadd.f32 %v16964_v34, %v9370_v31 }
 0x667   :  { %v9498_v10 = vadd.f32 %v16993_v26, %v9408_v61  ;;  %v9409_v43 = vadd.f32 %v9043_v49, %v17276_v6  ;;  %v9254_v55 = vpop.f32.mrf.mxu0  ;;  %v9544_v9 = vmax.f32 %v9466_v41, 0.0  ;;  %v9537_v5 = vmax.f32 %v9459_v15, 0.0  ;;  %v19466_v6 = vld [vmem:[#allocation197_spill] sm:$0xff] }
 0x668   :  { %v9583_v39 = vmax.f32 %v9505_v37, 0.0  ;;  %v9123_v14 = vpop.f32.mrf.mxu1  ;;  %10244 = vmatpush3.bf16.msra.mxu1 %v17141_v25  ;;  %v9380_v42 = vadd.f32 %v9254_v55, %v17287_v33  ;;  %v9621_v22 = vpack.c.bf16 %v9582_v24, %v9543_v8  ;;  %v8261_v53 = vadd.f32 %v19466_v6, %v19465_v20  ;;  %v19472_v55 = vld [vmem:[#allocation136_spill] sm:$0xff]  ;;  %v19474_v20 = vld [vmem:[#allocation134_spill] sm:$0xff] }
 0x669   :  { %v9576_v17 = vmax.f32 %v9498_v10, 0.0  ;;  %v9499_v45 = vadd.f32 %v16993_v26, %v9409_v43  ;;  %v9373_v52 = vadd.f32 %v9123_v14, %v17295_v40  ;;  %10245 = vmatprep.subr.bf16.mxu1 %v17204_v30  ;;  %v9256_v3 = vpop.f32.mrf.mxu0  ;;  %v9469_v18 = vadd.f32 %v16964_v34, %v9379_v23  ;;  %v10391_v40 = vld [vmem:[%s17467_s7] ss:$20 sps:$4 sm:$0xff]   ;;  %v19469_v23 = vld [vmem:[#allocation213_spill] sm:$0xff] }
 0x66a   :  { %v9125_v63 = vpop.f32.mrf.mxu1  ;;  %v9418_v25 = vadd.f32 %v9256_v3, %v17306_v28  ;;  %v9622_v31 = vpack.c.bf16 %v9583_v39, %v9544_v9  ;;  %v9538_v33 = vmax.f32 %v9460_v48, 0.0  ;;  %v9470_v30 = vadd.f32 %v16964_v34, %v9380_v42  ;;  %v10396_v28 = vld [vmem:[%s17467_s7 + $0x2c] ss:$20 sps:$4 sm:$0x7f]  }
 0x66b   :  { %v9577_v11 = vmax.f32 %v9499_v45, 0.0  ;;  %v9374_v19 = vadd.f32 %v9125_v63, %v8257_v13  ;;  %v9258_v59 = vpop.f32.mrf.mxu0  ;;  %v17359_v41 = vpack.c.bf16 %v9576_v17, %v9537_v5  ;;  %v19467_v13 = vld [vmem:[#allocation210_spill] sm:$0xff]  ;;  %v9463_v15 = vadd.f32 %v16964_v34, %v9373_v52  ;;  %v19473_v3 = vld [vmem:[#allocation15_spill] sm:$0xff] }
 0x66c   :  { %v9127_v29 = vpop.f32.mrf.mxu1  ;;  %v9508_v4 = vadd.f32 %v16993_v26, %v9418_v25  ;;  %10246 = vmatpush3.bf16.msra.mxu1 %v17127_v2  ;;  %v9419_v35 = vadd.f32 %v9258_v59, %v8390_v44  ;;  %10259 = vmatprep.subr.bf16.mxu0 %v9622_v31  ;;  %v8341_v56 = vadd.f32 %v19468_v32, %v19467_v13  ;;  %v9547_v24 = vmax.f32 %v9469_v18, 0.0  ;;  %v10394_v59 = vld [vmem:[%s17467_s7 + $0x28] ss:$20 sps:$4 sm:$0x7f]  }
 0x66d   :  { %v9412_v61 = vadd.f32 %v9127_v29, %v8259_v1  ;;  %v9338_v50 = vpop.f32.mrf.mxu0  ;;  %10260 = vmatpush3.bf16.msra.mxu0 %v17278_v54  ;;  %v17371_v8 = vpack.c.bf16 %v9577_v11, %v9538_v33  ;;  %v8473_v51 = vadd.f32 %v19470_v12, %v19469_v23  ;;  %v9464_v48 = vadd.f32 %v16964_v34, %v9374_v19  ;;  %v19471_v54 = vld [vmem:[#allocation177_spill] sm:$0xff]  ;;  %v10403_v29 = vld [vmem:[%s17467_s7 + $0x10] ss:$20 sps:$4 sm:$0xff]  }
 0x66e   :  { %v9586_v49 = vmax.f32 %v9508_v4, 0.0  ;;  %v9129_v2 = vpop.f32.mrf.mxu1  ;;  %v9509_v44 = vadd.f32 %v16993_v26, %v9419_v35  ;;  %v9383_v37 = vadd.f32 %v9338_v50, %v8470_v16  ;;  %10261 = vmatprep.subr.bf16.mxu0 %v9621_v22  ;;  %v8343_v9 = vadd.f32 %v19472_v55, %v19471_v54  ;;  %v19475_v4 = vld [vmem:[#allocation181_spill] sm:$0xff] }
 0x66f   :  { %v9502_v10 = vadd.f32 %v16993_v26, %v9412_v61  ;;  %v9413_v1 = vadd.f32 %v9129_v2, %v8261_v53  ;;  %9756 = vmatmul.mubr.bf16.vlgmr.msra.gmra.mxu1 %v10391_v40  ;;  %v10349_v43 = vpop.f32.mrf.mxu0  ;;  %v9548_v39 = vmax.f32 %v9470_v30, 0.0  ;;  %v9541_v16 = vmax.f32 %v9463_v15, 0.0 }
 0x670   :  { %v9587_v14 = vmax.f32 %v9509_v44, 0.0  ;;  %v9209_v42 = vpop.f32.mrf.mxu1  ;;  %9763 = vmatprep.mubr.bf16.mxu1 %v10396_v28  ;;  %v17380_v5 = vpack.c.bf16 %v9586_v49, %v9547_v24  ;;  %v8345_v6 = vadd.f32 %v19474_v20, %v19473_v3  ;;  %v9473_v53 = vadd.f32 %v16964_v34, %v9383_v37  ;;  %v19477_v37 = vld [vmem:[#allocation104_spill] sm:$0xff]  ;;  %v19479_v43 = vld [vmem:[#allocation58_spill] sm:$0xff] }
 0x671   :  { %v9580_v22 = vmax.f32 %v9502_v10, 0.0  ;;  %v9503_v17 = vadd.f32 %v16993_v26, %v9413_v1  ;;  %v9377_v45 = vadd.f32 %v9209_v42, %v8341_v56  ;;  %v9341_v52 = vpop.f32.mrf.mxu0  ;;  %10262 = vmatpush3.bf16.msra.mxu0 %v17268_v21  ;;  %v9542_v31 = vmax.f32 %v9464_v48, 0.0  ;;  %v19476_v56 = vld [vmem:[#allocation212_spill] sm:$0xff]  ;;  %v19478_v1 = vld [vmem:[#allocation182_spill] sm:$0xff]  ;;  %v19480_v42 = vld [vmem:[#allocation133_spill] sm:$0xff] }
 0x672   :  { %v9211_v18 = vpop.f32.mrf.mxu1  ;;  %v9422_v63 = vadd.f32 %v9341_v52, %v8473_v51  ;;  %v17387_v25 = vpack.c.bf16 %v9587_v14, %v9548_v39  ;;  %v8347_v35 = vadd.f32 %v16934_v7, %v19475_v4  ;;  %v8427_v15 = vadd.f32 %v16962_v46, %v19476_v56  ;;  %v9659_v56 = vpop.permute.xlu0 %9658 }
 0x673   :  { %v9581_v33 = vmax.f32 %v9503_v17, 0.0  ;;  %v9378_v11 = vadd.f32 %v9211_v18, %v8343_v9  ;;  %v10350_v19 = vpop.f32.mrf.mxu0  ;;  %v9619_v40 = vpack.c.bf16 %v9580_v22, %v9541_v16  ;;  %v9467_v28 = vadd.f32 %v16964_v34, %v9377_v45  ;;  %v19481_v16 = vld [vmem:[#allocation220_spill] sm:$0xff] }
 0x674   :  { %v9213_v30 = vpop.f32.mrf.mxu1  ;;  %v9512_v21 = vadd.f32 %v16993_v26, %v9422_v63  ;;  %v9551_v61 = vmax.f32 %v9473_v53, 0.0  ;;  %v8429_v7 = vadd.f32 %v16991_v47, %v19477_v37  ;;  %v8431_v54 = vadd.f32 %v19479_v43, %v19478_v1 }
 0x675   :  { %v9416_v13 = vadd.f32 %v9213_v30, %v8345_v6  ;;  %v9620_v32 = vpack.c.bf16 %v9581_v33, %v9542_v31  ;;  %v9468_v49 = vadd.f32 %v16964_v34, %v9378_v11  ;;  %v9545_v46 = vmax.f32 %v9467_v28, 0.0 }
 0x676   :  { %v9590_v50 = vmax.f32 %v9512_v21, 0.0  ;;  %v9215_v24 = vpop.f32.mrf.mxu1  ;;  %v8433_v22 = vadd.f32 %v19481_v16, %v19480_v42 }
 0x677   :  { %v9506_v2 = vadd.f32 %v16993_v26, %v9416_v13  ;;  %v9417_v44 = vadd.f32 %v9215_v24, %v8347_v35  ;;  %9764 = vmatmul.mubr.bf16.gmra.mxu1 %v10394_v59  ;;  %10263 = vmatprep.subr.bf16.mxu0 %v9620_v32  ;;  %v9546_v9 = vmax.f32 %v9468_v49, 0.0  ;;  %v9664_v13 = vpop.permute.xlu1 %9663 }
 0x678   :  { %v9295_v23 = vpop.f32.mrf.mxu1  ;;  %10264 = vmatpush3.bf16.msra.mxu0 %v17335_v57  ;;  %v9629_v12 = vpack.c.bf16 %v9590_v50, %v9551_v61  ;;  %10365 = vmatprep.mubr.msk.bf16.mxu1 %vm9716_vm3, %v10403_v29 }
 0x679   :  { %v9584_v51 = vmax.f32 %v9506_v2, 0.0  ;;  %v9507_v48 = vadd.f32 %v16993_v26, %v9417_v44  ;;  %v9381_v10 = vadd.f32 %v9295_v23, %v8427_v15  ;;  %10265 = vmatprep.subr.bf16.mxu0 %v9619_v40 }
 0x67a   :  { %v9297_v55 = vpop.f32.mrf.mxu1  ;;  %10351 = vmatprep.subr.bf16.mxu1 %v9629_v12 }
 0x67b   :  { %v9585_v39 = vmax.f32 %v9507_v48, 0.0  ;;  %v9382_v47 = vadd.f32 %v9297_v55, %v8429_v7  ;;  %10352 = vmatpush3.bf16.msra.mxu1 %v9629_v12  ;;  %v9623_v14 = vpack.c.bf16 %v9584_v51, %v9545_v46  ;;  %v9471_v17 = vadd.f32 %v16964_v34, %v9381_v10  ;;  %v9654_v46 = vpop.permute.xlu1 %9653  ;;  %v9649_v10 = vpop.permute.xlu0 %9648 }
 0x67c   :  { %v9299_v57 = vpop.f32.mrf.mxu1  ;;  %10266 = vmatpush3.bf16.msra.mxu0 %v17324_v60 }
 0x67d   :  { %v9420_v45 = vadd.f32 %v9299_v57, %v8431_v54  ;;  %10267 = vmatprep.subr.bf16.mxu0 %v17322_v38  ;;  %v9624_v52 = vpack.c.bf16 %v9585_v39, %v9546_v9  ;;  %v9472_v20 = vadd.f32 %v16964_v34, %v9382_v47  ;;  %v9549_v18 = vmax.f32 %v9471_v17, 0.0  ;;  %v10397_v34 = vld [vmem:[%s17467_s7 + $0x8] ss:$20 sps:$4 sm:$0xff]  }
 0x67e   :  { %v9301_v3 = vpop.f32.mrf.mxu1 }
 0x67f   :  { %v9510_v6 = vadd.f32 %v16993_v26, %v9420_v45  ;;  %v9421_v53 = vadd.f32 %v9301_v3, %v8433_v22  ;;  %v9550_v31 = vmax.f32 %v9472_v20, 0.0 }
 0x680   :  { %10268 = vmatpush3.bf16.msra.mxu0 %v17241_v36  ;;  %v10400_v36 = vld [vmem:[%s17467_s7 + $0x30] ss:$20 sps:$4 sm:$0x7f]  }
 0x681   :  { %v9588_v63 = vmax.f32 %v9510_v6, 0.0  ;;  %v9511_v60 = vadd.f32 %v16993_v26, %v9421_v53  ;;  %10269 = vmatprep.subr.bf16.mxu0 %v17313_v0  ;;  %v10402_v26 = vld [vmem:[%s17467_s7 + $0x34] ss:$20 sps:$4 sm:$0x7f]   ;;  %v10405_v53 = vld [vmem:[%s17468_s9] sm:$0xff]  }
 0x683   :  { %v9589_v33 = vmax.f32 %v9511_v60, 0.0  ;;  %v9627_v11 = vpack.c.bf16 %v9588_v63, %v9549_v18  ;;  %v9888_v60 = vpop.permute.xlu0 %9887 }
 0x684   :  { %10270 = vmatpush3.bf16.msra.mxu0 %v17231_v27  ;;  %v19482_v27 = vmov 0.0  }
 0x685   :  { %10271 = vmatprep.subr.bf16.mxu0 %v17371_v8  ;;  %v9628_v38 = vpack.c.bf16 %v9589_v33, %v9550_v31  ;;  %v9883_v33 = vpop.permute.xlu1 %9882 }
 0x687   :  { %10353 = vmatprep.subr.bf16.mxu1 %v9628_v38 }
 0x688   :  { %10272 = vmatpush3.bf16.msra.mxu0 %v17297_v58  ;;  %10354 = vmatpush3.bf16.msra.mxu1 %v9628_v38 }
 0x689   :  { %10273 = vmatprep.subr.bf16.mxu0 %v17359_v41  ;;  %10355 = vmatprep.subr.bf16.mxu1 %v9627_v11 }
 0x68c   :  { %10274 = vmatpush3.bf16.msra.mxu0 %v17282_v62  ;;  %10356 = vmatpush3.bf16.msra.mxu1 %v9627_v11  ;;  %v10404_v62 = vld [vmem:[%s17467_s7 + $0x38] ss:$20 sps:$4 sm:$0x7f]  }
 0x68d   :  { %10357 = vmatprep.subr.bf16.mxu1 %v17387_v25  ;;  %10369 = vmatprep.subr.bf16.mxu0 %v19482_v27 }
 0x68f   :  { %9805 = vmatmul.mubr.bf16.vlgmr.msra.gmra.mxu0 %v10397_v34 }
 0x690   :  { %10358 = vmatpush3.bf16.msra.mxu1 %v17387_v25  ;;  %9812 = vmatprep.mubr.bf16.mxu0 %v10402_v26 }
 0x691   :  { %10359 = vmatprep.subr.bf16.mxu1 %v17380_v5 }
 0x694   :  { %10360 = vmatpush3.bf16.msra.mxu1 %v17380_v5 }
 0x695   :  { %10361 = vmatprep.subr.bf16.mxu1 %v9624_v52 }
 0x697   :  { %9813 = vmatmul.mubr.bf16.gmra.mxu0 %v10400_v36 }
 0x698   :  { %10362 = vmatpush3.bf16.msra.mxu1 %v9624_v52  ;;  %10373 = vmatprep.mubr.msk.bf16.mxu0 %vm10427_vm2, %v19482_v27 }
 0x699   :  { %10363 = vmatprep.subr.bf16.mxu1 %v9623_v14 }
 0x69c   :  { %10364 = vmatpush3.bf16.msra.mxu1 %v9623_v14 }
 0x69f   :  { %10366 = vmatmul.mubr.msk.bf16.vlgmr.msra.gmra.mxu1 %vm9716_vm3, %v10404_v62 }
 0x72f   :  { %v10247_v58 = vpop.f32.mrf.mxu1 }
 0x731   :  { %v10248_v0 = vpop.f32.mrf.mxu1 }
 0x732   :  { %v10249_v44 = vadd.f32 %v10248_v0, %v10247_v58 }
 0x733   :  { %v10250_v41 = vpop.f32.mrf.mxu1 }
 0x734   :  { %v9758_v55 = vadd.f32 %v10249_v44, %v9649_v10 }
 0x735   :  { %v10251_v8 = vpop.f32.mrf.mxu1 }
 0x736   :  { %v10252_v24 = vadd.f32 %v10251_v8, %v10250_v41 }
 0x737   :  { %v10253_v25 = vpop.f32.mrf.mxu1 }
 0x738   :  { %v9761_v1 = vadd.f32 %v10252_v24, %v9654_v46 }
 0x739   :  { %v10254_v19 = vpop.f32.mrf.mxu1 }
 0x73a   :  { %v10255_v28 = vadd.f32 %v10254_v19, %v10253_v25 }
 0x73b   :  { %v10256_v30 = vpop.f32.mrf.mxu1 }
 0x73c   :  { %v9766_v49 = vadd.f32 %v10255_v28, %v9659_v56 }
 0x73d   :  { %v10257_v4 = vpop.f32.mrf.mxu1 }
 0x73e   :  { %v10258_v15 = vadd.f32 %v10257_v4, %v10256_v30 }
 0x740   :  { %v9769_v7 = vadd.f32 %v10258_v15, %v9664_v13 }
 0x74f   :  { %v10275_v5 = vpop.f32.mrf.mxu0 }
 0x751   :  { %v10276_v59 = vpop.f32.mrf.mxu0 }
 0x752   :  { %v10277_v51 = vadd.f32 %v10276_v59, %v10275_v5 }
 0x753   :  { %v10278_v40 = vpop.f32.mrf.mxu0 }
 0x754   :  { %v9807_v14 = vadd.f32 %v10277_v51, %v9758_v55 }
 0x755   :  { %v10279_v21 = vpop.f32.mrf.mxu0 }
 0x756   :  { %v10280_v23 = vadd.f32 %v10279_v21, %v10278_v40 }
 0x757   :  { %v10281_v29 = vpop.f32.mrf.mxu0 }
 0x758   :  { %v9810_v47 = vadd.f32 %v10280_v23, %v9761_v1 }
 0x759   :  { %v10282_v35 = vpop.f32.mrf.mxu0 }
 0x75a   :  { %v10283_v61 = vadd.f32 %v10282_v35, %v10281_v29 }
 0x75b   :  { %v10284_v32 = vpop.f32.mrf.mxu0 }
 0x75c   :  { %v9815_v12 = vadd.f32 %v10283_v61, %v9766_v49 }
 0x75d   :  { %v10285_v50 = vpop.f32.mrf.mxu0 }
 0x75e   :  { %v10286_v2 = vadd.f32 %v10285_v50, %v10284_v32 }
 0x75f   :  { %v10367_v37 = vpop.f32.mrf.mxu1 }
 0x760   :  { %v9864_v43 = vadd.f32 %v10367_v37, %v9815_v12  ;;  %v9818_v54 = vadd.f32 %v10286_v2, %v9769_v7 }
 0x761   :  { %v9855_v48 = vpop.f32.mrf.mxu1 }
 0x762   :  { %v9872_v42 = vmax.f32 %v9864_v43, 0.0  ;;  %v9856_v17 = vadd.f32 %v9855_v48, %v9807_v14 }
 0x763   :  { %v10368_v9 = vpop.f32.mrf.mxu1 }
 0x764   :  { %v9867_v39 = vadd.f32 %v10368_v9, %v9818_v54  ;;  %v9870_v20 = vmax.f32 %v9856_v17, 0.0 }
 0x765   :  { %v9858_v57 = vpop.f32.mrf.mxu1 }
 0x766   :  { %v9873_v16 = vmax.f32 %v9867_v39, 0.0  ;;  %v9859_v22 = vadd.f32 %v9858_v57, %v9810_v47 }
 0x768   :  { %v9875_v45 = vpack.c.bf16 %v9873_v16, %v9872_v42  ;;  %v9871_v52 = vmax.f32 %v9859_v22, 0.0 }
 0x76a   :  { %v9901_v3 = vsel %vm9899_vm4, %v9875_v45, 0  ;;  %v9874_v6 = vpack.c.bf16 %v9871_v52, %v9870_v20 }
 0x76b   :  { %10370 = vmatpush3.bf16.msra.mxu0 %v9901_v3 }
 0x76c   :  { %10371 = vmatprep.subr.bf16.mxu0 %v19482_v27 }
 0x76f   :  { %10372 = vmatpush3.bf16.msra.mxu0 %v9874_v6 }
 0x772   :  { %10374 = vmatmul.mubr.msk.bf16.vlgmr.msra.gmra.mxu0 %vm9895_vm5, %v10405_v53 }
 0x832   :  { %v9937_v18 = vpop.f32.mrf.mxu0 }
 0x833   :  { %v9938_v38 = vadd.f32 %v9937_v18, %v9883_v33 }
 0x834   :  { %v10375_v63 = vpop.f32.mrf.mxu0 }
 0x836   :  { %v9940_v31 = vpop.f32.mrf.mxu0 }
 0x837   :  { %v9941_v11 = vadd.f32 %v9940_v31, %v9888_v60 }
 0x838   :  { %v10376_v34 = vpop.f32.mrf.mxu0 }
 0x839   :  { %v9944_v26 = vsel %vm9899_vm4, %v9941_v11, -inf }
 0x83a   :  { %v9945_v36 = vmax.f32 %v9938_v38, %v9944_v26 }
 0x83c   :  { %v9946_v27 = vrot.slane %v9945_v36, 4 }
 0x83e   :  { %v9947_v62 = vmax.f32 %v9945_v36, %v9946_v27 }
 0x840   :  { %v9948_v58 = vrot.slane %v9947_v62, 2 }
 0x842   :  { %v9949_v0 = vmax.f32 %v9947_v62, %v9948_v58 }
 0x844   :  { %v9950_v41 = vrot.slane %v9949_v0, 1 }
 0x846   :  { %v9951_v8 = vmax.f32 %v9949_v0, %v9950_v41 }
 0x848   :  { %v9952_v25 = vsub.f32 %v9938_v38, %v9951_v8  ;;  %v9953_v5 = vsub.f32 %v9941_v11, %v9951_v8 }
 0x84a   :  { %v9954_v19 = vmul.f32 1.442695, %v9952_v25  ;;  %v9956_v59 = vmul.f32 1.442695, %v9953_v5 }
 0x84c   :  { %10406 = vpow2.f32 %v9954_v19 }
 0x84d   :  { %10408 = vpow2.f32 %v9956_v59 }
 0x859   :  { %v10407_v40 = vpop.eup %10406 }
 0x85a   :  { %v10409_v30 = vpop.eup %10408 }
 0x85b   :  { %v9958_v21 = vsel %vm9899_vm4, %v10409_v30, 0.0 }
 0x85c   :  { %v9959_v29 = vadd.f32 %v10407_v40, %v9958_v21 }
 0x85e   :  { %v9960_v4 = vrot.slane %v9959_v29, 4 }
 0x860   :  { %v9961_v35 = vadd.f32 %v9960_v4, %v9959_v29 }
 0x862   :  { %v9962_v28 = vrot.slane %v9961_v35, 2 }
 0x864   :  { %v9963_v13 = vadd.f32 %v9962_v28, %v9961_v35 }
 0x866   :  { %v9964_v32 = vrot.slane %v9963_v13, 1 }
 0x868   :  { %v9965_v56 = vadd.f32 %v9964_v32, %v9963_v13 }
 0x86a   :  { %10410 = vlog2.f32 %v9965_v56 }
 0x877   :  { %v10411_v15 = vpop.eup %10410 }
 0x878   :  { %v9967_v61 = vmul.f32 0.6931472, %v10411_v15 }
 0x87a   :  { %v9968_v50 = vadd.f32 %v9967_v61, %v9951_v8 }
 0x87c   :  { %v9969_v24 = vsub.f32 %v9938_v38, %v9968_v50  ;;  %v9970_v49 = vsub.f32 %v9941_v11, %v9968_v50 }
 0x87e   :  { %9971 = vst [vmem:[%s17469_s11] sm:$0xff] %v9969_v24  ;;  %9972 = vst [vmem:[%s17469_s11 + $0x8] sm:$0x7f] %v9970_v49 }

</bundles_post_ra>
